<compile_context>
chip_gen: v5e
topology: v5e:2x2
jax: 0.10.0
libtpu: 0.0.40
codegen_flags: <defaults>
</compile_context>

<pallas_src>
import jax
import jax.numpy as jnp
from jax.experimental import pallas as pl
from jax.experimental.pallas import tpu as pltpu

COUT = 2144
COUT_PAD = 2176  # next multiple of 128 -> lane-dense output stores


# ---------------------------------------------------------------------------
# Pallas kernel: the whole Inception-ResNet-C block for one batch image
# ---------------------------------------------------------------------------

def _inception_resnet_c_kernel(
        x_ref,                                   # (HW, Cin) bf16
        s_wl_ref, s_wr_ref, s_hu_ref, s_hd_ref,  # (HW, HW) bf16 shift/selection mats
        w_b1_ref, sc_b1_ref, sh_b1_ref,          # branch1x1
        w_b31_ref, sc_b31_ref, sh_b31_ref,       # branch3x3 1x1
        w_b32_ref, sc_b32_ref, sh_b32_ref,       # branch3x3 (1,3) taps (3,192,224)
        w_b33_ref, sc_b33_ref, sh_b33_ref,       # branch3x3 (3,1) taps (3,224,256)
        w_sc_ref, b_sc_ref,                      # shortcut 1x1 (+bias), cout padded
        w_red1_ref, w_red3_ref, b_red_ref,       # reduction 1x1 split over cat halves
        sc_bn_ref, sh_bn_ref,                    # final folded BN
        o_ref):                                  # (HW, COUT_PAD) f32
    f32 = jnp.float32
    bf16 = jnp.bfloat16

    def bn_relu(y, scale_ref, shift_ref):
        return jnp.maximum(y * scale_ref[...] + shift_ref[...], 0.0)

    x = x_ref[...]                                                     # (HW, Cin)

    # ----- branch1x1: 1x1 conv + BN + ReLU --------------------------------
    b1 = bn_relu(jnp.dot(x, w_b1_ref[...], preferred_element_type=f32),
                 sc_b1_ref, sh_b1_ref)                                 # (HW,192) f32

    # ----- branch3x3[0]: 1x1 conv + BN + ReLU -----------------------------
    t1 = bn_relu(jnp.dot(x, w_b31_ref[...], preferred_element_type=f32),
                 sc_b31_ref, sh_b31_ref).astype(bf16)                  # (HW,192)

    # ----- branch3x3[1]: (1,3) conv, pad (0,1) ----------------------------
    # y[h,w] = t1[h,w-1]@W0 + t1[h,w]@W1 + t1[h,w+1]@W2 (zero outside row).
    # Shifted copies via 0/1 selection matrices (exact in bf16).
    t1_l = jnp.dot(s_wl_ref[...], t1, preferred_element_type=f32).astype(bf16)
    t1_r = jnp.dot(s_wr_ref[...], t1, preferred_element_type=f32).astype(bf16)
    y13 = (jnp.dot(t1_l, w_b32_ref[0], preferred_element_type=f32)
           + jnp.dot(t1, w_b32_ref[1], preferred_element_type=f32)
           + jnp.dot(t1_r, w_b32_ref[2], preferred_element_type=f32))
    t2 = bn_relu(y13, sc_b32_ref, sh_b32_ref).astype(bf16)             # (HW,224)

    # ----- branch3x3[2]: (3,1) conv, pad (1,0) ----------------------------
    t2_u = jnp.dot(s_hu_ref[...], t2, preferred_element_type=f32).astype(bf16)
    t2_d = jnp.dot(s_hd_ref[...], t2, preferred_element_type=f32).astype(bf16)
    y31 = (jnp.dot(t2_u, w_b33_ref[0], preferred_element_type=f32)
           + jnp.dot(t2, w_b33_ref[1], preferred_element_type=f32)
           + jnp.dot(t2_d, w_b33_ref[2], preferred_element_type=f32))
    b3 = bn_relu(y31, sc_b33_ref, sh_b33_ref)                          # (HW,256) f32

    # ----- shortcut conv (+bias), reduction conv (+bias) * 0.1, BN, ReLU --
    short = jnp.dot(x, w_sc_ref[...], preferred_element_type=f32) + b_sc_ref[...]
    red = (jnp.dot(b1.astype(bf16), w_red1_ref[...], preferred_element_type=f32)
           + jnp.dot(b3.astype(bf16), w_red3_ref[...], preferred_element_type=f32)
           + b_red_ref[...])
    y = short + 0.1 * red
    o_ref[...] = jnp.maximum(y * sc_bn_ref[...] + sh_bn_ref[...], 0.0)


# ---------------------------------------------------------------------------
# Plain-JAX glue: weight layout, BN folding, shift matrices, parameter init
# ---------------------------------------------------------------------------

def conv1x1_to_mat(w):
    # (Cout, Cin, 1, 1) -> (Cin, Cout)
    return jnp.transpose(w[:, :, 0, 0], (1, 0))


def conv1x3_to_taps(w):
    # (Cout, Cin, 1, 3) -> (3, Cin, Cout); tap kw multiplies input at w + kw - 1
    return jnp.transpose(w[:, :, 0, :], (2, 1, 0))


def conv3x1_to_taps(w):
    # (Cout, Cin, 3, 1) -> (3, Cin, Cout); tap kh multiplies input at h + kh - 1
    return jnp.transpose(w[:, :, :, 0], (2, 1, 0))


def fold_bn(gamma, beta, mean, var, eps=1e-5):
    scale = gamma / jnp.sqrt(var + eps)
    shift = beta - mean * scale
    return scale[None, :].astype(jnp.float32), shift[None, :].astype(jnp.float32)


def _pad_cout(a):
    pad = [(0, 0)] * (a.ndim - 1) + [(0, COUT_PAD - COUT)]
    return jnp.pad(a, pad)


def _shift_matrices(h, w, dtype):
    """0/1 selection matrices implementing +-1 spatial shifts (with zero padding)
    on the flattened (H*W) row index.  Tiny at the 8x8 feature maps this block
    operates on."""
    hw = h * w
    idx = jnp.arange(hw, dtype=jnp.int32)
    row = idx[:, None]
    col = idx[None, :]
    s_wl = ((col == row - 1) & (row % w != 0)).astype(dtype)       # source w-1
    s_wr = ((col == row + 1) & (row % w != w - 1)).astype(dtype)   # source w+1
    s_hu = (col == row - w).astype(dtype)                          # source h-1
    s_hd = (col == row + w).astype(dtype)                          # source h+1
    return s_wl, s_wr, s_hu, s_hd


def _full_spec(shape):
    zeros = (0,) * len(shape)
    return pl.BlockSpec(shape, lambda b: zeros)


def make_params(key, in_channels):
    ks = iter(jax.random.split(key, 32))

    def conv_w(cout, cin, kh, kw):
        fan_in = cin * kh * kw
        return jax.random.normal(next(ks), (cout, cin, kh, kw),
                                 jnp.float32) * (1.0 / jnp.sqrt(fan_in))

    def bn_params(c):
        gamma = 1.0 + 0.1 * jax.random.normal(next(ks), (c,), jnp.float32)
        beta = 0.1 * jax.random.normal(next(ks), (c,), jnp.float32)
        mean = 0.05 * jax.random.normal(next(ks), (c,), jnp.float32)
        var = 0.5 + jax.random.uniform(next(ks), (c,), jnp.float32)
        return (gamma, beta, mean, var)

    p = {}
    p['b1_w'] = conv_w(192, in_channels, 1, 1)
    p['b1_bn'] = bn_params(192)
    p['b3_w1'] = conv_w(192, in_channels, 1, 1)
    p['b3_bn1'] = bn_params(192)
    p['b3_w2'] = conv_w(224, 192, 1, 3)
    p['b3_bn2'] = bn_params(224)
    p['b3_w3'] = conv_w(256, 224, 3, 1)
    p['b3_bn3'] = bn_params(256)
    p['red_w'] = conv_w(COUT, 448, 1, 1)
    p['red_b'] = 0.1 * jax.random.normal(next(ks), (COUT,), jnp.float32)
    p['sc_w'] = conv_w(COUT, in_channels, 1, 1)
    p['sc_b'] = 0.1 * jax.random.normal(next(ks), (COUT,), jnp.float32)
    p['bn'] = bn_params(COUT)
    return p


# ---------------------------------------------------------------------------
# Forward pass
# ---------------------------------------------------------------------------

@jax.jit
def inception_resnet_c_forward(x_nchw, params):
    x = jnp.transpose(x_nchw, (0, 2, 3, 1))                   # -> NHWC
    n, h, w, c = x.shape
    hw = h * w
    bf16 = jnp.bfloat16
    xb = x.reshape(n * hw, c).astype(bf16)

    s_wl, s_wr, s_hu, s_hd = _shift_matrices(h, w, bf16)

    # branch1x1
    w_b1 = conv1x1_to_mat(params['b1_w']).astype(bf16)
    sc_b1, sh_b1 = fold_bn(*params['b1_bn'])
    # branch3x3
    w_b31 = conv1x1_to_mat(params['b3_w1']).astype(bf16)
    sc_b31, sh_b31 = fold_bn(*params['b3_bn1'])
    w_b32 = conv1x3_to_taps(params['b3_w2']).astype(bf16)     # (3,192,224)
    sc_b32, sh_b32 = fold_bn(*params['b3_bn2'])
    w_b33 = conv3x1_to_taps(params['b3_w3']).astype(bf16)     # (3,224,256)
    sc_b33, sh_b33 = fold_bn(*params['b3_bn3'])
    # shortcut / reduction (cout padded 2144 -> 2176 for lane-dense stores)
    w_sc = _pad_cout(conv1x1_to_mat(params['sc_w'])).astype(bf16)
    b_sc = _pad_cout(params['sc_b'][None, :]).astype(jnp.float32)
    w_red = conv1x1_to_mat(params['red_w'])                   # (448, 2144)
    w_red1 = _pad_cout(w_red[:192, :]).astype(bf16)           # b1 slice of the cat
    w_red3 = _pad_cout(w_red[192:, :]).astype(bf16)           # b3 slice of the cat
    b_red = _pad_cout(params['red_b'][None, :]).astype(jnp.float32)
    sc_bn, sh_bn = fold_bn(*params['bn'])
    sc_bn = _pad_cout(sc_bn)
    sh_bn = _pad_cout(sh_bn)

    consts = (s_wl, s_wr, s_hu, s_hd,
              w_b1, sc_b1, sh_b1,
              w_b31, sc_b31, sh_b31,
              w_b32, sc_b32, sh_b32,
              w_b33, sc_b33, sh_b33,
              w_sc, b_sc,
              w_red1, w_red3, b_red,
              sc_bn, sh_bn)

    out = pl.pallas_call(
        _inception_resnet_c_kernel,
        out_shape=jax.ShapeDtypeStruct((n * hw, COUT_PAD), jnp.float32),
        grid_spec=pltpu.PrefetchScalarGridSpec(
            num_scalar_prefetch=0,
            grid=(n,),
            in_specs=[pl.BlockSpec((hw, c), lambda b: (b, 0))]
                     + [_full_spec(a.shape) for a in consts],
            out_specs=pl.BlockSpec((hw, COUT_PAD), lambda b: (b, 0)),
        ),
        compiler_params=pltpu.CompilerParams(
            dimension_semantics=("parallel",),
            vmem_limit_bytes=48 * 1024 * 1024),
    )(xb, *consts)

    out = out[:, :COUT].reshape(n, h, w, COUT)
    return jnp.transpose(out, (0, 3, 1, 2))                   # -> NCHW


# ---------------------------------------------------------------------------
# Pure-JAX f32 reference (im2col) for a numerical cross-check
# ---------------------------------------------------------------------------

def _reference_forward(x_nchw, params):
    x = jnp.transpose(x_nchw, (0, 2, 3, 1)).astype(jnp.float32)
    n, h, w, c = x.shape
    m = n * h * w

    def conv_w_to_mat(wt):
        co, ci, kh, kw = wt.shape
        return jnp.transpose(wt, (2, 3, 1, 0)).reshape(kh * kw * ci, co)

    def im2col(t, kh, kw, ph, pw):
        tp = jnp.pad(t, ((0, 0), (ph, ph), (pw, pw), (0, 0)))
        cols = []
        for dh in range(kh):
            for dw in range(kw):
                cols.append(tp[:, dh:dh + h, dw:dw + w, :])
        return jnp.concatenate(cols, axis=-1).reshape(m, kh * kw * t.shape[-1])

    def basic(t, wt, bn, kh, kw, ph, pw):
        y = im2col(t, kh, kw, ph, pw) @ conv_w_to_mat(wt)
        s, sh = fold_bn(*bn)
        return jnp.maximum(y * s + sh, 0.0).reshape(n, h, w, -1)

    xm = x.reshape(m, c)
    b1 = basic(x, params['b1_w'], params['b1_bn'], 1, 1, 0, 0)
    t1 = basic(x, params['b3_w1'], params['b3_bn1'], 1, 1, 0, 0)
    t2 = basic(t1, params['b3_w2'], params['b3_bn2'], 1, 3, 0, 1)
    b3 = basic(t2, params['b3_w3'], params['b3_bn3'], 3, 1, 1, 0)
    cat = jnp.concatenate([b1, b3], axis=-1).reshape(m, 448)
    short = xm @ conv_w_to_mat(params['sc_w']) + params['sc_b'][None, :]
    red = cat @ conv_w_to_mat(params['red_w']) + params['red_b'][None, :]
    s, sh = fold_bn(*params['bn'])
    y = jnp.maximum((short + 0.1 * red) * s + sh, 0.0)
    return jnp.transpose(y.reshape(n, h, w, COUT), (0, 3, 1, 2))


if __name__ == "__main__":
    key = jax.random.PRNGKey(0)
    k_x, k_p = jax.random.split(key)

    # Small NCHW input; 8x8 spatial matches the real Inception-ResNet-C stage.
    N, C_IN, H, W = 2, 32, 8, 8
    x = jax.random.normal(k_x, (N, C_IN, H, W), jnp.float32)
    params = make_params(k_p, C_IN)

    y = inception_resnet_c_forward(x, params)
    jax.block_until_ready(y)

    assert y.shape == (N, COUT, H, W), y.shape
    assert bool(jnp.all(y >= 0.0)) and bool(jnp.all(jnp.isfinite(y)))

    # numerical cross-check against a pure-JAX f32 reference (kernel uses bf16 MXU
    # operands with f32 accumulation -> expect ~1e-2 level differences)
    y_ref = _reference_forward(x, params)
    max_ref = float(jnp.max(jnp.abs(y_ref)))
    max_err = float(jnp.max(jnp.abs(y - y_ref)))
    assert max_err <= 5e-2 * (1.0 + max_ref), (max_err, max_ref)

    print("KERNEL_OK")
</pallas_src>

<mosaic_0001>
module attributes {stable_mosaic.version = 11 : i64} {
  func.func @_inception_resnet_c_kernel(%arg0: i32, %arg1: memref<64x32xbf16, #tpu.memory_space<vmem>>, %arg2: memref<64x64xbf16, #tpu.memory_space<vmem>>, %arg3: memref<64x64xbf16, #tpu.memory_space<vmem>>, %arg4: memref<64x64xbf16, #tpu.memory_space<vmem>>, %arg5: memref<64x64xbf16, #tpu.memory_space<vmem>>, %arg6: memref<32x192xbf16, #tpu.memory_space<vmem>>, %arg7: memref<1x192xf32, #tpu.memory_space<vmem>>, %arg8: memref<1x192xf32, #tpu.memory_space<vmem>>, %arg9: memref<32x192xbf16, #tpu.memory_space<vmem>>, %arg10: memref<1x192xf32, #tpu.memory_space<vmem>>, %arg11: memref<1x192xf32, #tpu.memory_space<vmem>>, %arg12: memref<3x192x224xbf16, #tpu.memory_space<vmem>>, %arg13: memref<1x224xf32, #tpu.memory_space<vmem>>, %arg14: memref<1x224xf32, #tpu.memory_space<vmem>>, %arg15: memref<3x224x256xbf16, #tpu.memory_space<vmem>>, %arg16: memref<1x256xf32, #tpu.memory_space<vmem>>, %arg17: memref<1x256xf32, #tpu.memory_space<vmem>>, %arg18: memref<32x2176xbf16, #tpu.memory_space<vmem>>, %arg19: memref<1x2176xf32, #tpu.memory_space<vmem>>, %arg20: memref<192x2176xbf16, #tpu.memory_space<vmem>>, %arg21: memref<256x2176xbf16, #tpu.memory_space<vmem>>, %arg22: memref<1x2176xf32, #tpu.memory_space<vmem>>, %arg23: memref<1x2176xf32, #tpu.memory_space<vmem>>, %arg24: memref<1x2176xf32, #tpu.memory_space<vmem>>, %arg25: memref<64x2176xf32, #tpu.memory_space<vmem>>) attributes {dimension_semantics = [#tpu.dimension_semantics<parallel>], iteration_bounds = array<i64: 2>, scalar_prefetch = 0 : i64, scratch_operands = 0 : i64, tpu.core_type = #tpu.core_type<tc>, window_params = [{transform_indices = @transform_0, window_bounds = array<i64: 64, 32>}, {pipeline_mode = #tpu.pipeline_mode<synchronous>, transform_indices = @transform_1, window_bounds = array<i64: 64, 64>}, {pipeline_mode = #tpu.pipeline_mode<synchronous>, transform_indices = @transform_2, window_bounds = array<i64: 64, 64>}, {pipeline_mode = #tpu.pipeline_mode<synchronous>, transform_indices = @transform_3, window_bounds = array<i64: 64, 64>}, {pipeline_mode = #tpu.pipeline_mode<synchronous>, transform_indices = @transform_4, window_bounds = array<i64: 64, 64>}, {pipeline_mode = #tpu.pipeline_mode<synchronous>, transform_indices = @transform_5, window_bounds = array<i64: 32, 192>}, {pipeline_mode = #tpu.pipeline_mode<synchronous>, transform_indices = @transform_6, window_bounds = array<i64: 1, 192>}, {pipeline_mode = #tpu.pipeline_mode<synchronous>, transform_indices = @transform_7, window_bounds = array<i64: 1, 192>}, {pipeline_mode = #tpu.pipeline_mode<synchronous>, transform_indices = @transform_8, window_bounds = array<i64: 32, 192>}, {pipeline_mode = #tpu.pipeline_mode<synchronous>, transform_indices = @transform_9, window_bounds = array<i64: 1, 192>}, {pipeline_mode = #tpu.pipeline_mode<synchronous>, transform_indices = @transform_10, window_bounds = array<i64: 1, 192>}, {pipeline_mode = #tpu.pipeline_mode<synchronous>, transform_indices = @transform_11, window_bounds = array<i64: 3, 192, 224>}, {pipeline_mode = #tpu.pipeline_mode<synchronous>, transform_indices = @transform_12, window_bounds = array<i64: 1, 224>}, {pipeline_mode = #tpu.pipeline_mode<synchronous>, transform_indices = @transform_13, window_bounds = array<i64: 1, 224>}, {pipeline_mode = #tpu.pipeline_mode<synchronous>, transform_indices = @transform_14, window_bounds = array<i64: 3, 224, 256>}, {pipeline_mode = #tpu.pipeline_mode<synchronous>, transform_indices = @transform_15, window_bounds = array<i64: 1, 256>}, {pipeline_mode = #tpu.pipeline_mode<synchronous>, transform_indices = @transform_16, window_bounds = array<i64: 1, 256>}, {pipeline_mode = #tpu.pipeline_mode<synchronous>, transform_indices = @transform_17, window_bounds = array<i64: 32, 2176>}, {pipeline_mode = #tpu.pipeline_mode<synchronous>, transform_indices = @transform_18, window_bounds = array<i64: 1, 2176>}, {pipeline_mode = #tpu.pipeline_mode<synchronous>, transform_indices = @transform_19, window_bounds = array<i64: 192, 2176>}, {pipeline_mode = #tpu.pipeline_mode<synchronous>, transform_indices = @transform_20, window_bounds = array<i64: 256, 2176>}, {pipeline_mode = #tpu.pipeline_mode<synchronous>, transform_indices = @transform_21, window_bounds = array<i64: 1, 2176>}, {pipeline_mode = #tpu.pipeline_mode<synchronous>, transform_indices = @transform_22, window_bounds = array<i64: 1, 2176>}, {pipeline_mode = #tpu.pipeline_mode<synchronous>, transform_indices = @transform_23, window_bounds = array<i64: 1, 2176>}, {transform_indices = @transform_24, window_bounds = array<i64: 64, 2176>}]} {
    %c0 = arith.constant 0 : index
    %c0_0 = arith.constant 0 : index
    %0 = vector.load %arg1[%c0, %c0_0] : memref<64x32xbf16, #tpu.memory_space<vmem>>, vector<64x32xbf16>
    %c0_1 = arith.constant 0 : index
    %c0_2 = arith.constant 0 : index
    %1 = vector.load %arg6[%c0_1, %c0_2] : memref<32x192xbf16, #tpu.memory_space<vmem>>, vector<32x192xbf16>
    %cst = arith.constant dense<0.000000e+00> : vector<64x192xf32>
    %2 = tpu.matmul %0, %1, %cst {dimension_numbers = #tpu.dot_dimension_numbers<[1], [0], [0], [1], [0, 0, 1, 1], [], []>} : vector<64x32xbf16>, vector<32x192xbf16>, vector<64x192xf32> -> vector<64x192xf32>
    %c0_3 = arith.constant 0 : index
    %c0_4 = arith.constant 0 : index
    %3 = vector.load %arg7[%c0_3, %c0_4] : memref<1x192xf32, #tpu.memory_space<vmem>>, vector<1x192xf32>
    %4 = vector.broadcast %3 : vector<1x192xf32> to vector<64x192xf32>
    %5 = arith.mulf %2, %4 : vector<64x192xf32>
    %c0_5 = arith.constant 0 : index
    %c0_6 = arith.constant 0 : index
    %6 = vector.load %arg8[%c0_5, %c0_6] : memref<1x192xf32, #tpu.memory_space<vmem>>, vector<1x192xf32>
    %7 = vector.broadcast %6 : vector<1x192xf32> to vector<64x192xf32>
    %8 = arith.addf %5, %7 : vector<64x192xf32>
    %cst_7 = arith.constant 0.000000e+00 : f32
    %9 = vector.broadcast %cst_7 : f32 to vector<64x192xf32>
    %10 = arith.maximumf %8, %9 : vector<64x192xf32>
    %c0_8 = arith.constant 0 : index
    %c0_9 = arith.constant 0 : index
    %11 = vector.load %arg9[%c0_8, %c0_9] : memref<32x192xbf16, #tpu.memory_space<vmem>>, vector<32x192xbf16>
    %cst_10 = arith.constant dense<0.000000e+00> : vector<64x192xf32>
    %12 = tpu.matmul %0, %11, %cst_10 {dimension_numbers = #tpu.dot_dimension_numbers<[1], [0], [0], [1], [0, 0, 1, 1], [], []>} : vector<64x32xbf16>, vector<32x192xbf16>, vector<64x192xf32> -> vector<64x192xf32>
    %c0_11 = arith.constant 0 : index
    %c0_12 = arith.constant 0 : index
    %13 = vector.load %arg10[%c0_11, %c0_12] : memref<1x192xf32, #tpu.memory_space<vmem>>, vector<1x192xf32>
    %14 = vector.broadcast %13 : vector<1x192xf32> to vector<64x192xf32>
    %15 = arith.mulf %12, %14 : vector<64x192xf32>
    %c0_13 = arith.constant 0 : index
    %c0_14 = arith.constant 0 : index
    %16 = vector.load %arg11[%c0_13, %c0_14] : memref<1x192xf32, #tpu.memory_space<vmem>>, vector<1x192xf32>
    %17 = vector.broadcast %16 : vector<1x192xf32> to vector<64x192xf32>
    %18 = arith.addf %15, %17 : vector<64x192xf32>
    %cst_15 = arith.constant 0.000000e+00 : f32
    %19 = vector.broadcast %cst_15 : f32 to vector<64x192xf32>
    %20 = arith.maximumf %18, %19 : vector<64x192xf32>
    %21 = arith.truncf %20 : vector<64x192xf32> to vector<64x192xbf16>
    %c0_16 = arith.constant 0 : index
    %c0_17 = arith.constant 0 : index
    %22 = vector.load %arg2[%c0_16, %c0_17] : memref<64x64xbf16, #tpu.memory_space<vmem>>, vector<64x64xbf16>
    %cst_18 = arith.constant dense<0.000000e+00> : vector<64x192xf32>
    %23 = tpu.matmul %22, %21, %cst_18 {dimension_numbers = #tpu.dot_dimension_numbers<[1], [0], [0], [1], [0, 0, 1, 1], [], []>} : vector<64x64xbf16>, vector<64x192xbf16>, vector<64x192xf32> -> vector<64x192xf32>
    %24 = arith.truncf %23 : vector<64x192xf32> to vector<64x192xbf16>
    %c0_19 = arith.constant 0 : index
    %c0_20 = arith.constant 0 : index
    %25 = vector.load %arg3[%c0_19, %c0_20] : memref<64x64xbf16, #tpu.memory_space<vmem>>, vector<64x64xbf16>
    %cst_21 = arith.constant dense<0.000000e+00> : vector<64x192xf32>
    %26 = tpu.matmul %25, %21, %cst_21 {dimension_numbers = #tpu.dot_dimension_numbers<[1], [0], [0], [1], [0, 0, 1, 1], [], []>} : vector<64x64xbf16>, vector<64x192xbf16>, vector<64x192xf32> -> vector<64x192xf32>
    %27 = arith.truncf %26 : vector<64x192xf32> to vector<64x192xbf16>
    %c0_22 = arith.constant 0 : index
    %c0_23 = arith.constant 0 : index
    %c0_24 = arith.constant 0 : index
    %28 = vector.load %arg12[%c0_22, %c0_23, %c0_24] : memref<3x192x224xbf16, #tpu.memory_space<vmem>>, vector<1x192x224xbf16>
    %29 = vector.shape_cast %28 : vector<1x192x224xbf16> to vector<192x224xbf16>
    %cst_25 = arith.constant dense<0.000000e+00> : vector<64x224xf32>
    %30 = tpu.matmul %24, %29, %cst_25 {dimension_numbers = #tpu.dot_dimension_numbers<[1], [0], [0], [1], [0, 0, 1, 1], [], []>} : vector<64x192xbf16>, vector<192x224xbf16>, vector<64x224xf32> -> vector<64x224xf32>
    %c1 = arith.constant 1 : index
    %c0_26 = arith.constant 0 : index
    %c0_27 = arith.constant 0 : index
    %31 = vector.load %arg12[%c1, %c0_26, %c0_27] : memref<3x192x224xbf16, #tpu.memory_space<vmem>>, vector<1x192x224xbf16>
    %32 = vector.shape_cast %31 : vector<1x192x224xbf16> to vector<192x224xbf16>
    %cst_28 = arith.constant dense<0.000000e+00> : vector<64x224xf32>
    %33 = tpu.matmul %21, %32, %cst_28 {dimension_numbers = #tpu.dot_dimension_numbers<[1], [0], [0], [1], [0, 0, 1, 1], [], []>} : vector<64x192xbf16>, vector<192x224xbf16>, vector<64x224xf32> -> vector<64x224xf32>
    %34 = arith.addf %30, %33 : vector<64x224xf32>
    %c2 = arith.constant 2 : index
    %c0_29 = arith.constant 0 : index
    %c0_30 = arith.constant 0 : index
    %35 = vector.load %arg12[%c2, %c0_29, %c0_30] : memref<3x192x224xbf16, #tpu.memory_space<vmem>>, vector<1x192x224xbf16>
    %36 = vector.shape_cast %35 : vector<1x192x224xbf16> to vector<192x224xbf16>
    %cst_31 = arith.constant dense<0.000000e+00> : vector<64x224xf32>
    %37 = tpu.matmul %27, %36, %cst_31 {dimension_numbers = #tpu.dot_dimension_numbers<[1], [0], [0], [1], [0, 0, 1, 1], [], []>} : vector<64x192xbf16>, vector<192x224xbf16>, vector<64x224xf32> -> vector<64x224xf32>
    %38 = arith.addf %34, %37 : vector<64x224xf32>
    %c0_32 = arith.constant 0 : index
    %c0_33 = arith.constant 0 : index
    %39 = vector.load %arg13[%c0_32, %c0_33] : memref<1x224xf32, #tpu.memory_space<vmem>>, vector<1x224xf32>
    %40 = vector.broadcast %39 : vector<1x224xf32> to vector<64x224xf32>
    %41 = arith.mulf %38, %40 : vector<64x224xf32>
    %c0_34 = arith.constant 0 : index
    %c0_35 = arith.constant 0 : index
    %42 = vector.load %arg14[%c0_34, %c0_35] : memref<1x224xf32, #tpu.memory_space<vmem>>, vector<1x224xf32>
    %43 = vector.broadcast %42 : vector<1x224xf32> to vector<64x224xf32>
    %44 = arith.addf %41, %43 : vector<64x224xf32>
    %cst_36 = arith.constant 0.000000e+00 : f32
    %45 = vector.broadcast %cst_36 : f32 to vector<64x224xf32>
    %46 = arith.maximumf %44, %45 : vector<64x224xf32>
    %47 = arith.truncf %46 : vector<64x224xf32> to vector<64x224xbf16>
    %c0_37 = arith.constant 0 : index
    %c0_38 = arith.constant 0 : index
    %48 = vector.load %arg4[%c0_37, %c0_38] : memref<64x64xbf16, #tpu.memory_space<vmem>>, vector<64x64xbf16>
    %cst_39 = arith.constant dense<0.000000e+00> : vector<64x224xf32>
    %49 = tpu.matmul %48, %47, %cst_39 {dimension_numbers = #tpu.dot_dimension_numbers<[1], [0], [0], [1], [0, 0, 1, 1], [], []>} : vector<64x64xbf16>, vector<64x224xbf16>, vector<64x224xf32> -> vector<64x224xf32>
    %50 = arith.truncf %49 : vector<64x224xf32> to vector<64x224xbf16>
    %c0_40 = arith.constant 0 : index
    %c0_41 = arith.constant 0 : index
    %51 = vector.load %arg5[%c0_40, %c0_41] : memref<64x64xbf16, #tpu.memory_space<vmem>>, vector<64x64xbf16>
    %cst_42 = arith.constant dense<0.000000e+00> : vector<64x224xf32>
    %52 = tpu.matmul %51, %47, %cst_42 {dimension_numbers = #tpu.dot_dimension_numbers<[1], [0], [0], [1], [0, 0, 1, 1], [], []>} : vector<64x64xbf16>, vector<64x224xbf16>, vector<64x224xf32> -> vector<64x224xf32>
    %53 = arith.truncf %52 : vector<64x224xf32> to vector<64x224xbf16>
    %c0_43 = arith.constant 0 : index
    %c0_44 = arith.constant 0 : index
    %c0_45 = arith.constant 0 : index
    %54 = vector.load %arg15[%c0_43, %c0_44, %c0_45] : memref<3x224x256xbf16, #tpu.memory_space<vmem>>, vector<1x224x256xbf16>
    %55 = vector.shape_cast %54 : vector<1x224x256xbf16> to vector<224x256xbf16>
    %cst_46 = arith.constant dense<0.000000e+00> : vector<64x256xf32>
    %56 = tpu.matmul %50, %55, %cst_46 {dimension_numbers = #tpu.dot_dimension_numbers<[1], [0], [0], [1], [0, 0, 1, 1], [], []>} : vector<64x224xbf16>, vector<224x256xbf16>, vector<64x256xf32> -> vector<64x256xf32>
    %c1_47 = arith.constant 1 : index
    %c0_48 = arith.constant 0 : index
    %c0_49 = arith.constant 0 : index
    %57 = vector.load %arg15[%c1_47, %c0_48, %c0_49] : memref<3x224x256xbf16, #tpu.memory_space<vmem>>, vector<1x224x256xbf16>
    %58 = vector.shape_cast %57 : vector<1x224x256xbf16> to vector<224x256xbf16>
    %cst_50 = arith.constant dense<0.000000e+00> : vector<64x256xf32>
    %59 = tpu.matmul %47, %58, %cst_50 {dimension_numbers = #tpu.dot_dimension_numbers<[1], [0], [0], [1], [0, 0, 1, 1], [], []>} : vector<64x224xbf16>, vector<224x256xbf16>, vector<64x256xf32> -> vector<64x256xf32>
    %60 = arith.addf %56, %59 : vector<64x256xf32>
    %c2_51 = arith.constant 2 : index
    %c0_52 = arith.constant 0 : index
    %c0_53 = arith.constant 0 : index
    %61 = vector.load %arg15[%c2_51, %c0_52, %c0_53] : memref<3x224x256xbf16, #tpu.memory_space<vmem>>, vector<1x224x256xbf16>
    %62 = vector.shape_cast %61 : vector<1x224x256xbf16> to vector<224x256xbf16>
    %cst_54 = arith.constant dense<0.000000e+00> : vector<64x256xf32>
    %63 = tpu.matmul %53, %62, %cst_54 {dimension_numbers = #tpu.dot_dimension_numbers<[1], [0], [0], [1], [0, 0, 1, 1], [], []>} : vector<64x224xbf16>, vector<224x256xbf16>, vector<64x256xf32> -> vector<64x256xf32>
    %64 = arith.addf %60, %63 : vector<64x256xf32>
    %c0_55 = arith.constant 0 : index
    %c0_56 = arith.constant 0 : index
    %65 = vector.load %arg16[%c0_55, %c0_56] : memref<1x256xf32, #tpu.memory_space<vmem>>, vector<1x256xf32>
    %66 = vector.broadcast %65 : vector<1x256xf32> to vector<64x256xf32>
    %67 = arith.mulf %64, %66 : vector<64x256xf32>
    %c0_57 = arith.constant 0 : index
    %c0_58 = arith.constant 0 : index
    %68 = vector.load %arg17[%c0_57, %c0_58] : memref<1x256xf32, #tpu.memory_space<vmem>>, vector<1x256xf32>
    %69 = vector.broadcast %68 : vector<1x256xf32> to vector<64x256xf32>
    %70 = arith.addf %67, %69 : vector<64x256xf32>
    %cst_59 = arith.constant 0.000000e+00 : f32
    %71 = vector.broadcast %cst_59 : f32 to vector<64x256xf32>
    %72 = arith.maximumf %70, %71 : vector<64x256xf32>
    %c0_60 = arith.constant 0 : index
    %c0_61 = arith.constant 0 : index
    %73 = vector.load %arg18[%c0_60, %c0_61] : memref<32x2176xbf16, #tpu.memory_space<vmem>>, vector<32x2176xbf16>
    %cst_62 = arith.constant dense<0.000000e+00> : vector<64x2176xf32>
    %74 = tpu.matmul %0, %73, %cst_62 {dimension_numbers = #tpu.dot_dimension_numbers<[1], [0], [0], [1], [0, 0, 1, 1], [], []>} : vector<64x32xbf16>, vector<32x2176xbf16>, vector<64x2176xf32> -> vector<64x2176xf32>
    %c0_63 = arith.constant 0 : index
    %c0_64 = arith.constant 0 : index
    %75 = vector.load %arg19[%c0_63, %c0_64] : memref<1x2176xf32, #tpu.memory_space<vmem>>, vector<1x2176xf32>
    %76 = vector.broadcast %75 : vector<1x2176xf32> to vector<64x2176xf32>
    %77 = arith.addf %74, %76 : vector<64x2176xf32>
    %78 = arith.truncf %10 : vector<64x192xf32> to vector<64x192xbf16>
    %c0_65 = arith.constant 0 : index
    %c0_66 = arith.constant 0 : index
    %79 = vector.load %arg20[%c0_65, %c0_66] : memref<192x2176xbf16, #tpu.memory_space<vmem>>, vector<192x2176xbf16>
    %cst_67 = arith.constant dense<0.000000e+00> : vector<64x2176xf32>
    %80 = tpu.matmul %78, %79, %cst_67 {dimension_numbers = #tpu.dot_dimension_numbers<[1], [0], [0], [1], [0, 0, 1, 1], [], []>} : vector<64x192xbf16>, vector<192x2176xbf16>, vector<64x2176xf32> -> vector<64x2176xf32>
    %81 = arith.truncf %72 : vector<64x256xf32> to vector<64x256xbf16>
    %c0_68 = arith.constant 0 : index
    %c0_69 = arith.constant 0 : index
    %82 = vector.load %arg21[%c0_68, %c0_69] : memref<256x2176xbf16, #tpu.memory_space<vmem>>, vector<256x2176xbf16>
    %cst_70 = arith.constant dense<0.000000e+00> : vector<64x2176xf32>
    %83 = tpu.matmul %81, %82, %cst_70 {dimension_numbers = #tpu.dot_dimension_numbers<[1], [0], [0], [1], [0, 0, 1, 1], [], []>} : vector<64x256xbf16>, vector<256x2176xbf16>, vector<64x2176xf32> -> vector<64x2176xf32>
    %84 = arith.addf %80, %83 : vector<64x2176xf32>
    %c0_71 = arith.constant 0 : index
    %c0_72 = arith.constant 0 : index
    %85 = vector.load %arg22[%c0_71, %c0_72] : memref<1x2176xf32, #tpu.memory_space<vmem>>, vector<1x2176xf32>
    %86 = vector.broadcast %85 : vector<1x2176xf32> to vector<64x2176xf32>
    %87 = arith.addf %84, %86 : vector<64x2176xf32>
    %cst_73 = arith.constant 1.000000e-01 : f32
    %88 = vector.broadcast %cst_73 : f32 to vector<64x2176xf32>
    %89 = arith.mulf %88, %87 : vector<64x2176xf32>
    %90 = arith.addf %77, %89 : vector<64x2176xf32>
    %c0_74 = arith.constant 0 : index
    %c0_75 = arith.constant 0 : index
    %91 = vector.load %arg23[%c0_74, %c0_75] : memref<1x2176xf32, #tpu.memory_space<vmem>>, vector<1x2176xf32>
    %92 = vector.broadcast %91 : vector<1x2176xf32> to vector<64x2176xf32>
    %93 = arith.mulf %90, %92 : vector<64x2176xf32>
    %c0_76 = arith.constant 0 : index
    %c0_77 = arith.constant 0 : index
    %94 = vector.load %arg24[%c0_76, %c0_77] : memref<1x2176xf32, #tpu.memory_space<vmem>>, vector<1x2176xf32>
    %95 = vector.broadcast %94 : vector<1x2176xf32> to vector<64x2176xf32>
    %96 = arith.addf %93, %95 : vector<64x2176xf32>
    %cst_78 = arith.constant 0.000000e+00 : f32
    %97 = vector.broadcast %cst_78 : f32 to vector<64x2176xf32>
    %98 = arith.maximumf %96, %97 : vector<64x2176xf32>
    %c0_79 = arith.constant 0 : index
    %c0_80 = arith.constant 0 : index
    %99 = vector.load %arg25[%c0_79, %c0_80] : memref<64x2176xf32, #tpu.memory_space<vmem>>, vector<64x2176xf32>
    tpu.vector_store %arg25[%c0_79, %c0_80], %98 {strides = array<i32>} : memref<64x2176xf32, #tpu.memory_space<vmem>>, vector<64x2176xf32>,
    return
  }
  func.func @transform_0(%arg0: i32) -> (i32, i32) {
    %c0_i32 = arith.constant 0 : i32
    %c0_i32_0 = arith.constant 0 : i32
    return %arg0, %c0_i32 : i32, i32
  }
  func.func @transform_1(%arg0: i32) -> (i32, i32) {
    %c0_i32 = arith.constant 0 : i32
    %c0_i32_0 = arith.constant 0 : i32
    %c0_i32_1 = arith.constant 0 : i32
    return %c0_i32, %c0_i32_0 : i32, i32
  }
  func.func @transform_2(%arg0: i32) -> (i32, i32) {
    %c0_i32 = arith.constant 0 : i32
    %c0_i32_0 = arith.constant 0 : i32
    %c0_i32_1 = arith.constant 0 : i32
    return %c0_i32, %c0_i32_0 : i32, i32
  }
  func.func @transform_3(%arg0: i32) -> (i32, i32) {
    %c0_i32 = arith.constant 0 : i32
    %c0_i32_0 = arith.constant 0 : i32
    %c0_i32_1 = arith.constant 0 : i32
    return %c0_i32, %c0_i32_0 : i32, i32
  }
  func.func @transform_4(%arg0: i32) -> (i32, i32) {
    %c0_i32 = arith.constant 0 : i32
    %c0_i32_0 = arith.constant 0 : i32
    %c0_i32_1 = arith.constant 0 : i32
    return %c0_i32, %c0_i32_0 : i32, i32
  }
  func.func @transform_5(%arg0: i32) -> (i32, i32) {
    %c0_i32 = arith.constant 0 : i32
    %c0_i32_0 = arith.constant 0 : i32
    %c0_i32_1 = arith.constant 0 : i32
    return %c0_i32, %c0_i32_0 : i32, i32
  }
  func.func @transform_6(%arg0: i32) -> (i32, i32) {
    %c0_i32 = arith.constant 0 : i32
    %c0_i32_0 = arith.constant 0 : i32
    %c0_i32_1 = arith.constant 0 : i32
    return %c0_i32, %c0_i32_0 : i32, i32
  }
  func.func @transform_7(%arg0: i32) -> (i32, i32) {
    %c0_i32 = arith.constant 0 : i32
    %c0_i32_0 = arith.constant 0 : i32
    %c0_i32_1 = arith.constant 0 : i32
    return %c0_i32, %c0_i32_0 : i32, i32
  }
  func.func @transform_8(%arg0: i32) -> (i32, i32) {
    %c0_i32 = arith.constant 0 : i32
    %c0_i32_0 = arith.constant 0 : i32
    %c0_i32_1 = arith.constant 0 : i32
    return %c0_i32, %c0_i32_0 : i32, i32
  }
  func.func @transform_9(%arg0: i32) -> (i32, i32) {
    %c0_i32 = arith.constant 0 : i32
    %c0_i32_0 = arith.constant 0 : i32
    %c0_i32_1 = arith.constant 0 : i32
    return %c0_i32, %c0_i32_0 : i32, i32
  }
  func.func @transform_10(%arg0: i32) -> (i32, i32) {
    %c0_i32 = arith.constant 0 : i32
    %c0_i32_0 = arith.constant 0 : i32
    %c0_i32_1 = arith.constant 0 : i32
    return %c0_i32, %c0_i32_0 : i32, i32
  }
  func.func @transform_11(%arg0: i32) -> (i32, i32, i32) {
    %c0_i32 = arith.constant 0 : i32
    %c0_i32_0 = arith.constant 0 : i32
    %c0_i32_1 = arith.constant 0 : i32
    %c0_i32_2 = arith.constant 0 : i32
    return %c0_i32, %c0_i32_0, %c0_i32_1 : i32, i32, i32
  }
  func.func @transform_12(%arg0: i32) -> (i32, i32) {
    %c0_i32 = arith.constant 0 : i32
    %c0_i32_0 = arith.constant 0 : i32
    %c0_i32_1 = arith.constant 0 : i32
    return %c0_i32, %c0_i32_0 : i32, i32
  }
  func.func @transform_13(%arg0: i32) -> (i32, i32) {
    %c0_i32 = arith.constant 0 : i32
    %c0_i32_0 = arith.constant 0 : i32
    %c0_i32_1 = arith.constant 0 : i32
    return %c0_i32, %c0_i32_0 : i32, i32
  }
  func.func @transform_14(%arg0: i32) -> (i32, i32, i32) {
    %c0_i32 = arith.constant 0 : i32
    %c0_i32_0 = arith.constant 0 : i32
    %c0_i32_1 = arith.constant 0 : i32
    %c0_i32_2 = arith.constant 0 : i32
    return %c0_i32, %c0_i32_0, %c0_i32_1 : i32, i32, i32
  }
  func.func @transform_15(%arg0: i32) -> (i32, i32) {
    %c0_i32 = arith.constant 0 : i32
    %c0_i32_0 = arith.constant 0 : i32
    %c0_i32_1 = arith.constant 0 : i32
    return %c0_i32, %c0_i32_0 : i32, i32
  }
  func.func @transform_16(%arg0: i32) -> (i32, i32) {
    %c0_i32 = arith.constant 0 : i32
    %c0_i32_0 = arith.constant 0 : i32
    %c0_i32_1 = arith.constant 0 : i32
    return %c0_i32, %c0_i32_0 : i32, i32
  }
  func.func @transform_17(%arg0: i32) -> (i32, i32) {
    %c0_i32 = arith.constant 0 : i32
    %c0_i32_0 = arith.constant 0 : i32
    %c0_i32_1 = arith.constant 0 : i32
    return %c0_i32, %c0_i32_0 : i32, i32
  }
  func.func @transform_18(%arg0: i32) -> (i32, i32) {
    %c0_i32 = arith.constant 0 : i32
    %c0_i32_0 = arith.constant 0 : i32
    %c0_i32_1 = arith.constant 0 : i32
    return %c0_i32, %c0_i32_0 : i32, i32
  }
  func.func @transform_19(%arg0: i32) -> (i32, i32) {
    %c0_i32 = arith.constant 0 : i32
    %c0_i32_0 = arith.constant 0 : i32
    %c0_i32_1 = arith.constant 0 : i32
    return %c0_i32, %c0_i32_0 : i32, i32
  }
  func.func @transform_20(%arg0: i32) -> (i32, i32) {
    %c0_i32 = arith.constant 0 : i32
    %c0_i32_0 = arith.constant 0 : i32
    %c0_i32_1 = arith.constant 0 : i32
    return %c0_i32, %c0_i32_0 : i32, i32
  }
  func.func @transform_21(%arg0: i32) -> (i32, i32) {
    %c0_i32 = arith.constant 0 : i32
    %c0_i32_0 = arith.constant 0 : i32
    %c0_i32_1 = arith.constant 0 : i32
    return %c0_i32, %c0_i32_0 : i32, i32
  }
  func.func @transform_22(%arg0: i32) -> (i32, i32) {
    %c0_i32 = arith.constant 0 : i32
    %c0_i32_0 = arith.constant 0 : i32
    %c0_i32_1 = arith.constant 0 : i32
    return %c0_i32, %c0_i32_0 : i32, i32
  }
  func.func @transform_23(%arg0: i32) -> (i32, i32) {
    %c0_i32 = arith.constant 0 : i32
    %c0_i32_0 = arith.constant 0 : i32
    %c0_i32_1 = arith.constant 0 : i32
    return %c0_i32, %c0_i32_0 : i32, i32
  }
  func.func @transform_24(%arg0: i32) -> (i32, i32) {
    %c0_i32 = arith.constant 0 : i32
    %c0_i32_0 = arith.constant 0 : i32
    return %arg0, %c0_i32 : i32, i32
  }
}

</mosaic_0001>

<bundles_post_ra>
// kernel: inception_resnet_c_forward.1
= control target key start
LH: loop header
LB: loop body
LE: loop exit
PB: predicated region body
PF: predicated region fallthrough
CT: control target
= control target key end

     0   :  { %s21864_s0 = inlined_call_operand.vmem [shape: bf16[128,32], index: 0, kind: input, shape index: {}]   ;;  %s21865_s1 = inlined_call_operand.vmem [shape: bf16[64,64], index: 1, kind: input, shape index: {}]   ;;  %s21866_s2 = inlined_call_operand.vmem [shape: bf16[64,64], index: 2, kind: input, shape index: {}]   ;;  %s21867_s3 = inlined_call_operand.vmem [shape: bf16[64,64], index: 3, kind: input, shape index: {}]   ;;  %s21868_s4 = inlined_call_operand.vmem [shape: bf16[64,64], index: 4, kind: input, shape index: {}]   ;;  %s21869_s5 = inlined_call_operand.vmem [shape: bf16[32,192], index: 5, kind: input, shape index: {}]   ;;  %s21870_s6 = inlined_call_operand.vmem [shape: f32[1,192], index: 6, kind: input, shape index: {}]   ;;  %s21871_s7 = inlined_call_operand.vmem [shape: f32[1,192], index: 7, kind: input, shape index: {}]   ;;  %s21872_s8 = inlined_call_operand.vmem [shape: bf16[32,192], index: 8, kind: input, shape index: {}]   ;;  %s21873_s9 = inlined_call_operand.vmem [shape: f32[1,192], index: 9, kind: input, shape index: {}]   ;;  %s21874_s10 = inlined_call_operand.vmem [shape: f32[1,192], index: 10, kind: input, shape index: {}]   ;;  %s21875_s11 = inlined_call_operand.vmem [shape: bf16[3,192,224], index: 11, kind: input, shape index: {}]   ;;  %s21876_s12 = inlined_call_operand.vmem [shape: f32[1,224], index: 12, kind: input, shape index: {}]   ;;  %s21877_s13 = inlined_call_operand.vmem [shape: f32[1,224], index: 13, kind: input, shape index: {}]   ;;  %s21878_s14 = inlined_call_operand.vmem [shape: bf16[3,224,256], index: 14, kind: input, shape index: {}]   ;;  %s21879_s15 = inlined_call_operand.vmem [shape: f32[1,256], index: 15, kind: input, shape index: {}]   ;;  %s21880_s16 = inlined_call_operand.vmem [shape: f32[1,256], index: 16, kind: input, shape index: {}]   ;;  %s21881_s17 = inlined_call_operand.vmem [shape: bf16[32,2176], index: 17, kind: input, shape index: {}]   ;;  %s21882_s18 = inlined_call_operand.vmem [shape: f32[1,2176], index: 18, kind: input, shape index: {}]   ;;  %s21883_s19 = inlined_call_operand.vmem [shape: bf16[192,2176], index: 19, kind: input, shape index: {}]   ;;  %s21884_s20 = inlined_call_operand.vmem [shape: bf16[256,2176], index: 20, kind: input, shape index: {}]   ;;  %s21885_s21 = inlined_call_operand.vmem [shape: f32[1,2176], index: 21, kind: input, shape index: {}]   ;;  %s21886_s22 = inlined_call_operand.vmem [shape: f32[1,2176], index: 22, kind: input, shape index: {}]   ;;  %s21887_s23 = inlined_call_operand.vmem [shape: f32[1,2176], index: 23, kind: input, shape index: {}]   ;;  %s21888_s24 = inlined_call_operand.hbm [shape: f32[128,2176], index: 24, kind: output, shape index: {}]  }
   0x1   :  { %21915 = sst [smem:[#allocation258_spill]] %s21864_s0 }
   0x2   :  { %21916 = sst [smem:[#allocation259_spill]] %s21865_s1 }
   0x3   :  { %21917 = sst [smem:[#allocation260_spill]] %s21866_s2 }
   0x4   :  { %21918 = sst [smem:[#allocation261_spill]] %s21867_s3 }
   0x5   :  { %21919 = sst [smem:[#allocation262_spill]] %s21868_s4 }
   0x6   :  { %21920 = sst [smem:[#allocation263_spill]] %s21869_s5 }
   0x7   :  { %21921 = sst [smem:[#allocation264_spill]] %s21870_s6 }
   0x8   :  { %21922 = sst [smem:[#allocation265_spill]] %s21871_s7 }
   0x9   :  { %21923 = sst [smem:[#allocation266_spill]] %s21872_s8 }
   0xa   :  { %21924 = sst [smem:[#allocation267_spill]] %s21873_s9 }
   0xb   :  { %21925 = sst [smem:[#allocation268_spill]] %s21874_s10 }
   0xc   :  { %21926 = sst [smem:[#allocation269_spill]] %s21875_s11 }
   0xd   :  { %21927 = sst [smem:[#allocation270_spill]] %s21876_s12 }
   0xe   :  { %29 = vsyncpa [#allocation3], 0 }
   0xf   :  { %31 = vsyncpa [#allocation3 + $0x1], 0  ;;  %s14250_s5 = smov 0   ;;  %s14252_s26 = smov 0  }
  0x10   :  { %s14254_s27 = smov 0   ;;  %s14256_s28 = smov 0  }
  0x11 LB: > { %21928 = sst [smem:[#allocation5_spill]] %s14109_s5  ;;  %s14271_s6 = sadd.s32 4294967295, %s14121_s28   ;;  %s14121_s28 = sphi %s14256_s28, %s22493_s28   ;;  %s14117_s27 = sphi %s14254_s27, %s22495_s27   ;;  %s14113_s26 = sphi %s14252_s26, %s22497_s26   ;;  %s14109_s5 = sphi %s14250_s5, %s22496_s5  }
  0x12   : > { %21929 = sst [smem:[#allocation6_spill]] %s14117_s27  ;;  %s10171_s2 = sadd.s32 4294967294, %s14121_s28  }
  0x13   : > { %21930 = sst [smem:[#allocation7_spill]] %s14121_s28  ;;  %s14275_s29 = sadd.s32 1, %s14121_s28  }
  0x14   : > { %21931 = sst [smem:[#allocation8_spill]] %s14275_s29  ;;  %s553_s0 = sadd.s32 1, %s14117_s27 }
  0x15   : > { %s550_s7 = ssub.s32 %s14121_s28, %s14275_s29  ;;  %p563_p0 = scmp.ne.s32.totalorder %s14117_s27, %s14113_s26 }
  0x16   : > { %p551_p1 = scmp.eq.s32.totalorder %s550_s7, 0  ;;  %p564_p2 = scmp.eq.s32.totalorder %s14271_s6, 1 }
  0x17   : > { %p569_p3 = scmp.ne.s32.totalorder %s14113_s26, %s14109_s5  ;;  %p570_p4 = scmp.eq.s32.totalorder %s10171_s2, 1 }
  0x18   : > { %s14286_s30 = scalar_select %p551_p1, %s14117_s27, %s553_s0  }
  0x19   : > { %p14288_p5 = por %p564_p2, %p563_p0  ;;  %p14292_p6 = por %p570_p4, %p569_p3 }
  0x1a   : > { %21932 = sst [smem:[#allocation9_spill]] %s14286_s30  ;;  %p10174_p7 = scmp.ge.s32.totalorder %s14121_s28, 1 }
  0x1b   : > { %s21933_s3 = scalar_select %p14288_p5, 1, 0 }
  0x1c   : > { %s21935_s25 = scalar_select %p14292_p6, 1, 0 }
  0x1d   : > { %21934 = sst [smem:[#allocation10_spill]] %s21933_s3  ;;  %p666_p8 = scmp.lt.s32.totalorder %s14121_s28, 3 }
  0x1e   : > { %21936 = sst [smem:[#allocation11_spill]] %s21935_s25 }
  0x1f   : > { %p667_p9 = pnand %p10174_p7, %p666_p8 }
  0x21   : > { %670 = sbr.rel (%p667_p9) target bundleno = 2532 (0x9e4), region = 116 }
  0x26   : > { %s21937_s1 = sld [smem:[#allocation263_spill]]  ;;  %s10175_s28 = sshll.u32 %s14271_s6, 3  ;;  %vm792_vm0 = vcmask 261120   ;;  %vm1101_vm1 = vcmask 523264   ;;  %vm2597_vm2 = vcmask 785408  }
  0x27   : > { %p733_p10 = scmp.lt.s32.totalorder %s10175_s28, 15  ;;  %s21938_s29 = sld [smem:[#allocation266_spill]] }
  0x28   : > { %s21939_s7 = sld [smem:[#allocation258_spill]]  ;;  %s729_s27 = sand.u32 1, %s14113_s26  }
  0x29   : > { %s22499_s28 = smov (!%p733_p10, %s10175_s28), 15  ;;  %s21944_s9 = sld [smem:[#allocation267_spill]] }
  0x2a   : > { %s10176_s0 = sshll.u32 %s22499_s28, 2  ;;  %s21945_s10 = sld [smem:[#allocation268_spill]] }
  0x2b   : > { %s21946_s11 = sld [smem:[#allocation269_spill]] }
  0x2c   : > { %v10203_v0 = vld [vmem:[%s21937_s1 + $0x10] sm:$0xf]  ;;  %v13301_v1 = vld [vmem:[%s21937_s1 + $0x14] sm:$0xf0]  ;;  %v13300_v2 = vld [vmem:[%s21937_s1 + $0x14] sm:$0xf] }
  0x2d   : > { %v10204_v3 = vor.u32 %v13301_v1, %v10203_v0  ;;  %v10205_v4 = vld [vmem:[%s21937_s1 + $0x18] sm:$0xf0]  ;;  %v10195_v5 = vld [vmem:[%s21937_s1] sm:$0xf]  ;;  %v13299_v6 = vld [vmem:[%s21937_s1 + $0x4] sm:$0xf0] }
  0x2e   : > { %v10208_v7 = vor.u32 %v13300_v2, %v10205_v4  ;;  %v13298_v8 = vld [vmem:[%s21937_s1 + $0x4] sm:$0xf]  ;;  %v10197_v9 = vld [vmem:[%s21937_s1 + $0x8] sm:$0xf0]  ;;  %v10196_v10 = vor.u32 %v13299_v6, %v10195_v5  ;;  %v10227_v11 = vld [vmem:[%s21938_s29 + $0x10] sm:$0xf]  ;;  %s14350_s3 = scalar_lea.vmem %s21939_s7, %s10176_s0 }
  0x2f   : > { %13988 = vmatpush.bf16.msra.mxu2 %v10204_v3  ;;  %v13305_v12 = vld [vmem:[%s21938_s29 + $0x14] sm:$0xf0]  ;;  %811 = vmatpush.bf16.msra.mxu0 %v10204_v3  ;;  %v10200_v13 = vor.u32 %v13298_v8, %v10197_v9  ;;  %v13304_v15 = vld [vmem:[%s21938_s29 + $0x14] sm:$0xf]  ;;  %v10229_v16 = vld [vmem:[%s21938_s29 + $0x18] sm:$0xf0] }
  0x30   : > { %13990 = vmatpush.bf16.msra.mxu3 %v10208_v7  ;;  %v10228_v14 = vor.u32 %v13305_v12, %v10227_v11  ;;  %v10219_v17 = vld [vmem:[%s21938_s29] sm:$0xf]  ;;  %840 = vmatpush.bf16.msra.mxu1 %v10208_v7  ;;  %v10232_v18 = vor.u32 %v13304_v15, %v10229_v16  ;;  %v13303_v19 = vld [vmem:[%s21938_s29 + $0x4] sm:$0xf0]  ;;  %v13302_v20 = vld [vmem:[%s21938_s29 + $0x4] sm:$0xf] }
  0x31   : > { %v10221_v21 = vld [vmem:[%s21938_s29 + $0x8] sm:$0xf0]  ;;  %v10220_v22 = vor.u32 %v13303_v19, %v10219_v17  ;;  %v13297_v23 = vld [vmem:[%s14350_s3 + $0x18] sm:$0xff]  ;;  %v13294_v25 = vld [vmem:[%s14350_s3] sm:$0xff]  ;;  %s21947_s7 = sld [smem:[#allocation259_spill]]  ;;  %s10093_s0 = scalar_lea.sflag [#allocation3], %s729_s27 }
  0x32   : > { %v10224_v24 = vor.u32 %v13302_v20, %v10221_v21  ;;  %v13295_v26 = vld [vmem:[%s14350_s3 + $0x8] sm:$0xff]  ;;  %v13296_v27 = vld [vmem:[%s14350_s3 + $0x10] sm:$0xff]  ;;  %v1005_v44 = vld [vmem:[%s21944_s9] sm:$0x3]  ;;  %s21948_s1 = sld [smem:[#allocation260_spill]] }
  0x33   : > { %13989 = vmatpush.bf16.msra.mxu2 %v10196_v10  ;;  %812 = vmatpush.bf16.msra.mxu0 %v10196_v10  ;;  %v1008_v47 = vperm.slane %v1005_v44, 1  ;;  %v1007_v48 = vperm.slane %v1005_v44, 0  ;;  %v1027_v50 = vld [vmem:[%s21945_s10] sm:$0x3]  ;;  %s21968_s12 = sld [smem:[#allocation270_spill]]  ;;  %s19558_s10 = smul.u32 1088, %s729_s27 }
  0x34   : > { %13991 = vmatpush.bf16.msra.mxu3 %v10200_v13  ;;  %841 = vmatpush.bf16.msra.mxu1 %v10200_v13  ;;  %v1030_v51 = vperm.slane %v1027_v50, 1  ;;  %v1029_v55 = vperm.slane %v1027_v50, 0  ;;  %s21976_s28 = sld [smem:[#allocation261_spill]] }
  0x35   : > { %s21978_s8 = sld [smem:[#allocation262_spill]]  ;;  %s19612_s30 = scalar_lea.vmem [#allocation2], %s19558_s10 }
  0x36   : > { %10212 = vmatmul.msk.bf16.vlgmr.msra.gmra.mxu2 %vm792_vm0, %v13297_v23  ;;  %10209 = vmatmul.msk.bf16.vlgmr.msra.gmra.mxu0 %vm792_vm0, %v13294_v25  ;;  %s22173_s4 = sld [smem:[#allocation265_spill]] }
  0x37   : > { %953 = vmatpush.bf16.msrb.mxu2 %v10228_v14  ;;  %10216 = vmatmul.msk.bf16.vlgmr.msra.gmra.mxu3 %vm792_vm0, %v13297_v23 }
  0x38   : > { %982 = vmatpush.bf16.msrb.mxu3 %v10232_v18  ;;  %10213 = vmatmul.msk.bf16.vlgmr.msra.gmra.mxu1 %vm792_vm0, %v13294_v25 }
  0x3a   : > { %s21977_s25 = smov %s21976_s28 }
  0x3b   : > { %954 = vmatpush.bf16.msrb.mxu2 %v10220_v22 }
  0x3c   : > { %983 = vmatpush.bf16.msrb.mxu3 %v10224_v24 }
  0x46   : > { %10233 = vmatmul.msk.bf16.vlgmr.msrb.gmra.mxu2 %vm792_vm0, %v13294_v25  ;;  %10210 = vmatmul.msk.bf16.gmra.mxu0 %vm792_vm0, %v13295_v26 }
  0x47   : > { %10237 = vmatmul.msk.bf16.vlgmr.msrb.gmra.mxu3 %vm792_vm0, %v13294_v25 }
  0x48   : > { %10214 = vmatmul.msk.bf16.gmra.mxu1 %vm792_vm0, %v13295_v26 }
  0x56   : > { %10234 = vmatmul.msk.bf16.gmra.mxu2 %vm792_vm0, %v13295_v26  ;;  %10211 = vmatmul.msk.bf16.gmra.mxu0 %vm792_vm0, %v13296_v27 }
  0x57   : > { %10238 = vmatmul.msk.bf16.gmra.mxu3 %vm792_vm0, %v13295_v26 }
  0x58   : > { %10215 = vmatmul.msk.bf16.gmra.mxu1 %vm792_vm0, %v13296_v27 }
  0x66   : > { %10235 = vmatmul.msk.bf16.gmra.mxu2 %vm792_vm0, %v13296_v27 }
  0x67   : > { %10239 = vmatmul.msk.bf16.gmra.mxu3 %vm792_vm0, %v13296_v27 }
  0x76   : > { %10236 = vmatmul.msk.bf16.gmra.mxu2 %vm792_vm0, %v13297_v23 }
  0x77   : > { %10240 = vmatmul.msk.bf16.gmra.mxu3 %vm792_vm0, %v13297_v23 }
  0xb9   : > { %v14372_v28 = vpop.f32.mrf.mxu2 }
  0xba   : > { %21940 = vst [vmem:[#allocation12_spill] sm:$0xff] %v14372_v28  ;;  %v14374_v29 = vpop.f32.mrf.mxu3 }
  0xbb   : > { %21941 = vst [vmem:[#allocation13_spill] sm:$0xff] %v14374_v29 }
  0xc1   : > { %v14376_v30 = vpop.f32.mrf.mxu2 }
  0xc2   : > { %21942 = vst [vmem:[#allocation14_spill] sm:$0xff] %v14376_v30  ;;  %v14378_v31 = vpop.f32.mrf.mxu3 }
  0xc3   : > { %21943 = vst [vmem:[#allocation15_spill] sm:$0xff] %v14378_v31 }
  0xc9   : > { %v956_v32 = vpop.f32.mrf.mxu2 }
  0xca   : > { %v985_v33 = vpop.f32.mrf.mxu3  ;;  %v1011_v25 = vmul.f32 %v1007_v48, %v956_v32 }
  0xcb   : > { %v1012_v21 = vmul.f32 %v1008_v47, %v985_v33 }
  0xcd   : > { %v1034_v33 = vadd.f32 %v1030_v51, %v1012_v21  ;;  %v13343_v21 = vld [vmem:[%s21946_s11 + $0xe4] sm:$0xf0] }
  0xcf   : > { %v1050_v44 = vmax.f32 %v1034_v33, 0.0  ;;  %v10405_v33 = vld [vmem:[%s21946_s11 + $0x178] sm:$0xf0] }
  0xd1   : > { %v958_v34 = vpop.f32.mrf.mxu2 }
  0xd2   : > { %v987_v35 = vpop.f32.mrf.mxu3  ;;  %v1013_v14 = vmul.f32 %v1007_v48, %v958_v34 }
  0xd3   : > { %v1014_v22 = vmul.f32 %v1008_v47, %v987_v35 }
  0xd5   : > { %v1036_v35 = vadd.f32 %v1030_v51, %v1014_v22  ;;  %v13311_v22 = vld [vmem:[%s21948_s1 + $0x8] sm:$0xff] }
  0xd9   : > { %v961_v36 = vpop.f32.mrf.mxu2 }
  0xda   : > { %v990_v37 = vpop.f32.mrf.mxu3  ;;  %v1015_v7 = vmul.f32 %v1007_v48, %v961_v36  ;;  %v1035_v36 = vadd.f32 %v1029_v55, %v1013_v14 }
  0xdb   : > { %v1016_v8 = vmul.f32 %v1008_v47, %v990_v37 }
  0xdc   : > { %v1037_v26 = vadd.f32 %v1029_v55, %v1015_v7  ;;  %v13347_v7 = vld [vmem:[%s21946_s11 + $0x104] sm:$0xf0] }
  0xdd   : > { %v1038_v23 = vadd.f32 %v1030_v51, %v1016_v8 }
  0xe1   : > { %v963_v38 = vpop.f32.mrf.mxu2 }
  0xe2   : > { %v992_v39 = vpop.f32.mrf.mxu3  ;;  %v1017_v0 = vmul.f32 %v1007_v48, %v963_v38 }
  0xe3   : > { %v1018_v9 = vmul.f32 %v1008_v47, %v992_v39  ;;  %v1054_v39 = vmax.f32 %v1038_v23, 0.0 }
  0xe4   : > { %v1039_v17 = vadd.f32 %v1029_v55, %v1017_v0  ;;  %v13350_v0 = vld [vmem:[%s21946_s11 + $0x124] sm:$0xf] }
  0xe5   : > { %v1040_v24 = vadd.f32 %v1030_v51, %v1018_v9 }
  0xe6   : > { %v1055_v37 = vmax.f32 %v1039_v17, 0.0  ;;  %v14501_v17 = vld [vmem:[%s21947_s7 + $0x18] sm:$0xff] }
  0xe7   : > { %v1056_v32 = vmax.f32 %v1040_v24, 0.0  ;;  %v10323_v24 = vld [vmem:[%s21946_s11 + $0xd0] sm:$0xf] }
  0xe9   : > { %v966_v40 = vpop.f32.mrf.mxu2 }
  0xea   : > { %v995_v41 = vpop.f32.mrf.mxu3  ;;  %v1019_v60 = vmul.f32 %v1007_v48, %v966_v40  ;;  %v1033_v40 = vadd.f32 %v1029_v55, %v1011_v25  ;;  %v13344_v25 = vld [vmem:[%s21946_s11 + $0xf4] sm:$0xf] }
  0xeb   : > { %v1020_v53 = vmul.f32 %v1008_v47, %v995_v41  ;;  %v1053_v41 = vmax.f32 %v1037_v26, 0.0  ;;  %v10341_v26 = vld [vmem:[%s21946_s11 + $0xf8] sm:$0xf0] }
  0xec   : > { %v1041_v10 = vadd.f32 %v1029_v55, %v1019_v60  ;;  %v10373_v60 = vld [vmem:[%s21946_s11 + $0x138] sm:$0xf0] }
  0xed   : > { %v1042_v1 = vadd.f32 %v1030_v51, %v1020_v53 }
  0xee   : > { %v1057_v27 = vmax.f32 %v1041_v10, 0.0  ;;  %v13346_v10 = vld [vmem:[%s21946_s11 + $0x104] sm:$0xf] }
  0xef   : > { %v1058_v15 = vmax.f32 %v1042_v1, 0.0  ;;  %v10365_v1 = vld [vmem:[%s21946_s11 + $0x128] sm:$0xf0] }
  0xf1   : > { %v968_v42 = vpop.f32.mrf.mxu2 }
  0xf2   : > { %v997_v43 = vpop.f32.mrf.mxu3  ;;  %v1021_v56 = vmul.f32 %v1007_v48, %v968_v42  ;;  %v1051_v42 = vmax.f32 %v1035_v36, 0.0  ;;  %v10344_v36 = vor.u32 %v13344_v25, %v10341_v26  ;;  %v13326_v26 = vld [vmem:[%s21946_s11 + $0x64] sm:$0xf] }
  0xf3   : > { %v1022_v54 = vmul.f32 %v1008_v47, %v997_v43  ;;  %v14402_v43 = vpack.c.bf16 %v1055_v37, %v1053_v41  ;;  %v13360_v37 = vld [vmem:[%s21946_s11 + $0x174] sm:$0xf] }
  0xf4   : > { %v1043_v3 = vadd.f32 %v1029_v55, %v1021_v56  ;;  %v13351_v56 = vld [vmem:[%s21946_s11 + $0x124] sm:$0xf0] }
  0xf5   : > { %v1044_v2 = vadd.f32 %v1030_v51, %v1022_v54  ;;  %v14428_v54 = vld [vmem:[%s21947_s7 + $0x10] sm:$0xff] }
  0xf6   : > { %v1059_v18 = vmax.f32 %v1043_v3, 0.0 }
  0xf7   : > { %v1060_v16 = vmax.f32 %v1044_v2, 0.0  ;;  %v10368_v2 = vor.u32 %v13350_v0, %v10365_v1 }
  0xf8   : > { %v14396_v38 = vpack.c.bf16 %v1059_v18, %v1057_v27  ;;  %v10331_v18 = vld [vmem:[%s21946_s11 + $0xe0] sm:$0xf]  ;;  %v13341_v27 = vld [vmem:[%s21946_s11 + $0xd4] sm:$0xf0] }
  0xf9   : > { %v971_v45 = vpop.f32.mrf.mxu2  ;;  %v14392_v34 = vpack.c.bf16 %v1060_v16, %v1058_v15  ;;  %v13307_v15 = vld [vmem:[%s21947_s7 + $0x8] sm:$0xff]  ;;  %v10332_v23 = vor.u32 %v13343_v21, %v10331_v18  ;;  %v13329_v18 = vld [vmem:[%s21946_s11 + $0x74] sm:$0xf0] }
  0xfa   : > { %v1000_v46 = vpop.f32.mrf.mxu3  ;;  %v1023_v52 = vmul.f32 %v1007_v48, %v971_v45  ;;  %v1052_v45 = vmax.f32 %v1036_v35, 0.0  ;;  %v10408_v35 = vor.u32 %v13360_v37, %v10405_v33 }
  0xfb   : > { %v1024_v49 = vmul.f32 %v1008_v47, %v1000_v46  ;;  %v14404_v46 = vpack.c.bf16 %v1056_v32, %v1054_v39  ;;  %v13342_v39 = vld [vmem:[%s21946_s11 + $0xe4] sm:$0xf]  ;;  %v10333_v32 = vld [vmem:[%s21946_s11 + $0xe8] sm:$0xf0] }
  0xfc   : > { %v1045_v61 = vadd.f32 %v1029_v55, %v1023_v52  ;;  %v14423_v53 = vpack.c.bf16 %v1052_v45, %v1050_v44  ;;  %v10336_v41 = vor.u32 %v13342_v39, %v10333_v32  ;;  %v10324_v44 = vor.u32 %v13341_v27, %v10323_v24  ;;  %v10315_v45 = vld [vmem:[%s21946_s11 + $0xc0] sm:$0xf]  ;;  %v14642_v24 = vpop.f32.mrf.mxu1  ;;  %v10469_v27 = vld [vmem:[%s21946_s11 + $0x68] sm:$0xf0]  ;;  %v10459_v39 = vld [vmem:[%s21946_s11 + $0x50] sm:$0xf] }
  0xfd   : > { %v1046_v57 = vadd.f32 %v1030_v51, %v1024_v49  ;;  %v1049_v49 = vmax.f32 %v1033_v40, 0.0  ;;  %v13358_v40 = vld [vmem:[%s21946_s11 + $0x164] sm:$0xf]  ;;  %21950 = vst [vmem:[#allocation17_spill] sm:$0xff] %v14642_v24  ;;  %v10472_v37 = vor.u32 %v13326_v26, %v10469_v27  ;;  %v13325_v32 = vld [vmem:[%s21946_s11 + $0x54] sm:$0xf0] }
  0xfe   : > { %v1061_v11 = vmax.f32 %v1045_v61, 0.0  ;;  %v10355_v61 = vld [vmem:[%s21946_s11 + $0x110] sm:$0xf]  ;;  %v10499_v26 = vld [vmem:[%s21946_s11 + $0xa0] sm:$0xf] }
  0xff   : > { %v1062_v4 = vmax.f32 %v1046_v57, 0.0  ;;  %v14416_v50 = vpack.c.bf16 %v1051_v42, %v1049_v49  ;;  %v13310_v57 = vld [vmem:[%s21948_s1] sm:$0xff]  ;;  %v10397_v42 = vld [vmem:[%s21946_s11 + $0x168] sm:$0xf0]  ;;  %v10325_v49 = vld [vmem:[%s21946_s11 + $0xd8] sm:$0xf0] }
 0x100   : > { %v13335_v27 = vld [vmem:[%s21946_s11 + $0xa4] sm:$0xf0] }
 0x101   : > { %v973_v58 = vpop.f32.mrf.mxu2 }
 0x102   : > { %v1002_v59 = vpop.f32.mrf.mxu3  ;;  %v1025_v62 = vmul.f32 %v1007_v48, %v973_v58  ;;  %v13353_v48 = vld [vmem:[%s21946_s11 + $0x134] sm:$0xf0] }
 0x103   : > { %v1026_v63 = vmul.f32 %v1008_v47, %v1002_v59  ;;  %v10371_v47 = vld [vmem:[%s21946_s11 + $0x130] sm:$0xf]  ;;  %v13352_v59 = vld [vmem:[%s21946_s11 + $0x134] sm:$0xf] }
 0x104   : > { %v1047_v5 = vadd.f32 %v1029_v55, %v1025_v62  ;;  %v10372_v52 = vor.u32 %v13353_v48, %v10371_v47  ;;  %v10363_v55 = vld [vmem:[%s21946_s11 + $0x120] sm:$0xf]  ;;  %v13349_v62 = vld [vmem:[%s21946_s11 + $0x114] sm:$0xf0]  ;;  %v10400_v47 = vor.u32 %v13358_v40, %v10397_v42  ;;  %v13340_v48 = vld [vmem:[%s21946_s11 + $0xd4] sm:$0xf] }
 0x105   : > { %v1048_v6 = vadd.f32 %v1030_v51, %v1026_v63  ;;  %v14421_v51 = vld [vmem:[%s21947_s7] sm:$0xff]  ;;  %v10364_v58 = vor.u32 %v13351_v56, %v10363_v55  ;;  %v10376_v63 = vor.u32 %v13352_v59, %v10373_v60  ;;  %v10356_v3 = vor.u32 %v13349_v62, %v10355_v61  ;;  %v13356_v55 = vld [vmem:[%s21946_s11 + $0x154] sm:$0xf]  ;;  %v10389_v56 = vld [vmem:[%s21946_s11 + $0x158] sm:$0xf0] }
 0x106   : > { %v1063_v12 = vmax.f32 %v1047_v5, 0.0  ;;  %v10357_v5 = vld [vmem:[%s21946_s11 + $0x118] sm:$0xf0]  ;;  %v10392_v59 = vor.u32 %v13356_v55, %v10389_v56  ;;  %v13338_v60 = vld [vmem:[%s21946_s11 + $0xc4] sm:$0xf] }
 0x107   : > { %v1064_v13 = vmax.f32 %v1048_v6, 0.0  ;;  %v10347_v6 = vld [vmem:[%s21946_s11 + $0x100] sm:$0xf]  ;;  %v10317_v61 = vld [vmem:[%s21946_s11 + $0xc8] sm:$0xf0] }
 0x108   : > { %v14386_v19 = vpack.c.bf16 %v1063_v12, %v1061_v11  ;;  %v10348_v9 = vor.u32 %v13347_v7, %v10347_v6  ;;  %v10349_v11 = vld [vmem:[%s21946_s11 + $0x108] sm:$0xf0]  ;;  %v10339_v12 = vld [vmem:[%s21946_s11 + $0xf0] sm:$0xf]  ;;  %v13354_v62 = vld [vmem:[%s21946_s11 + $0x144] sm:$0xf]  ;;  %v10320_v0 = vor.u32 %v13338_v60, %v10317_v61 }
 0x109   : > { %v14388_v20 = vpack.c.bf16 %v1064_v13, %v1062_v4  ;;  %v13348_v4 = vld [vmem:[%s21946_s11 + $0x114] sm:$0xf]  ;;  %v13345_v13 = vld [vmem:[%s21946_s11 + $0xf4] sm:$0xf0]  ;;  %v10352_v14 = vor.u32 %v13346_v10, %v10349_v11  ;;  %v10395_v6 = vld [vmem:[%s21946_s11 + $0x160] sm:$0xf] }
 0x10a   : > { %1118 = vmatpush.bf16.msrb.mxu0 %v14386_v19  ;;  %13992 = vmatpush.bf16.msrb.mxu1 %v14386_v19  ;;  %v10360_v8 = vor.u32 %v13348_v4, %v10357_v5  ;;  %v10340_v16 = vor.u32 %v13345_v13, %v10339_v12  ;;  %v10403_v4 = vld [vmem:[%s21946_s11 + $0x170] sm:$0xf]  ;;  %v13361_v5 = vld [vmem:[%s21946_s11 + $0x174] sm:$0xf0]  ;;  %v13359_v7 = vld [vmem:[%s21946_s11 + $0x164] sm:$0xf0] }
 0x10b   : > { %1224 = vmatpush.bf16.msra.mxu2 %v14386_v19  ;;  %1253 = vmatpush.bf16.msra.mxu3 %v14388_v20  ;;  %v13357_v10 = vld [vmem:[%s21946_s11 + $0x154] sm:$0xf0]  ;;  %v10379_v12 = vld [vmem:[%s21946_s11 + $0x140] sm:$0xf]  ;;  %v13355_v13 = vld [vmem:[%s21946_s11 + $0x144] sm:$0xf0] }
 0x10c   : > { %v13324_v40 = vld [vmem:[%s21946_s11 + $0x54] sm:$0xf]  ;;  %v10461_v42 = vld [vmem:[%s21946_s11 + $0x58] sm:$0xf0]  ;;  %v13321_v55 = vld [vmem:[%s21946_s11 + $0x34] sm:$0xf0] }
 0x10d   : > { %v13320_v56 = vld [vmem:[%s21946_s11 + $0x34] sm:$0xf] }
 0x10e   : > { %1119 = vmatpush.bf16.msrb.mxu0 %v14396_v38  ;;  %13993 = vmatpush.bf16.msrb.mxu1 %v14396_v38 }
 0x10f   : > { %1225 = vmatpush.bf16.msra.mxu2 %v14396_v38  ;;  %1254 = vmatpush.bf16.msra.mxu3 %v14392_v34 }
 0x112   : > { %1120 = vmatpush.bf16.msrb.mxu0 %v14402_v43  ;;  %13994 = vmatpush.bf16.msrb.mxu1 %v14402_v43 }
 0x113   : > { %1226 = vmatpush.bf16.msra.mxu2 %v14402_v43  ;;  %1255 = vmatpush.bf16.msra.mxu3 %v14404_v46 }
 0x116   : > { %1121 = vmatpush.bf16.msrb.mxu0 %v14416_v50  ;;  %13995 = vmatpush.bf16.msrb.mxu1 %v14416_v50 }
 0x117   : > { %1227 = vmatpush.bf16.msra.mxu2 %v14416_v50  ;;  %1256 = vmatpush.bf16.msra.mxu3 %v14423_v53 }
 0x119   : > { %10257 = vmatmul.msk.bf16.vlgmr.msrb.gmra.mxu0 %vm1101_vm1, %v14421_v51  ;;  %10259 = vmatmul.msk.bf16.vlgmr.msrb.gmra.mxu1 %vm1101_vm1, %v14428_v54 }
 0x11a   : > { %1147 = vmatpush.bf16.msra.mxu1 %v14388_v20  ;;  %1467 = vmatpush.bf16.msra.mxu0 %v10372_v52  ;;  %v13339_v52 = vld [vmem:[%s21946_s11 + $0xc4] sm:$0xf0] }
 0x11b   : > { %10281 = vmatmul.msk.bf16.vlgmr.msra.gmra.mxu2 %vm1101_vm1, %v13310_v57  ;;  %10285 = vmatmul.msk.bf16.vlgmr.msra.gmra.mxu3 %vm1101_vm1, %v13310_v57  ;;  %v10328_v57 = vor.u32 %v13340_v48, %v10325_v49 }
 0x11c   : > { %1525 = vmatpush.bf16.msrb.mxu2 %v10376_v63  ;;  %1558 = vmatpush.bf16.msrb.mxu3 %v10408_v35  ;;  %v10381_v63 = vld [vmem:[%s21946_s11 + $0x148] sm:$0xf0]  ;;  %v14652_v35 = vpop.f32.mrf.mxu1 }
 0x11d   : > { %v10384_v1 = vor.u32 %v13354_v62, %v10381_v63  ;;  %21952 = vst [vmem:[#allocation19_spill] sm:$0xff] %v14652_v35  ;;  %v10435_v62 = vld [vmem:[%s21946_s11 + $0x20] sm:$0xf]  ;;  %v13319_v63 = vld [vmem:[%s21946_s11 + $0x24] sm:$0xf0] }
 0x11e   : > { %1148 = vmatpush.bf16.msra.mxu1 %v14392_v34  ;;  %1468 = vmatpush.bf16.msra.mxu0 %v10364_v58  ;;  %v10316_v58 = vor.u32 %v13339_v52, %v10315_v45  ;;  %v10451_v45 = vld [vmem:[%s21946_s11 + $0x40] sm:$0xf]  ;;  %v10443_v52 = vld [vmem:[%s21946_s11 + $0x30] sm:$0xf] }
 0x120   : > { %1526 = vmatpush.bf16.msrb.mxu2 %v10368_v2  ;;  %1559 = vmatpush.bf16.msrb.mxu3 %v10400_v47  ;;  %v13312_v2 = vld [vmem:[%s21948_s1 + $0x10] sm:$0xff]  ;;  %v13322_v47 = vld [vmem:[%s21946_s11 + $0x44] sm:$0xf] }
 0x122   : > { %1149 = vmatpush.bf16.msra.mxu1 %v14404_v46  ;;  %1469 = vmatpush.bf16.msra.mxu0 %v10356_v3  ;;  %v13313_v3 = vld [vmem:[%s21948_s1 + $0x18] sm:$0xff]  ;;  %s22170_s1 = sld [smem:[#allocation264_spill]] }
 0x124   : > { %1527 = vmatpush.bf16.msrb.mxu2 %v10360_v8  ;;  %1560 = vmatpush.bf16.msrb.mxu3 %v10392_v59  ;;  %v10396_v8 = vor.u32 %v13359_v7, %v10395_v6  ;;  %v10444_v59 = vor.u32 %v13321_v55, %v10443_v52  ;;  %v14698_v60 = vpop.f32.mrf.mxu1  ;;  %v13316_v6 = vld [vmem:[%s21946_s11 + $0x14] sm:$0xf]  ;;  %v13330_v52 = vld [vmem:[%s21946_s11 + $0x84] sm:$0xf] }
 0x125   : > { %21954 = vst [vmem:[#allocation21_spill] sm:$0xff] %v14698_v60 }
 0x126   : > { %1150 = vmatpush.bf16.msra.mxu1 %v14423_v53  ;;  %1470 = vmatpush.bf16.msra.mxu0 %v10348_v9  ;;  %v10387_v9 = vld [vmem:[%s21946_s11 + $0x150] sm:$0xf] }
 0x127   : > { %v10388_v11 = vor.u32 %v13357_v10, %v10387_v9 }
 0x128   : > { %1528 = vmatpush.bf16.msrb.mxu2 %v10352_v14  ;;  %1561 = vmatpush.bf16.msrb.mxu3 %v10384_v1  ;;  %v10380_v14 = vor.u32 %v13355_v13, %v10379_v12  ;;  %v10436_v1 = vor.u32 %v13319_v63, %v10435_v62  ;;  %v13314_v12 = vld [vmem:[%s21946_s11 + $0x4] sm:$0xf] }
 0x129   : > { %10258 = vmatmul.msk.bf16.gmra.mxu0 %vm1101_vm1, %v13307_v15  ;;  %10260 = vmatmul.msk.bf16.gmra.mxu1 %vm1101_vm1, %v14501_v17 }
 0x12a   : > { %1471 = vmatpush.bf16.msra.mxu0 %v10340_v16  ;;  %v10475_v16 = vld [vmem:[%s21946_s11 + $0x70] sm:$0xf] }
 0x12b   : > { %10282 = vmatmul.msk.bf16.gmra.mxu2 %vm1101_vm1, %v13311_v22  ;;  %10286 = vmatmul.msk.bf16.gmra.mxu3 %vm1101_vm1, %v13311_v22  ;;  %v10476_v21 = vor.u32 %v13329_v18, %v10475_v16  ;;  %v10467_v22 = vld [vmem:[%s21946_s11 + $0x60] sm:$0xf] }
 0x12c   : > { %1529 = vmatpush.bf16.msrb.mxu2 %v10344_v36  ;;  %v14728_v9 = vpop.f32.mrf.mxu1 }
 0x12d   : > { %21956 = vst [vmem:[#allocation23_spill] sm:$0xff] %v14728_v9 }
 0x12e   : > { %1472 = vmatpush.bf16.msra.mxu0 %v10332_v23  ;;  %v13327_v23 = vld [vmem:[%s21946_s11 + $0x64] sm:$0xf0] }
 0x12f   : > { %v10468_v36 = vor.u32 %v13327_v23, %v10467_v22  ;;  %v13337_v22 = vld [vmem:[%s21946_s11 + $0xb4] sm:$0xf0]  ;;  %v10509_v23 = vld [vmem:[%s21946_s11 + $0xb8] sm:$0xf0] }
 0x130   : > { %1530 = vmatpush.bf16.msrb.mxu2 %v10336_v41  ;;  %v10460_v41 = vor.u32 %v13325_v32, %v10459_v39  ;;  %v10501_v39 = vld [vmem:[%s21946_s11 + $0xa8] sm:$0xf0] }
 0x132   : > { %1473 = vmatpush.bf16.msra.mxu0 %v10324_v44  ;;  %v10464_v44 = vor.u32 %v13324_v40, %v10461_v42  ;;  %v10491_v42 = vld [vmem:[%s21946_s11 + $0x90] sm:$0xf] }
 0x134   : > { %1531 = vmatpush.bf16.msrb.mxu2 %v10328_v57  ;;  %v10445_v57 = vld [vmem:[%s21946_s11 + $0x38] sm:$0xf0]  ;;  %v14747_v18 = vpop.f32.mrf.mxu1 }
 0x135   : > { %v10448_v61 = vor.u32 %v13320_v56, %v10445_v57  ;;  %21958 = vst [vmem:[#allocation25_spill] sm:$0xff] %v14747_v18 }
 0x136   : > { %1474 = vmatpush.bf16.msra.mxu0 %v10316_v58 }
 0x138   : > { %1532 = vmatpush.bf16.msrb.mxu2 %v10320_v0  ;;  %v13318_v0 = vld [vmem:[%s21946_s11 + $0x24] sm:$0xf] }
 0x139   : > { %10261 = vmatmul.msk.bf16.vlgmr.msra.gmra.mxu1 %vm1101_vm1, %v14421_v51  ;;  %1475 = vmatmul.bf16.vlgmr.msra.gmra.mxu0 %v14416_v50  ;;  %v10404_v51 = vor.u32 %v13361_v5, %v10403_v4  ;;  %v10427_v5 = vld [vmem:[%s21946_s11 + $0x10] sm:$0xf] }
 0x13a   : > { %1715 = vmatpush.bf16.msrb.mxu0 %v10476_v21 }
 0x13b   : > { %10283 = vmatmul.msk.bf16.gmra.mxu2 %vm1101_vm1, %v13312_v2  ;;  %10287 = vmatmul.msk.bf16.gmra.mxu3 %vm1101_vm1, %v13312_v2  ;;  %v10437_v2 = vld [vmem:[%s21946_s11 + $0x28] sm:$0xf0] }
 0x13c   : > { %1500 = vmatpush.bf16.msrb.mxu1 %v10404_v51  ;;  %v13317_v51 = vld [vmem:[%s21946_s11 + $0x14] sm:$0xf0]  ;;  %v14756_v21 = vpop.f32.mrf.mxu1 }
 0x13d   : > { %v10428_v7 = vor.u32 %v13317_v51, %v10427_v5  ;;  %21960 = vst [vmem:[#allocation27_spill] sm:$0xff] %v14756_v21 }
 0x13e   : > { %1716 = vmatpush.bf16.msrb.mxu0 %v10468_v36  ;;  %v13334_v36 = vld [vmem:[%s21946_s11 + $0xa4] sm:$0xf] }
 0x140   : > { %1501 = vmatpush.bf16.msrb.mxu1 %v10396_v8  ;;  %v10429_v8 = vld [vmem:[%s21946_s11 + $0x18] sm:$0xf0] }
 0x141   : > { %v10432_v10 = vor.u32 %v13316_v6, %v10429_v8 }
 0x142   : > { %1717 = vmatpush.bf16.msrb.mxu0 %v10460_v41  ;;  %v10504_v41 = vor.u32 %v13334_v36, %v10501_v39  ;;  %v13373_v36 = vld [vmem:[%s21946_s11 + $0x1d4] sm:$0xf0] }
 0x144   : > { %1502 = vmatpush.bf16.msrb.mxu1 %v10388_v11  ;;  %v10419_v11 = vld [vmem:[%s21946_s11] sm:$0xf] }
 0x148   : > { %1503 = vmatpush.bf16.msrb.mxu1 %v10380_v14 }
 0x149   : > { %10262 = vmatmul.msk.bf16.gmra.mxu1 %vm1101_vm1, %v13307_v15  ;;  %1480 = vmatmul.bf16.gmra.mxu0 %v14402_v43  ;;  %v14622_v15 = vpop.f32.mrf.mxu0 }
 0x14a   : > { %21949 = vst [vmem:[#allocation16_spill] sm:$0xff] %v14622_v15 }
 0x14b   : > { %10284 = vmatmul.msk.bf16.gmra.mxu2 %vm1101_vm1, %v13313_v3  ;;  %10288 = vmatmul.msk.bf16.gmra.mxu3 %vm1101_vm1, %v13313_v3  ;;  %v10440_v3 = vor.u32 %v13318_v0, %v10437_v2 }
 0x151   : > { %v14650_v33 = vpop.f32.mrf.mxu0 }
 0x152   : > { %21951 = vst [vmem:[#allocation18_spill] sm:$0xff] %v14650_v33 }
 0x159   : > { %10263 = vmatmul.msk.bf16.gmra.mxu1 %vm1101_vm1, %v14428_v54  ;;  %1485 = vmatmul.bf16.gmra.mxu0 %v14396_v38  ;;  %v13328_v54 = vld [vmem:[%s21946_s11 + $0x74] sm:$0xf]  ;;  %v14696_v58 = vpop.f32.mrf.mxu0 }
 0x15a   : > { %21953 = vst [vmem:[#allocation20_spill] sm:$0xff] %v14696_v58 }
 0x15b   : > { %1533 = vmatmul.bf16.vlgmr.msrb.gmra.mxu2 %v14416_v50  ;;  %10413 = vmatmul.msk.bf16.vlgmr.msrb.gmra.mxu3 %vm1101_vm1, %v14423_v53  ;;  %v10477_v50 = vld [vmem:[%s21946_s11 + $0x78] sm:$0xf0] }
 0x15c   : > { %v10480_v25 = vor.u32 %v13328_v54, %v10477_v50  ;;  %v10507_v50 = vld [vmem:[%s21946_s11 + $0xb0] sm:$0xf] }
 0x15e   : > { %1773 = vmatpush.bf16.msra.mxu2 %v10480_v25 }
 0x161   : > { %v14712_v4 = vpop.f32.mrf.mxu0 }
 0x162   : > { %1774 = vmatpush.bf16.msra.mxu2 %v10472_v37  ;;  %21955 = vst [vmem:[#allocation22_spill] sm:$0xff] %v14712_v4  ;;  %v10500_v37 = vor.u32 %v13335_v27, %v10499_v26  ;;  %v10587_v27 = vld [vmem:[%s21946_s11 + $0x1d0] sm:$0xf] }
 0x163   : > { %v10588_v39 = vor.u32 %v13373_v36, %v10587_v27  ;;  %v10547_v27 = vld [vmem:[%s21946_s11 + $0x180] sm:$0xf]  ;;  %v13363_v36 = vld [vmem:[%s21946_s11 + $0x184] sm:$0xf0] }
 0x166   : > { %1775 = vmatpush.bf16.msra.mxu2 %v10464_v44  ;;  %v13333_v44 = vld [vmem:[%s21946_s11 + $0x94] sm:$0xf0] }
 0x169   : > { %10264 = vmatmul.msk.bf16.gmra.mxu1 %vm1101_vm1, %v14501_v17  ;;  %1490 = vmatmul.bf16.gmra.mxu0 %v14386_v19  ;;  %v13323_v17 = vld [vmem:[%s21946_s11 + $0x44] sm:$0xf0]  ;;  %v14745_v16 = vpop.f32.mrf.mxu0 }
 0x16a   : > { %v10452_v48 = vor.u32 %v13323_v17, %v10451_v45  ;;  %21957 = vst [vmem:[#allocation24_spill] sm:$0xff] %v14745_v16  ;;  %v13332_v45 = vld [vmem:[%s21946_s11 + $0x94] sm:$0xf]  ;;  %v10492_v17 = vor.u32 %v13333_v44, %v10491_v42  ;;  %v10579_v42 = vld [vmem:[%s21946_s11 + $0x1c0] sm:$0xf] }
 0x16b   : > { %1538 = vmatmul.bf16.gmra.mxu2 %v14402_v43  ;;  %10414 = vmatmul.msk.bf16.gmra.mxu3 %vm1101_vm1, %v14404_v46  ;;  %v10453_v43 = vld [vmem:[%s21946_s11 + $0x48] sm:$0xf0]  ;;  %v13371_v44 = vld [vmem:[%s21946_s11 + $0x1c4] sm:$0xf0] }
 0x16c   : > { %v10456_v49 = vor.u32 %v13322_v47, %v10453_v43  ;;  %1718 = vmatpush.bf16.msrb.mxu0 %v10452_v48  ;;  %v10493_v47 = vld [vmem:[%s21946_s11 + $0x98] sm:$0xf0]  ;;  %v10483_v43 = vld [vmem:[%s21946_s11 + $0x80] sm:$0xf] }
 0x16d   : > { %v10496_v48 = vor.u32 %v13332_v45, %v10493_v47  ;;  %v13370_v45 = vld [vmem:[%s21946_s11 + $0x1c4] sm:$0xf] }
 0x16e   : > { %1776 = vmatpush.bf16.msra.mxu2 %v10456_v49  ;;  %v13331_v49 = vld [vmem:[%s21946_s11 + $0x84] sm:$0xf0] }
 0x16f   : > { %v10484_v57 = vor.u32 %v13331_v49, %v10483_v43  ;;  %v10581_v43 = vld [vmem:[%s21946_s11 + $0x1c8] sm:$0xf0] }
 0x170   : > { %1719 = vmatpush.bf16.msrb.mxu0 %v10444_v59 }
 0x171   : > { %v14754_v54 = vpop.f32.mrf.mxu0 }
 0x172   : > { %1777 = vmatpush.bf16.msra.mxu2 %v10448_v61  ;;  %21959 = vst [vmem:[#allocation26_spill] sm:$0xff] %v14754_v54 }
 0x174   : > { %1720 = vmatpush.bf16.msrb.mxu0 %v10436_v1 }
 0x176   : > { %1778 = vmatpush.bf16.msra.mxu2 %v10440_v3 }
 0x178   : > { %1721 = vmatpush.bf16.msrb.mxu0 %v10428_v7 }
 0x179   : > { %10409 = vmatmul.msk.bf16.vlgmr.msrb.gmra.mxu1 %vm1101_vm1, %v14423_v53  ;;  %v13315_v53 = vld [vmem:[%s21946_s11 + $0x4] sm:$0xf0] }
 0x17a   : > { %1779 = vmatpush.bf16.msra.mxu2 %v10432_v10  ;;  %v10420_v13 = vor.u32 %v13315_v53, %v10419_v11  ;;  %v10603_v10 = vld [vmem:[%s21946_s11 + $0x1f0] sm:$0xf]  ;;  %v13377_v11 = vld [vmem:[%s21946_s11 + $0x1f4] sm:$0xf0] }
 0x17b   : > { %1543 = vmatmul.bf16.gmra.mxu2 %v14396_v38  ;;  %10415 = vmatmul.msk.bf16.gmra.mxu3 %vm1101_vm1, %v14392_v34  ;;  %v10421_v38 = vld [vmem:[%s21946_s11 + $0x8] sm:$0xf0]  ;;  %v10604_v53 = vor.u32 %v13377_v11, %v10603_v10  ;;  %v13366_v10 = vld [vmem:[%s21946_s11 + $0x1a4] sm:$0xf] }
 0x17c   : > { %v10424_v14 = vor.u32 %v13314_v12, %v10421_v38  ;;  %1722 = vmatpush.bf16.msrb.mxu0 %v10420_v13  ;;  %v10605_v12 = vld [vmem:[%s21946_s11 + $0x1f8] sm:$0xf0]  ;;  %v10595_v38 = vld [vmem:[%s21946_s11 + $0x1e0] sm:$0xf] }
 0x17e   : > { %1780 = vmatpush.bf16.msra.mxu2 %v10424_v14  ;;  %v13375_v14 = vld [vmem:[%s21946_s11 + $0x1e4] sm:$0xf0] }
 0x180   : > { %1988 = vmatpush.bf16.msra.mxu0 %v10604_v53 }
 0x189   : > { %10410 = vmatmul.msk.bf16.gmra.mxu1 %vm1101_vm1, %v14404_v46  ;;  %v13336_v46 = vld [vmem:[%s21946_s11 + $0xb4] sm:$0xf] }
 0x18a   : > { %v10512_v25 = vor.u32 %v13336_v46, %v10509_v23  ;;  %v10597_v23 = vld [vmem:[%s21946_s11 + $0x1e8] sm:$0xf0] }
 0x18b   : > { %1548 = vmatmul.bf16.gmra.mxu2 %v14386_v19  ;;  %10416 = vmatmul.msk.bf16.gmra.mxu3 %vm1101_vm1, %v14388_v20  ;;  %v10508_v19 = vor.u32 %v13337_v22, %v10507_v50  ;;  %v13374_v50 = vld [vmem:[%s21946_s11 + $0x1e4] sm:$0xf] }
 0x18c   : > { %1806 = vmatpush.bf16.msra.mxu3 %v10512_v25  ;;  %v10600_v26 = vor.u32 %v13374_v50, %v10597_v23  ;;  %v13365_v50 = vld [vmem:[%s21946_s11 + $0x194] sm:$0xf0] }
 0x18d   : > { %1748 = vmatpush.bf16.msra.mxu1 %v10508_v19  ;;  %v10596_v19 = vor.u32 %v13375_v14, %v10595_v38  ;;  %v10555_v14 = vld [vmem:[%s21946_s11 + $0x190] sm:$0xf] }
 0x18e   : > { %v10556_v23 = vor.u32 %v13365_v50, %v10555_v14  ;;  %v10621_v50 = vld [vmem:[%s21946_s11 + $0x218] sm:$0xf0] }
 0x18f   : > { %1989 = vmatpush.bf16.msra.mxu0 %v10596_v19  ;;  %v13364_v19 = vld [vmem:[%s21946_s11 + $0x194] sm:$0xf] }
 0x190   : > { %1807 = vmatpush.bf16.msra.mxu3 %v10504_v41 }
 0x191   : > { %1749 = vmatpush.bf16.msra.mxu1 %v10500_v37  ;;  %v13372_v37 = vld [vmem:[%s21946_s11 + $0x1d4] sm:$0xf] }
 0x193   : > { %1990 = vmatpush.bf16.msra.mxu0 %v10588_v39 }
 0x194   : > { %1808 = vmatpush.bf16.msra.mxu3 %v10496_v48  ;;  %v10580_v48 = vor.u32 %v13371_v44, %v10579_v42  ;;  %v10549_v42 = vld [vmem:[%s21946_s11 + $0x188] sm:$0xf0] }
 0x195   : > { %1750 = vmatpush.bf16.msra.mxu1 %v10492_v17 }
 0x196   : > { %v1123_v32 = vpop.f32.mrf.mxu0  ;;  %v14782_v40 = vpop.f32.mrf.mxu1 }
 0x197   : > { %1991 = vmatpush.bf16.msra.mxu0 %v10580_v48 }
 0x199   : > { %10411 = vmatmul.msk.bf16.gmra.mxu1 %vm1101_vm1, %v14392_v34  ;;  %v10485_v34 = vld [vmem:[%s21946_s11 + $0x88] sm:$0xf0] }
 0x19a   : > { %v10488_v62 = vor.u32 %v13330_v52, %v10485_v34  ;;  %1751 = vmatpush.bf16.msra.mxu1 %v10484_v57  ;;  %v10584_v52 = vor.u32 %v13370_v45, %v10581_v43 }
 0x19c   : > { %1809 = vmatpush.bf16.msra.mxu3 %v10488_v62  ;;  %v13369_v62 = vld [vmem:[%s21946_s11 + $0x1b4] sm:$0xf0] }
 0x19e   : > { %v14807_v55 = vpop.f32.mrf.mxu2  ;;  %v14809_v56 = vpop.f32.mrf.mxu3 }
 0x19f   : > { %v1125_v59 = vpop.f32.mrf.mxu0  ;;  %v1135_v61 = vpop.f32.mrf.mxu1 }
 0x1a0   : > { %v1172_v63 = vpack.c.bf16 %v1125_v59, %v1123_v32  ;;  %v10589_v32 = vld [vmem:[%s21946_s11 + $0x1d8] sm:$0xf0]  ;;  %v1176_v34 = vpack.c.bf16 %v1135_v61, %v14782_v40  ;;  %v10571_v59 = vld [vmem:[%s21946_s11 + $0x1b0] sm:$0xf] }
 0x1a1   : > { %v10592_v41 = vor.u32 %v13372_v37, %v10589_v32  ;;  %v10573_v40 = vld [vmem:[%s21946_s11 + $0x1b8] sm:$0xf0]  ;;  %v13362_v37 = vld [vmem:[%s21946_s11 + $0x184] sm:$0xf] }
 0x1a2   : > { %1723 = vmatmul.bf16.vlgmr.msrb.gmra.mxu0 %v1172_v63  ;;  %1781 = vmatmul.bf16.vlgmr.msra.gmra.mxu2 %v1172_v63  ;;  %v13368_v63 = vld [vmem:[%s21946_s11 + $0x1b4] sm:$0xf]  ;;  %v10552_v45 = vor.u32 %v13362_v37, %v10549_v42 }
 0x1a3   : > { %v10576_v61 = vor.u32 %v13368_v63, %v10573_v40  ;;  %v13383_v63 = vld [vmem:[%s21946_s11 + $0x224] sm:$0xf0] }
 0x1a6   : > { %v14814_v0 = vpop.f32.mrf.mxu2  ;;  %v14816_v1 = vpop.f32.mrf.mxu3 }
 0x1a7   : > { %v1128_v2 = vpop.f32.mrf.mxu0  ;;  %v14818_v3 = vpop.f32.mrf.mxu1 }
 0x1a9   : > { %10412 = vmatmul.msk.bf16.gmra.mxu1 %vm1101_vm1, %v14388_v20  ;;  %v13376_v20 = vld [vmem:[%s21946_s11 + $0x1f4] sm:$0xf] }
 0x1aa   : > { %v10608_v13 = vor.u32 %v13376_v20, %v10605_v12  ;;  %v10565_v12 = vld [vmem:[%s21946_s11 + $0x1a8] sm:$0xf0] }
 0x1ab   : > { %v10568_v38 = vor.u32 %v13366_v10, %v10565_v12  ;;  %v10619_v12 = vld [vmem:[%s21946_s11 + $0x210] sm:$0xf] }
 0x1ac   : > { %2046 = vmatpush.bf16.msrb.mxu2 %v10608_v13 }
 0x1ae   : > { %v14822_v5 = vpop.f32.mrf.mxu2  ;;  %v14824_v51 = vpop.f32.mrf.mxu3 }
 0x1af   : > { %v1130_v6 = vpop.f32.mrf.mxu0  ;;  %v14826_v7 = vpop.f32.mrf.mxu1 }
 0x1b0   : > { %v1174_v8 = vpack.c.bf16 %v1130_v6, %v1128_v2  ;;  %2047 = vmatpush.bf16.msrb.mxu2 %v10600_v26  ;;  %v10572_v2 = vor.u32 %v13369_v62, %v10571_v59  ;;  %v10563_v6 = vld [vmem:[%s21946_s11 + $0x1a0] sm:$0xf]  ;;  %v1178_v48 = vpack.c.bf16 %v14826_v7, %v14818_v3  ;;  %v10637_v7 = vld [vmem:[%s21946_s11 + $0x238] sm:$0xf0] }
 0x1b1   : > { %v10627_v62 = vld [vmem:[%s21946_s11 + $0x220] sm:$0xf] }
 0x1b2   : > { %1728 = vmatmul.bf16.gmra.mxu0 %v1174_v8  ;;  %1786 = vmatmul.bf16.gmra.mxu2 %v1174_v8  ;;  %v13367_v8 = vld [vmem:[%s21946_s11 + $0x1a4] sm:$0xf0] }
 0x1b3   : > { %1992 = vmatpush.bf16.msra.mxu0 %v10572_v2  ;;  %v10564_v53 = vor.u32 %v13367_v8, %v10563_v6  ;;  %v13382_v2 = vld [vmem:[%s21946_s11 + $0x224] sm:$0xf]  ;;  %v10628_v6 = vor.u32 %v13383_v63, %v10627_v62  ;;  %v10629_v8 = vld [vmem:[%s21946_s11 + $0x228] sm:$0xf0] }
 0x1b4   : > { %2048 = vmatpush.bf16.msrb.mxu2 %v10592_v41  ;;  %v10548_v41 = vor.u32 %v13363_v36, %v10547_v27  ;;  %v13378_v27 = vld [vmem:[%s21946_s11 + $0x204] sm:$0xf]  ;;  %v1278_v36 = vpack.c.bf16 %v14814_v0, %v14807_v55 }
 0x1b6   : > { %v14849_v22 = vpop.f32.mrf.mxu2  ;;  %v14851_v46 = vpop.f32.mrf.mxu3 }
 0x1b7   : > { %v1152_v25 = vpop.f32.mrf.mxu1  ;;  %1993 = vmatpush.bf16.msra.mxu0 %v10564_v53  ;;  %v10632_v53 = vor.u32 %v13382_v2, %v10629_v8 }
 0x1b8   : > { %2049 = vmatpush.bf16.msrb.mxu2 %v10584_v52  ;;  %v10635_v52 = vld [vmem:[%s21946_s11 + $0x230] sm:$0xf] }
 0x1bb   : > { %1994 = vmatpush.bf16.msra.mxu0 %v10556_v23 }
 0x1bc   : > { %2050 = vmatpush.bf16.msrb.mxu2 %v10576_v61 }
 0x1be   : > { %v14877_v17 = vpop.f32.mrf.mxu2  ;;  %v14879_v47 = vpop.f32.mrf.mxu3 }
 0x1bf   : > { %v1154_v49 = vpop.f32.mrf.mxu1  ;;  %1995 = vmatpush.bf16.msra.mxu0 %v10548_v41 }
 0x1c0   : > { %v1173_v57 = vpack.c.bf16 %v1154_v49, %v1152_v25  ;;  %v10557_v25 = vld [vmem:[%s21946_s11 + $0x198] sm:$0xf0]  ;;  %2051 = vmatpush.bf16.msrb.mxu2 %v10568_v38  ;;  %v14945_v49 = vpop.f32.mrf.mxu0  ;;  %v13380_v38 = vld [vmem:[%s21946_s11 + $0x214] sm:$0xf] }
 0x1c1   : > { %v10560_v26 = vor.u32 %v13364_v19, %v10557_v25  ;;  %v10624_v19 = vor.u32 %v13380_v38, %v10621_v50  ;;  %v10611_v25 = vld [vmem:[%s21946_s11 + $0x200] sm:$0xf] }
 0x1c2   : > { %1733 = vmatmul.bf16.gmra.mxu0 %v1176_v34  ;;  %10513 = vmatmul.msk.bf16.vlgmr.msra.gmra.mxu1 %vm1101_vm1, %v1173_v57 }
 0x1c3   : > { %1791 = vmatmul.bf16.gmra.mxu2 %v1176_v34  ;;  %10517 = vmatmul.msk.bf16.vlgmr.msra.gmra.mxu3 %vm1101_vm1, %v1173_v57  ;;  %v13385_v57 = vld [vmem:[%s21946_s11 + $0x234] sm:$0xf0]  ;;  %v13384_v34 = vld [vmem:[%s21946_s11 + $0x234] sm:$0xf] }
 0x1c4   : > { %2052 = vmatpush.bf16.msrb.mxu2 %v10560_v26  ;;  %v10636_v3 = vor.u32 %v13385_v57, %v10635_v52  ;;  %v10640_v59 = vor.u32 %v13384_v34, %v10637_v7  ;;  %v13379_v26 = vld [vmem:[%s21946_s11 + $0x204] sm:$0xf0] }
 0x1c5   : > { %v10612_v42 = vor.u32 %v13379_v26, %v10611_v25 }
 0x1c6   : > { %v14908_v11 = vpop.f32.mrf.mxu2  ;;  %v14910_v20 = vpop.f32.mrf.mxu3  ;;  %2021 = vmatpush.bf16.msrb.mxu1 %v10636_v3  ;;  %2079 = vmatpush.bf16.msrb.mxu3 %v10640_v59  ;;  %v1280_v3 = vpack.c.bf16 %v14849_v22, %v14822_v5 }
 0x1c7   : > { %v1157_v13 = vpop.f32.mrf.mxu1 }
 0x1c8   : > { %2053 = vmatpush.bf16.msrb.mxu2 %v10552_v45  ;;  %v14989_v23 = vpop.f32.mrf.mxu0 }
 0x1ca   : > { %2022 = vmatpush.bf16.msrb.mxu1 %v10628_v6  ;;  %2080 = vmatpush.bf16.msrb.mxu3 %v10632_v53 }
 0x1ce   : > { %v14936_v39 = vpop.f32.mrf.mxu2  ;;  %v14938_v32 = vpop.f32.mrf.mxu3  ;;  %2081 = vmatpush.bf16.msrb.mxu3 %v10624_v19  ;;  %v1279_v19 = vpack.c.bf16 %v14816_v1, %v14809_v56 }
 0x1cf   : > { %v1159_v44 = vpop.f32.mrf.mxu1 }
 0x1d0   : > { %v1175_v43 = vpack.c.bf16 %v1159_v44, %v1157_v13  ;;  %v13381_v13 = vld [vmem:[%s21946_s11 + $0x214] sm:$0xf0]  ;;  %v10613_v44 = vld [vmem:[%s21946_s11 + $0x208] sm:$0xf0]  ;;  %v1481_v55 = vpop.f32.mrf.mxu0 }
 0x1d1   : > { %v10620_v14 = vor.u32 %v13381_v13, %v10619_v12  ;;  %v1282_v12 = vpack.c.bf16 %v14908_v11, %v14877_v17 }
 0x1d2   : > { %1738 = vmatmul.bf16.gmra.mxu0 %v1178_v48  ;;  %10514 = vmatmul.msk.bf16.gmra.mxu1 %vm1101_vm1, %v1175_v43 }
 0x1d3   : > { %1796 = vmatmul.bf16.gmra.mxu2 %v1178_v48  ;;  %10518 = vmatmul.msk.bf16.gmra.mxu3 %vm1101_vm1, %v1175_v43  ;;  %v10616_v43 = vor.u32 %v13378_v27, %v10613_v44 }
 0x1d4   : > { %2023 = vmatpush.bf16.msrb.mxu1 %v10620_v14 }
 0x1d5   : > { %2082 = vmatpush.bf16.msrb.mxu3 %v10616_v43 }
 0x1d6   : > { %v14970_v40 = vpop.f32.mrf.mxu2  ;;  %v14972_v61 = vpop.f32.mrf.mxu3 }
 0x1d7   : > { %v1162_v10 = vpop.f32.mrf.mxu1 }
 0x1d8   : > { %2024 = vmatpush.bf16.msrb.mxu1 %v10612_v42  ;;  %v15015_v62 = vpop.f32.mrf.mxu0  ;;  %v1281_v42 = vpack.c.bf16 %v14851_v46, %v14824_v51 }
 0x1de   : > { %v1534_v37 = vpop.f32.mrf.mxu2  ;;  %v1563_v41 = vpop.f32.mrf.mxu3 }
 0x1df   : > { %v15005_v45 = vadd.f32 %v1563_v41, %v1534_v37  ;;  %v1164_v48 = vpop.f32.mrf.mxu1 }
 0x1e0   : > { %v1177_v52 = vpack.c.bf16 %v1164_v48, %v1162_v10  ;;  %v1486_v22 = vpop.f32.mrf.mxu0 }
 0x1e2   : > { %10515 = vmatmul.msk.bf16.gmra.mxu1 %vm1101_vm1, %v1177_v52  ;;  %1996 = vmatmul.bf16.vlgmr.msra.gmra.mxu0 %v1278_v36 }
 0x1e3   : > { %10519 = vmatmul.msk.bf16.gmra.mxu3 %vm1101_vm1, %v1177_v52  ;;  %2054 = vmatmul.bf16.vlgmr.msrb.gmra.mxu2 %v1278_v36  ;;  %v1284_v36 = vpack.c.bf16 %v14970_v40, %v14936_v39 }
 0x1e6   : > { %v15009_v0 = vpop.f32.mrf.mxu2  ;;  %v15011_v57 = vpop.f32.mrf.mxu3 }
 0x1e7   : > { %v1167_v34 = vpop.f32.mrf.mxu1 }
 0x1e8   : > { %v15031_v25 = vpop.f32.mrf.mxu0 }
 0x1ee   : > { %v1539_v7 = vpop.f32.mrf.mxu2  ;;  %v1568_v59 = vpop.f32.mrf.mxu3 }
 0x1ef   : > { %v1569_v63 = vadd.f32 %v1568_v59, %v1539_v7  ;;  %v1169_v2 = vpop.f32.mrf.mxu1 }
 0x1f0   : > { %v1179_v6 = vpack.c.bf16 %v1169_v2, %v1167_v34  ;;  %v1491_v27 = vpop.f32.mrf.mxu0 }
 0x1f2   : > { %10516 = vmatmul.msk.bf16.gmra.mxu1 %vm1101_vm1, %v1179_v6  ;;  %2001 = vmatmul.bf16.gmra.mxu0 %v1280_v3 }
 0x1f3   : > { %10520 = vmatmul.msk.bf16.gmra.mxu3 %vm1101_vm1, %v1179_v6  ;;  %2059 = vmatmul.bf16.gmra.mxu2 %v1280_v3 }
 0x1f6   : > { %v15019_v8 = vpop.f32.mrf.mxu2  ;;  %v15021_v10 = vpop.f32.mrf.mxu3 }
 0x1f7   : > { %v1505_v53 = vpop.f32.mrf.mxu1 }
 0x1f8   : > { %v1506_v5 = vadd.f32 %v1505_v53, %v14945_v49  ;;  %v15046_v44 = vpop.f32.mrf.mxu0  ;;  %v1285_v53 = vpack.c.bf16 %v14972_v61, %v14938_v32 }
 0x1fe   : > { %v1544_v13 = vpop.f32.mrf.mxu2  ;;  %v1573_v38 = vpop.f32.mrf.mxu3 }
 0x1ff   : > { %v1574_v14 = vadd.f32 %v1573_v38, %v1544_v13  ;;  %v15026_v50 = vpop.f32.mrf.mxu1 }
 0x202   : > { %10641 = vmatmul.msk.bf16.vlgmr.msrb.gmra.mxu1 %vm1101_vm1, %v1279_v19  ;;  %2006 = vmatmul.bf16.gmra.mxu0 %v1282_v12 }
 0x203   : > { %10645 = vmatmul.msk.bf16.vlgmr.msrb.gmra.mxu3 %vm1101_vm1, %v1279_v19  ;;  %2064 = vmatmul.bf16.gmra.mxu2 %v1282_v12 }
 0x206   : > { %v15034_v49 = vpop.f32.mrf.mxu2  ;;  %v15036_v26 = vpop.f32.mrf.mxu3 }
 0x207   : > { %v1510_v17 = vpop.f32.mrf.mxu1 }
 0x208   : > { %v1511_v11 = vadd.f32 %v1510_v17, %v1481_v55  ;;  %v1283_v55 = vpack.c.bf16 %v14910_v20, %v14879_v47 }
 0x20e   : > { %v1549_v37 = vpop.f32.mrf.mxu2  ;;  %v1578_v56 = vpop.f32.mrf.mxu3 }
 0x20f   : > { %v1579_v1 = vadd.f32 %v1578_v56, %v1549_v37  ;;  %v15040_v41 = vpop.f32.mrf.mxu1 }
 0x212   : > { %10642 = vmatmul.msk.bf16.gmra.mxu1 %vm1101_vm1, %v1281_v42  ;;  %2011 = vmatmul.bf16.gmra.mxu0 %v1284_v36 }
 0x213   : > { %10646 = vmatmul.msk.bf16.gmra.mxu3 %vm1101_vm1, %v1281_v42  ;;  %2069 = vmatmul.bf16.gmra.mxu2 %v1284_v36 }
 0x216   : > { %v15048_v52 = vpop.f32.mrf.mxu2  ;;  %v15071_v13 = vpop.f32.mrf.mxu3 }
 0x217   : > { %v1515_v48 = vpop.f32.mrf.mxu1 }
 0x218   : > { %v1516_v43 = vadd.f32 %v1515_v48, %v1486_v22 }
 0x21f   : > { %v15050_v39 = vpop.f32.mrf.mxu1  ;;  %v1724_v40 = vpop.f32.mrf.mxu0 }
 0x220   : > { %v1725_v34 = vadd.f32 %v1724_v40, %v1506_v5  ;;  %v1518_v33 = vadd.f32 %v15050_v39, %v15031_v25 }
 0x222   : > { %10643 = vmatmul.msk.bf16.gmra.mxu1 %vm1101_vm1, %v1283_v55 }
 0x223   : > { %10647 = vmatmul.msk.bf16.gmra.mxu3 %vm1101_vm1, %v1283_v55 }
 0x225   : > { %v1782_v51 = vpop.f32.mrf.mxu2 }
 0x226   : > { %v1783_v46 = vadd.f32 %v1782_v51, %v15005_v45 }
 0x227   : > { %v1520_v3 = vpop.f32.mrf.mxu1  ;;  %v15057_v7 = vpop.f32.mrf.mxu0 }
 0x228   : > { %v1521_v59 = vadd.f32 %v1520_v3, %v1491_v27 }
 0x22d   : > { %v15059_v2 = vpop.f32.mrf.mxu2 }
 0x22f   : > { %v1729_v6 = vpop.f32.mrf.mxu0  ;;  %v15065_v5 = vpop.f32.mrf.mxu1 }
 0x230   : > { %v1730_v22 = vadd.f32 %v1729_v6, %v1511_v11 }
 0x232   : > { %10644 = vmatmul.msk.bf16.gmra.mxu1 %vm1101_vm1, %v1285_v53 }
 0x233   : > { %10648 = vmatmul.msk.bf16.gmra.mxu3 %vm1101_vm1, %v1285_v53 }
 0x235   : > { %v1787_v47 = vpop.f32.mrf.mxu2 }
 0x236   : > { %v1788_v20 = vadd.f32 %v1787_v47, %v1569_v63 }
 0x237   : > { %v15067_v45 = vpop.f32.mrf.mxu0 }
 0x23d   : > { %v15069_v12 = vpop.f32.mrf.mxu2 }
 0x23f   : > { %v1734_v38 = vpop.f32.mrf.mxu0  ;;  %v1753_v19 = vpop.f32.mrf.mxu1 }
 0x240   : > { %v1735_v17 = vadd.f32 %v1734_v38, %v1516_v43  ;;  %v1754_v27 = vadd.f32 %v1753_v19, %v1725_v34 }
 0x246   : > { %v1792_v32 = vpop.f32.mrf.mxu2  ;;  %v1811_v61 = vpop.f32.mrf.mxu3 }
 0x247   : > { %v1793_v11 = vadd.f32 %v1792_v32, %v1574_v14  ;;  %v1812_v36 = vadd.f32 %v1811_v61, %v1783_v46  ;;  %v15073_v37 = vpop.f32.mrf.mxu0  ;;  %v15075_v56 = vpop.f32.mrf.mxu1 }
 0x24e   : > { %v15077_v63 = vpop.f32.mrf.mxu2  ;;  %v15079_v42 = vpop.f32.mrf.mxu3 }
 0x24f   : > { %v1739_v48 = vpop.f32.mrf.mxu0  ;;  %v1758_v40 = vpop.f32.mrf.mxu1 }
 0x250   : > { %v1740_v55 = vadd.f32 %v1739_v48, %v1521_v59  ;;  %v15081_v51 = vadd.f32 %v1758_v40, %v1730_v22 }
 0x256   : > { %v1797_v3 = vpop.f32.mrf.mxu2  ;;  %v1816_v43 = vpop.f32.mrf.mxu3 }
 0x257   : > { %v1798_v34 = vadd.f32 %v1797_v3, %v1579_v1  ;;  %v15083_v6 = vadd.f32 %v1816_v43, %v1788_v20  ;;  %v15085_v14 = vpop.f32.mrf.mxu1  ;;  %v1741_v61 = vpop.f32.mrf.mxu0 }
 0x259   : > { %21961 = vst [vmem:[#allocation28_spill] sm:$0xff] %v15083_v6  ;;  %v1571_v6 = vadd.f32 %v15021_v10, %v15019_v8 }
 0x25b   : > { %v1790_v25 = vadd.f32 %v15069_v12, %v1571_v6 }
 0x25e   : > { %v15087_v46 = vpop.f32.mrf.mxu3  ;;  %v15095_v48 = vpop.f32.mrf.mxu2 }
 0x25f   : > { %v1763_v53 = vpop.f32.mrf.mxu1  ;;  %v1997_v20 = vpop.f32.mrf.mxu0 }
 0x260   : > { %v15089_v47 = vadd.f32 %v1763_v53, %v1735_v17 }
 0x266   : > { %v1821_v38 = vpop.f32.mrf.mxu3  ;;  %v2055_v31 = vpop.f32.mrf.mxu2 }
 0x267   : > { %v15091_v19 = vadd.f32 %v1821_v38, %v1793_v11  ;;  %v1765_v32 = vpop.f32.mrf.mxu1  ;;  %v15099_v29 = vpop.f32.mrf.mxu0 }
 0x269   : > { %21962 = vst [vmem:[#allocation29_spill] sm:$0xff] %v15091_v19 }
 0x26e   : > { %v15093_v59 = vpop.f32.mrf.mxu3  ;;  %v15103_v38 = vpop.f32.mrf.mxu2 }
 0x26f   : > { %v1768_v22 = vpop.f32.mrf.mxu1  ;;  %21963 = vst [vmem:[#allocation30_spill] sm:$0xff] %v15103_v38  ;;  %v2002_v18 = vpop.f32.mrf.mxu0  ;;  %v1737_v38 = vadd.f32 %v15073_v37, %v1518_v33 }
 0x270   : > { %v1769_v1 = vadd.f32 %v1768_v22, %v1740_v55 }
 0x271   : > { %v1766_v8 = vadd.f32 %v1765_v32, %v1737_v38  ;;  %v1819_v32 = vadd.f32 %v15087_v46, %v1790_v25 }
 0x276   : > { %v1826_v40 = vpop.f32.mrf.mxu3 }
 0x277   : > { %v15097_v3 = vadd.f32 %v1826_v40, %v1798_v34  ;;  %v1770_v43 = vpop.f32.mrf.mxu1  ;;  %v15109_v34 = vpop.f32.mrf.mxu2 }
 0x278   : > { %v2004_v35 = vpop.f32.mrf.mxu0 }
 0x27e   : > { %v15101_v17 = vpop.f32.mrf.mxu3 }
 0x27f   : > { %v2026_v11 = vpop.f32.mrf.mxu1  ;;  %v15113_v28 = vpop.f32.mrf.mxu2 }
 0x280   : > { %v2027_v53 = vadd.f32 %v2026_v11, %v1997_v20  ;;  %v2007_v11 = vpop.f32.mrf.mxu0 }
 0x282   : > { %v15105_v21 = vadd.f32 %v2027_v53, %v1754_v27 }
 0x284   : > { %21964 = vst [vmem:[#allocation31_spill] sm:$0xff] %v15105_v21  ;;  %v1508_v21 = vadd.f32 %v15026_v50, %v14989_v23  ;;  %v1523_v23 = vadd.f32 %v15065_v5, %v15046_v44  ;;  %v2142_v44 = vld [vmem:[%s21877_s13] sm:$0x3] }
 0x286   : > { %v2084_v9 = vpop.f32.mrf.mxu3 }
 0x287   : > { %v2085_v60 = vadd.f32 %v2084_v9, %v2055_v31  ;;  %v2028_v55 = vpop.f32.mrf.mxu1  ;;  %v2065_v54 = vpop.f32.mrf.mxu2 }
 0x288   : > { %v2009_v31 = vpop.f32.mrf.mxu0 }
 0x289   : > { %v15107_v22 = vadd.f32 %v2085_v60, %v1812_v36 }
 0x28b   : > { %21965 = vst [vmem:[#allocation32_spill] sm:$0xff] %v15107_v22  ;;  %v1566_v22 = vadd.f32 %v15011_v57, %v15009_v0  ;;  %v2120_v0 = vld [vmem:[%s21968_s12] sm:$0x3] }
 0x28c   : > { %v15155_v38 = vperm.slane %v2120_v0, 1 }
 0x28d   : > { %v1785_v57 = vadd.f32 %v15059_v2, %v1566_v22 }
 0x28e   : > { %v15111_v40 = vpop.f32.mrf.mxu3 }
 0x28f   : > { %21966 = vst [vmem:[#allocation33_spill] sm:$0xff] %v15111_v40  ;;  %v2031_v24 = vpop.f32.mrf.mxu1  ;;  %v2067_v36 = vpop.f32.mrf.mxu2  ;;  %v1576_v40 = vadd.f32 %v15036_v26, %v15034_v49  ;;  %v1814_v2 = vadd.f32 %v15079_v42, %v1785_v57 }
 0x290   : > { %v2012_v16 = vpop.f32.mrf.mxu0 }
 0x291   : > { %v1795_v26 = vadd.f32 %v15077_v63, %v1576_v40 }
 0x296   : > { %v15115_v30 = vpop.f32.mrf.mxu3 }
 0x297   : > { %21967 = vst [vmem:[#allocation34_spill] sm:$0xff] %v15115_v30  ;;  %v2033_v20 = vpop.f32.mrf.mxu1  ;;  %v1513_v30 = vadd.f32 %v15040_v41, %v15015_v62  ;;  %v2070_v10 = vpop.f32.mrf.mxu2  ;;  %v2122_v41 = vperm.slane %v2120_v0, 0 }
 0x298   : > { %v2014_v5 = vpop.f32.mrf.mxu0 }
 0x299   : > { %v1732_v62 = vadd.f32 %v15067_v45, %v1513_v30 }
 0x29e   : > { %v15117_v27 = vpop.f32.mrf.mxu3 }
 0x29f   : > { %v2036_v53 = vpop.f32.mrf.mxu1 }
 0x2a0   : > { %v2037_v33 = vadd.f32 %v2036_v53, %v2007_v11  ;;  %v2072_v53 = vpop.f32.mrf.mxu2 }
 0x2a2   : > { %v2112_v37 = vadd.f32 %v2037_v33, %v15089_v47 }
 0x2a4   : > { %v2134_v22 = vmul.f32 %v2122_v41, %v2112_v37 }
 0x2a6   : > { %v2094_v9 = vpop.f32.mrf.mxu3 }
 0x2a7   : > { %v2038_v60 = vpop.f32.mrf.mxu1 }
 0x2a8   : > { %v2039_v19 = vadd.f32 %v2038_v60, %v2009_v31 }
 0x2aa   : > { %v2114_v39 = vadd.f32 %v2039_v19, %v1766_v8 }
 0x2ae   : > { %v2096_v4 = vpop.f32.mrf.mxu3 }
 0x2af   : > { %v2041_v58 = vpop.f32.mrf.mxu1  ;;  %v2097_v19 = vadd.f32 %v2096_v4, %v2067_v36  ;;  %v15160_v4 = vperm.slane %v2142_v44, 1 }
 0x2b0   : > { %v2042_v15 = vadd.f32 %v2041_v58, %v2012_v16  ;;  %v1581_v58 = vadd.f32 %v15071_v13, %v15048_v52  ;;  %v1727_v16 = vadd.f32 %v15057_v7, %v1508_v21  ;;  %v1742_v21 = vadd.f32 %v1741_v61, %v1523_v23 }
 0x2b1   : > { %v2034_v52 = vadd.f32 %v2033_v20, %v2004_v35  ;;  %v2032_v13 = vadd.f32 %v2031_v24, %v2002_v18  ;;  %v2144_v35 = vperm.slane %v2142_v44, 0  ;;  %v2029_v61 = vadd.f32 %v2028_v55, %v15099_v29 }
 0x2b2   : > { %v2116_v50 = vadd.f32 %v2042_v15, %v1769_v1  ;;  %v1756_v49 = vadd.f32 %v15075_v56, %v1727_v16  ;;  %v1761_v15 = vadd.f32 %v15085_v14, %v1732_v62  ;;  %v1771_v30 = vadd.f32 %v1770_v43, %v1742_v21 }
 0x2b3   : > { %v1800_v6 = vadd.f32 %v15095_v48, %v1581_v58  ;;  %v2136_v1 = vmul.f32 %v2122_v41, %v2114_v39  ;;  %v1824_v43 = vadd.f32 %v15093_v59, %v1795_v26  ;;  %v2095_v24 = vadd.f32 %v2094_v9, %v2065_v54  ;;  %v21970_v9 = vld [vmem:[#allocation29_spill] sm:$0xff]  ;;  %v21974_v39 = vld [vmem:[#allocation31_spill] sm:$0xff] }
 0x2b4   : > { %v2138_v56 = vmul.f32 %v2122_v41, %v2116_v50  ;;  %v2110_v42 = vadd.f32 %v2034_v52, %v1761_v15  ;;  %v2108_v47 = vadd.f32 %v2032_v13, %v15081_v51  ;;  %v2092_v29 = vadd.f32 %v15117_v27, %v15113_v28  ;;  %v21971_v28 = vld [vmem:[#allocation30_spill] sm:$0xff]  ;;  %v21972_v27 = vld [vmem:[#allocation33_spill] sm:$0xff] }
 0x2b5   : > { %v1829_v46 = vadd.f32 %v15101_v17, %v1800_v6  ;;  %v2115_v55 = vadd.f32 %v2097_v19, %v1824_v43  ;;  %v2106_v20 = vadd.f32 %v2029_v61, %v1756_v49  ;;  %v2158_v11 = vadd.f32 %v2144_v35, %v2136_v1  ;;  %v21973_v49 = vld [vmem:[#allocation28_spill] sm:$0xff] }
 0x2b6   : > { %v2099_v7 = vpop.f32.mrf.mxu3  ;;  %v2160_v48 = vadd.f32 %v2144_v35, %v2138_v56  ;;  %v2132_v59 = vmul.f32 %v2122_v41, %v2110_v42  ;;  %v2113_v60 = vadd.f32 %v2095_v24, %v21970_v9  ;;  %v2130_v58 = vmul.f32 %v2122_v41, %v2108_v47  ;;  %v21975_v47 = vld [vmem:[#allocation32_spill] sm:$0xff] }
 0x2b7   : > { %v2100_v45 = vadd.f32 %v2099_v7, %v2070_v10  ;;  %v2043_v12 = vpop.f32.mrf.mxu1  ;;  %v2156_v16 = vadd.f32 %v2144_v35, %v2134_v22  ;;  %v2087_v57 = vadd.f32 %v21972_v27, %v21971_v28  ;;  %v2111_v8 = vadd.f32 %v2092_v29, %v1819_v32  ;;  %v10777_v27 = vld [vmem:[%s21878_s14 + $0x148] sm:$0xf0] }
 0x2b8   : > { %v2044_v63 = vadd.f32 %v2043_v12, %v2014_v5  ;;  %v2176_v23 = vmax.f32 %v2160_v48, 0.0  ;;  %v2137_v33 = vmul.f32 %v15155_v38, %v2115_v55  ;;  %v2128_v50 = vmul.f32 %v2122_v41, %v2106_v20 }
 0x2b9   : > { %v2117_v18 = vadd.f32 %v2100_v45, %v15097_v3  ;;  %v21969_v3 = vld [vmem:[#allocation34_spill] sm:$0xff]  ;;  %v2154_v62 = vadd.f32 %v2144_v35, %v2132_v59  ;;  %v2174_v25 = vmax.f32 %v2158_v11, 0.0  ;;  %v2135_v26 = vmul.f32 %v15155_v38, %v2113_v60  ;;  %v13386_v11 = vld [vmem:[%s21976_s28] sm:$0xff] }
 0x2ba   : > { %v2118_v14 = vadd.f32 %v2044_v63, %v1771_v30  ;;  %v2090_v51 = vadd.f32 %v21969_v3, %v15109_v34  ;;  %v2126_v7 = vmul.f32 %v2122_v41, %v21974_v39  ;;  %v2152_v15 = vadd.f32 %v2144_v35, %v2130_v58  ;;  %v13437_v3 = vld [vmem:[%s21878_s14 + $0x154] sm:$0xf0]  ;;  %v13436_v60 = vld [vmem:[%s21878_s14 + $0x154] sm:$0xf]  ;;  %v10775_v58 = vld [vmem:[%s21878_s14 + $0x140] sm:$0xf] }
 0x2bb   : > { %v2139_v36 = vmul.f32 %v15155_v38, %v2117_v18  ;;  %v2172_v30 = vmax.f32 %v2156_v16, 0.0  ;;  %v2107_v5 = vadd.f32 %v2087_v57, %v1814_v2  ;;  %v2133_v45 = vmul.f32 %v15155_v38, %v2111_v8  ;;  %v13435_v16 = vld [vmem:[%s21878_s14 + $0x144] sm:$0xf0]  ;;  %v10767_v8 = vld [vmem:[%s21878_s14 + $0x130] sm:$0xf] }
 0x2bc   : > { %v2140_v40 = vmul.f32 %v2122_v41, %v2118_v14  ;;  %v2109_v21 = vadd.f32 %v2090_v51, %v21973_v49  ;;  %v2159_v12 = vadd.f32 %v15160_v4, %v2137_v33  ;;  %v2150_v37 = vadd.f32 %v2144_v35, %v2128_v50  ;;  %v13433_v33 = vld [vmem:[%s21878_s14 + $0x134] sm:$0xf0]  ;;  %v13431_v49 = vld [vmem:[%s21878_s14 + $0x124] sm:$0xf0] }
 0x2bd   : > { %v2161_v44 = vadd.f32 %v15160_v4, %v2139_v36  ;;  %v2170_v56 = vmax.f32 %v2154_v62, 0.0  ;;  %v15183_v63 = vpack.c.bf16 %v2174_v25, %v2172_v30  ;;  %v2157_v41 = vadd.f32 %v15160_v4, %v2135_v26  ;;  %v10785_v36 = vld [vmem:[%s21878_s14 + $0x158] sm:$0xf0]  ;;  %v10759_v25 = vld [vmem:[%s21878_s14 + $0x120] sm:$0xf] }
 0x2be   : > { %v2162_v54 = vadd.f32 %v2144_v35, %v2140_v40  ;;  %v2101_v31 = vpop.f32.mrf.mxu3  ;;  %v2131_v6 = vmul.f32 %v15155_v38, %v2109_v21  ;;  %v2148_v61 = vadd.f32 %v2144_v35, %v2126_v7  ;;  %v2168_v42 = vmax.f32 %v2152_v15, 0.0  ;;  %v10769_v62 = vld [vmem:[%s21878_s14 + $0x138] sm:$0xf0]  ;;  %v13430_v26 = vld [vmem:[%s21878_s14 + $0x124] sm:$0xf] }
 0x2bf   : > { %v2102_v17 = vadd.f32 %v2101_v31, %v2072_v53  ;;  %v2177_v32 = vmax.f32 %v2161_v44, 0.0  ;;  %v2129_v2 = vmul.f32 %v15155_v38, %v2107_v5  ;;  %v2155_v1 = vadd.f32 %v15160_v4, %v2133_v45  ;;  %v13390_v53 = vld [vmem:[%s21978_s8] sm:$0xff]  ;;  %v10761_v44 = vld [vmem:[%s21878_s14 + $0x128] sm:$0xf0]  ;;  %v13449_v7 = vld [vmem:[%s21878_s14 + $0x1b4] sm:$0xf0] }
 0x2c0   : > { %v2178_v0 = vmax.f32 %v2162_v54, 0.0  ;;  %v2175_v14 = vmax.f32 %v2159_v12, 0.0  ;;  %v2166_v24 = vmax.f32 %v2150_v37, 0.0  ;;  %v15193_v18 = vpack.c.bf16 %v2170_v56, %v2168_v42  ;;  %v13448_v15 = vld [vmem:[%s21878_s14 + $0x1b4] sm:$0xf]  ;;  %v13391_v37 = vld [vmem:[%s21978_s8 + $0x8] sm:$0xff] }
 0x2c1   : > { %v2119_v10 = vadd.f32 %v2102_v17, %v1829_v46  ;;  %v2127_v22 = vmul.f32 %v15155_v38, %v21975_v47  ;;  %v2153_v35 = vadd.f32 %v15160_v4, %v2131_v6  ;;  %v2173_v48 = vmax.f32 %v2157_v41, 0.0  ;;  %v10833_v30 = vld [vmem:[%s21878_s14 + $0x1b8] sm:$0xf0]  ;;  %v10751_v56 = vld [vmem:[%s21878_s14 + $0x110] sm:$0xf] }
 0x2c2   : > { %v15171_v34 = vpack.c.bf16 %v2178_v0, %v2176_v23  ;;  %v2164_v40 = vmax.f32 %v2148_v61, 0.0  ;;  %v2151_v46 = vadd.f32 %v15160_v4, %v2129_v2  ;;  %v2171_v29 = vmax.f32 %v2155_v1, 0.0  ;;  %v13434_v23 = vld [vmem:[%s21878_s14 + $0x144] sm:$0xf]  ;;  %v13429_v6 = vld [vmem:[%s21878_s14 + $0x114] sm:$0xf0] }
 0x2c3   : > { %v2141_v52 = vmul.f32 %v15155_v38, %v2119_v10  ;;  %v15203_v55 = vpack.c.bf16 %v2175_v14, %v2173_v48  ;;  %v2149_v38 = vadd.f32 %v15160_v4, %v2127_v22  ;;  %v2169_v59 = vmax.f32 %v2153_v35, 0.0  ;;  %v13432_v10 = vld [vmem:[%s21878_s14 + $0x134] sm:$0xf]  ;;  %v10823_v42 = vld [vmem:[%s21878_s14 + $0x1a0] sm:$0xf] }
 0x2c4   : > { %2232 = vmatpush.bf16.msrb.mxu0 %v15171_v34  ;;  %2338 = vmatpush.bf16.msra.mxu2 %v15171_v34  ;;  %v15205_v20 = vpack.c.bf16 %v2166_v24, %v2164_v40  ;;  %v2167_v54 = vmax.f32 %v2151_v46, 0.0  ;;  %v10788_v17 = vor.u32 %v13436_v60, %v10785_v36  ;;  %v10776_v28 = vor.u32 %v13435_v16, %v10775_v58  ;;  %v13447_v2 = vld [vmem:[%s21878_s14 + $0x1a4] sm:$0xf0]  ;;  %v13446_v1 = vld [vmem:[%s21878_s14 + $0x1a4] sm:$0xf] }
 0x2c5   : > { %v2163_v13 = vadd.f32 %v15160_v4, %v2141_v52  ;;  %v15218_v31 = vpack.c.bf16 %v2171_v29, %v2169_v59  ;;  %v10783_v4 = vld [vmem:[%s21878_s14 + $0x150] sm:$0xf]  ;;  %v2165_v51 = vmax.f32 %v2149_v38, 0.0  ;;  %v10780_v57 = vor.u32 %v13434_v23, %v10777_v27  ;;  %v10825_v24 = vld [vmem:[%s21878_s14 + $0x1a8] sm:$0xf0] }
 0x2c6   : > { %v10784_v9 = vor.u32 %v13437_v3, %v10783_v4  ;;  %v10768_v50 = vor.u32 %v13433_v33, %v10767_v8  ;;  %v10772_v21 = vor.u32 %v13432_v10, %v10769_v62  ;;  %v10831_v52 = vld [vmem:[%s21878_s14 + $0x1b0] sm:$0xf]  ;;  %v10760_v39 = vor.u32 %v13431_v49, %v10759_v25  ;;  %v10743_v47 = vld [vmem:[%s21878_s14 + $0x100] sm:$0xf]  ;;  %v13427_v22 = vld [vmem:[%s21878_s14 + $0x104] sm:$0xf0] }
 0x2c7   : > { %v2179_v19 = vmax.f32 %v2163_v13, 0.0  ;;  %v15245_v0 = vpack.c.bf16 %v2167_v54, %v2165_v51  ;;  %v10832_v5 = vor.u32 %v13449_v7, %v10831_v52  ;;  %v10836_v45 = vor.u32 %v13448_v15, %v10833_v30  ;;  %v13387_v13 = vld [vmem:[%s21977_s25 + $0x8] sm:$0xff]  ;;  %v13426_v40 = vld [vmem:[%s21878_s14 + $0x104] sm:$0xf]  ;;  %v10815_v38 = vld [vmem:[%s21878_s14 + $0x190] sm:$0xf] }
 0x2c8   : > { %2233 = vmatpush.bf16.msrb.mxu0 %v15183_v63  ;;  %2339 = vmatpush.bf16.msra.mxu2 %v15183_v63  ;;  %v10764_v12 = vor.u32 %v13430_v26, %v10761_v44  ;;  %v10752_v41 = vor.u32 %v13429_v6, %v10751_v56  ;;  %v10824_v14 = vor.u32 %v13447_v2, %v10823_v42  ;;  %v10745_v46 = vld [vmem:[%s21878_s14 + $0x108] sm:$0xf0]  ;;  %v13445_v59 = vld [vmem:[%s21878_s14 + $0x194] sm:$0xf0]  ;;  %v10817_v54 = vld [vmem:[%s21878_s14 + $0x198] sm:$0xf0] }
 0x2c9   : > { %v15191_v43 = vpack.c.bf16 %v2179_v19, %v2177_v32  ;;  %v13428_v32 = vld [vmem:[%s21878_s14 + $0x114] sm:$0xf]  ;;  %v10753_v19 = vld [vmem:[%s21878_s14 + $0x118] sm:$0xf0]  ;;  %v10828_v35 = vor.u32 %v13446_v1, %v10825_v24  ;;  %v10744_v48 = vor.u32 %v13427_v22, %v10743_v47  ;;  %v10748_v29 = vor.u32 %v13426_v40, %v10745_v46  ;;  %v10735_v3 = vld [vmem:[%s21878_s14 + $0xf0] sm:$0xf] }
 0x2ca   : > { %v10756_v61 = vor.u32 %v13428_v32, %v10753_v19  ;;  %v13425_v51 = vld [vmem:[%s21878_s14 + $0xf4] sm:$0xf0]  ;;  %v10737_v36 = vld [vmem:[%s21878_s14 + $0xf8] sm:$0xf0]  ;;  %v13443_v58 = vld [vmem:[%s21878_s14 + $0x184] sm:$0xf0] }
 0x2cb   : > { %2261 = vmatpush.bf16.msra.mxu1 %v15191_v43  ;;  %2367 = vmatpush.bf16.msra.mxu3 %v15191_v43  ;;  %v10736_v60 = vor.u32 %v13425_v51, %v10735_v3  ;;  %v10809_v27 = vld [vmem:[%s21878_s14 + $0x188] sm:$0xf0]  ;;  %v13423_v33 = vld [vmem:[%s21878_s14 + $0xe4] sm:$0xf0]  ;;  %v13422_v10 = vld [vmem:[%s21878_s14 + $0xe4] sm:$0xf] }
 0x2cc   : > { %2234 = vmatpush.bf16.msrb.mxu0 %v15193_v18  ;;  %2340 = vmatpush.bf16.msra.mxu2 %v15193_v18  ;;  %v10799_v25 = vld [vmem:[%s21878_s14 + $0x170] sm:$0xf]  ;;  %v13441_v49 = vld [vmem:[%s21878_s14 + $0x174] sm:$0xf0]  ;;  %v10801_v52 = vld [vmem:[%s21878_s14 + $0x178] sm:$0xf0] }
 0x2cd   : > { %v10800_v44 = vor.u32 %v13441_v49, %v10799_v25  ;;  %v13392_v7 = vld [vmem:[%s21978_s8 + $0x10] sm:$0xff]  ;;  %v10791_v30 = vld [vmem:[%s21878_s14 + $0x160] sm:$0xf]  ;;  %v13389_v56 = vld [vmem:[%s21977_s25 + $0x18] sm:$0xff] }
 0x2ce   : > { %v13393_v6 = vld [vmem:[%s21978_s8 + $0x18] sm:$0xff]  ;;  %v13408_v19 = vld [vmem:[%s21878_s14 + $0x74] sm:$0xf]  ;;  %v13407_v42 = vld [vmem:[%s21878_s14 + $0x64] sm:$0xf0] }
 0x2cf   : > { %2262 = vmatpush.bf16.msra.mxu1 %v15203_v55  ;;  %2368 = vmatpush.bf16.msra.mxu3 %v15203_v55  ;;  %v13409_v32 = vld [vmem:[%s21878_s14 + $0x74] sm:$0xf0]  ;;  %v13406_v1 = vld [vmem:[%s21878_s14 + $0x64] sm:$0xf]  ;;  %v10887_v22 = vld [vmem:[%s21878_s14 + $0x50] sm:$0xf] }
 0x2d0   : > { %2235 = vmatpush.bf16.msrb.mxu0 %v15205_v20  ;;  %2341 = vmatpush.bf16.msra.mxu2 %v15205_v20  ;;  %v10889_v46 = vld [vmem:[%s21878_s14 + $0x58] sm:$0xf0]  ;;  %v13421_v3 = vld [vmem:[%s21878_s14 + $0xd4] sm:$0xf0]  ;;  %v13420_v51 = vld [vmem:[%s21878_s14 + $0xd4] sm:$0xf] }
 0x2d1   : > { %v13399_v25 = vld [vmem:[%s21878_s14 + $0x24] sm:$0xf0]  ;;  %v13398_v49 = vld [vmem:[%s21878_s14 + $0x24] sm:$0xf] }
 0x2d3   : > { %2263 = vmatpush.bf16.msra.mxu1 %v15218_v31  ;;  %2369 = vmatpush.bf16.msra.mxu3 %v15218_v31 }
 0x2d4   : > { %10665 = vmatmul.msk.bf16.vlgmr.msrb.gmra.mxu0 %vm1101_vm1, %v13386_v11  ;;  %10689 = vmatmul.msk.bf16.vlgmr.msra.gmra.mxu2 %vm1101_vm1, %v13390_v53 }
 0x2d5   : > { %2610 = vmatpush.bf16.msra.mxu0 %v10784_v9  ;;  %2668 = vmatpush.bf16.msrb.mxu2 %v10788_v17  ;;  %v13424_v9 = vld [vmem:[%s21878_s14 + $0xf4] sm:$0xf]  ;;  %v10807_v17 = vld [vmem:[%s21878_s14 + $0x180] sm:$0xf] }
 0x2d6   : > { %v10740_v16 = vor.u32 %v13424_v9, %v10737_v36  ;;  %v10808_v23 = vor.u32 %v13443_v58, %v10807_v17  ;;  %v10871_v17 = vld [vmem:[%s21878_s14 + $0x30] sm:$0xf]  ;;  %v13401_v58 = vld [vmem:[%s21878_s14 + $0x34] sm:$0xf0] }
 0x2d7   : > { %2264 = vmatpush.bf16.msra.mxu1 %v15245_v0  ;;  %2370 = vmatpush.bf16.msra.mxu3 %v15245_v0 }
 0x2d9   : > { %2611 = vmatpush.bf16.msra.mxu0 %v10776_v28  ;;  %2669 = vmatpush.bf16.msrb.mxu2 %v10780_v57  ;;  %v13442_v28 = vld [vmem:[%s21878_s14 + $0x184] sm:$0xf]  ;;  %v10727_v57 = vld [vmem:[%s21878_s14 + $0xe0] sm:$0xf] }
 0x2da   : > { %10669 = vmatmul.msk.bf16.vlgmr.msra.gmra.mxu1 %vm1101_vm1, %v13386_v11  ;;  %10693 = vmatmul.msk.bf16.vlgmr.msra.gmra.mxu3 %vm1101_vm1, %v13390_v53  ;;  %v13444_v11 = vld [vmem:[%s21878_s14 + $0x194] sm:$0xf]  ;;  %v10816_v53 = vor.u32 %v13445_v59, %v10815_v38  ;;  %v10812_v8 = vor.u32 %v13442_v28, %v10809_v27  ;;  %v10728_v62 = vor.u32 %v13423_v33, %v10727_v57  ;;  %v10879_v38 = vld [vmem:[%s21878_s14 + $0x40] sm:$0xf]  ;;  %v13403_v59 = vld [vmem:[%s21878_s14 + $0x44] sm:$0xf0] }
 0x2db   : > { %2641 = vmatpush.bf16.msrb.mxu1 %v10832_v5  ;;  %2699 = vmatpush.bf16.msrb.mxu3 %v10836_v45  ;;  %v10820_v4 = vor.u32 %v13444_v11, %v10817_v54  ;;  %v13439_v5 = vld [vmem:[%s21878_s14 + $0x164] sm:$0xf0]  ;;  %v13438_v45 = vld [vmem:[%s21878_s14 + $0x164] sm:$0xf]  ;;  %v10881_v54 = vld [vmem:[%s21878_s14 + $0x48] sm:$0xf0] }
 0x2dc   : > { %v13402_v11 = vld [vmem:[%s21878_s14 + $0x44] sm:$0xf]  ;;  %v10943_v28 = vld [vmem:[%s21878_s14 + $0xc0] sm:$0xf]  ;;  %v13419_v27 = vld [vmem:[%s21878_s14 + $0xc4] sm:$0xf0] }
 0x2dd   : > { %2612 = vmatpush.bf16.msra.mxu0 %v10768_v50  ;;  %2670 = vmatpush.bf16.msrb.mxu2 %v10772_v21  ;;  %v10729_v50 = vld [vmem:[%s21878_s14 + $0xe8] sm:$0xf0]  ;;  %v13440_v21 = vld [vmem:[%s21878_s14 + $0x174] sm:$0xf]  ;;  %v13418_v33 = vld [vmem:[%s21878_s14 + $0xc4] sm:$0xf] }
 0x2de   : > { %v10732_v26 = vor.u32 %v13422_v10, %v10729_v50  ;;  %v10804_v15 = vor.u32 %v13440_v21, %v10801_v52  ;;  %v10945_v10 = vld [vmem:[%s21878_s14 + $0xc8] sm:$0xf0]  ;;  %v10935_v52 = vld [vmem:[%s21878_s14 + $0xb0] sm:$0xf] }
 0x2df   : > { %2642 = vmatpush.bf16.msrb.mxu1 %v10824_v14  ;;  %2700 = vmatpush.bf16.msrb.mxu3 %v10828_v35  ;;  %v10897_v14 = vld [vmem:[%s21878_s14 + $0x68] sm:$0xf0]  ;;  %v13405_v35 = vld [vmem:[%s21878_s14 + $0x54] sm:$0xf0]  ;;  %v10948_v50 = vor.u32 %v13418_v33, %v10945_v10 }
 0x2e0   : > { %v10900_v47 = vor.u32 %v13406_v1, %v10897_v14  ;;  %v10888_v40 = vor.u32 %v13405_v35, %v10887_v22  ;;  %v10849_v14 = vld [vmem:[%s21878_s14 + $0x8] sm:$0xf0]  ;;  %v13413_v22 = vld [vmem:[%s21878_s14 + $0x94] sm:$0xf0]  ;;  %v13412_v35 = vld [vmem:[%s21878_s14 + $0x94] sm:$0xf] }
 0x2e1   : > { %2613 = vmatpush.bf16.msra.mxu0 %v10760_v39  ;;  %2671 = vmatpush.bf16.msrb.mxu2 %v10764_v12  ;;  %v13388_v39 = vld [vmem:[%s21977_s25 + $0x10] sm:$0xff]  ;;  %v10792_v12 = vor.u32 %v13439_v5, %v10791_v30  ;;  %v10937_v30 = vld [vmem:[%s21878_s14 + $0xb8] sm:$0xf0] }
 0x2e2   : > { %v10855_v5 = vld [vmem:[%s21878_s14 + $0x10] sm:$0xf] }
 0x2e3   : > { %2643 = vmatpush.bf16.msrb.mxu1 %v10816_v53  ;;  %2701 = vmatpush.bf16.msrb.mxu3 %v10820_v4  ;;  %v10880_v53 = vor.u32 %v13403_v59, %v10879_v38  ;;  %v10951_v4 = vld [vmem:[%s21878_s14 + $0xd0] sm:$0xf]  ;;  %v13411_v38 = vld [vmem:[%s21878_s14 + $0x84] sm:$0xf0]  ;;  %v13410_v59 = vld [vmem:[%s21878_s14 + $0x84] sm:$0xf] }
 0x2e4   : > { %10666 = vmatmul.msk.bf16.gmra.mxu0 %vm1101_vm1, %v13387_v13  ;;  %10690 = vmatmul.msk.bf16.gmra.mxu2 %vm1101_vm1, %v13391_v37  ;;  %v10952_v9 = vor.u32 %v13421_v3, %v10951_v4 }
 0x2e5   : > { %2614 = vmatpush.bf16.msra.mxu0 %v10752_v41  ;;  %2672 = vmatpush.bf16.msrb.mxu2 %v10756_v61  ;;  %v10903_v41 = vld [vmem:[%s21878_s14 + $0x70] sm:$0xf]  ;;  %v10905_v61 = vld [vmem:[%s21878_s14 + $0x78] sm:$0xf0] }
 0x2e6   : > { %v10908_v2 = vor.u32 %v13408_v19, %v10905_v61  ;;  %v13414_v19 = vld [vmem:[%s21878_s14 + $0xa4] sm:$0xf]  ;;  %v10929_v61 = vld [vmem:[%s21878_s14 + $0xa8] sm:$0xf0] }
 0x2e7   : > { %2644 = vmatpush.bf16.msrb.mxu1 %v10808_v23  ;;  %2702 = vmatpush.bf16.msrb.mxu3 %v10812_v8  ;;  %v10872_v23 = vor.u32 %v13401_v58, %v10871_v17  ;;  %v10944_v8 = vor.u32 %v13419_v27, %v10943_v28 }
 0x2e9   : > { %2615 = vmatpush.bf16.msra.mxu0 %v10744_v48  ;;  %2673 = vmatpush.bf16.msrb.mxu2 %v10748_v29  ;;  %v13404_v48 = vld [vmem:[%s21878_s14 + $0x54] sm:$0xf] }
 0x2ea   : > { %10670 = vmatmul.msk.bf16.gmra.mxu1 %vm1101_vm1, %v13387_v13  ;;  %10694 = vmatmul.msk.bf16.gmra.mxu3 %vm1101_vm1, %v13391_v37  ;;  %v10793_v13 = vld [vmem:[%s21878_s14 + $0x168] sm:$0xf0]  ;;  %v10892_v29 = vor.u32 %v13404_v48, %v10889_v46 }
 0x2eb   : > { %2645 = vmatpush.bf16.msrb.mxu1 %v10800_v44  ;;  %2703 = vmatpush.bf16.msrb.mxu3 %v10804_v15  ;;  %v10796_v37 = vor.u32 %v13438_v45, %v10793_v13  ;;  %v13397_v45 = vld [vmem:[%s21878_s14 + $0x14] sm:$0xf0] }
 0x2ec   : > { %v10856_v13 = vor.u32 %v13397_v45, %v10855_v5 }
 0x2ed   : > { %2616 = vmatpush.bf16.msra.mxu0 %v10736_v60  ;;  %2674 = vmatpush.bf16.msrb.mxu2 %v10740_v16  ;;  %v10953_v60 = vld [vmem:[%s21878_s14 + $0xd8] sm:$0xf0]  ;;  %v13400_v16 = vld [vmem:[%s21878_s14 + $0x34] sm:$0xf] }
 0x2ee   : > { %v10956_v36 = vor.u32 %v13420_v51, %v10953_v60  ;;  %v13464_v60 = vld [vmem:[%s21878_s14 + $0x234] sm:$0xf] }
 0x2ef   : > { %2646 = vmatpush.bf16.msrb.mxu1 %v10792_v12  ;;  %2704 = vmatpush.bf16.msrb.mxu3 %v10796_v37  ;;  %v13396_v37 = vld [vmem:[%s21878_s14 + $0x14] sm:$0xf] }
 0x2f1   : > { %2617 = vmatpush.bf16.msra.mxu0 %v10728_v62  ;;  %2675 = vmatpush.bf16.msrb.mxu2 %v10732_v26  ;;  %v10863_v62 = vld [vmem:[%s21878_s14 + $0x20] sm:$0xf]  ;;  %v10865_v26 = vld [vmem:[%s21878_s14 + $0x28] sm:$0xf0] }
 0x2f2   : > { %v10864_v21 = vor.u32 %v13399_v25, %v10863_v62  ;;  %v10868_v44 = vor.u32 %v13398_v49, %v10865_v26  ;;  %v11035_v62 = vld [vmem:[%s21878_s14 + $0x210] sm:$0xf]  ;;  %v13461_v25 = vld [vmem:[%s21878_s14 + $0x214] sm:$0xf0]  ;;  %v13460_v49 = vld [vmem:[%s21878_s14 + $0x214] sm:$0xf] }
 0x2f3   : > { %2909 = vmatpush.bf16.msra.mxu1 %v10952_v9  ;;  %2967 = vmatpush.bf16.msra.mxu3 %v10956_v36  ;;  %v11051_v9 = vld [vmem:[%s21878_s14 + $0x230] sm:$0xf]  ;;  %v11037_v26 = vld [vmem:[%s21878_s14 + $0x218] sm:$0xf0] }
 0x2f4   : > { %10667 = vmatmul.msk.bf16.gmra.mxu0 %vm1101_vm1, %v13388_v39  ;;  %10691 = vmatmul.msk.bf16.gmra.mxu2 %vm1101_vm1, %v13392_v7 }
 0x2f5   : > { %2936 = vmatpush.bf16.msra.mxu2 %v10908_v2  ;;  %v13394_v2 = vld [vmem:[%s21878_s14 + $0x4] sm:$0xf] }
 0x2f7   : > { %2910 = vmatpush.bf16.msra.mxu1 %v10944_v8  ;;  %2968 = vmatpush.bf16.msra.mxu3 %v10948_v50  ;;  %v11045_v8 = vld [vmem:[%s21878_s14 + $0x228] sm:$0xf0] }
 0x2f9   : > { %2937 = vmatpush.bf16.msra.mxu2 %v10900_v47  ;;  %v10919_v47 = vld [vmem:[%s21878_s14 + $0x90] sm:$0xf] }
 0x2fa   : > { %10671 = vmatmul.msk.bf16.gmra.mxu1 %vm1101_vm1, %v13388_v39  ;;  %10695 = vmatmul.msk.bf16.gmra.mxu3 %vm1101_vm1, %v13392_v7  ;;  %v13417_v39 = vld [vmem:[%s21878_s14 + $0xb4] sm:$0xf0]  ;;  %v13416_v7 = vld [vmem:[%s21878_s14 + $0xb4] sm:$0xf]  ;;  %v10920_v48 = vor.u32 %v13413_v22, %v10919_v47  ;;  %v13475_v47 = vld [vmem:[%s21878_s14 + $0x284] sm:$0xf0] }
 0x2fb   : > { %v10936_v15 = vor.u32 %v13417_v39, %v10935_v52  ;;  %v10940_v12 = vor.u32 %v13416_v7, %v10937_v30  ;;  %v11027_v39 = vld [vmem:[%s21878_s14 + $0x200] sm:$0xf]  ;;  %v13459_v7 = vld [vmem:[%s21878_s14 + $0x204] sm:$0xf0]  ;;  %v13474_v22 = vld [vmem:[%s21878_s14 + $0x284] sm:$0xf] }
 0x2fc   : > { %v11028_v45 = vor.u32 %v13459_v7, %v11027_v39  ;;  %v13450_v39 = vld [vmem:[%s21878_s14 + $0x1c4] sm:$0xf] }
 0x2fd   : > { %2938 = vmatpush.bf16.msra.mxu2 %v10892_v29  ;;  %2911 = vmatpush.bf16.msra.mxu1 %v10936_v15  ;;  %v10911_v29 = vld [vmem:[%s21878_s14 + $0x80] sm:$0xf]  ;;  %v13458_v15 = vld [vmem:[%s21878_s14 + $0x204] sm:$0xf] }
 0x2fe   : > { %2969 = vmatpush.bf16.msra.mxu3 %v10940_v12  ;;  %v11029_v12 = vld [vmem:[%s21878_s14 + $0x208] sm:$0xf0] }
 0x304   : > { %10668 = vmatmul.msk.bf16.gmra.mxu0 %vm1101_vm1, %v13389_v56  ;;  %10692 = vmatmul.msk.bf16.gmra.mxu2 %vm1101_vm1, %v13393_v6 }
 0x30a   : > { %10672 = vmatmul.msk.bf16.gmra.mxu1 %vm1101_vm1, %v13389_v56  ;;  %10696 = vmatmul.msk.bf16.gmra.mxu3 %vm1101_vm1, %v13393_v6  ;;  %v10857_v56 = vld [vmem:[%s21878_s14 + $0x18] sm:$0xf0] }
 0x30b   : > { %v10860_v6 = vor.u32 %v13396_v37, %v10857_v56  ;;  %v11099_v37 = vld [vmem:[%s21878_s14 + $0x290] sm:$0xf]  ;;  %v13477_v56 = vld [vmem:[%s21878_s14 + $0x294] sm:$0xf0] }
 0x314   : > { %2618 = vmatmul.bf16.vlgmr.msra.gmra.mxu0 %v15205_v20  ;;  %2676 = vmatmul.bf16.vlgmr.msrb.gmra.mxu2 %v15205_v20  ;;  %v10904_v20 = vor.u32 %v13409_v32, %v10903_v41  ;;  %v10927_v41 = vld [vmem:[%s21878_s14 + $0xa0] sm:$0xf]  ;;  %v13415_v32 = vld [vmem:[%s21878_s14 + $0xa4] sm:$0xf0] }
 0x316   : > { %2878 = vmatpush.bf16.msrb.mxu0 %v10904_v20  ;;  %v10928_v20 = vor.u32 %v13415_v32, %v10927_v41  ;;  %v11100_v32 = vor.u32 %v13477_v56, %v11099_v37  ;;  %v13469_v37 = vld [vmem:[%s21878_s14 + $0x254] sm:$0xf0]  ;;  %v13468_v56 = vld [vmem:[%s21878_s14 + $0x254] sm:$0xf] }
 0x318   : > { %2912 = vmatpush.bf16.msra.mxu1 %v10928_v20 }
 0x31a   : > { %10837 = vmatmul.msk.bf16.vlgmr.msrb.gmra.mxu1 %vm2597_vm2, %v15245_v0  ;;  %10841 = vmatmul.msk.bf16.vlgmr.msrb.gmra.mxu3 %vm2597_vm2, %v15245_v0  ;;  %v10895_v0 = vld [vmem:[%s21878_s14 + $0x60] sm:$0xf] }
 0x31b   : > { %v10896_v24 = vor.u32 %v13407_v42, %v10895_v0  ;;  %v10847_v0 = vld [vmem:[%s21878_s14] sm:$0xf]  ;;  %v13395_v42 = vld [vmem:[%s21878_s14 + $0x4] sm:$0xf0] }
 0x31c   : > { %v10848_v1 = vor.u32 %v13395_v42, %v10847_v0  ;;  %2913 = vmatpush.bf16.msra.mxu1 %v10920_v48  ;;  %v13457_v0 = vld [vmem:[%s21878_s14 + $0x1f4] sm:$0xf0]  ;;  %v13456_v42 = vld [vmem:[%s21878_s14 + $0x1f4] sm:$0xf] }
 0x31d   : > { %2879 = vmatpush.bf16.msrb.mxu0 %v10896_v24  ;;  %v10852_v24 = vor.u32 %v13394_v2, %v10849_v14 }
 0x321   : > { %2880 = vmatpush.bf16.msrb.mxu0 %v10888_v40  ;;  %v10921_v40 = vld [vmem:[%s21878_s14 + $0x98] sm:$0xf0] }
 0x322   : > { %v10924_v46 = vor.u32 %v13412_v35, %v10921_v40  ;;  %v11093_v40 = vld [vmem:[%s21878_s14 + $0x288] sm:$0xf0] }
 0x324   : > { %2623 = vmatmul.bf16.gmra.mxu0 %v15193_v18  ;;  %2681 = vmatmul.bf16.gmra.mxu2 %v15193_v18  ;;  %v10884_v18 = vor.u32 %v13402_v11, %v10881_v54  ;;  %v10912_v11 = vor.u32 %v13411_v38, %v10911_v29  ;;  %v11011_v29 = vld [vmem:[%s21878_s14 + $0x1e0] sm:$0xf]  ;;  %v13455_v38 = vld [vmem:[%s21878_s14 + $0x1e4] sm:$0xf0] }
 0x325   : > { %2881 = vmatpush.bf16.msrb.mxu0 %v10880_v53 }
 0x326   : > { %2939 = vmatpush.bf16.msra.mxu2 %v10884_v18  ;;  %2914 = vmatpush.bf16.msra.mxu1 %v10912_v11 }
 0x329   : > { %2882 = vmatpush.bf16.msrb.mxu0 %v10872_v23  ;;  %v13463_v23 = vld [vmem:[%s21878_s14 + $0x224] sm:$0xf0] }
 0x32a   : > { %10838 = vmatmul.msk.bf16.gmra.mxu1 %vm2597_vm2, %v15218_v31  ;;  %10842 = vmatmul.msk.bf16.gmra.mxu3 %vm2597_vm2, %v15218_v31  ;;  %v10873_v31 = vld [vmem:[%s21878_s14 + $0x38] sm:$0xf0] }
 0x32b   : > { %v10876_v57 = vor.u32 %v13400_v16, %v10873_v31  ;;  %v11043_v16 = vld [vmem:[%s21878_s14 + $0x220] sm:$0xf]  ;;  %v13462_v31 = vld [vmem:[%s21878_s14 + $0x224] sm:$0xf]  ;;  %3206 = vmatpush.bf16.msrb.mxu1 %v11100_v32  ;;  %v11069_v32 = vld [vmem:[%s21878_s14 + $0x258] sm:$0xf0] }
 0x32c   : > { %v11048_v10 = vor.u32 %v13462_v31, %v11045_v8  ;;  %v13452_v31 = vld [vmem:[%s21878_s14 + $0x1d4] sm:$0xf] }
 0x32d   : > { %2940 = vmatpush.bf16.msra.mxu2 %v10876_v57  ;;  %2883 = vmatpush.bf16.msrb.mxu0 %v10864_v21  ;;  %v11044_v57 = vor.u32 %v13463_v23, %v11043_v16  ;;  %v11036_v21 = vor.u32 %v13461_v25, %v11035_v62  ;;  %v11003_v16 = vld [vmem:[%s21878_s14 + $0x1d0] sm:$0xf]  ;;  %v13453_v23 = vld [vmem:[%s21878_s14 + $0x1d4] sm:$0xf0] }
 0x331   : > { %2941 = vmatpush.bf16.msra.mxu2 %v10868_v44  ;;  %2884 = vmatpush.bf16.msrb.mxu0 %v10856_v13  ;;  %v11040_v44 = vor.u32 %v13460_v49, %v11037_v26  ;;  %v11032_v13 = vor.u32 %v13458_v15, %v11029_v12  ;;  %v11077_v49 = vld [vmem:[%s21878_s14 + $0x268] sm:$0xf0]  ;;  %v10995_v26 = vld [vmem:[%s21878_s14 + $0x1c0] sm:$0xf] }
 0x334   : > { %2628 = vmatmul.bf16.gmra.mxu0 %v15183_v63  ;;  %2686 = vmatmul.bf16.gmra.mxu2 %v15183_v63  ;;  %v10932_v63 = vor.u32 %v13414_v19, %v10929_v61  ;;  %v11101_v19 = vld [vmem:[%s21878_s14 + $0x298] sm:$0xf0] }
 0x335   : > { %2942 = vmatpush.bf16.msra.mxu2 %v10860_v6  ;;  %2885 = vmatpush.bf16.msrb.mxu0 %v10848_v1  ;;  %v13476_v6 = vld [vmem:[%s21878_s14 + $0x294] sm:$0xf]  ;;  %v11021_v1 = vld [vmem:[%s21878_s14 + $0x1f8] sm:$0xf0] }
 0x336   : > { %2970 = vmatpush.bf16.msra.mxu3 %v10932_v63  ;;  %v11104_v61 = vor.u32 %v13476_v6, %v11101_v19  ;;  %v11019_v63 = vld [vmem:[%s21878_s14 + $0x1f0] sm:$0xf]  ;;  %v11024_v14 = vor.u32 %v13456_v42, %v11021_v1  ;;  %v11061_v1 = vld [vmem:[%s21878_s14 + $0x248] sm:$0xf0] }
 0x337   : > { %v11020_v2 = vor.u32 %v13457_v0, %v11019_v63  ;;  %v13467_v63 = vld [vmem:[%s21878_s14 + $0x244] sm:$0xf0]  ;;  %v13466_v0 = vld [vmem:[%s21878_s14 + $0x244] sm:$0xf] }
 0x339   : > { %2943 = vmatpush.bf16.msra.mxu2 %v10852_v24  ;;  %v11091_v24 = vld [vmem:[%s21878_s14 + $0x280] sm:$0xf] }
 0x33a   : > { %10839 = vmatmul.msk.bf16.gmra.mxu1 %vm2597_vm2, %v15203_v55  ;;  %10843 = vmatmul.msk.bf16.gmra.mxu3 %vm2597_vm2, %v15203_v55  ;;  %v10913_v55 = vld [vmem:[%s21878_s14 + $0x88] sm:$0xf0]  ;;  %v11092_v48 = vor.u32 %v13475_v47, %v11091_v24 }
 0x33b   : > { %2971 = vmatpush.bf16.msra.mxu3 %v10924_v46  ;;  %v10916_v53 = vor.u32 %v13410_v59, %v10913_v55  ;;  %v11096_v46 = vor.u32 %v13474_v22, %v11093_v40  ;;  %v13454_v59 = vld [vmem:[%s21878_s14 + $0x1e4] sm:$0xf] }
 0x33c   : > { %3207 = vmatpush.bf16.msrb.mxu1 %v11092_v48 }
 0x33f   : > { %2972 = vmatpush.bf16.msra.mxu3 %v10916_v53  ;;  %v11012_v53 = vor.u32 %v13455_v38, %v11011_v29 }
 0x343   : > { %3264 = vmatpush.bf16.msrb.mxu3 %v11104_v61  ;;  %v11059_v61 = vld [vmem:[%s21878_s14 + $0x240] sm:$0xf] }
 0x344   : > { %2633 = vmatmul.bf16.gmra.mxu0 %v15171_v34  ;;  %2691 = vmatmul.bf16.gmra.mxu2 %v15171_v34  ;;  %v13465_v34 = vld [vmem:[%s21878_s14 + $0x234] sm:$0xf0] }
 0x345   : > { %v11052_v36 = vor.u32 %v13465_v34, %v11051_v9  ;;  %v13473_v9 = vld [vmem:[%s21878_s14 + $0x274] sm:$0xf0]  ;;  %v13472_v34 = vld [vmem:[%s21878_s14 + $0x274] sm:$0xf] }
 0x347   : > { %3175 = vmatpush.bf16.msra.mxu0 %v11052_v36  ;;  %3265 = vmatpush.bf16.msrb.mxu3 %v11096_v46 }
 0x34a   : > { %10840 = vmatmul.msk.bf16.gmra.mxu1 %vm2597_vm2, %v15191_v43  ;;  %10844 = vmatmul.msk.bf16.gmra.mxu3 %vm2597_vm2, %v15191_v43  ;;  %v11053_v43 = vld [vmem:[%s21878_s14 + $0x238] sm:$0xf0] }
 0x34b   : > { %v11056_v17 = vor.u32 %v13464_v60, %v11053_v43  ;;  %3176 = vmatpush.bf16.msra.mxu0 %v11044_v57  ;;  %v11085_v43 = vld [vmem:[%s21878_s14 + $0x278] sm:$0xf0] }
 0x34c   : > { %v11005_v57 = vld [vmem:[%s21878_s14 + $0x1d8] sm:$0xf0] }
 0x34d   : > { %3233 = vmatpush.bf16.msrb.mxu2 %v11056_v17  ;;  %v11088_v17 = vor.u32 %v13472_v34, %v11085_v43  ;;  %v11008_v8 = vor.u32 %v13452_v31, %v11005_v57 }
 0x34f   : > { %3177 = vmatpush.bf16.msra.mxu0 %v11036_v21  ;;  %3266 = vmatpush.bf16.msrb.mxu3 %v11088_v17 }
 0x351   : > { %v2237_v54 = vpop.f32.mrf.mxu0  ;;  %3234 = vmatpush.bf16.msrb.mxu2 %v11048_v10  ;;  %v13471_v10 = vld [vmem:[%s21878_s14 + $0x264] sm:$0xf0] }
 0x353   : > { %3178 = vmatpush.bf16.msra.mxu0 %v11028_v45  ;;  %v10997_v45 = vld [vmem:[%s21878_s14 + $0x1c8] sm:$0xf0] }
 0x354   : > { %v11000_v12 = vor.u32 %v13450_v39, %v10997_v45 }
 0x355   : > { %3235 = vmatpush.bf16.msrb.mxu2 %v11040_v44  ;;  %v13451_v44 = vld [vmem:[%s21878_s14 + $0x1c4] sm:$0xf0] }
 0x357   : > { %v2266_v18 = vpop.f32.mrf.mxu1  ;;  %v15620_v4 = vpop.f32.mrf.mxu2  ;;  %3179 = vmatpush.bf16.msra.mxu0 %v11020_v2  ;;  %v11060_v2 = vor.u32 %v13467_v63, %v11059_v61  ;;  %v13495_v61 = vld [vmem:[%s21881_s17 + $0x8c] sm:$0xf]  ;;  %v11185_v63 = vld [vmem:[%s21881_s17 + $0xcc] sm:$0xf0] }
 0x359   : > { %v2239_v3 = vpop.f32.mrf.mxu0  ;;  %3236 = vmatpush.bf16.msrb.mxu2 %v11032_v13  ;;  %v11067_v13 = vld [vmem:[%s21878_s14 + $0x250] sm:$0xf] }
 0x35a   : > { %v2286_v51 = vpack.c.bf16 %v2239_v3, %v2237_v54  ;;  %v11013_v54 = vld [vmem:[%s21878_s14 + $0x1e8] sm:$0xf0] }
 0x35b   : > { %v11016_v3 = vor.u32 %v13454_v59, %v11013_v54  ;;  %3180 = vmatpush.bf16.msra.mxu0 %v11012_v53 }
 0x35c   : > { %2886 = vmatmul.bf16.vlgmr.msrb.gmra.mxu0 %v2286_v51  ;;  %2944 = vmatmul.bf16.vlgmr.msra.gmra.mxu2 %v2286_v51  ;;  %v11083_v51 = vld [vmem:[%s21878_s14 + $0x270] sm:$0xf] }
 0x35d   : > { %v15634_v58 = vpop.f32.mrf.mxu3  ;;  %3237 = vmatpush.bf16.msrb.mxu2 %v11024_v14  ;;  %v11084_v36 = vor.u32 %v13473_v9, %v11083_v51  ;;  %v11064_v14 = vor.u32 %v13466_v0, %v11061_v1  ;;  %v13496_v0 = vld [vmem:[%s21881_s17 + $0x94] sm:$0xf]  ;;  %v11193_v1 = vld [vmem:[%s21881_s17 + $0xd4] sm:$0xf0] }
 0x35f   : > { %v2268_v28 = vpop.f32.mrf.mxu1  ;;  %v15645_v27 = vpop.f32.mrf.mxu2  ;;  %3208 = vmatpush.bf16.msrb.mxu1 %v11084_v36 }
 0x360   : > { %v2287_v33 = vpack.c.bf16 %v2268_v28, %v2266_v18  ;;  %v11004_v28 = vor.u32 %v13453_v23, %v11003_v16  ;;  %v2392_v43 = vpack.c.bf16 %v15645_v27, %v15620_v4 }
 0x361   : > { %v2242_v50 = vpop.f32.mrf.mxu0  ;;  %3238 = vmatpush.bf16.msrb.mxu2 %v11016_v3 }
 0x362   : > { %10957 = vmatmul.msk.bf16.vlgmr.msra.gmra.mxu1 %vm2597_vm2, %v2287_v33  ;;  %10961 = vmatmul.msk.bf16.vlgmr.msra.gmra.mxu3 %vm2597_vm2, %v2287_v33  ;;  %v11075_v33 = vld [vmem:[%s21878_s14 + $0x260] sm:$0xf] }
 0x363   : > { %3181 = vmatpush.bf16.msra.mxu0 %v11004_v28  ;;  %v11076_v25 = vor.u32 %v13471_v10, %v11075_v33 }
 0x365   : > { %v15664_v52 = vpop.f32.mrf.mxu3  ;;  %3239 = vmatpush.bf16.msrb.mxu2 %v11008_v8  ;;  %3209 = vmatpush.bf16.msrb.mxu1 %v11076_v25 }
 0x366   : > { %v2393_v28 = vpack.c.bf16 %v15664_v52, %v15634_v58 }
 0x367   : > { %v2271_v30 = vpop.f32.mrf.mxu1  ;;  %v15675_v5 = vpop.f32.mrf.mxu2 }
 0x369   : > { %v2244_v41 = vpop.f32.mrf.mxu0  ;;  %3240 = vmatpush.bf16.msrb.mxu2 %v11000_v12 }
 0x36a   : > { %v2288_v20 = vpack.c.bf16 %v2244_v41, %v2242_v50  ;;  %v13470_v50 = vld [vmem:[%s21878_s14 + $0x264] sm:$0xf]  ;;  %v11068_v41 = vor.u32 %v13469_v37, %v11067_v13  ;;  %v11123_v37 = vld [vmem:[%s21881_s17 + $0x8] sm:$0xf] }
 0x36b   : > { %v11080_v21 = vor.u32 %v13470_v50, %v11077_v49  ;;  %v11183_v49 = vld [vmem:[%s21881_s17 + $0x88] sm:$0xf] }
 0x36c   : > { %2891 = vmatmul.bf16.gmra.mxu0 %v2288_v20  ;;  %2949 = vmatmul.bf16.gmra.mxu2 %v2288_v20  ;;  %v11072_v20 = vor.u32 %v13468_v56, %v11069_v32  ;;  %v13487_v32 = vld [vmem:[%s21881_s17 + $0x48] sm:$0xf0] }
 0x36d   : > { %v15713_v35 = vpop.f32.mrf.mxu3  ;;  %3267 = vmatpush.bf16.msrb.mxu3 %v11080_v21  ;;  %3210 = vmatpush.bf16.msrb.mxu1 %v11068_v41  ;;  %v13503_v21 = vld [vmem:[%s21881_s17 + $0xc8] sm:$0xf0] }
 0x36e   : > { %v11184_v39 = vor.u32 %v13503_v21, %v11183_v49 }
 0x36f   : > { %v2273_v11 = vpop.f32.mrf.mxu1  ;;  %v15727_v55 = vpop.f32.mrf.mxu2 }
 0x370   : > { %v2289_v18 = vpack.c.bf16 %v2273_v11, %v2271_v30  ;;  %v10996_v30 = vor.u32 %v13451_v44, %v10995_v26  ;;  %v2394_v25 = vpack.c.bf16 %v15727_v55, %v15675_v5  ;;  %v11191_v55 = vld [vmem:[%s21881_s17 + $0x90] sm:$0xf] }
 0x371   : > { %v2247_v60 = vpop.f32.mrf.mxu0  ;;  %3268 = vmatpush.bf16.msrb.mxu3 %v11072_v20  ;;  %3211 = vmatpush.bf16.msrb.mxu1 %v11060_v2  ;;  %v11124_v20 = vor.u32 %v13487_v32, %v11123_v37  ;;  %v11188_v2 = vor.u32 %v13495_v61, %v11185_v63  ;;  %v11199_v32 = vld [vmem:[%s21881_s17 + $0x98] sm:$0xf] }
 0x372   : > { %10958 = vmatmul.msk.bf16.gmra.mxu1 %vm2597_vm2, %v2289_v18  ;;  %10962 = vmatmul.msk.bf16.gmra.mxu3 %vm2597_vm2, %v2289_v18 }
 0x373   : > { %3182 = vmatpush.bf16.msra.mxu0 %v10996_v30 }
 0x375   : > { %v15767_v62 = vpop.f32.mrf.mxu3  ;;  %3269 = vmatpush.bf16.msrb.mxu3 %v11064_v14  ;;  %3650 = vmatpush.bf16.msra.mxu1 %v11188_v2 }
 0x376   : > { %v2395_v5 = vpack.c.bf16 %v15767_v62, %v15713_v35  ;;  %v11115_v35 = vld [vmem:[%s21881_s17] sm:$0xf]  ;;  %v13486_v62 = vld [vmem:[%s21881_s17 + $0x40] sm:$0xf0] }
 0x377   : > { %v2276_v7 = vpop.f32.mrf.mxu1  ;;  %v15781_v15 = vpop.f32.mrf.mxu2  ;;  %3621 = vmatpush.bf16.msrb.mxu0 %v11184_v39  ;;  %v11116_v41 = vor.u32 %v13486_v62, %v11115_v35  ;;  %v15942_v39 = vld [vmem:[%s14350_s3] sm:$0xff] }
 0x379   : > { %v2249_v6 = vpop.f32.mrf.mxu0 }
 0x37a   : > { %v2290_v19 = vpack.c.bf16 %v2249_v6, %v2247_v60 }
 0x37b   : > { %3622 = vmatpush.bf16.msrb.mxu0 %v11116_v41 }
 0x37c   : > { %2896 = vmatmul.bf16.gmra.mxu0 %v2290_v19  ;;  %2954 = vmatmul.bf16.gmra.mxu2 %v2290_v19 }
 0x37d   : > { %v15807_v42 = vpop.f32.mrf.mxu3 }
 0x37f   : > { %v2278_v24 = vpop.f32.mrf.mxu1  ;;  %v15812_v47 = vpop.f32.mrf.mxu2 }
 0x380   : > { %v2291_v22 = vpack.c.bf16 %v2278_v24, %v2276_v7  ;;  %v13504_v7 = vld [vmem:[%s21881_s17 + $0xd0] sm:$0xf0]  ;;  %v2396_v14 = vpack.c.bf16 %v15812_v47, %v15781_v15  ;;  %v11196_v24 = vor.u32 %v13496_v0, %v11193_v1 }
 0x381   : > { %v2252_v48 = vpop.f32.mrf.mxu0  ;;  %v11192_v45 = vor.u32 %v13504_v7, %v11191_v55 }
 0x382   : > { %10959 = vmatmul.msk.bf16.gmra.mxu1 %vm2597_vm2, %v2291_v22  ;;  %10963 = vmatmul.msk.bf16.gmra.mxu3 %vm2597_vm2, %v2291_v22  ;;  %v13478_v22 = vld [vmem:[%s21881_s17 + $0x4] sm:$0xf] }
 0x383   : > { %3679 = vmatpush.bf16.msra.mxu2 %v11192_v45  ;;  %3708 = vmatpush.bf16.msra.mxu3 %v11196_v24  ;;  %v11207_v24 = vld [vmem:[%s21881_s17 + $0xa0] sm:$0xf] }
 0x385   : > { %v15816_v40 = vpop.f32.mrf.mxu3 }
 0x387   : > { %v2281_v46 = vpop.f32.mrf.mxu1  ;;  %v15818_v29 = vpop.f32.mrf.mxu2  ;;  %3680 = vmatpush.bf16.msra.mxu2 %v11124_v20 }
 0x389   : > { %v2254_v38 = vpop.f32.mrf.mxu0 }
 0x38a   : > { %v2292_v59 = vpack.c.bf16 %v2254_v38, %v2252_v48  ;;  %v11117_v48 = vld [vmem:[%s21881_s17 + $0x44] sm:$0xf0] }
 0x38b   : > { %v11120_v47 = vor.u32 %v13478_v22, %v11117_v48  ;;  %v11131_v48 = vld [vmem:[%s21881_s17 + $0x10] sm:$0xf] }
 0x38c   : > { %2901 = vmatmul.bf16.gmra.mxu0 %v2292_v59  ;;  %2959 = vmatmul.bf16.gmra.mxu2 %v2292_v59  ;;  %v11125_v59 = vld [vmem:[%s21881_s17 + $0x4c] sm:$0xf0] }
 0x38d   : > { %v15820_v11 = vpop.f32.mrf.mxu3  ;;  %3651 = vmatpush.bf16.msra.mxu1 %v11120_v47 }
 0x38f   : > { %v2283_v53 = vpop.f32.mrf.mxu1  ;;  %v15822_v54 = vpop.f32.mrf.mxu2 }
 0x390   : > { %v2293_v18 = vpack.c.bf16 %v2283_v53, %v2281_v46  ;;  %v13479_v46 = vld [vmem:[%s21881_s17 + $0xc] sm:$0xf] }
 0x391   : > { %v2619_v3 = vpop.f32.mrf.mxu0 }
 0x392   : > { %10960 = vmatmul.msk.bf16.gmra.mxu1 %vm2597_vm2, %v2293_v18  ;;  %10964 = vmatmul.msk.bf16.gmra.mxu3 %vm2597_vm2, %v2293_v18  ;;  %v11128_v18 = vor.u32 %v13479_v46, %v11125_v59  ;;  %v13488_v46 = vld [vmem:[%s21881_s17 + $0x50] sm:$0xf0] }
 0x394   : > { %3709 = vmatpush.bf16.msra.mxu3 %v11128_v18  ;;  %v11132_v18 = vor.u32 %v13488_v46, %v11131_v48 }
 0x395   : > { %v15826_v51 = vpop.f32.mrf.mxu3 }
 0x397   : > { %v2648_v9 = vpop.f32.mrf.mxu1  ;;  %v2677_v34 = vpop.f32.mrf.mxu2 }
 0x398   : > { %v15828_v60 = vadd.f32 %v2648_v9, %v2619_v3  ;;  %v2397_v9 = vpack.c.bf16 %v15816_v40, %v15807_v42 }
 0x399   : > { %v15830_v36 = vpop.f32.mrf.mxu0 }
 0x39c   : > { %3183 = vmatmul.bf16.vlgmr.msra.gmra.mxu0 %v2392_v43  ;;  %3241 = vmatmul.bf16.vlgmr.msrb.gmra.mxu2 %v2392_v43 }
 0x39d   : > { %v2706_v17 = vpop.f32.mrf.mxu3 }
 0x39e   : > { %v15834_v16 = vadd.f32 %v2706_v17, %v2677_v34 }
 0x39f   : > { %v15836_v23 = vpop.f32.mrf.mxu1  ;;  %v2679_v31 = vpop.f32.mrf.mxu2 }
 0x3a1   : > { %v2624_v57 = vpop.f32.mrf.mxu0 }
 0x3a2   : > { %11105 = vmatmul.msk.bf16.vlgmr.msrb.gmra.mxu1 %vm2597_vm2, %v2393_v28  ;;  %11109 = vmatmul.msk.bf16.vlgmr.msrb.gmra.mxu3 %vm2597_vm2, %v2393_v28 }
 0x3a5   : > { %v2708_v8 = vpop.f32.mrf.mxu3 }
 0x3a6   : > { %v15842_v33 = vadd.f32 %v2708_v8, %v2679_v31  ;;  %v2398_v8 = vpack.c.bf16 %v15822_v54, %v15818_v29 }
 0x3a7   : > { %v2653_v4 = vpop.f32.mrf.mxu1  ;;  %v2682_v27 = vpop.f32.mrf.mxu2 }
 0x3a8   : > { %v15844_v10 = vadd.f32 %v2653_v4, %v2624_v57 }
 0x3a9   : > { %v15846_v50 = vpop.f32.mrf.mxu0 }
 0x3ac   : > { %3188 = vmatmul.bf16.gmra.mxu0 %v2394_v25  ;;  %3246 = vmatmul.bf16.gmra.mxu2 %v2394_v25 }
 0x3ad   : > { %v2711_v58 = vpop.f32.mrf.mxu3 }
 0x3ae   : > { %v15850_v52 = vadd.f32 %v2711_v58, %v2682_v27  ;;  %v2399_v27 = vpack.c.bf16 %v15826_v51, %v15820_v11 }
 0x3af   : > { %v15858_v26 = vpop.f32.mrf.mxu1  ;;  %v2684_v44 = vpop.f32.mrf.mxu2 }
 0x3b0   : > { %v2656_v63 = vadd.f32 %v15858_v26, %v15846_v50  ;;  %v13506_v50 = vld [vmem:[%s21881_s17 + $0xe0] sm:$0xf0] }
 0x3b1   : > { %v2629_v30 = vpop.f32.mrf.mxu0  ;;  %v11208_v26 = vor.u32 %v13506_v50, %v11207_v24 }
 0x3b2   : > { %11106 = vmatmul.msk.bf16.gmra.mxu1 %vm2597_vm2, %v2395_v5  ;;  %11110 = vmatmul.msk.bf16.gmra.mxu3 %vm2597_vm2, %v2395_v5  ;;  %v2651_v5 = vadd.f32 %v15836_v23, %v15830_v36 }
 0x3b3   : > { %3795 = vmatpush.bf16.msrb.mxu2 %v11208_v26 }
 0x3b5   : > { %v2713_v12 = vpop.f32.mrf.mxu3 }
 0x3b6   : > { %v15870_v13 = vadd.f32 %v2713_v12, %v2684_v44 }
 0x3b7   : > { %v2658_v56 = vpop.f32.mrf.mxu1  ;;  %v2687_v6 = vpop.f32.mrf.mxu2 }
 0x3b8   : > { %v15884_v19 = vadd.f32 %v2658_v56, %v2629_v30  ;;  %v15964_v56 = vld [vmem:[%s14350_s3 + $0x8] sm:$0xff] }
 0x3b9   : > { %v15909_v38 = vpop.f32.mrf.mxu0 }
 0x3bc   : > { %3193 = vmatmul.bf16.gmra.mxu0 %v2396_v14  ;;  %3251 = vmatmul.bf16.gmra.mxu2 %v2396_v14 }
 0x3bd   : > { %v2716_v15 = vpop.f32.mrf.mxu3 }
 0x3be   : > { %v15914_v53 = vadd.f32 %v2716_v15, %v2687_v6  ;;  %v11139_v15 = vld [vmem:[%s21881_s17 + $0x18] sm:$0xf] }
 0x3bf   : > { %v15916_v3 = vpop.f32.mrf.mxu1  ;;  %v2689_v34 = vpop.f32.mrf.mxu2 }
 0x3c1   : > { %v2634_v31 = vpop.f32.mrf.mxu0 }
 0x3c2   : > { %11107 = vmatmul.msk.bf16.gmra.mxu1 %vm2597_vm2, %v2397_v9  ;;  %11111 = vmatmul.msk.bf16.gmra.mxu3 %vm2597_vm2, %v2397_v9  ;;  %v13489_v9 = vld [vmem:[%s21881_s17 + $0x58] sm:$0xf0] }
 0x3c5   : > { %v2718_v43 = vpop.f32.mrf.mxu3 }
 0x3c6   : > { %v15922_v17 = vadd.f32 %v2718_v43, %v2689_v34 }
 0x3c7   : > { %v2663_v28 = vpop.f32.mrf.mxu1  ;;  %v2692_v4 = vpop.f32.mrf.mxu2 }
 0x3c8   : > { %v15924_v57 = vadd.f32 %v2663_v28, %v2634_v31  ;;  %v11140_v31 = vor.u32 %v13489_v9, %v11139_v15  ;;  %v13497_v28 = vld [vmem:[%s21881_s17 + $0x9c] sm:$0xf] }
 0x3c9   : > { %v15932_v25 = vpop.f32.mrf.mxu0 }
 0x3ca   : > { %3796 = vmatpush.bf16.msrb.mxu2 %v11140_v31 }
 0x3cc   : > { %3198 = vmatmul.bf16.gmra.mxu0 %v2398_v8  ;;  %3256 = vmatmul.bf16.gmra.mxu2 %v2398_v8  ;;  %v11201_v8 = vld [vmem:[%s21881_s17 + $0xdc] sm:$0xf0] }
 0x3cd   : > { %v2721_v42 = vpop.f32.mrf.mxu3 }
 0x3ce   : > { %v15928_v40 = vadd.f32 %v2721_v42, %v2692_v4  ;;  %v13498_v4 = vld [vmem:[%s21881_s17 + $0xa4] sm:$0xf] }
 0x3cf   : > { %v2694_v58 = vpop.f32.mrf.mxu2  ;;  %v15938_v29 = vpop.f32.mrf.mxu1 }
 0x3d0   : > { %v2666_v50 = vadd.f32 %v15938_v29, %v15932_v25 }
 0x3d2   : > { %11108 = vmatmul.msk.bf16.gmra.mxu1 %vm2597_vm2, %v2399_v27  ;;  %11112 = vmatmul.msk.bf16.gmra.mxu3 %vm2597_vm2, %v2399_v27  ;;  %v11204_v27 = vor.u32 %v13497_v28, %v11201_v8  ;;  %v3307_v28 = vld [vmem:[%s21879_s15] sm:$0x3] }
 0x3d4   : > { %3766 = vmatpush.bf16.msrb.mxu1 %v11204_v27 }
 0x3d5   : > { %v2723_v49 = vpop.f32.mrf.mxu3 }
 0x3d6   : > { %v15936_v21 = vadd.f32 %v2723_v49, %v2694_v58 }
 0x3d9   : > { %v2887_v54 = vpop.f32.mrf.mxu0 }
 0x3da   : > { %v2888_v44 = vadd.f32 %v2887_v54, %v15828_v60  ;;  %v16024_v54 = vld [vmem:[%s14350_s3 + $0x10] sm:$0xff] }
 0x3dc   : > { %11249 = vmatmul.msk.bf16.vlgmr.msrb.gmra.mxu0 %vm792_vm0, %v15942_v39  ;;  %11257 = vmatmul.msk.bf16.vlgmr.msra.gmra.mxu2 %vm792_vm0, %v15942_v39 }
 0x3df   : > { %v2916_v11 = vpop.f32.mrf.mxu1  ;;  %v2945_v51 = vpop.f32.mrf.mxu2 }
 0x3e0   : > { %v15950_v55 = vadd.f32 %v2916_v11, %v2888_v44  ;;  %v2946_v7 = vadd.f32 %v2945_v51, %v15834_v16  ;;  %v13480_v44 = vld [vmem:[%s21881_s17 + $0x14] sm:$0xf]  ;;  %v11133_v11 = vld [vmem:[%s21881_s17 + $0x54] sm:$0xf0] }
 0x3e1   : > { %v2889_v30 = vpop.f32.mrf.mxu0 }
 0x3e2   : > { %v2890_v60 = vadd.f32 %v2889_v30, %v2651_v5  ;;  %11253 = vmatmul.msk.bf16.vlgmr.msra.gmra.mxu1 %vm792_vm0, %v15942_v39  ;;  %11261 = vmatmul.msk.bf16.vlgmr.msra.gmra.mxu3 %vm792_vm0, %v15942_v39  ;;  %v11136_v5 = vor.u32 %v13480_v44, %v11133_v11 }
 0x3e4   : > { %3767 = vmatpush.bf16.msrb.mxu1 %v11136_v5 }
 0x3e5   : > { %v2974_v45 = vpop.f32.mrf.mxu3 }
 0x3e6   : > { %v15957_v12 = vadd.f32 %v2974_v45, %v2946_v7  ;;  %v11141_v7 = vld [vmem:[%s21881_s17 + $0x5c] sm:$0xf0] }
 0x3e7   : > { %v2918_v35 = vpop.f32.mrf.mxu1  ;;  %v2947_v62 = vpop.f32.mrf.mxu2 }
 0x3e8   : > { %v15959_v37 = vadd.f32 %v2918_v35, %v2890_v60  ;;  %v2948_v36 = vadd.f32 %v2947_v62, %v15842_v33  ;;  %v13505_v33 = vld [vmem:[%s21881_s17 + $0xd8] sm:$0xf0]  ;;  %v2661_v62 = vadd.f32 %v15916_v3, %v15909_v38 }
 0x3e9   : > { %v2892_v23 = vpop.f32.mrf.mxu0  ;;  %v11200_v61 = vor.u32 %v13505_v33, %v11199_v32 }
 0x3ea   : > { %v2893_v16 = vadd.f32 %v2892_v23, %v15844_v10 }
 0x3eb   : > { %3737 = vmatpush.bf16.msra.mxu0 %v11200_v61 }
 0x3ec   : > { %11250 = vmatmul.msk.bf16.gmra.mxu0 %vm792_vm0, %v15964_v56  ;;  %11258 = vmatmul.msk.bf16.gmra.mxu2 %vm792_vm0, %v15964_v56 }
 0x3ed   : > { %v2976_v6 = vpop.f32.mrf.mxu3 }
 0x3ee   : > { %v15970_v41 = vadd.f32 %v2976_v6, %v2948_v36 }
 0x3ef   : > { %v2921_v10 = vpop.f32.mrf.mxu1  ;;  %v2950_v20 = vpop.f32.mrf.mxu2  ;;  %3738 = vmatpush.bf16.msra.mxu0 %v11132_v18 }
 0x3f0   : > { %v15980_v0 = vadd.f32 %v2921_v10, %v2893_v16  ;;  %v2951_v2 = vadd.f32 %v2950_v20, %v15850_v52 }
 0x3f1   : > { %v2894_v1 = vpop.f32.mrf.mxu0 }
 0x3f2   : > { %v2895_v14 = vadd.f32 %v2894_v1, %v2656_v63  ;;  %11254 = vmatmul.msk.bf16.gmra.mxu1 %vm792_vm0, %v15964_v56  ;;  %11262 = vmatmul.msk.bf16.gmra.mxu3 %vm792_vm0, %v15964_v56  ;;  %v16060_v63 = vld [vmem:[%s14350_s3 + $0x18] sm:$0xff] }
 0x3f5   : > { %v2979_v22 = vpop.f32.mrf.mxu3 }
 0x3f6   : > { %v15993_v52 = vadd.f32 %v2979_v22, %v2951_v2 }
 0x3f7   : > { %v2923_v47 = vpop.f32.mrf.mxu1  ;;  %v2952_v59 = vpop.f32.mrf.mxu2 }
 0x3f8   : > { %v16007_v34 = vadd.f32 %v2923_v47, %v2895_v14  ;;  %v2953_v43 = vadd.f32 %v2952_v59, %v15870_v13  ;;  %v11209_v13 = vld [vmem:[%s21881_s17 + $0xe4] sm:$0xf0] }
 0x3f9   : > { %v2897_v42 = vpop.f32.mrf.mxu0  ;;  %v11212_v49 = vor.u32 %v13498_v4, %v11209_v13  ;;  %v16096_v4 = vperm.slane %v3307_v28, 0 }
 0x3fa   : > { %v2898_v58 = vadd.f32 %v2897_v42, %v15884_v19  ;;  %v13481_v19 = vld [vmem:[%s21881_s17 + $0x1c] sm:$0xf]  ;;  %v3329_v42 = vld [vmem:[%s21880_s16] sm:$0x3] }
 0x3fb   : > { %3824 = vmatpush.bf16.msrb.mxu3 %v11212_v49  ;;  %v11144_v60 = vor.u32 %v13481_v19, %v11141_v7  ;;  %v16102_v11 = vperm.slane %v3329_v42, 0 }
 0x3fc   : > { %11251 = vmatmul.msk.bf16.gmra.mxu0 %vm792_vm0, %v16024_v54  ;;  %11259 = vmatmul.msk.bf16.gmra.mxu2 %vm792_vm0, %v16024_v54 }
 0x3fd   : > { %v2981_v51 = vpop.f32.mrf.mxu3 }
 0x3fe   : > { %v16042_v30 = vadd.f32 %v2981_v51, %v2953_v43  ;;  %v16105_v51 = vperm.slane %v3307_v28, 1 }
 0x3ff   : > { %v2926_v45 = vpop.f32.mrf.mxu1  ;;  %v2955_v35 = vpop.f32.mrf.mxu2  ;;  %3825 = vmatpush.bf16.msrb.mxu3 %v11144_v60 }
 0x400   : > { %v16046_v36 = vadd.f32 %v2926_v45, %v2898_v58  ;;  %v2956_v23 = vadd.f32 %v2955_v35, %v15914_v53 }
 0x401   : > { %v2899_v16 = vpop.f32.mrf.mxu0 }
 0x402   : > { %v2900_v6 = vadd.f32 %v2899_v16, %v2661_v62  ;;  %11255 = vmatmul.msk.bf16.gmra.mxu1 %vm792_vm0, %v16024_v54  ;;  %11263 = vmatmul.msk.bf16.gmra.mxu3 %vm792_vm0, %v16024_v54  ;;  %v16115_v62 = vperm.slane %v3329_v42, 1 }
 0x405   : > { %v2984_v32 = vpop.f32.mrf.mxu3 }
 0x406   : > { %v16053_v33 = vadd.f32 %v2984_v32, %v2956_v23 }
 0x407   : > { %v2928_v10 = vpop.f32.mrf.mxu1  ;;  %v2957_v20 = vpop.f32.mrf.mxu2 }
 0x408   : > { %v16055_v38 = vadd.f32 %v2928_v10, %v2900_v6  ;;  %v2958_v3 = vadd.f32 %v2957_v20, %v15922_v17 }
 0x409   : > { %v2902_v61 = vpop.f32.mrf.mxu0 }
 0x40a   : > { %v2903_v53 = vadd.f32 %v2902_v61, %v15924_v57 }
 0x40c   : > { %11252 = vmatmul.msk.bf16.gmra.mxu0 %vm792_vm0, %v16060_v63  ;;  %11260 = vmatmul.msk.bf16.gmra.mxu2 %vm792_vm0, %v16060_v63 }
 0x40d   : > { %v2986_v2 = vpop.f32.mrf.mxu3 }
 0x40e   : > { %v16066_v1 = vadd.f32 %v2986_v2, %v2958_v3 }
 0x40f   : > { %v2931_v14 = vpop.f32.mrf.mxu1  ;;  %v2960_v24 = vpop.f32.mrf.mxu2 }
 0x410   : > { %v16070_v17 = vadd.f32 %v2931_v14, %v2903_v53  ;;  %v2961_v57 = vadd.f32 %v2960_v24, %v15928_v40 }
 0x411   : > { %v2904_v26 = vpop.f32.mrf.mxu0 }
 0x412   : > { %v2905_v22 = vadd.f32 %v2904_v26, %v2666_v50  ;;  %11256 = vmatmul.msk.bf16.gmra.mxu1 %vm792_vm0, %v16060_v63  ;;  %11264 = vmatmul.msk.bf16.gmra.mxu3 %vm792_vm0, %v16060_v63  ;;  %v13507_v50 = vld [vmem:[%s21881_s17 + $0xe8] sm:$0xf0] }
 0x415   : > { %v2989_v48 = vpop.f32.mrf.mxu3 }
 0x416   : > { %v16077_v46 = vadd.f32 %v2989_v48, %v2961_v57  ;;  %v11223_v57 = vld [vmem:[%s21881_s17 + $0xb0] sm:$0xf] }
 0x417   : > { %v2933_v15 = vpop.f32.mrf.mxu1  ;;  %v2962_v47 = vpop.f32.mrf.mxu2 }
 0x418   : > { %v16079_v59 = vadd.f32 %v2933_v15, %v2905_v22  ;;  %v2963_v25 = vadd.f32 %v2962_v47, %v15936_v21 }
 0x419   : > { %v3184_v29 = vpop.f32.mrf.mxu0 }
 0x41c   : > { %11265 = vmatmul.msk.bf16.vlgmr.msra.gmra.mxu0 %vm792_vm0, %v15942_v39  ;;  %11273 = vmatmul.msk.bf16.vlgmr.msrb.gmra.mxu2 %vm792_vm0, %v15942_v39 }
 0x41d   : > { %v2991_v40 = vpop.f32.mrf.mxu3 }
 0x41e   : > { %v16086_v18 = vadd.f32 %v2991_v40, %v2963_v25  ;;  %v11147_v40 = vld [vmem:[%s21881_s17 + $0x20] sm:$0xf] }
 0x41f   : > { %v3213_v9 = vpop.f32.mrf.mxu1  ;;  %v3242_v43 = vpop.f32.mrf.mxu2 }
 0x420   : > { %v3214_v31 = vadd.f32 %v3213_v9, %v3184_v29  ;;  %v13490_v9 = vld [vmem:[%s21881_s17 + $0x60] sm:$0xf0] }
 0x421   : > { %v3186_v8 = vpop.f32.mrf.mxu0  ;;  %v11148_v28 = vor.u32 %v13490_v9, %v11147_v40 }
 0x422   : > { %v3291_v21 = vadd.f32 %v3214_v31, %v15950_v55  ;;  %11269 = vmatmul.msk.bf16.vlgmr.msrb.gmra.mxu1 %vm792_vm0, %v15942_v39  ;;  %11277 = vmatmul.msk.bf16.vlgmr.msrb.gmra.mxu3 %vm792_vm0, %v15942_v39 }
 0x424   : > { %v3313_v44 = vmul.f32 %v16096_v4, %v3291_v21  ;;  %v13491_v21 = vld [vmem:[%s21881_s17 + $0x68] sm:$0xf0] }
 0x425   : > { %v3271_v27 = vpop.f32.mrf.mxu3 }
 0x426   : > { %v3272_v13 = vadd.f32 %v3271_v27, %v3242_v43  ;;  %v3335_v60 = vadd.f32 %v16102_v11, %v3313_v44  ;;  %v11217_v44 = vld [vmem:[%s21881_s17 + $0xec] sm:$0xf0] }
 0x427   : > { %v3215_v58 = vpop.f32.mrf.mxu1  ;;  %v3244_v49 = vpop.f32.mrf.mxu2 }
 0x428   : > { %v3292_v55 = vadd.f32 %v3272_v13, %v15957_v12  ;;  %v3216_v19 = vadd.f32 %v3215_v58, %v3186_v8  ;;  %v3351_v32 = vmax.f32 %v3335_v60, 0.0  ;;  %v11155_v8 = vld [vmem:[%s21881_s17 + $0x28] sm:$0xf] }
 0x429   : > { %v3189_v5 = vpop.f32.mrf.mxu0 }
 0x42a   : > { %v3293_v7 = vadd.f32 %v3216_v19, %v15959_v37  ;;  %v3314_v35 = vmul.f32 %v16105_v51, %v3292_v55  ;;  %v11156_v19 = vor.u32 %v13491_v21, %v11155_v8 }
 0x42c   : > { %v3315_v45 = vmul.f32 %v16096_v4, %v3293_v7  ;;  %11266 = vmatmul.msk.bf16.gmra.mxu0 %vm792_vm0, %v15964_v56  ;;  %11274 = vmatmul.msk.bf16.gmra.mxu2 %vm792_vm0, %v15964_v56  ;;  %v3336_v61 = vadd.f32 %v16115_v62, %v3314_v35  ;;  %v13500_v7 = vld [vmem:[%s21881_s17 + $0xb4] sm:$0xf] }
 0x42d   : > { %v3273_v12 = vpop.f32.mrf.mxu3 }
 0x42e   : > { %v3337_v23 = vadd.f32 %v16102_v11, %v3315_v45  ;;  %v3274_v16 = vadd.f32 %v3273_v12, %v3244_v49  ;;  %v3352_v47 = vmax.f32 %v3336_v61, 0.0  ;;  %v13499_v49 = vld [vmem:[%s21881_s17 + $0xac] sm:$0xf] }
 0x42f   : > { %v3218_v6 = vpop.f32.mrf.mxu1  ;;  %v3247_v37 = vpop.f32.mrf.mxu2 }
 0x430   : > { %v3353_v10 = vmax.f32 %v3337_v23, 0.0  ;;  %v3294_v20 = vadd.f32 %v3274_v16, %v15970_v41  ;;  %v3219_v3 = vadd.f32 %v3218_v6, %v3189_v5  ;;  %v11215_v41 = vld [vmem:[%s21881_s17 + $0xa8] sm:$0xf]  ;;  %v11220_v5 = vor.u32 %v13499_v49, %v11217_v44  ;;  %v13482_v23 = vld [vmem:[%s21881_s17 + $0x24] sm:$0xf] }
 0x431   : > { %v3191_v53 = vpop.f32.mrf.mxu0  ;;  %v11216_v26 = vor.u32 %v13507_v50, %v11215_v41  ;;  %v13483_v16 = vld [vmem:[%s21881_s17 + $0x2c] sm:$0xf] }
 0x432   : > { %v16120_v2 = vpack.c.bf16 %v3353_v10, %v3351_v32  ;;  %v3316_v14 = vmul.f32 %v16105_v51, %v3294_v20  ;;  %v3295_v24 = vadd.f32 %v3219_v3, %v15980_v0  ;;  %11270 = vmatmul.msk.bf16.gmra.mxu1 %vm792_vm0, %v15964_v56  ;;  %11278 = vmatmul.msk.bf16.gmra.mxu3 %vm792_vm0, %v15964_v56  ;;  %v13508_v0 = vld [vmem:[%s21881_s17 + $0xf0] sm:$0xf0]  ;;  %v11157_v10 = vld [vmem:[%s21881_s17 + $0x6c] sm:$0xf0] }
 0x433   : > { %v11224_v48 = vor.u32 %v13508_v0, %v11223_v57  ;;  %3853 = vmatpush.bf16.msrb.mxu0 %v11216_v26  ;;  %3882 = vmatpush.bf16.msra.mxu1 %v11220_v5  ;;  %v11160_v61 = vor.u32 %v13483_v16, %v11157_v10 }
 0x434   : > { %v3338_v22 = vadd.f32 %v16115_v62, %v3316_v14  ;;  %v3317_v27 = vmul.f32 %v16096_v4, %v3295_v24 }
 0x435   : > { %v3276_v15 = vpop.f32.mrf.mxu3  ;;  %3911 = vmatpush.bf16.msra.mxu2 %v11224_v48 }
 0x436   : > { %v3354_v25 = vmax.f32 %v3338_v22, 0.0  ;;  %v3277_v29 = vadd.f32 %v3276_v15, %v3247_v37  ;;  %v3339_v35 = vadd.f32 %v16102_v11, %v3317_v27 }
 0x437   : > { %v3220_v43 = vpop.f32.mrf.mxu1  ;;  %v3249_v31 = vpop.f32.mrf.mxu2  ;;  %3854 = vmatpush.bf16.msrb.mxu0 %v11148_v28 }
 0x438   : > { %v16153_v42 = vpack.c.bf16 %v3354_v25, %v3352_v47  ;;  %v3296_v13 = vadd.f32 %v3277_v29, %v15993_v52  ;;  %v3221_v58 = vadd.f32 %v3220_v43, %v3191_v53  ;;  %v11225_v52 = vld [vmem:[%s21881_s17 + $0xf4] sm:$0xf0]  ;;  %v3355_v24 = vmax.f32 %v3339_v35, 0.0 }
 0x439   : > { %v3194_v55 = vpop.f32.mrf.mxu0  ;;  %v11228_v45 = vor.u32 %v13500_v7, %v11225_v52  ;;  %3912 = vmatpush.bf16.msra.mxu2 %v11156_v19 }
 0x43a   : > { %v3297_v60 = vadd.f32 %v3221_v58, %v16007_v34  ;;  %v11149_v34 = vld [vmem:[%s21881_s17 + $0x64] sm:$0xf0]  ;;  %v3318_v6 = vmul.f32 %v16105_v51, %v3296_v13 }
 0x43b   : > { %3940 = vmatpush.bf16.msra.mxu3 %v11228_v45  ;;  %v11152_v32 = vor.u32 %v13482_v23, %v11149_v34 }
 0x43c   : > { %v3319_v12 = vmul.f32 %v16096_v4, %v3297_v60  ;;  %11267 = vmatmul.msk.bf16.gmra.mxu0 %vm792_vm0, %v16024_v54  ;;  %11275 = vmatmul.msk.bf16.gmra.mxu2 %vm792_vm0, %v16024_v54  ;;  %v3340_v26 = vadd.f32 %v16115_v62, %v3318_v6 }
 0x43d   : > { %v3278_v37 = vpop.f32.mrf.mxu3  ;;  %3883 = vmatpush.bf16.msra.mxu1 %v11152_v32 }
 0x43e   : > { %v3341_v20 = vadd.f32 %v16102_v11, %v3319_v12  ;;  %v3279_v3 = vadd.f32 %v3278_v37, %v3249_v31  ;;  %v3356_v25 = vmax.f32 %v3340_v26, 0.0 }
 0x43f   : > { %v3223_v53 = vpop.f32.mrf.mxu1  ;;  %v3252_v14 = vpop.f32.mrf.mxu2  ;;  %3941 = vmatpush.bf16.msra.mxu3 %v11160_v61 }
 0x440   : > { %v3357_v41 = vmax.f32 %v3341_v20, 0.0  ;;  %v3298_v50 = vadd.f32 %v3279_v3, %v16042_v30  ;;  %v3224_v57 = vadd.f32 %v3223_v53, %v3194_v55 }
 0x441   : > { %v3196_v0 = vpop.f32.mrf.mxu0 }
 0x442   : > { %v16192_v22 = vpack.c.bf16 %v3357_v41, %v3355_v24  ;;  %v3320_v48 = vmul.f32 %v16105_v51, %v3298_v50  ;;  %v3299_v15 = vadd.f32 %v3224_v57, %v16046_v36  ;;  %11271 = vmatmul.msk.bf16.gmra.mxu1 %vm792_vm0, %v16024_v54  ;;  %11279 = vmatmul.msk.bf16.gmra.mxu3 %vm792_vm0, %v16024_v54 }
 0x444   : > { %v3342_v47 = vadd.f32 %v16115_v62, %v3320_v48  ;;  %v3321_v28 = vmul.f32 %v16096_v4, %v3299_v15 }
 0x445   : > { %v3281_v30 = vpop.f32.mrf.mxu3 }
 0x446   : > { %v3358_v29 = vmax.f32 %v3342_v47, 0.0  ;;  %v3282_v40 = vadd.f32 %v3281_v30, %v3252_v14  ;;  %v3343_v13 = vadd.f32 %v16102_v11, %v3321_v28 }
 0x447   : > { %v3225_v9 = vpop.f32.mrf.mxu1  ;;  %v3254_v43 = vpop.f32.mrf.mxu2 }
 0x448   : > { %v16201_v31 = vpack.c.bf16 %v3358_v29, %v3356_v25  ;;  %v3300_v36 = vadd.f32 %v3282_v40, %v16053_v33  ;;  %v3226_v8 = vadd.f32 %v3225_v9, %v3196_v0  ;;  %v3359_v7 = vmax.f32 %v3343_v13, 0.0 }
 0x449   : > { %v3199_v21 = vpop.f32.mrf.mxu0 }
 0x44a   : > { %v3301_v27 = vadd.f32 %v3226_v8, %v16055_v38  ;;  %v3322_v49 = vmul.f32 %v16105_v51, %v3300_v36 }
 0x44c   : > { %v3323_v58 = vmul.f32 %v16096_v4, %v3301_v27  ;;  %11268 = vmatmul.msk.bf16.gmra.mxu0 %vm792_vm0, %v16060_v63  ;;  %11276 = vmatmul.msk.bf16.gmra.mxu2 %vm792_vm0, %v16060_v63  ;;  %v3344_v45 = vadd.f32 %v16115_v62, %v3322_v49  ;;  %v13509_v27 = vld [vmem:[%s21881_s17 + $0xf8] sm:$0xf0] }
 0x44d   : > { %v3283_v44 = vpop.f32.mrf.mxu3 }
 0x44e   : > { %v3345_v55 = vadd.f32 %v16102_v11, %v3323_v58  ;;  %v3284_v33 = vadd.f32 %v3283_v44, %v3254_v43 }
 0x44f   : > { %v3228_v19 = vpop.f32.mrf.mxu1  ;;  %v3257_v5 = vpop.f32.mrf.mxu2 }
 0x450   : > { %v3361_v38 = vmax.f32 %v3345_v55, 0.0  ;;  %v3302_v52 = vadd.f32 %v3284_v33, %v16066_v1  ;;  %v3229_v60 = vadd.f32 %v3228_v19, %v3199_v21  ;;  %v3360_v1 = vmax.f32 %v3344_v45, 0.0  ;;  %v11239_v55 = vld [vmem:[%s21881_s17 + $0xc0] sm:$0xf]  ;;  %v13510_v33 = vld [vmem:[%s21881_s17 + $0x100] sm:$0xf0] }
 0x451   : > { %v3201_v35 = vpop.f32.mrf.mxu0  ;;  %v11240_v19 = vor.u32 %v13510_v33, %v11239_v55  ;;  %v12339_v33 = vld [vmem:[%s21884_s20 + $0x7f8] sm:$0xf] }
 0x452   : > { %v16216_v12 = vpack.c.bf16 %v3361_v38, %v3359_v7  ;;  %v3324_v23 = vmul.f32 %v16105_v51, %v3302_v52  ;;  %v3303_v34 = vadd.f32 %v3229_v60, %v16070_v17  ;;  %11272 = vmatmul.msk.bf16.gmra.mxu1 %vm792_vm0, %v16060_v63  ;;  %11280 = vmatmul.msk.bf16.gmra.mxu3 %vm792_vm0, %v16060_v63  ;;  %v11163_v7 = vld [vmem:[%s21881_s17 + $0x30] sm:$0xf]  ;;  %v13492_v38 = vld [vmem:[%s21881_s17 + $0x70] sm:$0xf0]  ;;  %v11171_v52 = vld [vmem:[%s21881_s17 + $0x38] sm:$0xf] }
 0x453   : > { %4027 = vmatpush.bf16.msrb.mxu2 %v11240_v19  ;;  %v13979_v19 = vld [vmem:[%s21884_s20 + $0x838] sm:$0xf0] }
 0x454   : > { %v3346_v16 = vadd.f32 %v16115_v62, %v3324_v23  ;;  %v3325_v61 = vmul.f32 %v16096_v4, %v3303_v34  ;;  %v13493_v23 = vld [vmem:[%s21881_s17 + $0x78] sm:$0xf0] }
 0x455   : > { %v3286_v6 = vpop.f32.mrf.mxu3  ;;  %v11172_v34 = vor.u32 %v13493_v23, %v11171_v52  ;;  %v12271_v52 = vld [vmem:[%s21884_s20 + $0x770] sm:$0xf] }
 0x456   : > { %v3362_v37 = vmax.f32 %v3346_v16, 0.0  ;;  %v3287_v32 = vadd.f32 %v3286_v6, %v3257_v5  ;;  %v3347_v41 = vadd.f32 %v16102_v11, %v3325_v61  ;;  %v13501_v16 = vld [vmem:[%s21881_s17 + $0xbc] sm:$0xf]  ;;  %v11233_v6 = vld [vmem:[%s21881_s17 + $0xfc] sm:$0xf0] }
 0x457   : > { %v3230_v10 = vpop.f32.mrf.mxu1  ;;  %v3259_v20 = vpop.f32.mrf.mxu2  ;;  %4028 = vmatpush.bf16.msrb.mxu2 %v11172_v34  ;;  %v13484_v61 = vld [vmem:[%s21881_s17 + $0x34] sm:$0xf] }
 0x458   : > { %v16225_v3 = vpack.c.bf16 %v3362_v37, %v3360_v1  ;;  %v3304_v17 = vadd.f32 %v3287_v32, %v16077_v46  ;;  %v3231_v53 = vadd.f32 %v3230_v10, %v3201_v35  ;;  %v11164_v35 = vor.u32 %v13492_v38, %v11163_v7  ;;  %v13502_v32 = vld [vmem:[%s21881_s17 + $0xc4] sm:$0xf]  ;;  %v11241_v10 = vld [vmem:[%s21881_s17 + $0x104] sm:$0xf0] }
 0x459   : > { %v16229_v14 = vpop.f32.mrf.mxu0  ;;  %v11236_v37 = vor.u32 %v13501_v16, %v11233_v6  ;;  %v12340_v7 = vor.u32 %v13979_v19, %v12339_v33  ;;  %v11795_v6 = vld [vmem:[%s21884_s20 + $0x3b8] sm:$0xf]  ;;  %v13818_v33 = vld [vmem:[%s21884_s20 + $0x334] sm:$0xf] }
 0x45a   : > { %v3305_v24 = vadd.f32 %v3231_v53, %v16079_v59  ;;  %v3326_v26 = vmul.f32 %v16105_v51, %v3304_v17  ;;  %v3363_v59 = vmax.f32 %v3347_v41, 0.0  ;;  %v11165_v17 = vld [vmem:[%s21881_s17 + $0x74] sm:$0xf0]  ;;  %v13485_v53 = vld [vmem:[%s21881_s17 + $0x3c] sm:$0xf] }
 0x45b   : > { %3998 = vmatpush.bf16.msrb.mxu1 %v11236_v37  ;;  %v11168_v41 = vor.u32 %v13484_v61, %v11165_v17  ;;  %v13843_v37 = vld [vmem:[%s21884_s20 + $0x3f8] sm:$0xf0]  ;;  %v11797_v61 = vld [vmem:[%s21884_s20 + $0x3fc] sm:$0xf0] }
 0x45c   : > { %v3327_v50 = vmul.f32 %v16096_v4, %v3305_v24  ;;  %11281 = vmatmul.msk.bf16.vlgmr.msrb.gmra.mxu0 %vm792_vm0, %v15942_v39  ;;  %11289 = vmatmul.msk.bf16.vlgmr.msra.gmra.mxu2 %vm792_vm0, %v15942_v39  ;;  %v3348_v25 = vadd.f32 %v16115_v62, %v3326_v26 }
 0x45d   : > { %v3288_v57 = vpop.f32.mrf.mxu3  ;;  %6033 = vmatpush.bf16.msra.mxu2 %v12340_v7 }
 0x45e   : > { %v3349_v46 = vadd.f32 %v16102_v11, %v3327_v50  ;;  %v3289_v0 = vadd.f32 %v3288_v57, %v3259_v20  ;;  %v3364_v43 = vmax.f32 %v3348_v25, 0.0  ;;  %v11244_v20 = vor.u32 %v13502_v32, %v11241_v10  ;;  %v11173_v50 = vld [vmem:[%s21881_s17 + $0x7c] sm:$0xf0]  ;;  %v13835_v32 = vld [vmem:[%s21884_s20 + $0x3bc] sm:$0xf] }
 0x45f   : > { %v16240_v48 = vpop.f32.mrf.mxu1  ;;  %v16242_v15 = vpop.f32.mrf.mxu2  ;;  %v11176_v57 = vor.u32 %v13485_v53, %v11173_v50  ;;  %3999 = vmatpush.bf16.msrb.mxu1 %v11168_v41  ;;  %v11800_v17 = vor.u32 %v13835_v32, %v11797_v61  ;;  %v12203_v53 = vld [vmem:[%s21884_s20 + $0x6e8] sm:$0xf]  ;;  %v13945_v41 = vld [vmem:[%s21884_s20 + $0x728] sm:$0xf0] }
 0x460   : > { %21979 = vst [vmem:[#allocation34_spill] sm:$0xff] %v16242_v15  ;;  %v3365_v47 = vmax.f32 %v3349_v46, 0.0  ;;  %v3306_v4 = vadd.f32 %v3289_v0, %v16086_v18  ;;  %4056 = vmatpush.bf16.msrb.mxu3 %v11244_v20  ;;  %v11796_v20 = vor.u32 %v13843_v37, %v11795_v6  ;;  %v12204_v50 = vor.u32 %v13945_v41, %v12203_v53  ;;  %v13928_v6 = vld [vmem:[%s21884_s20 + $0x6a0] sm:$0xf0]  ;;  %v11659_v61 = vld [vmem:[%s21884_s20 + $0x2a8] sm:$0xf] }
 0x461   : > { %v16245_v30 = vpop.f32.mrf.mxu0  ;;  %v13801_v53 = vld [vmem:[%s21884_s20 + $0x2ac] sm:$0xf] }
 0x462   : > { %v16248_v29 = vpack.c.bf16 %v3365_v47, %v3363_v59  ;;  %v3328_v40 = vmul.f32 %v16105_v51, %v3306_v4  ;;  %11285 = vmatmul.msk.bf16.vlgmr.msra.gmra.mxu1 %vm792_vm0, %v15942_v39  ;;  %11293 = vmatmul.msk.bf16.vlgmr.msra.gmra.mxu3 %vm792_vm0, %v15942_v39 }
 0x463   : > { %6004 = vmatpush.bf16.msra.mxu1 %v11796_v20 }
 0x464   : > { %v3350_v11 = vadd.f32 %v16115_v62, %v3328_v40  ;;  %v11231_v62 = vld [vmem:[%s21881_s17 + $0xb8] sm:$0xf]  ;;  %4057 = vmatpush.bf16.msrb.mxu3 %v11176_v57  ;;  %v11727_v57 = vld [vmem:[%s21884_s20 + $0x330] sm:$0xf] }
 0x465   : > { %v16256_v9 = vpop.f32.mrf.mxu3  ;;  %v11232_v49 = vor.u32 %v13509_v27, %v11231_v62 }
 0x466   : > { %21980 = vst [vmem:[#allocation29_spill] sm:$0xff] %v16256_v9  ;;  %v3366_v18 = vmax.f32 %v3350_v11, 0.0  ;;  %v11699_v9 = vld [vmem:[%s21884_s20 + $0x2d0] sm:$0xf] }
 0x467   : > { %v16258_v28 = vpop.f32.mrf.mxu1  ;;  %v16260_v36 = vpop.f32.mrf.mxu2  ;;  %3969 = vmatpush.bf16.msra.mxu0 %v11232_v49 }
 0x468   : > { %21981 = vst [vmem:[#allocation30_spill] sm:$0xff] %v16260_v36  ;;  %v16262_v8 = vpack.c.bf16 %v3366_v18, %v3364_v43  ;;  %6062 = vmatpush.bf16.msra.mxu3 %v11800_v17  ;;  %v13809_v17 = vld [vmem:[%s21884_s20 + $0x2e8] sm:$0xf0]  ;;  %v13840_v36 = vld [vmem:[%s21884_s20 + $0x3e4] sm:$0xf] }
 0x469   : > { %v16264_v21 = vpop.f32.mrf.mxu0 }
 0x46b   : > { %3970 = vmatpush.bf16.msra.mxu0 %v11164_v35  ;;  %v13962_v35 = vld [vmem:[%s21884_s20 + $0x7b0] sm:$0xf0] }
 0x46c   : > { %11282 = vmatmul.msk.bf16.gmra.mxu0 %vm792_vm0, %v15964_v56  ;;  %11290 = vmatmul.msk.bf16.gmra.mxu2 %vm792_vm0, %v15964_v56  ;;  %v12272_v16 = vor.u32 %v13962_v35, %v12271_v52  ;;  %v11729_v52 = vld [vmem:[%s21884_s20 + $0x374] sm:$0xf0] }
 0x46d   : > { %v16270_v51 = vpop.f32.mrf.mxu3  ;;  %v11732_v35 = vor.u32 %v13818_v33, %v11729_v52  ;;  %v12067_v33 = vld [vmem:[%s21884_s20 + $0x5d8] sm:$0xf] }
 0x46e   : > { %21982 = vst [vmem:[#allocation33_spill] sm:$0xff] %v16270_v51  ;;  %6034 = vmatpush.bf16.msra.mxu2 %v12272_v16  ;;  %v12135_v16 = vld [vmem:[%s21884_s20 + $0x660] sm:$0xf] }
 0x46f   : > { %v16278_v13 = vpop.f32.mrf.mxu1  ;;  %v16280_v58 = vpop.f32.mrf.mxu2  ;;  %v12136_v20 = vor.u32 %v13928_v6, %v12135_v16  ;;  %6063 = vmatpush.bf16.msra.mxu3 %v11732_v35  ;;  %v11591_v35 = vld [vmem:[%s21884_s20 + $0x220] sm:$0xf]  ;;  %v13792_v16 = vld [vmem:[%s21884_s20 + $0x260] sm:$0xf0] }
 0x470   : > { %21983 = vst [vmem:[#allocation28_spill] sm:$0xff] %v16280_v58  ;;  %v13784_v6 = vld [vmem:[%s21884_s20 + $0x224] sm:$0xf]  ;;  %v13745_v58 = vld [vmem:[%s21884_s20 + $0xe8] sm:$0xf0] }
 0x471   : > { %v16282_v44 = vpop.f32.mrf.mxu0 }
 0x472   : > { %11286 = vmatmul.msk.bf16.gmra.mxu1 %vm792_vm0, %v15964_v56  ;;  %11294 = vmatmul.msk.bf16.gmra.mxu3 %vm792_vm0, %v15964_v56 }
 0x473   : > { %6035 = vmatpush.bf16.msra.mxu2 %v12204_v50  ;;  %v11660_v50 = vor.u32 %v13809_v17, %v11659_v61  ;;  %v11592_v61 = vor.u32 %v13792_v16, %v11591_v35  ;;  %v11593_v17 = vld [vmem:[%s21884_s20 + $0x264] sm:$0xf0]  ;;  %v13894_v35 = vld [vmem:[%s21884_s20 + $0x590] sm:$0xf0] }
 0x475   : > { %v16294_v5 = vpop.f32.mrf.mxu3 }
 0x476   : > { %21984 = vst [vmem:[#allocation31_spill] sm:$0xff] %v16294_v5  ;;  %v11419_v5 = vld [vmem:[%s21884_s20 + $0xa8] sm:$0xf] }
 0x477   : > { %v16305_v60 = vpop.f32.mrf.mxu1  ;;  %v16307_v45 = vpop.f32.mrf.mxu2  ;;  %6036 = vmatpush.bf16.msra.mxu2 %v12136_v20 }
 0x478   : > { %21985 = vst [vmem:[#allocation32_spill] sm:$0xff] %v16307_v45  ;;  %v13779_v45 = vld [vmem:[%s21884_s20 + $0x1f8] sm:$0xf0] }
 0x479   : > { %v16318_v1 = vpop.f32.mrf.mxu0 }
 0x47c   : > { %11283 = vmatmul.msk.bf16.gmra.mxu0 %vm792_vm0, %v16024_v54  ;;  %11291 = vmatmul.msk.bf16.gmra.mxu2 %vm792_vm0, %v16024_v54 }
 0x47d   : > { %v16339_v24 = vpop.f32.mrf.mxu3 }
 0x47e   : > { %21986 = vst [vmem:[#allocation35_spill] sm:$0xff] %v16339_v24  ;;  %v11555_v24 = vld [vmem:[%s21884_s20 + $0x1b8] sm:$0xf] }
 0x47f   : > { %v16344_v26 = vpop.f32.mrf.mxu1  ;;  %v16346_v46 = vpop.f32.mrf.mxu2 }
 0x480   : > { %21987 = vst [vmem:[#allocation36_spill] sm:$0xff] %v16346_v46  ;;  %v13813_v46 = vld [vmem:[%s21884_s20 + $0x308] sm:$0xf0] }
 0x481   : > { %v16348_v0 = vpop.f32.mrf.mxu0 }
 0x482   : > { %11287 = vmatmul.msk.bf16.gmra.mxu1 %vm792_vm0, %v16024_v54  ;;  %11295 = vmatmul.msk.bf16.gmra.mxu3 %vm792_vm0, %v16024_v54 }
 0x485   : > { %v16354_v59 = vpop.f32.mrf.mxu3 }
 0x486   : > { %21988 = vst [vmem:[#allocation37_spill] sm:$0xff] %v16354_v59  ;;  %v11691_v59 = vld [vmem:[%s21884_s20 + $0x2c8] sm:$0xf] }
 0x487   : > { %v16356_v47 = vpop.f32.mrf.mxu1  ;;  %v16358_v4 = vpop.f32.mrf.mxu2 }
 0x488   : > { %21989 = vst [vmem:[#allocation38_spill] sm:$0xff] %v16358_v4 }
 0x489   : > { %v16360_v25 = vpop.f32.mrf.mxu0 }
 0x48c   : > { %11284 = vmatmul.msk.bf16.gmra.mxu0 %vm792_vm0, %v16060_v63  ;;  %11292 = vmatmul.msk.bf16.gmra.mxu2 %vm792_vm0, %v16060_v63 }
 0x48d   : > { %v16366_v40 = vpop.f32.mrf.mxu3 }
 0x48e   : > { %21990 = vst [vmem:[#allocation39_spill] sm:$0xff] %v16366_v40  ;;  %v12167_v40 = vld [vmem:[%s21884_s20 + $0x680] sm:$0xf] }
 0x48f   : > { %v16368_v11 = vpop.f32.mrf.mxu1  ;;  %v16370_v43 = vpop.f32.mrf.mxu2 }
 0x490   : > { %21991 = vst [vmem:[#allocation40_spill] sm:$0xff] %v16370_v43  ;;  %v13839_v43 = vld [vmem:[%s21884_s20 + $0x3dc] sm:$0xf] }
 0x491   : > { %v16372_v18 = vpop.f32.mrf.mxu0 }
 0x492   : > { %11288 = vmatmul.msk.bf16.gmra.mxu1 %vm792_vm0, %v16060_v63  ;;  %11296 = vmatmul.msk.bf16.gmra.mxu3 %vm792_vm0, %v16060_v63 }
 0x495   : > { %v16378_v62 = vpop.f32.mrf.mxu3 }
 0x496   : > { %21992 = vst [vmem:[#allocation41_spill] sm:$0xff] %v16378_v62  ;;  %v13847_v62 = vld [vmem:[%s21884_s20 + $0x418] sm:$0xf0] }
 0x497   : > { %v16380_v27 = vpop.f32.mrf.mxu1  ;;  %v16382_v49 = vpop.f32.mrf.mxu2 }
 0x498   : > { %21993 = vst [vmem:[#allocation42_spill] sm:$0xff] %v16380_v27 }
 0x499   : > { %21994 = vst [vmem:[#allocation43_spill] sm:$0xff] %v16382_v49  ;;  %v16384_v55 = vpop.f32.mrf.mxu0 }
 0x49a   : > { %21995 = vst [vmem:[#allocation44_spill] sm:$0xff] %v16384_v55 }
 0x49c   : > { %11297 = vmatmul.msk.bf16.vlgmr.msra.gmra.mxu0 %vm792_vm0, %v15942_v39  ;;  %11305 = vmatmul.msk.bf16.vlgmr.msrb.gmra.mxu2 %vm792_vm0, %v15942_v39 }
 0x49d   : > { %v16396_v38 = vpop.f32.mrf.mxu3 }
 0x49e   : > { %21996 = vst [vmem:[#allocation45_spill] sm:$0xff] %v16396_v38 }
 0x49f   : > { %v16404_v23 = vpop.f32.mrf.mxu1  ;;  %v16406_v34 = vpop.f32.mrf.mxu2 }
 0x4a0   : > { %21997 = vst [vmem:[#allocation46_spill] sm:$0xff] %v16404_v23 }
 0x4a1   : > { %21998 = vst [vmem:[#allocation47_spill] sm:$0xff] %v16406_v34  ;;  %v16417_v10 = vpop.f32.mrf.mxu0  ;;  %v13954_v34 = vld [vmem:[%s21884_s20 + $0x774] sm:$0xf] }
 0x4a2   : > { %21999 = vst [vmem:[#allocation48_spill] sm:$0xff] %v16417_v10  ;;  %11301 = vmatmul.msk.bf16.vlgmr.msrb.gmra.mxu1 %vm792_vm0, %v15942_v39  ;;  %11309 = vmatmul.msk.bf16.vlgmr.msrb.gmra.mxu3 %vm792_vm0, %v15942_v39  ;;  %v13826_v39 = vld [vmem:[%s21884_s20 + $0x370] sm:$0xf0] }
 0x4a3   : > { %v11728_v7 = vor.u32 %v13826_v39, %v11727_v57  ;;  %v11661_v57 = vld [vmem:[%s21884_s20 + $0x2ec] sm:$0xf0] }
 0x4a4   : > { %v11664_v39 = vor.u32 %v13801_v53, %v11661_v57  ;;  %v11247_v53 = vld [vmem:[%s21881_s17 + $0xc8] sm:$0xf]  ;;  %v11596_v57 = vor.u32 %v13784_v6, %v11593_v17  ;;  %v13775_v6 = vld [vmem:[%s21884_s20 + $0x1d8] sm:$0xf0] }
 0x4a5   : > { %v16441_v19 = vpop.f32.mrf.mxu3  ;;  %6005 = vmatpush.bf16.msra.mxu1 %v11728_v7  ;;  %v13911_v7 = vld [vmem:[%s21884_s20 + $0x618] sm:$0xf0] }
 0x4a6   : > { %22000 = vst [vmem:[#allocation49_spill] sm:$0xff] %v16441_v19  ;;  %v12068_v52 = vor.u32 %v13911_v7, %v12067_v33  ;;  %6064 = vmatpush.bf16.msra.mxu3 %v11664_v39  ;;  %v11999_v33 = vld [vmem:[%s21884_s20 + $0x550] sm:$0xf]  ;;  %v13767_v17 = vld [vmem:[%s21884_s20 + $0x19c] sm:$0xf] }
 0x4a7   : > { %v16452_v37 = vpop.f32.mrf.mxu1  ;;  %v16454_v32 = vpop.f32.mrf.mxu2  ;;  %v12000_v16 = vor.u32 %v13894_v35, %v11999_v33  ;;  %v11931_v33 = vld [vmem:[%s21884_s20 + $0x4c8] sm:$0xf]  ;;  %v13750_v35 = vld [vmem:[%s21884_s20 + $0x114] sm:$0xf] }
 0x4a8   : > { %22001 = vst [vmem:[#allocation50_spill] sm:$0xff] %v16452_v37  ;;  %6037 = vmatpush.bf16.msra.mxu2 %v12068_v52 }
 0x4a9   : > { %22002 = vst [vmem:[#allocation51_spill] sm:$0xff] %v16454_v32  ;;  %v16465_v41 = vpop.f32.mrf.mxu0  ;;  %6006 = vmatpush.bf16.msra.mxu1 %v11660_v50  ;;  %v13511_v50 = vld [vmem:[%s21881_s17 + $0x108] sm:$0xf0] }
 0x4aa   : > { %22003 = vst [vmem:[#allocation52_spill] sm:$0xff] %v16465_v41  ;;  %v11248_v52 = vor.u32 %v13511_v50, %v11247_v53  ;;  %6065 = vmatpush.bf16.msra.mxu3 %v11596_v57  ;;  %v11525_v53 = vld [vmem:[%s21884_s20 + $0x1dc] sm:$0xf0]  ;;  %v13877_v57 = vld [vmem:[%s21884_s20 + $0x508] sm:$0xf0] }
 0x4ab   : > { %v11528_v50 = vor.u32 %v13767_v17, %v11525_v53  ;;  %v11179_v53 = vld [vmem:[%s21881_s17 + $0x40] sm:$0xf]  ;;  %v13741_v32 = vld [vmem:[%s21884_s20 + $0xc8] sm:$0xf0]  ;;  %v13744_v41 = vld [vmem:[%s21884_s20 + $0xe0] sm:$0xf0] }
 0x4ac   : > { %11298 = vmatmul.msk.bf16.gmra.mxu0 %vm792_vm0, %v15964_v56  ;;  %11306 = vmatmul.msk.bf16.gmra.mxu2 %vm792_vm0, %v15964_v56 }
 0x4ad   : > { %v16489_v20 = vpop.f32.mrf.mxu3  ;;  %6007 = vmatpush.bf16.msra.mxu1 %v11592_v61  ;;  %4085 = vmatpush.bf16.msrb.mxu0 %v11248_v52  ;;  %v11455_v52 = vld [vmem:[%s21884_s20 + $0x110] sm:$0xf] }
 0x4ae   : > { %22004 = vst [vmem:[#allocation53_spill] sm:$0xff] %v16489_v20  ;;  %v11523_v20 = vld [vmem:[%s21884_s20 + $0x198] sm:$0xf]  ;;  %6038 = vmatpush.bf16.msra.mxu2 %v12000_v16  ;;  %6066 = vmatpush.bf16.msra.mxu3 %v11528_v50 }
 0x4af   : > { %v16503_v39 = vpop.f32.mrf.mxu1  ;;  %v16505_v7 = vpop.f32.mrf.mxu2  ;;  %v11524_v61 = vor.u32 %v13775_v6, %v11523_v20  ;;  %v11932_v20 = vor.u32 %v13877_v57, %v11931_v33  ;;  %v11457_v16 = vld [vmem:[%s21884_s20 + $0x154] sm:$0xf0]  ;;  %v13494_v33 = vld [vmem:[%s21881_s17 + $0x80] sm:$0xf0]  ;;  %v11863_v57 = vld [vmem:[%s21884_s20 + $0x440] sm:$0xf] }
 0x4b0   : > { %22005 = vst [vmem:[#allocation54_spill] sm:$0xff] %v16503_v39  ;;  %v11411_v39 = vld [vmem:[%s21884_s20 + $0xa0] sm:$0xf] }
 0x4b1   : > { %22006 = vst [vmem:[#allocation55_spill] sm:$0xff] %v16505_v7  ;;  %v16519_v7 = vpop.f32.mrf.mxu0  ;;  %6008 = vmatpush.bf16.msra.mxu1 %v11524_v61  ;;  %v11460_v61 = vor.u32 %v13750_v35, %v11457_v16  ;;  %v11387_v16 = vld [vmem:[%s21884_s20 + $0x88] sm:$0xf] }
 0x4b2   : > { %22007 = vst [vmem:[#allocation56_spill] sm:$0xff] %v16519_v7  ;;  %11302 = vmatmul.msk.bf16.gmra.mxu1 %vm792_vm0, %v15964_v56  ;;  %11310 = vmatmul.msk.bf16.gmra.mxu3 %vm792_vm0, %v15964_v56  ;;  %v13758_v56 = vld [vmem:[%s21884_s20 + $0x150] sm:$0xf0] }
 0x4b3   : > { %v11456_v17 = vor.u32 %v13758_v56, %v11455_v52  ;;  %6039 = vmatpush.bf16.msra.mxu2 %v11932_v20  ;;  %v11180_v52 = vor.u32 %v13494_v33, %v11179_v53  ;;  %v13860_v56 = vld [vmem:[%s21884_s20 + $0x480] sm:$0xf0]  ;;  %6067 = vmatpush.bf16.msra.mxu3 %v11460_v61  ;;  %v11388_v20 = vor.u32 %v13741_v32, %v11387_v16  ;;  %v11389_v53 = vld [vmem:[%s21884_s20 + $0xcc] sm:$0xf0]  ;;  %v11319_v32 = vld [vmem:[%s21884_s20] sm:$0xf] }
 0x4b4   : > { %v11864_v35 = vor.u32 %v13860_v56, %v11863_v57  ;;  %v13724_v61 = vld [vmem:[%s21884_s20 + $0x40] sm:$0xf0]  ;;  %v13778_v7 = vld [vmem:[%s21884_s20 + $0x1f0] sm:$0xf0] }
 0x4b5   : > { %v16543_v6 = vpop.f32.mrf.mxu3  ;;  %6009 = vmatpush.bf16.msra.mxu1 %v11456_v17  ;;  %4086 = vmatpush.bf16.msrb.mxu0 %v11180_v52  ;;  %v13733_v17 = vld [vmem:[%s21884_s20 + $0x8c] sm:$0xf]  ;;  %v13716_v57 = vld [vmem:[%s21884_s20 + $0x4] sm:$0xf]  ;;  %v11320_v56 = vor.u32 %v13724_v61, %v11319_v32 }
 0x4b6   : > { %22008 = vst [vmem:[#allocation57_spill] sm:$0xff] %v16543_v6  ;;  %v11392_v33 = vor.u32 %v13733_v17, %v11389_v53 }
 0x4b7   : > { %v16557_v6 = vpop.f32.mrf.mxu1  ;;  %v16559_v50 = vpop.f32.mrf.mxu2  ;;  %6040 = vmatpush.bf16.msra.mxu2 %v11864_v35  ;;  %v11321_v35 = vld [vmem:[%s21884_s20 + $0x44] sm:$0xf0] }
 0x4b8   : > { %22009 = vst [vmem:[#allocation58_spill] sm:$0xff] %v16557_v6  ;;  %6068 = vmatpush.bf16.msra.mxu3 %v11392_v33  ;;  %v11324_v16 = vor.u32 %v13716_v57, %v11321_v35  ;;  %v11547_v6 = vld [vmem:[%s21884_s20 + $0x1b0] sm:$0xf] }
 0x4b9   : > { %22010 = vst [vmem:[#allocation59_spill] sm:$0xff] %v16559_v50  ;;  %v16570_v19 = vpop.f32.mrf.mxu0  ;;  %6010 = vmatpush.bf16.msra.mxu1 %v11388_v20 }
 0x4ba   : > { %22011 = vst [vmem:[#allocation60_spill] sm:$0xff] %v16570_v19  ;;  %v13812_v19 = vld [vmem:[%s21884_s20 + $0x300] sm:$0xf0] }
 0x4bc   : > { %11299 = vmatmul.msk.bf16.gmra.mxu0 %vm792_vm0, %v16024_v54  ;;  %11307 = vmatmul.msk.bf16.gmra.mxu2 %vm792_vm0, %v16024_v54 }
 0x4bd   : > { %v16591_v52 = vpop.f32.mrf.mxu3  ;;  %6011 = vmatpush.bf16.msra.mxu1 %v11320_v56  ;;  %6069 = vmatpush.bf16.msra.mxu3 %v11324_v16 }
 0x4be   : > { %22012 = vst [vmem:[#allocation61_spill] sm:$0xff] %v16591_v52 }
 0x4bf   : > { %v16596_v20 = vpop.f32.mrf.mxu1  ;;  %v16598_v17 = vpop.f32.mrf.mxu2 }
 0x4c0   : > { %22013 = vst [vmem:[#allocation62_spill] sm:$0xff] %v16596_v20  ;;  %v11683_v20 = vld [vmem:[%s21884_s20 + $0x2c0] sm:$0xf] }
 0x4c1   : > { %22014 = vst [vmem:[#allocation63_spill] sm:$0xff] %v16598_v17  ;;  %v16600_v53 = vpop.f32.mrf.mxu0 }
 0x4c2   : > { %22015 = vst [vmem:[#allocation64_spill] sm:$0xff] %v16600_v53  ;;  %11303 = vmatmul.msk.bf16.gmra.mxu1 %vm792_vm0, %v16024_v54  ;;  %11311 = vmatmul.msk.bf16.gmra.mxu3 %vm792_vm0, %v16024_v54 }
 0x4c5   : > { %v16606_v33 = vpop.f32.mrf.mxu3 }
 0x4c6   : > { %22016 = vst [vmem:[#allocation65_spill] sm:$0xff] %v16606_v33 }
 0x4c7   : > { %v16608_v32 = vpop.f32.mrf.mxu1  ;;  %v16610_v61 = vpop.f32.mrf.mxu2 }
 0x4c8   : > { %22017 = vst [vmem:[#allocation66_spill] sm:$0xff] %v16608_v32  ;;  %v13776_v32 = vld [vmem:[%s21884_s20 + $0x1e0] sm:$0xf0] }
 0x4c9   : > { %22018 = vst [vmem:[#allocation67_spill] sm:$0xff] %v16610_v61  ;;  %v16612_v57 = vpop.f32.mrf.mxu0 }
 0x4ca   : > { %22019 = vst [vmem:[#allocation68_spill] sm:$0xff] %v16612_v57  ;;  %v12143_v57 = vld [vmem:[%s21884_s20 + $0x668] sm:$0xf] }
 0x4cc   : > { %11300 = vmatmul.msk.bf16.gmra.mxu0 %vm792_vm0, %v16060_v63  ;;  %11308 = vmatmul.msk.bf16.gmra.mxu2 %vm792_vm0, %v16060_v63 }
 0x4cd   : > { %v16618_v56 = vpop.f32.mrf.mxu3 }
 0x4ce   : > { %22020 = vst [vmem:[#allocation69_spill] sm:$0xff] %v16618_v56  ;;  %v12341_v56 = vld [vmem:[%s21884_s20 + $0x83c] sm:$0xf0] }
 0x4cf   : > { %v16620_v35 = vpop.f32.mrf.mxu1  ;;  %v16622_v54 = vpop.f32.mrf.mxu2 }
 0x4d0   : > { %22021 = vst [vmem:[#allocation70_spill] sm:$0xff] %v16620_v35 }
 0x4d1   : > { %22022 = vst [vmem:[#allocation71_spill] sm:$0xff] %v16622_v54  ;;  %v16624_v16 = vpop.f32.mrf.mxu0  ;;  %v13971_v54 = vld [vmem:[%s21884_s20 + $0x7fc] sm:$0xf] }
 0x4d2   : > { %22023 = vst [vmem:[#allocation72_spill] sm:$0xff] %v16624_v16  ;;  %11304 = vmatmul.msk.bf16.gmra.mxu1 %vm792_vm0, %v16060_v63  ;;  %11312 = vmatmul.msk.bf16.gmra.mxu3 %vm792_vm0, %v16060_v63  ;;  %v12347_v63 = vld [vmem:[%s21884_s20 + $0x800] sm:$0xf]  ;;  %v12344_v50 = vor.u32 %v13971_v54, %v12341_v56  ;;  %v12273_v56 = vld [vmem:[%s21884_s20 + $0x7b4] sm:$0xf0] }
 0x4d3   : > { %v12279_v54 = vld [vmem:[%s21884_s20 + $0x778] sm:$0xf] }
 0x4d4   : > { %6091 = vmatpush.bf16.msra.mxu0 %v12344_v50  ;;  %v13963_v50 = vld [vmem:[%s21884_s20 + $0x7b8] sm:$0xf0] }
 0x4d5   : > { %v16630_v61 = vpop.f32.mrf.mxu3 }
 0x4d6   : > { %22024 = vst [vmem:[#allocation73_spill] sm:$0xff] %v16630_v61  ;;  %v13980_v61 = vld [vmem:[%s21884_s20 + $0x840] sm:$0xf0] }
 0x4d7   : > { %v16632_v33 = vpop.f32.mrf.mxu1  ;;  %v16634_v17 = vpop.f32.mrf.mxu2 }
 0x4d8   : > { %22025 = vst [vmem:[#allocation74_spill] sm:$0xff] %v16632_v33 }
 0x4d9   : > { %22026 = vst [vmem:[#allocation75_spill] sm:$0xff] %v16634_v17  ;;  %v16636_v52 = vpop.f32.mrf.mxu0  ;;  %v14047_v17 = vld [vmem:[%s14350_s3] sm:$0xff] }
 0x4da   : > { %22027 = vst [vmem:[#allocation76_spill] sm:$0xff] %v16636_v52  ;;  %v12348_v52 = vor.u32 %v13980_v61, %v12347_v63  ;;  %v12276_v61 = vor.u32 %v13954_v34, %v12273_v56  ;;  %v11803_v63 = vld [vmem:[%s21884_s20 + $0x3c0] sm:$0xf]  ;;  %v11805_v56 = vld [vmem:[%s21884_s20 + $0x404] sm:$0xf0] }
 0x4dc   : > { %11313 = vmatmul.msk.bf16.vlgmr.msrb.gmra.mxu0 %vm792_vm0, %v14047_v17  ;;  %6041 = vmatmul.bf16.vlgmr.msra.gmra.mxu2 %v16153_v42 }
 0x4dd   : > { %v16653_v33 = vpop.f32.mrf.mxu3  ;;  %6149 = vmatpush.bf16.msrb.mxu2 %v12348_v52  ;;  %v12280_v52 = vor.u32 %v13963_v50, %v12279_v54  ;;  %6092 = vmatpush.bf16.msra.mxu0 %v12276_v61  ;;  %v13937_v50 = vld [vmem:[%s21884_s20 + $0x6ec] sm:$0xf] }
 0x4de   : > { %22028 = vst [vmem:[#allocation77_spill] sm:$0xff] %v16653_v33  ;;  %v13844_v33 = vld [vmem:[%s21884_s20 + $0x400] sm:$0xf0] }
 0x4df   : > { %v16664_v17 = vpop.f32.mrf.mxu1  ;;  %v16666_v16 = vpop.f32.mrf.mxu2  ;;  %v11804_v34 = vor.u32 %v13844_v33, %v11803_v63  ;;  %v12211_v33 = vld [vmem:[%s21884_s20 + $0x6f0] sm:$0xf]  ;;  %v13946_v63 = vld [vmem:[%s21884_s20 + $0x730] sm:$0xf0] }
 0x4e0   : > { %22029 = vst [vmem:[#allocation78_spill] sm:$0xff] %v16664_v17  ;;  %v13836_v17 = vld [vmem:[%s21884_s20 + $0x3c4] sm:$0xf] }
 0x4e1   : > { %22030 = vst [vmem:[#allocation79_spill] sm:$0xff] %v16666_v16  ;;  %v16680_v35 = vpop.f32.mrf.mxu0  ;;  %v11808_v54 = vor.u32 %v13836_v17, %v11805_v56  ;;  %v12205_v16 = vld [vmem:[%s21884_s20 + $0x72c] sm:$0xf0]  ;;  %6150 = vmatpush.bf16.msrb.mxu2 %v12280_v52  ;;  %6120 = vmatpush.bf16.msrb.mxu1 %v11804_v34  ;;  %v12212_v17 = vor.u32 %v13946_v63, %v12211_v33  ;;  %v11735_v56 = vld [vmem:[%s21884_s20 + $0x338] sm:$0xf] }
 0x4e2   : > { %22031 = vst [vmem:[#allocation80_spill] sm:$0xff] %v16680_v35  ;;  %6012 = vmatmul.bf16.vlgmr.msra.gmra.mxu1 %v16120_v2  ;;  %6070 = vmatmul.bf16.vlgmr.msra.gmra.mxu3 %v16120_v2  ;;  %v12208_v61 = vor.u32 %v13937_v50, %v12205_v16  ;;  %v13827_v35 = vld [vmem:[%s21884_s20 + $0x378] sm:$0xf0]  ;;  %v13920_v33 = vld [vmem:[%s21884_s20 + $0x664] sm:$0xf] }
 0x4e3   : > { %6178 = vmatpush.bf16.msrb.mxu3 %v11808_v54  ;;  %v13819_v52 = vld [vmem:[%s21884_s20 + $0x33c] sm:$0xf]  ;;  %v11736_v16 = vor.u32 %v13827_v35, %v11735_v56  ;;  %v11737_v54 = vld [vmem:[%s21884_s20 + $0x37c] sm:$0xf0]  ;;  %v12137_v63 = vld [vmem:[%s21884_s20 + $0x6a4] sm:$0xf0] }
 0x4e4   : > { %6093 = vmatpush.bf16.msra.mxu0 %v12208_v61  ;;  %v11740_v50 = vor.u32 %v13819_v52, %v11737_v54  ;;  %v12140_v61 = vor.u32 %v13920_v33, %v12137_v63  ;;  %v13929_v56 = vld [vmem:[%s21884_s20 + $0x6a8] sm:$0xf0]  ;;  %v11667_v54 = vld [vmem:[%s21884_s20 + $0x2b0] sm:$0xf]  ;;  %v13903_v63 = vld [vmem:[%s21884_s20 + $0x5dc] sm:$0xf] }
 0x4e5   : > { %v16708_v34 = vpop.f32.mrf.mxu3  ;;  %6151 = vmatpush.bf16.msrb.mxu2 %v12212_v17  ;;  %6121 = vmatpush.bf16.msrb.mxu1 %v11736_v16  ;;  %v12144_v52 = vor.u32 %v13929_v56, %v12143_v57  ;;  %v13802_v17 = vld [vmem:[%s21884_s20 + $0x2b4] sm:$0xf]  ;;  %v11669_v57 = vld [vmem:[%s21884_s20 + $0x2f4] sm:$0xf0]  ;;  %v12069_v56 = vld [vmem:[%s21884_s20 + $0x61c] sm:$0xf0] }
 0x4e6   : > { %22032 = vst [vmem:[#allocation81_spill] sm:$0xff] %v16708_v34 }
 0x4e7   : > { %v16722_v34 = vpop.f32.mrf.mxu1  ;;  %v16724_v35 = vpop.f32.mrf.mxu2  ;;  %6179 = vmatpush.bf16.msrb.mxu3 %v11740_v50  ;;  %v11672_v50 = vor.u32 %v13802_v17, %v11669_v57  ;;  %v11599_v57 = vld [vmem:[%s21884_s20 + $0x228] sm:$0xf] }
 0x4e8   : > { %22033 = vst [vmem:[#allocation82_spill] sm:$0xff] %v16722_v34  ;;  %v13810_v34 = vld [vmem:[%s21884_s20 + $0x2f0] sm:$0xf0]  ;;  %6094 = vmatpush.bf16.msra.mxu0 %v12140_v61  ;;  %v13912_v61 = vld [vmem:[%s21884_s20 + $0x620] sm:$0xf0] }
 0x4e9   : > { %22034 = vst [vmem:[#allocation83_spill] sm:$0xff] %v16724_v35  ;;  %v16738_v16 = vpop.f32.mrf.mxu0  ;;  %v11668_v33 = vor.u32 %v13810_v34, %v11667_v54  ;;  %v12075_v35 = vld [vmem:[%s21884_s20 + $0x5e0] sm:$0xf]  ;;  %6152 = vmatpush.bf16.msrb.mxu2 %v12144_v52  ;;  %v12072_v34 = vor.u32 %v13903_v63, %v12069_v56  ;;  %v14048_v54 = vld [vmem:[%s14350_s3 + $0x8] sm:$0xff] }
 0x4ea   : > { %22035 = vst [vmem:[#allocation84_spill] sm:$0xff] %v16738_v16  ;;  %v12076_v17 = vor.u32 %v13912_v61, %v12075_v35  ;;  %v13793_v52 = vld [vmem:[%s21884_s20 + $0x268] sm:$0xf0]  ;;  %v11601_v35 = vld [vmem:[%s21884_s20 + $0x26c] sm:$0xf0] }
 0x4eb   : > { %6122 = vmatpush.bf16.msrb.mxu1 %v11668_v33  ;;  %v13785_v33 = vld [vmem:[%s21884_s20 + $0x22c] sm:$0xf]  ;;  %6180 = vmatpush.bf16.msrb.mxu3 %v11672_v50  ;;  %v11600_v56 = vor.u32 %v13793_v52, %v11599_v57  ;;  %v12001_v16 = vld [vmem:[%s21884_s20 + $0x594] sm:$0xf0]  ;;  %v13895_v52 = vld [vmem:[%s21884_s20 + $0x598] sm:$0xf0] }
 0x4ec   : > { %11314 = vmatmul.msk.bf16.gmra.mxu0 %vm792_vm0, %v14048_v54  ;;  %6046 = vmatmul.bf16.gmra.mxu2 %v16201_v31  ;;  %v11604_v61 = vor.u32 %v13785_v33, %v11601_v35  ;;  %v13886_v54 = vld [vmem:[%s21884_s20 + $0x554] sm:$0xf]  ;;  %v11531_v35 = vld [vmem:[%s21884_s20 + $0x1a0] sm:$0xf] }
 0x4ed   : > { %v16767_v63 = vpop.f32.mrf.mxu3  ;;  %6095 = vmatpush.bf16.msra.mxu0 %v12072_v34  ;;  %6153 = vmatpush.bf16.msrb.mxu2 %v12076_v17  ;;  %v12004_v57 = vor.u32 %v13886_v54, %v12001_v16  ;;  %v11532_v16 = vor.u32 %v13776_v32, %v11531_v35  ;;  %v13869_v54 = vld [vmem:[%s21884_s20 + $0x4cc] sm:$0xf]  ;;  %v11939_v32 = vld [vmem:[%s21884_s20 + $0x4d0] sm:$0xf]  ;;  %v11463_v35 = vld [vmem:[%s21884_s20 + $0x118] sm:$0xf] }
 0x4ee   : > { %22036 = vst [vmem:[#allocation85_spill] sm:$0xff] %v16767_v63  ;;  %v12007_v63 = vld [vmem:[%s21884_s20 + $0x558] sm:$0xf] }
 0x4ef   : > { %v16781_v50 = vpop.f32.mrf.mxu1  ;;  %v16783_v34 = vpop.f32.mrf.mxu2  ;;  %6123 = vmatpush.bf16.msrb.mxu1 %v11600_v56  ;;  %v12008_v33 = vor.u32 %v13895_v52, %v12007_v63  ;;  %6181 = vmatpush.bf16.msrb.mxu3 %v11604_v61  ;;  %v11533_v63 = vld [vmem:[%s21884_s20 + $0x1e4] sm:$0xf0]  ;;  %v11933_v52 = vld [vmem:[%s21884_s20 + $0x50c] sm:$0xf0] }
 0x4f0   : > { %22037 = vst [vmem:[#allocation86_spill] sm:$0xff] %v16781_v50  ;;  %v11936_v61 = vor.u32 %v13869_v54, %v11933_v52  ;;  %v11465_v54 = vld [vmem:[%s21884_s20 + $0x15c] sm:$0xf0]  ;;  %v13742_v50 = vld [vmem:[%s21884_s20 + $0xd0] sm:$0xf0] }
 0x4f1   : > { %22038 = vst [vmem:[#allocation87_spill] sm:$0xff] %v16783_v34  ;;  %v13768_v34 = vld [vmem:[%s21884_s20 + $0x1a4] sm:$0xf]  ;;  %v16797_v17 = vpop.f32.mrf.mxu0  ;;  %6096 = vmatpush.bf16.msra.mxu0 %v12004_v57  ;;  %6154 = vmatpush.bf16.msrb.mxu2 %v12008_v33  ;;  %v13878_v57 = vld [vmem:[%s21884_s20 + $0x510] sm:$0xf0] }
 0x4f2   : > { %22039 = vst [vmem:[#allocation88_spill] sm:$0xff] %v16797_v17  ;;  %6017 = vmatmul.bf16.gmra.mxu1 %v16192_v22  ;;  %6075 = vmatmul.bf16.gmra.mxu3 %v16192_v22  ;;  %v11536_v56 = vor.u32 %v13768_v34, %v11533_v63  ;;  %v11940_v34 = vor.u32 %v13878_v57, %v11939_v32  ;;  %v13759_v63 = vld [vmem:[%s21884_s20 + $0x158] sm:$0xf0]  ;;  %v13852_v32 = vld [vmem:[%s21884_s20 + $0x444] sm:$0xf] }
 0x4f3   : > { %6124 = vmatpush.bf16.msrb.mxu1 %v11532_v16  ;;  %v13751_v17 = vld [vmem:[%s21884_s20 + $0x11c] sm:$0xf]  ;;  %v11464_v16 = vor.u32 %v13759_v63, %v11463_v35  ;;  %v11865_v57 = vld [vmem:[%s21884_s20 + $0x484] sm:$0xf0]  ;;  %v13861_v35 = vld [vmem:[%s21884_s20 + $0x488] sm:$0xf0] }
 0x4f4   : > { %6182 = vmatpush.bf16.msrb.mxu3 %v11536_v56  ;;  %v11468_v52 = vor.u32 %v13751_v17, %v11465_v54  ;;  %v11868_v17 = vor.u32 %v13852_v32, %v11865_v57  ;;  %v11395_v54 = vld [vmem:[%s21884_s20 + $0x90] sm:$0xf] }
 0x4f5   : > { %v16825_v33 = vpop.f32.mrf.mxu3  ;;  %6097 = vmatpush.bf16.msra.mxu0 %v11936_v61  ;;  %6155 = vmatpush.bf16.msrb.mxu2 %v11940_v34  ;;  %v11396_v34 = vor.u32 %v13742_v50, %v11395_v54  ;;  %v14049_v57 = vld [vmem:[%s14350_s3 + $0x10] sm:$0xff]  ;;  %v11327_v50 = vld [vmem:[%s21884_s20 + $0x8] sm:$0xf] }
 0x4f6   : > { %22040 = vst [vmem:[#allocation89_spill] sm:$0xff] %v16825_v33  ;;  %v11871_v33 = vld [vmem:[%s21884_s20 + $0x448] sm:$0xf]  ;;  %v11329_v54 = vld [vmem:[%s21884_s20 + $0x4c] sm:$0xf0] }
 0x4f7   : > { %v16839_v56 = vpop.f32.mrf.mxu1  ;;  %v16841_v61 = vpop.f32.mrf.mxu2  ;;  %6125 = vmatpush.bf16.msrb.mxu1 %v11464_v16  ;;  %v11872_v63 = vor.u32 %v13861_v35, %v11871_v33  ;;  %v13734_v16 = vld [vmem:[%s21884_s20 + $0x94] sm:$0xf]  ;;  %v11397_v33 = vld [vmem:[%s21884_s20 + $0xd4] sm:$0xf0] }
 0x4f8   : > { %22041 = vst [vmem:[#allocation90_spill] sm:$0xff] %v16839_v56  ;;  %6183 = vmatpush.bf16.msrb.mxu3 %v11468_v52  ;;  %v11400_v32 = vor.u32 %v13734_v16, %v11397_v33  ;;  %v13725_v52 = vld [vmem:[%s21884_s20 + $0x48] sm:$0xf0] }
 0x4f9   : > { %22042 = vst [vmem:[#allocation91_spill] sm:$0xff] %v16841_v61  ;;  %v16852_v56 = vpop.f32.mrf.mxu0  ;;  %6098 = vmatpush.bf16.msra.mxu0 %v11868_v17  ;;  %6156 = vmatpush.bf16.msrb.mxu2 %v11872_v63  ;;  %v13717_v17 = vld [vmem:[%s21884_s20 + $0xc] sm:$0xf]  ;;  %v11328_v63 = vor.u32 %v13725_v52, %v11327_v50 }
 0x4fa   : > { %22043 = vst [vmem:[#allocation92_spill] sm:$0xff] %v16852_v56  ;;  %v13811_v56 = vld [vmem:[%s21884_s20 + $0x2f8] sm:$0xf0] }
 0x4fb   : > { %6126 = vmatpush.bf16.msrb.mxu1 %v11396_v34  ;;  %v11332_v34 = vor.u32 %v13717_v17, %v11329_v54  ;;  %v14050_v17 = vld [vmem:[%s14350_s3 + $0x18] sm:$0xff]  ;;  %s14079_s3 = scalar_lea.hbm %s21888_s24, 2176 }
 0x4fc   : > { %11315 = vmatmul.msk.bf16.gmra.mxu0 %vm792_vm0, %v14049_v57  ;;  %6051 = vmatmul.bf16.gmra.mxu2 %v16225_v3 }
 0x4fd   : > { %v16872_v35 = vpop.f32.mrf.mxu3  ;;  %6184 = vmatpush.bf16.msrb.mxu3 %v11400_v32 }
 0x4fe   : > { %22044 = vst [vmem:[#allocation93_spill] sm:$0xff] %v16872_v35 }
 0x4ff   : > { %v16877_v16 = vpop.f32.mrf.mxu1  ;;  %v16879_v33 = vpop.f32.mrf.mxu2  ;;  %6127 = vmatpush.bf16.msrb.mxu1 %v11328_v63 }
 0x500   : > { %22045 = vst [vmem:[#allocation94_spill] sm:$0xff] %v16877_v16  ;;  %v12151_v16 = vld [vmem:[%s21884_s20 + $0x670] sm:$0xf] }
 0x501   : > { %22046 = vst [vmem:[#allocation95_spill] sm:$0xff] %v16879_v33  ;;  %v16881_v57 = vpop.f32.mrf.mxu0  ;;  %6185 = vmatpush.bf16.msrb.mxu3 %v11332_v34 }
 0x502   : > { %22047 = vst [vmem:[#allocation96_spill] sm:$0xff] %v16881_v57  ;;  %6022 = vmatmul.bf16.gmra.mxu1 %v16216_v12  ;;  %6080 = vmatmul.bf16.gmra.mxu3 %v16216_v12 }
 0x505   : > { %v16885_v35 = vpop.f32.mrf.mxu3 }
 0x506   : > { %22048 = vst [vmem:[#allocation97_spill] sm:$0xff] %v16885_v35 }
 0x507   : > { %v16887_v32 = vpop.f32.mrf.mxu1  ;;  %v16889_v50 = vpop.f32.mrf.mxu2 }
 0x508   : > { %22049 = vst [vmem:[#allocation98_spill] sm:$0xff] %v16887_v32 }
 0x509   : > { %22050 = vst [vmem:[#allocation99_spill] sm:$0xff] %v16889_v50  ;;  %v16891_v52 = vpop.f32.mrf.mxu0 }
 0x50a   : > { %22051 = vst [vmem:[#allocation100_spill] sm:$0xff] %v16891_v52 }
 0x50c   : > { %11316 = vmatmul.msk.bf16.gmra.mxu0 %vm792_vm0, %v14050_v17  ;;  %6056 = vmatmul.bf16.gmra.mxu2 %v16262_v8 }
 0x50d   : > { %v16896_v63 = vpop.f32.mrf.mxu3 }
 0x50e   : > { %22052 = vst [vmem:[#allocation101_spill] sm:$0xff] %v16896_v63  ;;  %v13972_v63 = vld [vmem:[%s21884_s20 + $0x804] sm:$0xf] }
 0x50f   : > { %v16898_v54 = vpop.f32.mrf.mxu1  ;;  %v16900_v34 = vpop.f32.mrf.mxu2 }
 0x510   : > { %22053 = vst [vmem:[#allocation102_spill] sm:$0xff] %v16898_v54 }
 0x511   : > { %22054 = vst [vmem:[#allocation103_spill] sm:$0xff] %v16900_v34  ;;  %v16902_v33 = vpop.f32.mrf.mxu0  ;;  %v12349_v34 = vld [vmem:[%s21884_s20 + $0x844] sm:$0xf0] }
 0x512   : > { %22055 = vst [vmem:[#allocation104_spill] sm:$0xff] %v16902_v33  ;;  %6027 = vmatmul.bf16.gmra.mxu1 %v16248_v29  ;;  %6085 = vmatmul.bf16.gmra.mxu3 %v16248_v29  ;;  %v12355_v33 = vld [vmem:[%s21884_s20 + $0x808] sm:$0xf]  ;;  %v12352_v54 = vor.u32 %v13972_v63, %v12349_v34  ;;  %v12281_v63 = vld [vmem:[%s21884_s20 + $0x7bc] sm:$0xf0] }
 0x513   : > { %v12287_v34 = vld [vmem:[%s21884_s20 + $0x780] sm:$0xf] }
 0x514   : > { %6207 = vmatpush.bf16.msrb.mxu0 %v12352_v54 }
 0x515   : > { %v16906_v50 = vpop.f32.mrf.mxu3 }
 0x516   : > { %22056 = vst [vmem:[#allocation105_spill] sm:$0xff] %v16906_v50  ;;  %v13981_v50 = vld [vmem:[%s21884_s20 + $0x848] sm:$0xf0] }
 0x517   : > { %v16908_v35 = vpop.f32.mrf.mxu1  ;;  %v16910_v61 = vpop.f32.mrf.mxu2 }
 0x518   : > { %22057 = vst [vmem:[#allocation106_spill] sm:$0xff] %v16908_v35  ;;  %v13955_v35 = vld [vmem:[%s21884_s20 + $0x77c] sm:$0xf] }
 0x519   : > { %22058 = vst [vmem:[#allocation107_spill] sm:$0xff] %v16910_v61  ;;  %v16912_v17 = vpop.f32.mrf.mxu0 }
 0x51a   : > { %22059 = vst [vmem:[#allocation108_spill] sm:$0xff] %v16912_v17  ;;  %v12356_v17 = vor.u32 %v13981_v50, %v12355_v33  ;;  %v12284_v33 = vor.u32 %v13955_v35, %v12281_v63  ;;  %v13964_v50 = vld [vmem:[%s21884_s20 + $0x7c0] sm:$0xf0]  ;;  %v11813_v63 = vld [vmem:[%s21884_s20 + $0x40c] sm:$0xf0] }
 0x51b   : > { %v12288_v54 = vor.u32 %v13964_v50, %v12287_v34  ;;  %v13938_v50 = vld [vmem:[%s21884_s20 + $0x6f4] sm:$0xf] }
 0x51c   : > { %6099 = vmatmul.bf16.vlgmr.msra.gmra.mxu0 %v16153_v42  ;;  %6157 = vmatmul.bf16.vlgmr.msrb.gmra.mxu2 %v16153_v42 }
 0x51d   : > { %v16928_v61 = vpop.f32.mrf.mxu3  ;;  %6265 = vmatpush.bf16.msra.mxu2 %v12356_v17  ;;  %v11811_v17 = vld [vmem:[%s21884_s20 + $0x3c8] sm:$0xf]  ;;  %6208 = vmatpush.bf16.msrb.mxu0 %v12284_v33 }
 0x51e   : > { %22060 = vst [vmem:[#allocation109_spill] sm:$0xff] %v16928_v61  ;;  %v13845_v61 = vld [vmem:[%s21884_s20 + $0x408] sm:$0xf0] }
 0x51f   : > { %v16939_v52 = vpop.f32.mrf.mxu1  ;;  %v16941_v32 = vpop.f32.mrf.mxu2  ;;  %v11812_v35 = vor.u32 %v13845_v61, %v11811_v17  ;;  %v12219_v61 = vld [vmem:[%s21884_s20 + $0x6f8] sm:$0xf]  ;;  %v13947_v17 = vld [vmem:[%s21884_s20 + $0x738] sm:$0xf0] }
 0x520   : > { %22061 = vst [vmem:[#allocation110_spill] sm:$0xff] %v16939_v52  ;;  %v13837_v52 = vld [vmem:[%s21884_s20 + $0x3cc] sm:$0xf] }
 0x521   : > { %22062 = vst [vmem:[#allocation111_spill] sm:$0xff] %v16941_v32  ;;  %v16955_v57 = vpop.f32.mrf.mxu0  ;;  %v11816_v34 = vor.u32 %v13837_v52, %v11813_v63  ;;  %v12213_v32 = vld [vmem:[%s21884_s20 + $0x734] sm:$0xf0]  ;;  %6266 = vmatpush.bf16.msra.mxu2 %v12288_v54  ;;  %6236 = vmatpush.bf16.msra.mxu1 %v11812_v35  ;;  %v12220_v52 = vor.u32 %v13947_v17, %v12219_v61  ;;  %v11743_v63 = vld [vmem:[%s21884_s20 + $0x340] sm:$0xf] }
 0x522   : > { %22063 = vst [vmem:[#allocation112_spill] sm:$0xff] %v16955_v57  ;;  %6128 = vmatmul.bf16.vlgmr.msrb.gmra.mxu1 %v16120_v2  ;;  %6186 = vmatmul.bf16.vlgmr.msrb.gmra.mxu3 %v16120_v2  ;;  %v12216_v33 = vor.u32 %v13938_v50, %v12213_v32  ;;  %v13828_v57 = vld [vmem:[%s21884_s20 + $0x380] sm:$0xf0]  ;;  %v13921_v61 = vld [vmem:[%s21884_s20 + $0x66c] sm:$0xf] }
 0x523   : > { %6294 = vmatpush.bf16.msra.mxu3 %v11816_v34  ;;  %v13820_v54 = vld [vmem:[%s21884_s20 + $0x344] sm:$0xf]  ;;  %v11744_v32 = vor.u32 %v13828_v57, %v11743_v63  ;;  %v11745_v34 = vld [vmem:[%s21884_s20 + $0x384] sm:$0xf0]  ;;  %v12145_v17 = vld [vmem:[%s21884_s20 + $0x6ac] sm:$0xf0] }
 0x524   : > { %6209 = vmatpush.bf16.msrb.mxu0 %v12216_v33  ;;  %v11748_v50 = vor.u32 %v13820_v54, %v11745_v34  ;;  %v12148_v33 = vor.u32 %v13921_v61, %v12145_v17  ;;  %v13930_v63 = vld [vmem:[%s21884_s20 + $0x6b0] sm:$0xf0]  ;;  %v11675_v34 = vld [vmem:[%s21884_s20 + $0x2b8] sm:$0xf]  ;;  %v13904_v17 = vld [vmem:[%s21884_s20 + $0x5e4] sm:$0xf] }
 0x525   : > { %v16983_v35 = vpop.f32.mrf.mxu3  ;;  %6267 = vmatpush.bf16.msra.mxu2 %v12220_v52  ;;  %6237 = vmatpush.bf16.msra.mxu1 %v11744_v32  ;;  %v12152_v54 = vor.u32 %v13930_v63, %v12151_v16  ;;  %v13803_v52 = vld [vmem:[%s21884_s20 + $0x2bc] sm:$0xf]  ;;  %v11676_v61 = vor.u32 %v13811_v56, %v11675_v34  ;;  %v11677_v16 = vld [vmem:[%s21884_s20 + $0x2fc] sm:$0xf0]  ;;  %v12077_v63 = vld [vmem:[%s21884_s20 + $0x624] sm:$0xf0] }
 0x526   : > { %22064 = vst [vmem:[#allocation113_spill] sm:$0xff] %v16983_v35  ;;  %v12080_v56 = vor.u32 %v13904_v17, %v12077_v63 }
 0x527   : > { %v16997_v35 = vpop.f32.mrf.mxu1  ;;  %v16999_v57 = vpop.f32.mrf.mxu2  ;;  %6295 = vmatpush.bf16.msra.mxu3 %v11748_v50  ;;  %v11680_v50 = vor.u32 %v13803_v52, %v11677_v16  ;;  %v11607_v52 = vld [vmem:[%s21884_s20 + $0x230] sm:$0xf]  ;;  %v13794_v16 = vld [vmem:[%s21884_s20 + $0x270] sm:$0xf0] }
 0x528   : > { %22065 = vst [vmem:[#allocation114_spill] sm:$0xff] %v16997_v35  ;;  %6210 = vmatpush.bf16.msrb.mxu0 %v12148_v33  ;;  %v13913_v33 = vld [vmem:[%s21884_s20 + $0x628] sm:$0xf0]  ;;  %v11608_v17 = vor.u32 %v13794_v16, %v11607_v52  ;;  %v13896_v16 = vld [vmem:[%s21884_s20 + $0x5a0] sm:$0xf0] }
 0x529   : > { %22066 = vst [vmem:[#allocation115_spill] sm:$0xff] %v16999_v57  ;;  %v17013_v32 = vpop.f32.mrf.mxu0  ;;  %v12083_v57 = vld [vmem:[%s21884_s20 + $0x5e8] sm:$0xf]  ;;  %6268 = vmatpush.bf16.msra.mxu2 %v12152_v54  ;;  %6238 = vmatpush.bf16.msra.mxu1 %v11676_v61  ;;  %v13786_v54 = vld [vmem:[%s21884_s20 + $0x234] sm:$0xf] }
 0x52a   : > { %22067 = vst [vmem:[#allocation116_spill] sm:$0xff] %v17013_v32  ;;  %v12084_v34 = vor.u32 %v13913_v33, %v12083_v57  ;;  %v11609_v57 = vld [vmem:[%s21884_s20 + $0x274] sm:$0xf0]  ;;  %v13887_v33 = vld [vmem:[%s21884_s20 + $0x55c] sm:$0xf] }
 0x52b   : > { %6296 = vmatpush.bf16.msra.mxu3 %v11680_v50  ;;  %v11612_v63 = vor.u32 %v13786_v54, %v11609_v57  ;;  %v12009_v32 = vld [vmem:[%s21884_s20 + $0x59c] sm:$0xf0]  ;;  %v11539_v57 = vld [vmem:[%s21884_s20 + $0x1a8] sm:$0xf]  ;;  %v13777_v35 = vld [vmem:[%s21884_s20 + $0x1e8] sm:$0xf0] }
 0x52c   : > { %6104 = vmatmul.bf16.gmra.mxu0 %v16201_v31  ;;  %6162 = vmatmul.bf16.gmra.mxu2 %v16201_v31  ;;  %v12012_v52 = vor.u32 %v13887_v33, %v12009_v32  ;;  %v11540_v32 = vor.u32 %v13777_v35, %v11539_v57  ;;  %v13870_v33 = vld [vmem:[%s21884_s20 + $0x4d4] sm:$0xf]  ;;  %v11947_v35 = vld [vmem:[%s21884_s20 + $0x4d8] sm:$0xf]  ;;  %v11471_v57 = vld [vmem:[%s21884_s20 + $0x120] sm:$0xf] }
 0x52d   : > { %v17041_v61 = vpop.f32.mrf.mxu3  ;;  %6211 = vmatpush.bf16.msrb.mxu0 %v12080_v56  ;;  %6269 = vmatpush.bf16.msra.mxu2 %v12084_v34 }
 0x52e   : > { %22068 = vst [vmem:[#allocation117_spill] sm:$0xff] %v17041_v61  ;;  %v12015_v61 = vld [vmem:[%s21884_s20 + $0x560] sm:$0xf]  ;;  %6239 = vmatpush.bf16.msra.mxu1 %v11608_v17 }
 0x52f   : > { %v17055_v50 = vpop.f32.mrf.mxu1  ;;  %v17057_v56 = vpop.f32.mrf.mxu2  ;;  %v12016_v54 = vor.u32 %v13896_v16, %v12015_v61  ;;  %6297 = vmatpush.bf16.msra.mxu3 %v11612_v63  ;;  %v11541_v61 = vld [vmem:[%s21884_s20 + $0x1ec] sm:$0xf0]  ;;  %v11941_v16 = vld [vmem:[%s21884_s20 + $0x514] sm:$0xf0] }
 0x530   : > { %22069 = vst [vmem:[#allocation118_spill] sm:$0xff] %v17055_v50  ;;  %v11944_v63 = vor.u32 %v13870_v33, %v11941_v16  ;;  %v11473_v33 = vld [vmem:[%s21884_s20 + $0x164] sm:$0xf0]  ;;  %v13743_v50 = vld [vmem:[%s21884_s20 + $0xd8] sm:$0xf0] }
 0x531   : > { %22070 = vst [vmem:[#allocation119_spill] sm:$0xff] %v17057_v56  ;;  %v13769_v56 = vld [vmem:[%s21884_s20 + $0x1ac] sm:$0xf]  ;;  %v17071_v34 = vpop.f32.mrf.mxu0  ;;  %6212 = vmatpush.bf16.msrb.mxu0 %v12012_v52  ;;  %6270 = vmatpush.bf16.msra.mxu2 %v12016_v54  ;;  %v13879_v52 = vld [vmem:[%s21884_s20 + $0x518] sm:$0xf0] }
 0x532   : > { %22071 = vst [vmem:[#allocation120_spill] sm:$0xff] %v17071_v34  ;;  %6133 = vmatmul.bf16.gmra.mxu1 %v16192_v22  ;;  %6191 = vmatmul.bf16.gmra.mxu3 %v16192_v22  ;;  %v11544_v17 = vor.u32 %v13769_v56, %v11541_v61  ;;  %v11948_v56 = vor.u32 %v13879_v52, %v11947_v35  ;;  %v13760_v61 = vld [vmem:[%s21884_s20 + $0x160] sm:$0xf0]  ;;  %v13853_v35 = vld [vmem:[%s21884_s20 + $0x44c] sm:$0xf] }
 0x533   : > { %6240 = vmatpush.bf16.msra.mxu1 %v11540_v32  ;;  %v13752_v34 = vld [vmem:[%s21884_s20 + $0x124] sm:$0xf]  ;;  %v11472_v32 = vor.u32 %v13760_v61, %v11471_v57  ;;  %v11873_v52 = vld [vmem:[%s21884_s20 + $0x48c] sm:$0xf0] }
 0x534   : > { %6298 = vmatpush.bf16.msra.mxu3 %v11544_v17  ;;  %v11476_v16 = vor.u32 %v13752_v34, %v11473_v33  ;;  %v11876_v57 = vor.u32 %v13853_v35, %v11873_v52  ;;  %v13862_v34 = vld [vmem:[%s21884_s20 + $0x490] sm:$0xf0]  ;;  %v11403_v33 = vld [vmem:[%s21884_s20 + $0x98] sm:$0xf] }
 0x535   : > { %v17099_v54 = vpop.f32.mrf.mxu3  ;;  %6213 = vmatpush.bf16.msrb.mxu0 %v11944_v63  ;;  %6271 = vmatpush.bf16.msra.mxu2 %v11948_v56  ;;  %v11404_v56 = vor.u32 %v13743_v50, %v11403_v33  ;;  %v13726_v50 = vld [vmem:[%s21884_s20 + $0x50] sm:$0xf0] }
 0x536   : > { %22072 = vst [vmem:[#allocation121_spill] sm:$0xff] %v17099_v54  ;;  %v11879_v54 = vld [vmem:[%s21884_s20 + $0x450] sm:$0xf]  ;;  %v13718_v52 = vld [vmem:[%s21884_s20 + $0x14] sm:$0xf] }
 0x537   : > { %v17113_v17 = vpop.f32.mrf.mxu1  ;;  %v17115_v63 = vpop.f32.mrf.mxu2  ;;  %6241 = vmatpush.bf16.msra.mxu1 %v11472_v32  ;;  %v11880_v61 = vor.u32 %v13862_v34, %v11879_v54  ;;  %v13735_v32 = vld [vmem:[%s21884_s20 + $0x9c] sm:$0xf]  ;;  %v11405_v54 = vld [vmem:[%s21884_s20 + $0xdc] sm:$0xf0] }
 0x538   : > { %22073 = vst [vmem:[#allocation122_spill] sm:$0xff] %v17113_v17  ;;  %6299 = vmatpush.bf16.msra.mxu3 %v11476_v16  ;;  %v11408_v35 = vor.u32 %v13735_v32, %v11405_v54  ;;  %v11335_v16 = vld [vmem:[%s21884_s20 + $0x10] sm:$0xf] }
 0x539   : > { %22074 = vst [vmem:[#allocation123_spill] sm:$0xff] %v17115_v63  ;;  %v17126_v53 = vpop.f32.mrf.mxu0  ;;  %6214 = vmatpush.bf16.msrb.mxu0 %v11876_v57  ;;  %6272 = vmatpush.bf16.msra.mxu2 %v11880_v61  ;;  %v11336_v34 = vor.u32 %v13726_v50, %v11335_v16  ;;  %v11337_v61 = vld [vmem:[%s21884_s20 + $0x54] sm:$0xf0] }
 0x53a   : > { %22075 = vst [vmem:[#allocation124_spill] sm:$0xff] %v17126_v53  ;;  %v11340_v33 = vor.u32 %v13718_v52, %v11337_v61  ;;  %v12159_v53 = vld [vmem:[%s21884_s20 + $0x678] sm:$0xf] }
 0x53b   : > { %6242 = vmatpush.bf16.msra.mxu1 %v11404_v56 }
 0x53c   : > { %6109 = vmatmul.bf16.gmra.mxu0 %v16225_v3  ;;  %6167 = vmatmul.bf16.gmra.mxu2 %v16225_v3 }
 0x53d   : > { %v17145_v57 = vpop.f32.mrf.mxu3  ;;  %6300 = vmatpush.bf16.msra.mxu3 %v11408_v35 }
 0x53e   : > { %22076 = vst [vmem:[#allocation125_spill] sm:$0xff] %v17145_v57 }
 0x53f   : > { %v17150_v56 = vpop.f32.mrf.mxu1  ;;  %v17152_v32 = vpop.f32.mrf.mxu2  ;;  %6243 = vmatpush.bf16.msra.mxu1 %v11336_v34 }
 0x540   : > { %22077 = vst [vmem:[#allocation126_spill] sm:$0xff] %v17150_v56  ;;  %v13838_v56 = vld [vmem:[%s21884_s20 + $0x3d4] sm:$0xf] }
 0x541   : > { %22078 = vst [vmem:[#allocation127_spill] sm:$0xff] %v17152_v32  ;;  %v17154_v54 = vpop.f32.mrf.mxu0  ;;  %6301 = vmatpush.bf16.msra.mxu3 %v11340_v33 }
 0x542   : > { %22079 = vst [vmem:[#allocation128_spill] sm:$0xff] %v17154_v54  ;;  %6138 = vmatmul.bf16.gmra.mxu1 %v16216_v12  ;;  %6196 = vmatmul.bf16.gmra.mxu3 %v16216_v12 }
 0x545   : > { %v17158_v57 = vpop.f32.mrf.mxu3 }
 0x546   : > { %22080 = vst [vmem:[#allocation129_spill] sm:$0xff] %v17158_v57 }
 0x547   : > { %v17160_v35 = vpop.f32.mrf.mxu1  ;;  %v17162_v16 = vpop.f32.mrf.mxu2 }
 0x548   : > { %22081 = vst [vmem:[#allocation130_spill] sm:$0xff] %v17160_v35 }
 0x549   : > { %22082 = vst [vmem:[#allocation131_spill] sm:$0xff] %v17162_v16  ;;  %v17164_v50 = vpop.f32.mrf.mxu0 }
 0x54a   : > { %22083 = vst [vmem:[#allocation132_spill] sm:$0xff] %v17164_v50 }
 0x54c   : > { %6114 = vmatmul.bf16.gmra.mxu0 %v16262_v8  ;;  %6172 = vmatmul.bf16.gmra.mxu2 %v16262_v8 }
 0x54d   : > { %v17168_v52 = vpop.f32.mrf.mxu3 }
 0x54e   : > { %22084 = vst [vmem:[#allocation133_spill] sm:$0xff] %v17168_v52  ;;  %v13973_v52 = vld [vmem:[%s21884_s20 + $0x80c] sm:$0xf] }
 0x54f   : > { %v17170_v34 = vpop.f32.mrf.mxu1  ;;  %v17172_v61 = vpop.f32.mrf.mxu2 }
 0x550   : > { %22085 = vst [vmem:[#allocation134_spill] sm:$0xff] %v17170_v34 }
 0x551   : > { %22086 = vst [vmem:[#allocation135_spill] sm:$0xff] %v17172_v61  ;;  %v17174_v33 = vpop.f32.mrf.mxu0  ;;  %v12357_v61 = vld [vmem:[%s21884_s20 + $0x84c] sm:$0xf0] }
 0x552   : > { %22087 = vst [vmem:[#allocation136_spill] sm:$0xff] %v17174_v33  ;;  %6143 = vmatmul.bf16.gmra.mxu1 %v16248_v29  ;;  %6201 = vmatmul.bf16.gmra.mxu3 %v16248_v29  ;;  %v12363_v33 = vld [vmem:[%s21884_s20 + $0x810] sm:$0xf]  ;;  %v12360_v34 = vor.u32 %v13973_v52, %v12357_v61  ;;  %v12289_v52 = vld [vmem:[%s21884_s20 + $0x7c4] sm:$0xf0] }
 0x553   : > { %v12295_v61 = vld [vmem:[%s21884_s20 + $0x788] sm:$0xf] }
 0x554   : > { %6323 = vmatpush.bf16.msra.mxu0 %v12360_v34 }
 0x555   : > { %v17178_v57 = vpop.f32.mrf.mxu3 }
 0x556   : > { %22088 = vst [vmem:[#allocation137_spill] sm:$0xff] %v17178_v57  ;;  %v13982_v57 = vld [vmem:[%s21884_s20 + $0x850] sm:$0xf0] }
 0x557   : > { %v17180_v16 = vpop.f32.mrf.mxu1  ;;  %v17182_v32 = vpop.f32.mrf.mxu2 }
 0x558   : > { %22089 = vst [vmem:[#allocation138_spill] sm:$0xff] %v17180_v16  ;;  %v13956_v16 = vld [vmem:[%s21884_s20 + $0x784] sm:$0xf] }
 0x559   : > { %22090 = vst [vmem:[#allocation139_spill] sm:$0xff] %v17182_v32  ;;  %v17184_v63 = vpop.f32.mrf.mxu0  ;;  %v12292_v54 = vor.u32 %v13956_v16, %v12289_v52 }
 0x55a   : > { %22091 = vst [vmem:[#allocation140_spill] sm:$0xff] %v17184_v63  ;;  %v12364_v63 = vor.u32 %v13982_v57, %v12363_v33  ;;  %v13965_v57 = vld [vmem:[%s21884_s20 + $0x7c8] sm:$0xf0]  ;;  %v11819_v33 = vld [vmem:[%s21884_s20 + $0x3d0] sm:$0xf] }
 0x55b   : > { %v12296_v34 = vor.u32 %v13965_v57, %v12295_v61  ;;  %6324 = vmatpush.bf16.msra.mxu0 %v12292_v54  ;;  %v13939_v61 = vld [vmem:[%s21884_s20 + $0x6fc] sm:$0xf]  ;;  %v12221_v57 = vld [vmem:[%s21884_s20 + $0x73c] sm:$0xf0] }
 0x55c   : > { %6215 = vmatmul.bf16.vlgmr.msrb.gmra.mxu0 %v16153_v42  ;;  %6273 = vmatmul.bf16.vlgmr.msra.gmra.mxu2 %v16153_v42  ;;  %v12224_v54 = vor.u32 %v13939_v61, %v12221_v57 }
 0x55d   : > { %v17200_v32 = vpop.f32.mrf.mxu3  ;;  %6381 = vmatpush.bf16.msrb.mxu2 %v12364_v63 }
 0x55e   : > { %22092 = vst [vmem:[#allocation141_spill] sm:$0xff] %v17200_v32  ;;  %v13846_v32 = vld [vmem:[%s21884_s20 + $0x410] sm:$0xf0] }
 0x55f   : > { %v6013_v50 = vpop.f32.mrf.mxu1  ;;  %v6042_v35 = vpop.f32.mrf.mxu2  ;;  %v11820_v52 = vor.u32 %v13846_v32, %v11819_v33  ;;  %v12227_v32 = vld [vmem:[%s21884_s20 + $0x700] sm:$0xf]  ;;  %v13948_v33 = vld [vmem:[%s21884_s20 + $0x740] sm:$0xf0]  ;;  %6325 = vmatpush.bf16.msra.mxu0 %v12224_v54 }
 0x560   : > { %v17214_v63 = vadd.f32 %v6042_v35, %v6013_v50  ;;  %v11821_v35 = vld [vmem:[%s21884_s20 + $0x414] sm:$0xf0] }
 0x561   : > { %v17225_v16 = vpop.f32.mrf.mxu0  ;;  %v11824_v50 = vor.u32 %v13838_v56, %v11821_v35  ;;  %6382 = vmatpush.bf16.msrb.mxu2 %v12296_v34  ;;  %6352 = vmatpush.bf16.msrb.mxu1 %v11820_v52  ;;  %v12228_v56 = vor.u32 %v13948_v33, %v12227_v32  ;;  %v11751_v35 = vld [vmem:[%s21884_s20 + $0x348] sm:$0xf]  ;;  %v13821_v34 = vld [vmem:[%s21884_s20 + $0x34c] sm:$0xf]  ;;  %v13922_v32 = vld [vmem:[%s21884_s20 + $0x674] sm:$0xf] }
 0x562   : > { %22093 = vst [vmem:[#allocation142_spill] sm:$0xff] %v17225_v16  ;;  %6244 = vmatmul.bf16.vlgmr.msra.gmra.mxu1 %v16120_v2  ;;  %6302 = vmatmul.bf16.vlgmr.msra.gmra.mxu3 %v16120_v2  ;;  %v13829_v16 = vld [vmem:[%s21884_s20 + $0x388] sm:$0xf0]  ;;  %v12153_v33 = vld [vmem:[%s21884_s20 + $0x6b4] sm:$0xf0] }
 0x563   : > { %6410 = vmatpush.bf16.msrb.mxu3 %v11824_v50  ;;  %v11752_v61 = vor.u32 %v13829_v16, %v11751_v35  ;;  %v11753_v50 = vld [vmem:[%s21884_s20 + $0x38c] sm:$0xf0]  ;;  %v12156_v16 = vor.u32 %v13922_v32, %v12153_v33  ;;  %v13931_v35 = vld [vmem:[%s21884_s20 + $0x6b8] sm:$0xf0]  ;;  %v11684_v32 = vor.u32 %v13812_v19, %v11683_v20  ;;  %v13914_v20 = vld [vmem:[%s21884_s20 + $0x630] sm:$0xf0] }
 0x564   : > { %v11756_v57 = vor.u32 %v13821_v34, %v11753_v50  ;;  %v12160_v50 = vor.u32 %v13931_v35, %v12159_v53  ;;  %v11685_v53 = vld [vmem:[%s21884_s20 + $0x304] sm:$0xf0]  ;;  %v12085_v33 = vld [vmem:[%s21884_s20 + $0x62c] sm:$0xf0]  ;;  %v11615_v35 = vld [vmem:[%s21884_s20 + $0x238] sm:$0xf] }
 0x565   : > { %v17253_v52 = vpop.f32.mrf.mxu3  ;;  %6383 = vmatpush.bf16.msrb.mxu2 %v12228_v56  ;;  %6353 = vmatpush.bf16.msrb.mxu1 %v11752_v61  ;;  %v13804_v56 = vld [vmem:[%s21884_s20 + $0x2c4] sm:$0xf] }
 0x566   : > { %6326 = vmatpush.bf16.msra.mxu0 %v12156_v16 }
 0x567   : > { %v6015_v17 = vpop.f32.mrf.mxu1  ;;  %v6044_v54 = vpop.f32.mrf.mxu2  ;;  %6411 = vmatpush.bf16.msrb.mxu3 %v11756_v57  ;;  %v13905_v57 = vld [vmem:[%s21884_s20 + $0x5ec] sm:$0xf] }
 0x568   : > { %v17270_v34 = vadd.f32 %v6044_v54, %v6015_v17  ;;  %v11688_v17 = vor.u32 %v13804_v56, %v11685_v53  ;;  %v12091_v54 = vld [vmem:[%s21884_s20 + $0x5f0] sm:$0xf]  ;;  %v12088_v19 = vor.u32 %v13905_v57, %v12085_v33  ;;  %v13795_v56 = vld [vmem:[%s21884_s20 + $0x278] sm:$0xf0]  ;;  %v11617_v57 = vld [vmem:[%s21884_s20 + $0x27c] sm:$0xf0] }
 0x569   : > { %v17281_v61 = vpop.f32.mrf.mxu0  ;;  %6384 = vmatpush.bf16.msrb.mxu2 %v12160_v50  ;;  %6354 = vmatpush.bf16.msrb.mxu1 %v11684_v32  ;;  %v12092_v16 = vor.u32 %v13914_v20, %v12091_v54  ;;  %v13787_v50 = vld [vmem:[%s21884_s20 + $0x23c] sm:$0xf]  ;;  %v11616_v53 = vor.u32 %v13795_v56, %v11615_v35  ;;  %v13888_v54 = vld [vmem:[%s21884_s20 + $0x564] sm:$0xf]  ;;  %v12017_v20 = vld [vmem:[%s21884_s20 + $0x5a4] sm:$0xf0] }
 0x56a   : > { %22094 = vst [vmem:[#allocation143_spill] sm:$0xff] %v17281_v61  ;;  %6327 = vmatpush.bf16.msra.mxu0 %v12088_v19  ;;  %v11620_v33 = vor.u32 %v13787_v50, %v11617_v57  ;;  %v12023_v61 = vld [vmem:[%s21884_s20 + $0x568] sm:$0xf]  ;;  %v12020_v35 = vor.u32 %v13888_v54, %v12017_v20  ;;  %v13897_v56 = vld [vmem:[%s21884_s20 + $0x5a8] sm:$0xf0]  ;;  %v11548_v54 = vor.u32 %v13778_v7, %v11547_v6 }
 0x56b   : > { %6412 = vmatpush.bf16.msrb.mxu3 %v11688_v17  ;;  %v12024_v57 = vor.u32 %v13897_v56, %v12023_v61  ;;  %v11549_v61 = vld [vmem:[%s21884_s20 + $0x1f4] sm:$0xf0]  ;;  %v11955_v7 = vld [vmem:[%s21884_s20 + $0x4e0] sm:$0xf]  ;;  %v11479_v56 = vld [vmem:[%s21884_s20 + $0x128] sm:$0xf] }
 0x56c   : > { %6220 = vmatmul.bf16.gmra.mxu0 %v16201_v31  ;;  %6278 = vmatmul.bf16.gmra.mxu2 %v16201_v31 }
 0x56d   : > { %v17309_v32 = vpop.f32.mrf.mxu3  ;;  %6385 = vmatpush.bf16.msrb.mxu2 %v12092_v16  ;;  %6355 = vmatpush.bf16.msrb.mxu1 %v11616_v53  ;;  %v13770_v16 = vld [vmem:[%s21884_s20 + $0x1b4] sm:$0xf] }
 0x56e   : > { %6328 = vmatpush.bf16.msra.mxu0 %v12020_v35  ;;  %v11552_v20 = vor.u32 %v13770_v16, %v11549_v61  ;;  %v13761_v16 = vld [vmem:[%s21884_s20 + $0x168] sm:$0xf0] }
 0x56f   : > { %v6018_v17 = vpop.f32.mrf.mxu1  ;;  %v6047_v19 = vpop.f32.mrf.mxu2  ;;  %6413 = vmatpush.bf16.msrb.mxu3 %v11620_v33  ;;  %v13880_v33 = vld [vmem:[%s21884_s20 + $0x520] sm:$0xf0]  ;;  %v13753_v61 = vld [vmem:[%s21884_s20 + $0x12c] sm:$0xf] }
 0x570   : > { %v17326_v50 = vadd.f32 %v6047_v19, %v6018_v17  ;;  %v13871_v17 = vld [vmem:[%s21884_s20 + $0x4dc] sm:$0xf]  ;;  %v11949_v19 = vld [vmem:[%s21884_s20 + $0x51c] sm:$0xf0]  ;;  %v11956_v35 = vor.u32 %v13880_v33, %v11955_v7  ;;  %v13854_v7 = vld [vmem:[%s21884_s20 + $0x454] sm:$0xf] }
 0x571   : > { %v17337_v53 = vpop.f32.mrf.mxu0  ;;  %6386 = vmatpush.bf16.msrb.mxu2 %v12024_v57  ;;  %6356 = vmatpush.bf16.msrb.mxu1 %v11548_v54  ;;  %v11952_v6 = vor.u32 %v13871_v17, %v11949_v19  ;;  %v11480_v54 = vor.u32 %v13761_v16, %v11479_v56  ;;  %v11481_v17 = vld [vmem:[%s21884_s20 + $0x16c] sm:$0xf0]  ;;  %v11881_v33 = vld [vmem:[%s21884_s20 + $0x494] sm:$0xf0]  ;;  %v13863_v16 = vld [vmem:[%s21884_s20 + $0x498] sm:$0xf0] }
 0x572   : > { %22095 = vst [vmem:[#allocation144_spill] sm:$0xff] %v17337_v53  ;;  %6249 = vmatmul.bf16.gmra.mxu1 %v16192_v22  ;;  %6307 = vmatmul.bf16.gmra.mxu3 %v16192_v22  ;;  %v11484_v19 = vor.u32 %v13753_v61, %v11481_v17  ;;  %v11887_v53 = vld [vmem:[%s21884_s20 + $0x458] sm:$0xf]  ;;  %v11884_v56 = vor.u32 %v13854_v7, %v11881_v33 }
 0x573   : > { %6414 = vmatpush.bf16.msrb.mxu3 %v11552_v20  ;;  %6329 = vmatpush.bf16.msra.mxu0 %v11952_v6  ;;  %v11888_v17 = vor.u32 %v13863_v16, %v11887_v53  ;;  %v11412_v7 = vor.u32 %v13744_v41, %v11411_v39  ;;  %v11413_v53 = vld [vmem:[%s21884_s20 + $0xe4] sm:$0xf0]  ;;  %v13719_v41 = vld [vmem:[%s21884_s20 + $0x1c] sm:$0xf] }
 0x575   : > { %v17365_v57 = vpop.f32.mrf.mxu3  ;;  %6387 = vmatpush.bf16.msrb.mxu2 %v11956_v35  ;;  %6357 = vmatpush.bf16.msrb.mxu1 %v11480_v54  ;;  %v13736_v35 = vld [vmem:[%s21884_s20 + $0xa4] sm:$0xf] }
 0x576   : > { %v11416_v33 = vor.u32 %v13736_v35, %v11413_v53 }
 0x577   : > { %v6020_v20 = vpop.f32.mrf.mxu1  ;;  %v6049_v6 = vpop.f32.mrf.mxu2  ;;  %6415 = vmatpush.bf16.msrb.mxu3 %v11484_v19  ;;  %6330 = vmatpush.bf16.msra.mxu0 %v11884_v56  ;;  %v13727_v19 = vld [vmem:[%s21884_s20 + $0x58] sm:$0xf0]  ;;  %v11345_v56 = vld [vmem:[%s21884_s20 + $0x5c] sm:$0xf0] }
 0x578   : > { %v17382_v61 = vadd.f32 %v6049_v6, %v6020_v20  ;;  %v11343_v20 = vld [vmem:[%s21884_s20 + $0x18] sm:$0xf]  ;;  %v11348_v16 = vor.u32 %v13719_v41, %v11345_v56 }
 0x579   : > { %v17393_v54 = vpop.f32.mrf.mxu0  ;;  %6388 = vmatpush.bf16.msrb.mxu2 %v11888_v17  ;;  %6358 = vmatpush.bf16.msrb.mxu1 %v11412_v7  ;;  %v11344_v6 = vor.u32 %v13727_v19, %v11343_v20 }
 0x57a   : > { %22096 = vst [vmem:[#allocation145_spill] sm:$0xff] %v17393_v54 }
 0x57b   : > { %6416 = vmatpush.bf16.msrb.mxu3 %v11416_v33 }
 0x57c   : > { %6225 = vmatmul.bf16.gmra.mxu0 %v16225_v3  ;;  %6283 = vmatmul.bf16.gmra.mxu2 %v16225_v3 }
 0x57d   : > { %v17409_v39 = vpop.f32.mrf.mxu3  ;;  %6359 = vmatpush.bf16.msrb.mxu1 %v11344_v6 }
 0x57f   : > { %v6023_v17 = vpop.f32.mrf.mxu1  ;;  %v6052_v35 = vpop.f32.mrf.mxu2  ;;  %6417 = vmatpush.bf16.msrb.mxu3 %v11348_v16 }
 0x580   : > { %v17414_v7 = vadd.f32 %v6052_v35, %v6023_v17 }
 0x581   : > { %v17416_v53 = vpop.f32.mrf.mxu0 }
 0x582   : > { %22097 = vst [vmem:[#allocation146_spill] sm:$0xff] %v17416_v53  ;;  %6254 = vmatmul.bf16.gmra.mxu1 %v16216_v12  ;;  %6312 = vmatmul.bf16.gmra.mxu3 %v16216_v12 }
 0x585   : > { %v17420_v54 = vpop.f32.mrf.mxu3 }
 0x587   : > { %v6025_v33 = vpop.f32.mrf.mxu1  ;;  %v6054_v20 = vpop.f32.mrf.mxu2 }
 0x588   : > { %v17422_v19 = vadd.f32 %v6054_v20, %v6025_v33 }
 0x589   : > { %v17424_v37 = vpop.f32.mrf.mxu0 }
 0x58a   : > { %22098 = vst [vmem:[#allocation147_spill] sm:$0xff] %v17424_v37 }
 0x58c   : > { %6230 = vmatmul.bf16.gmra.mxu0 %v16262_v8  ;;  %6288 = vmatmul.bf16.gmra.mxu2 %v16262_v8 }
 0x58d   : > { %v17428_v41 = vpop.f32.mrf.mxu3 }
 0x58f   : > { %v6028_v6 = vpop.f32.mrf.mxu1  ;;  %v6057_v56 = vpop.f32.mrf.mxu2 }
 0x590   : > { %v17430_v16 = vadd.f32 %v6057_v56, %v6028_v6  ;;  %v13974_v6 = vld [vmem:[%s21884_s20 + $0x814] sm:$0xf]  ;;  %v12365_v56 = vld [vmem:[%s21884_s20 + $0x854] sm:$0xf0] }
 0x591   : > { %v17432_v17 = vpop.f32.mrf.mxu0  ;;  %v12368_v23 = vor.u32 %v13974_v6, %v12365_v56  ;;  %v12297_v6 = vld [vmem:[%s21884_s20 + $0x7cc] sm:$0xf0] }
 0x592   : > { %22099 = vst [vmem:[#allocation148_spill] sm:$0xff] %v17432_v17  ;;  %6259 = vmatmul.bf16.gmra.mxu1 %v16248_v29  ;;  %6317 = vmatmul.bf16.gmra.mxu3 %v16248_v29  ;;  %v12371_v17 = vld [vmem:[%s21884_s20 + $0x818] sm:$0xf]  ;;  %v12303_v56 = vld [vmem:[%s21884_s20 + $0x790] sm:$0xf] }
 0x593   : > { %6439 = vmatpush.bf16.msrb.mxu0 %v12368_v23  ;;  %v13966_v23 = vld [vmem:[%s21884_s20 + $0x7d0] sm:$0xf0] }
 0x595   : > { %v17436_v35 = vpop.f32.mrf.mxu3 }
 0x597   : > { %v6030_v33 = vpop.f32.mrf.mxu1  ;;  %v6059_v20 = vpop.f32.mrf.mxu2 }
 0x598   : > { %v17438_v37 = vadd.f32 %v6059_v20, %v6030_v33  ;;  %v13983_v33 = vld [vmem:[%s21884_s20 + $0x858] sm:$0xf0]  ;;  %v13957_v20 = vld [vmem:[%s21884_s20 + $0x78c] sm:$0xf] }
 0x599   : > { %v6100_v53 = vpop.f32.mrf.mxu0  ;;  %v12300_v49 = vor.u32 %v13957_v20, %v12297_v6 }
 0x59a   : > { %v17441_v10 = vadd.f32 %v6100_v53, %v17253_v52  ;;  %v12372_v52 = vor.u32 %v13983_v33, %v12371_v17  ;;  %v12304_v33 = vor.u32 %v13966_v23, %v12303_v56  ;;  %v13940_v23 = vld [vmem:[%s21884_s20 + $0x704] sm:$0xf] }
 0x59b   : > { %6440 = vmatpush.bf16.msrb.mxu0 %v12300_v49  ;;  %v12235_v49 = vld [vmem:[%s21884_s20 + $0x708] sm:$0xf] }
 0x59c   : > { %6331 = vmatmul.bf16.vlgmr.msra.gmra.mxu0 %v16153_v42  ;;  %6389 = vmatmul.bf16.vlgmr.msrb.gmra.mxu2 %v16153_v42 }
 0x59d   : > { %v17457_v53 = vpop.f32.mrf.mxu3  ;;  %6497 = vmatpush.bf16.msra.mxu2 %v12372_v52  ;;  %v11827_v52 = vld [vmem:[%s21884_s20 + $0x3d8] sm:$0xf] }
 0x59e   : > { %v11828_v6 = vor.u32 %v13847_v62, %v11827_v52  ;;  %v12229_v62 = vld [vmem:[%s21884_s20 + $0x744] sm:$0xf0]  ;;  %v13949_v52 = vld [vmem:[%s21884_s20 + $0x748] sm:$0xf0] }
 0x59f   : > { %v6129_v38 = vpop.f32.mrf.mxu1  ;;  %v6158_v55 = vpop.f32.mrf.mxu2 }
 0x5a0   : > { %v17471_v17 = vadd.f32 %v6158_v55, %v6129_v38  ;;  %v11829_v55 = vld [vmem:[%s21884_s20 + $0x41c] sm:$0xf0]  ;;  %6468 = vmatpush.bf16.msra.mxu1 %v11828_v6 }
 0x5a1   : > { %v6102_v20 = vpop.f32.mrf.mxu0  ;;  %v11832_v56 = vor.u32 %v13839_v43, %v11829_v55  ;;  %6498 = vmatpush.bf16.msra.mxu2 %v12304_v33  ;;  %v12236_v43 = vor.u32 %v13949_v52, %v12235_v49  ;;  %v13830_v55 = vld [vmem:[%s21884_s20 + $0x390] sm:$0xf0]  ;;  %v13923_v49 = vld [vmem:[%s21884_s20 + $0x67c] sm:$0xf]  ;;  %v12161_v52 = vld [vmem:[%s21884_s20 + $0x6bc] sm:$0xf0] }
 0x5a2   : > { %22100 = vst [vmem:[#allocation149_spill] sm:$0xff] %v17471_v17  ;;  %v17486_v38 = vadd.f32 %v6102_v20, %v17309_v32  ;;  %6360 = vmatmul.bf16.vlgmr.msrb.gmra.mxu1 %v16120_v2  ;;  %6418 = vmatmul.bf16.vlgmr.msrb.gmra.mxu3 %v16120_v2  ;;  %v12232_v32 = vor.u32 %v13940_v23, %v12229_v62  ;;  %v11759_v20 = vld [vmem:[%s21884_s20 + $0x350] sm:$0xf]  ;;  %v13822_v33 = vld [vmem:[%s21884_s20 + $0x354] sm:$0xf] }
 0x5a3   : > { %6526 = vmatpush.bf16.msra.mxu3 %v11832_v56  ;;  %v11760_v23 = vor.u32 %v13830_v55, %v11759_v20  ;;  %v11761_v56 = vld [vmem:[%s21884_s20 + $0x394] sm:$0xf0]  ;;  %v12164_v20 = vor.u32 %v13923_v49, %v12161_v52  ;;  %v13932_v55 = vld [vmem:[%s21884_s20 + $0x6c0] sm:$0xf0]  ;;  %v11692_v49 = vor.u32 %v13813_v46, %v11691_v59  ;;  %v13906_v52 = vld [vmem:[%s21884_s20 + $0x5f4] sm:$0xf] }
 0x5a4   : > { %6441 = vmatpush.bf16.msrb.mxu0 %v12232_v32  ;;  %v11764_v62 = vor.u32 %v13822_v33, %v11761_v56  ;;  %v12168_v56 = vor.u32 %v13932_v55, %v12167_v40  ;;  %v12099_v46 = vld [vmem:[%s21884_s20 + $0x5f8] sm:$0xf]  ;;  %v11623_v55 = vld [vmem:[%s21884_s20 + $0x240] sm:$0xf] }
 0x5a5   : > { %v17511_v6 = vpop.f32.mrf.mxu3  ;;  %6499 = vmatpush.bf16.msra.mxu2 %v12236_v43  ;;  %6469 = vmatpush.bf16.msra.mxu1 %v11760_v23  ;;  %v13805_v43 = vld [vmem:[%s21884_s20 + $0x2cc] sm:$0xf] }
 0x5a7   : > { %v6131_v4 = vpop.f32.mrf.mxu1  ;;  %v6160_v32 = vpop.f32.mrf.mxu2  ;;  %6527 = vmatpush.bf16.msra.mxu3 %v11764_v62 }
 0x5a8   : > { %v17528_v33 = vadd.f32 %v6160_v32, %v6131_v4  ;;  %6442 = vmatpush.bf16.msrb.mxu0 %v12164_v20  ;;  %v11693_v4 = vld [vmem:[%s21884_s20 + $0x30c] sm:$0xf0]  ;;  %v12093_v32 = vld [vmem:[%s21884_s20 + $0x634] sm:$0xf0] }
 0x5a9   : > { %v6105_v23 = vpop.f32.mrf.mxu0  ;;  %v11696_v62 = vor.u32 %v13805_v43, %v11693_v4  ;;  %6500 = vmatpush.bf16.msra.mxu2 %v12168_v56  ;;  %6470 = vmatpush.bf16.msra.mxu1 %v11692_v49  ;;  %v12096_v59 = vor.u32 %v13906_v52, %v12093_v32  ;;  %v13796_v43 = vld [vmem:[%s21884_s20 + $0x280] sm:$0xf0]  ;;  %v11625_v4 = vld [vmem:[%s21884_s20 + $0x284] sm:$0xf0]  ;;  %v13889_v32 = vld [vmem:[%s21884_s20 + $0x56c] sm:$0xf] }
 0x5aa   : > { %22101 = vst [vmem:[#allocation150_spill] sm:$0xff] %v17528_v33  ;;  %v17543_v40 = vadd.f32 %v6105_v23, %v17365_v57  ;;  %v13915_v57 = vld [vmem:[%s21884_s20 + $0x638] sm:$0xf0]  ;;  %v13788_v56 = vld [vmem:[%s21884_s20 + $0x244] sm:$0xf]  ;;  %v11624_v49 = vor.u32 %v13796_v43, %v11623_v55 }
 0x5ab   : > { %v12100_v20 = vor.u32 %v13915_v57, %v12099_v46  ;;  %6528 = vmatpush.bf16.msra.mxu3 %v11696_v62  ;;  %v11628_v52 = vor.u32 %v13788_v56, %v11625_v4  ;;  %v12025_v46 = vld [vmem:[%s21884_s20 + $0x5ac] sm:$0xf0]  ;;  %v13898_v43 = vld [vmem:[%s21884_s20 + $0x5b0] sm:$0xf0] }
 0x5ac   : > { %6336 = vmatmul.bf16.gmra.mxu0 %v16201_v31  ;;  %6394 = vmatmul.bf16.gmra.mxu2 %v16201_v31  ;;  %v12031_v57 = vld [vmem:[%s21884_s20 + $0x570] sm:$0xf]  ;;  %v12028_v55 = vor.u32 %v13889_v32, %v12025_v46  ;;  %v11556_v32 = vor.u32 %v13779_v45, %v11555_v24  ;;  %v11557_v46 = vld [vmem:[%s21884_s20 + $0x1fc] sm:$0xf0]  ;;  %v11957_v45 = vld [vmem:[%s21884_s20 + $0x524] sm:$0xf0] }
 0x5ad   : > { %v17568_v23 = vpop.f32.mrf.mxu3  ;;  %6443 = vmatpush.bf16.msrb.mxu0 %v12096_v59  ;;  %6501 = vmatpush.bf16.msra.mxu2 %v12100_v20  ;;  %v12032_v4 = vor.u32 %v13898_v43, %v12031_v57  ;;  %v13771_v20 = vld [vmem:[%s21884_s20 + $0x1bc] sm:$0xf]  ;;  %v11963_v24 = vld [vmem:[%s21884_s20 + $0x4e8] sm:$0xf]  ;;  %v11487_v43 = vld [vmem:[%s21884_s20 + $0x130] sm:$0xf] }
 0x5ae   : > { %6471 = vmatpush.bf16.msra.mxu1 %v11624_v49 }
 0x5af   : > { %v6134_v62 = vpop.f32.mrf.mxu1  ;;  %v6163_v59 = vpop.f32.mrf.mxu2  ;;  %6529 = vmatpush.bf16.msra.mxu3 %v11628_v52  ;;  %v13881_v52 = vld [vmem:[%s21884_s20 + $0x528] sm:$0xf0] }
 0x5b0   : > { %v17585_v56 = vadd.f32 %v6163_v59, %v6134_v62  ;;  %v11560_v62 = vor.u32 %v13771_v20, %v11557_v46  ;;  %v13872_v59 = vld [vmem:[%s21884_s20 + $0x4e4] sm:$0xf]  ;;  %v13762_v20 = vld [vmem:[%s21884_s20 + $0x170] sm:$0xf0]  ;;  %v11489_v46 = vld [vmem:[%s21884_s20 + $0x174] sm:$0xf0] }
 0x5b1   : > { %v6107_v49 = vpop.f32.mrf.mxu0  ;;  %6444 = vmatpush.bf16.msrb.mxu0 %v12028_v55  ;;  %6502 = vmatpush.bf16.msra.mxu2 %v12032_v4  ;;  %v11964_v55 = vor.u32 %v13881_v52, %v11963_v24  ;;  %v11889_v24 = vld [vmem:[%s21884_s20 + $0x49c] sm:$0xf0] }
 0x5b2   : > { %22102 = vst [vmem:[#allocation151_spill] sm:$0xff] %v17585_v56  ;;  %v17600_v57 = vadd.f32 %v6107_v49, %v17409_v39  ;;  %6365 = vmatmul.bf16.gmra.mxu1 %v16192_v22  ;;  %6423 = vmatmul.bf16.gmra.mxu3 %v16192_v22  ;;  %v11960_v39 = vor.u32 %v13872_v59, %v11957_v45  ;;  %v13754_v49 = vld [vmem:[%s21884_s20 + $0x134] sm:$0xf]  ;;  %v13855_v45 = vld [vmem:[%s21884_s20 + $0x45c] sm:$0xf] }
 0x5b3   : > { %6472 = vmatpush.bf16.msra.mxu1 %v11556_v32  ;;  %6530 = vmatpush.bf16.msra.mxu3 %v11560_v62  ;;  %v11488_v32 = vor.u32 %v13762_v20, %v11487_v43  ;;  %v11492_v59 = vor.u32 %v13754_v49, %v11489_v46  ;;  %v11895_v52 = vld [vmem:[%s21884_s20 + $0x460] sm:$0xf]  ;;  %v11892_v43 = vor.u32 %v13855_v45, %v11889_v24  ;;  %v13864_v20 = vld [vmem:[%s21884_s20 + $0x4a0] sm:$0xf0]  ;;  %v11421_v24 = vld [vmem:[%s21884_s20 + $0xec] sm:$0xf0] }
 0x5b4   : > { %v11896_v46 = vor.u32 %v13864_v20, %v11895_v52  ;;  %v11420_v45 = vor.u32 %v13745_v58, %v11419_v5  ;;  %v13728_v58 = vld [vmem:[%s21884_s20 + $0x60] sm:$0xf0] }
 0x5b5   : > { %v17625_v4 = vpop.f32.mrf.mxu3  ;;  %6445 = vmatpush.bf16.msrb.mxu0 %v11960_v39  ;;  %6503 = vmatpush.bf16.msra.mxu2 %v11964_v55  ;;  %v13737_v55 = vld [vmem:[%s21884_s20 + $0xac] sm:$0xf]  ;;  %v13720_v5 = vld [vmem:[%s21884_s20 + $0x24] sm:$0xf] }
 0x5b6   : > { %v13848_v56 = vld [vmem:[%s21884_s20 + $0x420] sm:$0xf0] }
 0x5b7   : > { %v6136_v62 = vpop.f32.mrf.mxu1  ;;  %v6165_v39 = vpop.f32.mrf.mxu2  ;;  %6473 = vmatpush.bf16.msra.mxu1 %v11488_v32  ;;  %6531 = vmatpush.bf16.msra.mxu3 %v11492_v59  ;;  %v11351_v59 = vld [vmem:[%s21884_s20 + $0x20] sm:$0xf] }
 0x5b8   : > { %v17642_v49 = vadd.f32 %v6165_v39, %v6136_v62  ;;  %v11424_v62 = vor.u32 %v13737_v55, %v11421_v24  ;;  %v11352_v39 = vor.u32 %v13728_v58, %v11351_v59 }
 0x5b9   : > { %v6110_v32 = vpop.f32.mrf.mxu0  ;;  %6446 = vmatpush.bf16.msrb.mxu0 %v11892_v43  ;;  %6504 = vmatpush.bf16.msra.mxu2 %v11896_v46  ;;  %v11353_v43 = vld [vmem:[%s21884_s20 + $0x64] sm:$0xf0] }
 0x5ba   : > { %22103 = vst [vmem:[#allocation152_spill] sm:$0xff] %v17642_v49  ;;  %v17657_v52 = vadd.f32 %v6110_v32, %v17420_v54  ;;  %v11356_v20 = vor.u32 %v13720_v5, %v11353_v43 }
 0x5bb   : > { %6474 = vmatpush.bf16.msra.mxu1 %v11420_v45  ;;  %6532 = vmatpush.bf16.msra.mxu3 %v11424_v62 }
 0x5bc   : > { %6341 = vmatmul.bf16.gmra.mxu0 %v16225_v3  ;;  %6399 = vmatmul.bf16.gmra.mxu2 %v16225_v3 }
 0x5bd   : > { %v17670_v54 = vpop.f32.mrf.mxu3 }
 0x5bf   : > { %v6139_v46 = vpop.f32.mrf.mxu1  ;;  %v6168_v55 = vpop.f32.mrf.mxu2  ;;  %6475 = vmatpush.bf16.msra.mxu1 %v11352_v39  ;;  %6533 = vmatpush.bf16.msra.mxu3 %v11356_v20 }
 0x5c0   : > { %v17675_v32 = vadd.f32 %v6168_v55, %v6139_v46 }
 0x5c1   : > { %v6112_v45 = vpop.f32.mrf.mxu0 }
 0x5c2   : > { %22104 = vst [vmem:[#allocation153_spill] sm:$0xff] %v17675_v32  ;;  %v17678_v24 = vadd.f32 %v6112_v45, %v17428_v41  ;;  %6370 = vmatmul.bf16.gmra.mxu1 %v16216_v12  ;;  %6428 = vmatmul.bf16.gmra.mxu3 %v16216_v12 }
 0x5c5   : > { %v17682_v62 = vpop.f32.mrf.mxu3 }
 0x5c7   : > { %v6141_v59 = vpop.f32.mrf.mxu1  ;;  %v6170_v58 = vpop.f32.mrf.mxu2 }
 0x5c8   : > { %v17684_v49 = vadd.f32 %v6170_v58, %v6141_v59 }
 0x5c9   : > { %v6115_v5 = vpop.f32.mrf.mxu0 }
 0x5ca   : > { %22105 = vst [vmem:[#allocation154_spill] sm:$0xff] %v17684_v49  ;;  %v17687_v39 = vadd.f32 %v6115_v5, %v17436_v35 }
 0x5cc   : > { %6346 = vmatmul.bf16.gmra.mxu0 %v16262_v8  ;;  %6404 = vmatmul.bf16.gmra.mxu2 %v16262_v8 }
 0x5cd   : > { %v17691_v41 = vpop.f32.mrf.mxu3 }
 0x5cf   : > { %v6144_v43 = vpop.f32.mrf.mxu1  ;;  %v6173_v20 = vpop.f32.mrf.mxu2 }
 0x5d0   : > { %v17693_v46 = vadd.f32 %v6173_v20, %v6144_v43  ;;  %v13975_v43 = vld [vmem:[%s21884_s20 + $0x81c] sm:$0xf]  ;;  %v12379_v20 = vld [vmem:[%s21884_s20 + $0x820] sm:$0xf] }
 0x5d1   : > { %v6117_v55 = vpop.f32.mrf.mxu0 }
 0x5d2   : > { %22106 = vst [vmem:[#allocation155_spill] sm:$0xff] %v17693_v46  ;;  %v17696_v45 = vadd.f32 %v6117_v55, %v17457_v53  ;;  %6375 = vmatmul.bf16.gmra.mxu1 %v16248_v29  ;;  %6433 = vmatmul.bf16.gmra.mxu3 %v16248_v29  ;;  %v12373_v53 = vld [vmem:[%s21884_s20 + $0x85c] sm:$0xf0] }
 0x5d3   : > { %v12376_v55 = vor.u32 %v13975_v43, %v12373_v53  ;;  %v12305_v43 = vld [vmem:[%s21884_s20 + $0x7d4] sm:$0xf0] }
 0x5d4   : > { %22107 = vst [vmem:[#allocation156_spill] sm:$0xff] %v17696_v45  ;;  %v12311_v53 = vld [vmem:[%s21884_s20 + $0x798] sm:$0xf] }
 0x5d5   : > { %v17700_v35 = vpop.f32.mrf.mxu3  ;;  %6555 = vmatpush.bf16.msra.mxu0 %v12376_v55 }
 0x5d7   : > { %v6146_v59 = vpop.f32.mrf.mxu1  ;;  %v6175_v58 = vpop.f32.mrf.mxu2 }
 0x5d8   : > { %v17702_v5 = vadd.f32 %v6175_v58, %v6146_v59  ;;  %v13984_v59 = vld [vmem:[%s21884_s20 + $0x860] sm:$0xf0]  ;;  %v13958_v58 = vld [vmem:[%s21884_s20 + $0x794] sm:$0xf] }
 0x5d9   : > { %v6216_v49 = vpop.f32.mrf.mxu0  ;;  %v12308_v51 = vor.u32 %v13958_v58, %v12305_v43 }
 0x5da   : > { %22108 = vst [vmem:[#allocation157_spill] sm:$0xff] %v17702_v5  ;;  %v17705_v32 = vadd.f32 %v6216_v49, %v17511_v6  ;;  %v12380_v6 = vor.u32 %v13984_v59, %v12379_v20  ;;  %v13967_v20 = vld [vmem:[%s21884_s20 + $0x7d8] sm:$0xf0] }
 0x5db   : > { %v12312_v59 = vor.u32 %v13967_v20, %v12311_v53  ;;  %6556 = vmatpush.bf16.msra.mxu0 %v12308_v51  ;;  %v13941_v20 = vld [vmem:[%s21884_s20 + $0x70c] sm:$0xf]  ;;  %v12237_v51 = vld [vmem:[%s21884_s20 + $0x74c] sm:$0xf0] }
 0x5dc   : > { %22109 = vst [vmem:[#allocation158_spill] sm:$0xff] %v17705_v32  ;;  %6447 = vmatmul.bf16.vlgmr.msrb.gmra.mxu0 %v16153_v42  ;;  %6505 = vmatmul.bf16.vlgmr.msra.gmra.mxu2 %v16153_v42  ;;  %v13814_v32 = vld [vmem:[%s21884_s20 + $0x310] sm:$0xf0] }
 0x5dd   : > { %v17721_v49 = vpop.f32.mrf.mxu3  ;;  %6613 = vmatpush.bf16.msrb.mxu2 %v12380_v6  ;;  %v11835_v6 = vld [vmem:[%s21884_s20 + $0x3e0] sm:$0xf] }
 0x5de   : > { %v11836_v43 = vor.u32 %v13848_v56, %v11835_v6  ;;  %v12243_v56 = vld [vmem:[%s21884_s20 + $0x710] sm:$0xf]  ;;  %v13950_v6 = vld [vmem:[%s21884_s20 + $0x750] sm:$0xf0] }
 0x5df   : > { %v6245_v5 = vpop.f32.mrf.mxu1  ;;  %v6274_v46 = vpop.f32.mrf.mxu2 }
 0x5e0   : > { %v17735_v55 = vadd.f32 %v6274_v46, %v6245_v5  ;;  %v11837_v46 = vld [vmem:[%s21884_s20 + $0x424] sm:$0xf0]  ;;  %6584 = vmatpush.bf16.msrb.mxu1 %v11836_v43 }
 0x5e1   : > { %v6218_v58 = vpop.f32.mrf.mxu0  ;;  %v11840_v53 = vor.u32 %v13840_v36, %v11837_v46  ;;  %6614 = vmatpush.bf16.msrb.mxu2 %v12312_v59  ;;  %v12244_v36 = vor.u32 %v13950_v6, %v12243_v56  ;;  %v13831_v46 = vld [vmem:[%s21884_s20 + $0x398] sm:$0xf0]  ;;  %v13924_v56 = vld [vmem:[%s21884_s20 + $0x684] sm:$0xf]  ;;  %v12169_v6 = vld [vmem:[%s21884_s20 + $0x6c4] sm:$0xf0] }
 0x5e2   : > { %22110 = vst [vmem:[#allocation159_spill] sm:$0xff] %v17735_v55  ;;  %v17750_v5 = vadd.f32 %v6218_v58, %v17568_v23  ;;  %6476 = vmatmul.bf16.vlgmr.msra.gmra.mxu1 %v16120_v2  ;;  %6534 = vmatmul.bf16.vlgmr.msra.gmra.mxu3 %v16120_v2  ;;  %v12240_v23 = vor.u32 %v13941_v20, %v12237_v51  ;;  %v11767_v58 = vld [vmem:[%s21884_s20 + $0x358] sm:$0xf]  ;;  %v13823_v59 = vld [vmem:[%s21884_s20 + $0x35c] sm:$0xf] }
 0x5e3   : > { %6642 = vmatpush.bf16.msrb.mxu3 %v11840_v53  ;;  %v11768_v20 = vor.u32 %v13831_v46, %v11767_v58  ;;  %v11769_v53 = vld [vmem:[%s21884_s20 + $0x39c] sm:$0xf0]  ;;  %v12175_v55 = vld [vmem:[%s21884_s20 + $0x688] sm:$0xf]  ;;  %v12172_v58 = vor.u32 %v13924_v56, %v12169_v6  ;;  %v13933_v46 = vld [vmem:[%s21884_s20 + $0x6c8] sm:$0xf0]  ;;  %v11700_v56 = vor.u32 %v13814_v32, %v11699_v9 }
 0x5e4   : > { %22111 = vst [vmem:[#allocation160_spill] sm:$0xff] %v17750_v5  ;;  %6557 = vmatpush.bf16.msra.mxu0 %v12240_v23  ;;  %v11772_v51 = vor.u32 %v13823_v59, %v11769_v53  ;;  %v12176_v53 = vor.u32 %v13933_v46, %v12175_v55  ;;  %v13907_v6 = vld [vmem:[%s21884_s20 + $0x5fc] sm:$0xf]  ;;  %v12107_v9 = vld [vmem:[%s21884_s20 + $0x600] sm:$0xf] }
 0x5e5   : > { %v17775_v43 = vpop.f32.mrf.mxu3  ;;  %6615 = vmatpush.bf16.msrb.mxu2 %v12244_v36  ;;  %6585 = vmatpush.bf16.msrb.mxu1 %v11768_v20  ;;  %v13806_v36 = vld [vmem:[%s21884_s20 + $0x2d4] sm:$0xf]  ;;  %v11631_v46 = vld [vmem:[%s21884_s20 + $0x248] sm:$0xf] }
 0x5e7   : > { %v6247_v5 = vpop.f32.mrf.mxu1  ;;  %v6276_v23 = vpop.f32.mrf.mxu2  ;;  %6643 = vmatpush.bf16.msrb.mxu3 %v11772_v51 }
 0x5e8   : > { %v17792_v59 = vadd.f32 %v6276_v23, %v6247_v5  ;;  %6558 = vmatpush.bf16.msra.mxu0 %v12172_v58  ;;  %v11701_v5 = vld [vmem:[%s21884_s20 + $0x314] sm:$0xf0]  ;;  %v12101_v23 = vld [vmem:[%s21884_s20 + $0x63c] sm:$0xf0] }
 0x5e9   : > { %v6221_v20 = vpop.f32.mrf.mxu0  ;;  %v11704_v51 = vor.u32 %v13806_v36, %v11701_v5  ;;  %6616 = vmatpush.bf16.msrb.mxu2 %v12176_v53  ;;  %6586 = vmatpush.bf16.msrb.mxu1 %v11700_v56  ;;  %v12104_v32 = vor.u32 %v13907_v6, %v12101_v23  ;;  %v13797_v36 = vld [vmem:[%s21884_s20 + $0x288] sm:$0xf0]  ;;  %v11633_v5 = vld [vmem:[%s21884_s20 + $0x28c] sm:$0xf0]  ;;  %v13890_v23 = vld [vmem:[%s21884_s20 + $0x574] sm:$0xf] }
 0x5ea   : > { %22112 = vst [vmem:[#allocation161_spill] sm:$0xff] %v17792_v59  ;;  %v17807_v55 = vadd.f32 %v6221_v20, %v17625_v4  ;;  %v13916_v4 = vld [vmem:[%s21884_s20 + $0x640] sm:$0xf0]  ;;  %v13789_v53 = vld [vmem:[%s21884_s20 + $0x24c] sm:$0xf]  ;;  %v11632_v56 = vor.u32 %v13797_v36, %v11631_v46 }
 0x5eb   : > { %v12108_v58 = vor.u32 %v13916_v4, %v12107_v9  ;;  %6644 = vmatpush.bf16.msrb.mxu3 %v11704_v51  ;;  %v11636_v6 = vor.u32 %v13789_v53, %v11633_v5  ;;  %v12033_v9 = vld [vmem:[%s21884_s20 + $0x5b4] sm:$0xf0]  ;;  %v13899_v36 = vld [vmem:[%s21884_s20 + $0x5b8] sm:$0xf0]  ;;  %v11563_v59 = vld [vmem:[%s21884_s20 + $0x1c0] sm:$0xf] }
 0x5ec   : > { %22113 = vst [vmem:[#allocation162_spill] sm:$0xff] %v17807_v55  ;;  %6452 = vmatmul.bf16.gmra.mxu0 %v16201_v31  ;;  %6510 = vmatmul.bf16.gmra.mxu2 %v16201_v31  ;;  %v12039_v4 = vld [vmem:[%s21884_s20 + $0x578] sm:$0xf]  ;;  %v12036_v46 = vor.u32 %v13890_v23, %v12033_v9  ;;  %v13780_v55 = vld [vmem:[%s21884_s20 + $0x200] sm:$0xf0] }
 0x5ed   : > { %v17832_v20 = vpop.f32.mrf.mxu3  ;;  %6559 = vmatpush.bf16.msra.mxu0 %v12104_v32  ;;  %6617 = vmatpush.bf16.msrb.mxu2 %v12108_v58  ;;  %v12040_v5 = vor.u32 %v13899_v36, %v12039_v4  ;;  %v13772_v58 = vld [vmem:[%s21884_s20 + $0x1c4] sm:$0xf]  ;;  %v11564_v23 = vor.u32 %v13780_v55, %v11563_v59  ;;  %v11565_v9 = vld [vmem:[%s21884_s20 + $0x204] sm:$0xf0]  ;;  %v11965_v59 = vld [vmem:[%s21884_s20 + $0x52c] sm:$0xf0] }
 0x5ee   : > { %6587 = vmatpush.bf16.msrb.mxu1 %v11632_v56  ;;  %v11971_v55 = vld [vmem:[%s21884_s20 + $0x4f0] sm:$0xf]  ;;  %v11495_v36 = vld [vmem:[%s21884_s20 + $0x138] sm:$0xf] }
 0x5ef   : > { %v6250_v51 = vpop.f32.mrf.mxu1  ;;  %v6279_v32 = vpop.f32.mrf.mxu2  ;;  %6645 = vmatpush.bf16.msrb.mxu3 %v11636_v6  ;;  %v13882_v6 = vld [vmem:[%s21884_s20 + $0x530] sm:$0xf0] }
 0x5f0   : > { %v17849_v53 = vadd.f32 %v6279_v32, %v6250_v51  ;;  %v11568_v51 = vor.u32 %v13772_v58, %v11565_v9  ;;  %v13873_v32 = vld [vmem:[%s21884_s20 + $0x4ec] sm:$0xf]  ;;  %v13763_v58 = vld [vmem:[%s21884_s20 + $0x178] sm:$0xf0]  ;;  %v11497_v9 = vld [vmem:[%s21884_s20 + $0x17c] sm:$0xf0] }
 0x5f1   : > { %v6223_v56 = vpop.f32.mrf.mxu0  ;;  %6560 = vmatpush.bf16.msra.mxu0 %v12036_v46  ;;  %6618 = vmatpush.bf16.msrb.mxu2 %v12040_v5  ;;  %v11972_v46 = vor.u32 %v13882_v6, %v11971_v55  ;;  %v11897_v55 = vld [vmem:[%s21884_s20 + $0x4a4] sm:$0xf0] }
 0x5f2   : > { %22114 = vst [vmem:[#allocation163_spill] sm:$0xff] %v17849_v53  ;;  %v17864_v4 = vadd.f32 %v6223_v56, %v17670_v54  ;;  %6481 = vmatmul.bf16.gmra.mxu1 %v16192_v22  ;;  %6539 = vmatmul.bf16.gmra.mxu3 %v16192_v22  ;;  %v11968_v54 = vor.u32 %v13873_v32, %v11965_v59  ;;  %v13755_v56 = vld [vmem:[%s21884_s20 + $0x13c] sm:$0xf]  ;;  %v13856_v59 = vld [vmem:[%s21884_s20 + $0x464] sm:$0xf] }
 0x5f3   : > { %6588 = vmatpush.bf16.msrb.mxu1 %v11564_v23  ;;  %6646 = vmatpush.bf16.msrb.mxu3 %v11568_v51  ;;  %v11496_v23 = vor.u32 %v13763_v58, %v11495_v36  ;;  %v11500_v32 = vor.u32 %v13755_v56, %v11497_v9  ;;  %v11903_v6 = vld [vmem:[%s21884_s20 + $0x468] sm:$0xf]  ;;  %v11900_v36 = vor.u32 %v13856_v59, %v11897_v55  ;;  %v13865_v58 = vld [vmem:[%s21884_s20 + $0x4a8] sm:$0xf0]  ;;  %v11427_v53 = vld [vmem:[%s21884_s20 + $0xb0] sm:$0xf] }
 0x5f4   : > { %22115 = vst [vmem:[#allocation164_spill] sm:$0xff] %v17864_v4  ;;  %v11904_v9 = vor.u32 %v13865_v58, %v11903_v6  ;;  %v13746_v4 = vld [vmem:[%s21884_s20 + $0xf0] sm:$0xf0]  ;;  %v11429_v55 = vld [vmem:[%s21884_s20 + $0xf4] sm:$0xf0] }
 0x5f5   : > { %v17889_v5 = vpop.f32.mrf.mxu3  ;;  %6561 = vmatpush.bf16.msra.mxu0 %v11968_v54  ;;  %6619 = vmatpush.bf16.msrb.mxu2 %v11972_v46  ;;  %v13738_v46 = vld [vmem:[%s21884_s20 + $0xb4] sm:$0xf]  ;;  %v11428_v59 = vor.u32 %v13746_v4, %v11427_v53  ;;  %v13729_v53 = vld [vmem:[%s21884_s20 + $0x68] sm:$0xf0] }
 0x5f7   : > { %v6252_v51 = vpop.f32.mrf.mxu1  ;;  %v6281_v54 = vpop.f32.mrf.mxu2  ;;  %6589 = vmatpush.bf16.msrb.mxu1 %v11496_v23  ;;  %6647 = vmatpush.bf16.msrb.mxu3 %v11500_v32  ;;  %v11359_v32 = vld [vmem:[%s21884_s20 + $0x28] sm:$0xf] }
 0x5f8   : > { %v17906_v56 = vadd.f32 %v6281_v54, %v6252_v51  ;;  %v11432_v51 = vor.u32 %v13738_v46, %v11429_v55  ;;  %v11360_v54 = vor.u32 %v13729_v53, %v11359_v32 }
 0x5f9   : > { %v6226_v23 = vpop.f32.mrf.mxu0  ;;  %6562 = vmatpush.bf16.msra.mxu0 %v11900_v36  ;;  %6620 = vmatpush.bf16.msrb.mxu2 %v11904_v9  ;;  %v11361_v36 = vld [vmem:[%s21884_s20 + $0x6c] sm:$0xf0] }
 0x5fa   : > { %22116 = vst [vmem:[#allocation165_spill] sm:$0xff] %v17906_v56  ;;  %v17921_v6 = vadd.f32 %v6226_v23, %v17682_v62  ;;  %v13721_v62 = vld [vmem:[%s21884_s20 + $0x2c] sm:$0xf] }
 0x5fb   : > { %6590 = vmatpush.bf16.msrb.mxu1 %v11428_v59  ;;  %6648 = vmatpush.bf16.msrb.mxu3 %v11432_v51  ;;  %v11364_v58 = vor.u32 %v13721_v62, %v11361_v36 }
 0x5fc   : > { %22117 = vst [vmem:[#allocation166_spill] sm:$0xff] %v17921_v6  ;;  %6457 = vmatmul.bf16.gmra.mxu0 %v16225_v3  ;;  %6515 = vmatmul.bf16.gmra.mxu2 %v16225_v3  ;;  %v13815_v6 = vld [vmem:[%s21884_s20 + $0x318] sm:$0xf0] }
 0x5fd   : > { %v17934_v4 = vpop.f32.mrf.mxu3 }
 0x5ff   : > { %v6255_v9 = vpop.f32.mrf.mxu1  ;;  %v6284_v46 = vpop.f32.mrf.mxu2  ;;  %6591 = vmatpush.bf16.msrb.mxu1 %v11360_v54  ;;  %6649 = vmatpush.bf16.msrb.mxu3 %v11364_v58 }
 0x600   : > { %v17939_v23 = vadd.f32 %v6284_v46, %v6255_v9 }
 0x601   : > { %v6228_v59 = vpop.f32.mrf.mxu0 }
 0x602   : > { %22118 = vst [vmem:[#allocation167_spill] sm:$0xff] %v17939_v23  ;;  %v17942_v55 = vadd.f32 %v6228_v59, %v17691_v41  ;;  %6486 = vmatmul.bf16.gmra.mxu1 %v16216_v12  ;;  %6544 = vmatmul.bf16.gmra.mxu3 %v16216_v12 }
 0x604   : > { %22119 = vst [vmem:[#allocation168_spill] sm:$0xff] %v17942_v55  ;;  %v11707_v55 = vld [vmem:[%s21884_s20 + $0x2d8] sm:$0xf] }
 0x605   : > { %v17946_v51 = vpop.f32.mrf.mxu3 }
 0x607   : > { %v6257_v32 = vpop.f32.mrf.mxu1  ;;  %v6286_v53 = vpop.f32.mrf.mxu2 }
 0x608   : > { %v17948_v56 = vadd.f32 %v6286_v53, %v6257_v32 }
 0x609   : > { %v6231_v62 = vpop.f32.mrf.mxu0 }
 0x60a   : > { %22120 = vst [vmem:[#allocation169_spill] sm:$0xff] %v17948_v56  ;;  %v17951_v54 = vadd.f32 %v6231_v62, %v17700_v35 }
 0x60c   : > { %22121 = vst [vmem:[#allocation170_spill] sm:$0xff] %v17951_v54  ;;  %6462 = vmatmul.bf16.gmra.mxu0 %v16262_v8  ;;  %6520 = vmatmul.bf16.gmra.mxu2 %v16262_v8  ;;  %v13841_v54 = vld [vmem:[%s21884_s20 + $0x3ec] sm:$0xf] }
 0x60d   : > { %v17955_v41 = vpop.f32.mrf.mxu3 }
 0x60f   : > { %v6260_v36 = vpop.f32.mrf.mxu1  ;;  %v6289_v58 = vpop.f32.mrf.mxu2 }
 0x610   : > { %v17957_v9 = vadd.f32 %v6289_v58, %v6260_v36  ;;  %v13976_v36 = vld [vmem:[%s21884_s20 + $0x824] sm:$0xf]  ;;  %v12387_v58 = vld [vmem:[%s21884_s20 + $0x828] sm:$0xf] }
 0x611   : > { %v6233_v46 = vpop.f32.mrf.mxu0 }
 0x612   : > { %22122 = vst [vmem:[#allocation171_spill] sm:$0xff] %v17957_v9  ;;  %v17960_v59 = vadd.f32 %v6233_v46, %v17721_v49  ;;  %6491 = vmatmul.bf16.gmra.mxu1 %v16248_v29  ;;  %6549 = vmatmul.bf16.gmra.mxu3 %v16248_v29  ;;  %v12381_v49 = vld [vmem:[%s21884_s20 + $0x864] sm:$0xf0] }
 0x613   : > { %v12384_v46 = vor.u32 %v13976_v36, %v12381_v49  ;;  %v12313_v36 = vld [vmem:[%s21884_s20 + $0x7dc] sm:$0xf0] }
 0x614   : > { %22123 = vst [vmem:[#allocation172_spill] sm:$0xff] %v17960_v59  ;;  %v12319_v49 = vld [vmem:[%s21884_s20 + $0x7a0] sm:$0xf]  ;;  %v13849_v59 = vld [vmem:[%s21884_s20 + $0x428] sm:$0xf0] }
 0x615   : > { %v17964_v35 = vpop.f32.mrf.mxu3  ;;  %6671 = vmatpush.bf16.msrb.mxu0 %v12384_v46 }
 0x617   : > { %v6262_v32 = vpop.f32.mrf.mxu1  ;;  %v6291_v53 = vpop.f32.mrf.mxu2 }
 0x618   : > { %v17966_v62 = vadd.f32 %v6291_v53, %v6262_v32  ;;  %v13985_v32 = vld [vmem:[%s21884_s20 + $0x868] sm:$0xf0]  ;;  %v13959_v53 = vld [vmem:[%s21884_s20 + $0x79c] sm:$0xf] }
 0x619   : > { %v6332_v56 = vpop.f32.mrf.mxu0 }
 0x61a   : > { %22124 = vst [vmem:[#allocation173_spill] sm:$0xff] %v17966_v62  ;;  %v17969_v23 = vadd.f32 %v6332_v56, %v17775_v43  ;;  %v12388_v43 = vor.u32 %v13985_v32, %v12387_v58  ;;  %v13968_v58 = vld [vmem:[%s21884_s20 + $0x7e0] sm:$0xf0] }
 0x61b   : > { %v12320_v32 = vor.u32 %v13968_v58, %v12319_v49  ;;  %v13942_v58 = vld [vmem:[%s21884_s20 + $0x714] sm:$0xf] }
 0x61c   : > { %22125 = vst [vmem:[#allocation174_spill] sm:$0xff] %v17969_v23  ;;  %6563 = vmatmul.bf16.vlgmr.msra.gmra.mxu0 %v16153_v42  ;;  %6621 = vmatmul.bf16.vlgmr.msrb.gmra.mxu2 %v16153_v42  ;;  %v12316_v23 = vor.u32 %v13959_v53, %v12313_v36 }
 0x61d   : > { %v17985_v56 = vpop.f32.mrf.mxu3  ;;  %6729 = vmatpush.bf16.msra.mxu2 %v12388_v43  ;;  %v11843_v43 = vld [vmem:[%s21884_s20 + $0x3e8] sm:$0xf] }
 0x61e   : > { %6672 = vmatpush.bf16.msrb.mxu0 %v12316_v23  ;;  %v11844_v36 = vor.u32 %v13849_v59, %v11843_v43  ;;  %v12245_v23 = vld [vmem:[%s21884_s20 + $0x754] sm:$0xf0]  ;;  %v13951_v43 = vld [vmem:[%s21884_s20 + $0x758] sm:$0xf0] }
 0x61f   : > { %v6361_v62 = vpop.f32.mrf.mxu1  ;;  %v6390_v9 = vpop.f32.mrf.mxu2  ;;  %v12251_v59 = vld [vmem:[%s21884_s20 + $0x718] sm:$0xf] }
 0x620   : > { %v17999_v46 = vadd.f32 %v6390_v9, %v6361_v62  ;;  %v11845_v9 = vld [vmem:[%s21884_s20 + $0x42c] sm:$0xf0]  ;;  %6700 = vmatpush.bf16.msra.mxu1 %v11844_v36 }
 0x621   : > { %v6334_v53 = vpop.f32.mrf.mxu0  ;;  %v11848_v49 = vor.u32 %v13841_v54, %v11845_v9  ;;  %6730 = vmatpush.bf16.msra.mxu2 %v12320_v32  ;;  %v12252_v54 = vor.u32 %v13951_v43, %v12251_v59  ;;  %v13832_v9 = vld [vmem:[%s21884_s20 + $0x3a0] sm:$0xf0]  ;;  %v13925_v59 = vld [vmem:[%s21884_s20 + $0x68c] sm:$0xf]  ;;  %v12177_v43 = vld [vmem:[%s21884_s20 + $0x6cc] sm:$0xf0] }
 0x622   : > { %22126 = vst [vmem:[#allocation175_spill] sm:$0xff] %v17999_v46  ;;  %v18014_v62 = vadd.f32 %v6334_v53, %v17832_v20  ;;  %6592 = vmatmul.bf16.vlgmr.msrb.gmra.mxu1 %v16120_v2  ;;  %6650 = vmatmul.bf16.vlgmr.msrb.gmra.mxu3 %v16120_v2  ;;  %v12248_v20 = vor.u32 %v13942_v58, %v12245_v23  ;;  %v11775_v53 = vld [vmem:[%s21884_s20 + $0x360] sm:$0xf]  ;;  %v13824_v32 = vld [vmem:[%s21884_s20 + $0x364] sm:$0xf] }
 0x623   : > { %6758 = vmatpush.bf16.msra.mxu3 %v11848_v49  ;;  %v11776_v58 = vor.u32 %v13832_v9, %v11775_v53  ;;  %v11777_v49 = vld [vmem:[%s21884_s20 + $0x3a4] sm:$0xf0]  ;;  %v12183_v46 = vld [vmem:[%s21884_s20 + $0x690] sm:$0xf]  ;;  %v12180_v53 = vor.u32 %v13925_v59, %v12177_v43  ;;  %v13934_v9 = vld [vmem:[%s21884_s20 + $0x6d0] sm:$0xf0]  ;;  %v11708_v59 = vor.u32 %v13815_v6, %v11707_v55 }
 0x624   : > { %22127 = vst [vmem:[#allocation176_spill] sm:$0xff] %v18014_v62  ;;  %6673 = vmatpush.bf16.msrb.mxu0 %v12248_v20  ;;  %v11780_v23 = vor.u32 %v13824_v32, %v11777_v49  ;;  %v12184_v49 = vor.u32 %v13934_v9, %v12183_v46  ;;  %v13908_v43 = vld [vmem:[%s21884_s20 + $0x604] sm:$0xf]  ;;  %v12115_v6 = vld [vmem:[%s21884_s20 + $0x608] sm:$0xf] }
 0x625   : > { %v18039_v36 = vpop.f32.mrf.mxu3  ;;  %6731 = vmatpush.bf16.msra.mxu2 %v12252_v54  ;;  %6701 = vmatpush.bf16.msra.mxu1 %v11776_v58  ;;  %v13807_v54 = vld [vmem:[%s21884_s20 + $0x2dc] sm:$0xf]  ;;  %v11639_v9 = vld [vmem:[%s21884_s20 + $0x250] sm:$0xf] }
 0x627   : > { %v6363_v62 = vpop.f32.mrf.mxu1  ;;  %v6392_v20 = vpop.f32.mrf.mxu2  ;;  %6759 = vmatpush.bf16.msra.mxu3 %v11780_v23 }
 0x628   : > { %v18056_v32 = vadd.f32 %v6392_v20, %v6363_v62  ;;  %6674 = vmatpush.bf16.msrb.mxu0 %v12180_v53  ;;  %v11709_v62 = vld [vmem:[%s21884_s20 + $0x31c] sm:$0xf0]  ;;  %v12109_v20 = vld [vmem:[%s21884_s20 + $0x644] sm:$0xf0] }
 0x629   : > { %v6337_v58 = vpop.f32.mrf.mxu0  ;;  %v11712_v23 = vor.u32 %v13807_v54, %v11709_v62  ;;  %6732 = vmatpush.bf16.msra.mxu2 %v12184_v49  ;;  %6702 = vmatpush.bf16.msra.mxu1 %v11708_v59  ;;  %v12112_v55 = vor.u32 %v13908_v43, %v12109_v20  ;;  %v13798_v54 = vld [vmem:[%s21884_s20 + $0x290] sm:$0xf0]  ;;  %v11641_v62 = vld [vmem:[%s21884_s20 + $0x294] sm:$0xf0]  ;;  %v13891_v20 = vld [vmem:[%s21884_s20 + $0x57c] sm:$0xf] }
 0x62a   : > { %22128 = vst [vmem:[#allocation177_spill] sm:$0xff] %v18056_v32  ;;  %v18071_v46 = vadd.f32 %v6337_v58, %v17889_v5  ;;  %v13917_v5 = vld [vmem:[%s21884_s20 + $0x648] sm:$0xf0]  ;;  %v13790_v49 = vld [vmem:[%s21884_s20 + $0x254] sm:$0xf]  ;;  %v11640_v59 = vor.u32 %v13798_v54, %v11639_v9 }
 0x62b   : > { %v12116_v53 = vor.u32 %v13917_v5, %v12115_v6  ;;  %6760 = vmatpush.bf16.msra.mxu3 %v11712_v23  ;;  %v11644_v43 = vor.u32 %v13790_v49, %v11641_v62  ;;  %v12041_v6 = vld [vmem:[%s21884_s20 + $0x5bc] sm:$0xf0]  ;;  %v13900_v54 = vld [vmem:[%s21884_s20 + $0x5c0] sm:$0xf0]  ;;  %v11571_v32 = vld [vmem:[%s21884_s20 + $0x1c8] sm:$0xf] }
 0x62c   : > { %22129 = vst [vmem:[#allocation178_spill] sm:$0xff] %v18071_v46  ;;  %6568 = vmatmul.bf16.gmra.mxu0 %v16201_v31  ;;  %6626 = vmatmul.bf16.gmra.mxu2 %v16201_v31  ;;  %v12047_v5 = vld [vmem:[%s21884_s20 + $0x580] sm:$0xf]  ;;  %v12044_v9 = vor.u32 %v13891_v20, %v12041_v6  ;;  %v13781_v46 = vld [vmem:[%s21884_s20 + $0x208] sm:$0xf0] }
 0x62d   : > { %v18096_v58 = vpop.f32.mrf.mxu3  ;;  %6675 = vmatpush.bf16.msrb.mxu0 %v12112_v55  ;;  %6733 = vmatpush.bf16.msra.mxu2 %v12116_v53  ;;  %v12048_v62 = vor.u32 %v13900_v54, %v12047_v5  ;;  %v13773_v53 = vld [vmem:[%s21884_s20 + $0x1cc] sm:$0xf]  ;;  %v11572_v20 = vor.u32 %v13781_v46, %v11571_v32  ;;  %v11573_v6 = vld [vmem:[%s21884_s20 + $0x20c] sm:$0xf0]  ;;  %v11973_v32 = vld [vmem:[%s21884_s20 + $0x534] sm:$0xf0] }
 0x62e   : > { %6703 = vmatpush.bf16.msra.mxu1 %v11640_v59  ;;  %v11979_v46 = vld [vmem:[%s21884_s20 + $0x4f8] sm:$0xf]  ;;  %v11503_v54 = vld [vmem:[%s21884_s20 + $0x140] sm:$0xf] }
 0x62f   : > { %v6366_v23 = vpop.f32.mrf.mxu1  ;;  %v6395_v55 = vpop.f32.mrf.mxu2  ;;  %6761 = vmatpush.bf16.msra.mxu3 %v11644_v43  ;;  %v13883_v43 = vld [vmem:[%s21884_s20 + $0x538] sm:$0xf0] }
 0x630   : > { %v18113_v49 = vadd.f32 %v6395_v55, %v6366_v23  ;;  %v11576_v23 = vor.u32 %v13773_v53, %v11573_v6  ;;  %v13874_v55 = vld [vmem:[%s21884_s20 + $0x4f4] sm:$0xf]  ;;  %v13764_v53 = vld [vmem:[%s21884_s20 + $0x180] sm:$0xf0]  ;;  %v11505_v6 = vld [vmem:[%s21884_s20 + $0x184] sm:$0xf0] }
 0x631   : > { %v6339_v59 = vpop.f32.mrf.mxu0  ;;  %6676 = vmatpush.bf16.msrb.mxu0 %v12044_v9  ;;  %6734 = vmatpush.bf16.msra.mxu2 %v12048_v62  ;;  %v11980_v9 = vor.u32 %v13883_v43, %v11979_v46  ;;  %v11905_v46 = vld [vmem:[%s21884_s20 + $0x4ac] sm:$0xf0] }
 0x632   : > { %22130 = vst [vmem:[#allocation179_spill] sm:$0xff] %v18113_v49  ;;  %v18128_v5 = vadd.f32 %v6339_v59, %v17934_v4  ;;  %6597 = vmatmul.bf16.gmra.mxu1 %v16192_v22  ;;  %6655 = vmatmul.bf16.gmra.mxu3 %v16192_v22  ;;  %v11976_v4 = vor.u32 %v13874_v55, %v11973_v32  ;;  %v13756_v59 = vld [vmem:[%s21884_s20 + $0x144] sm:$0xf]  ;;  %v13857_v32 = vld [vmem:[%s21884_s20 + $0x46c] sm:$0xf] }
 0x633   : > { %6704 = vmatpush.bf16.msra.mxu1 %v11572_v20  ;;  %6762 = vmatpush.bf16.msra.mxu3 %v11576_v23  ;;  %v11504_v20 = vor.u32 %v13764_v53, %v11503_v54  ;;  %v11508_v55 = vor.u32 %v13756_v59, %v11505_v6  ;;  %v11911_v43 = vld [vmem:[%s21884_s20 + $0x470] sm:$0xf]  ;;  %v11908_v54 = vor.u32 %v13857_v32, %v11905_v46  ;;  %v13866_v53 = vld [vmem:[%s21884_s20 + $0x4b0] sm:$0xf0]  ;;  %v11435_v49 = vld [vmem:[%s21884_s20 + $0xb8] sm:$0xf] }
 0x634   : > { %22131 = vst [vmem:[#allocation180_spill] sm:$0xff] %v18128_v5  ;;  %v11912_v6 = vor.u32 %v13866_v53, %v11911_v43  ;;  %v13747_v5 = vld [vmem:[%s21884_s20 + $0xf8] sm:$0xf0]  ;;  %v11437_v46 = vld [vmem:[%s21884_s20 + $0xfc] sm:$0xf0] }
 0x635   : > { %v18153_v62 = vpop.f32.mrf.mxu3  ;;  %6677 = vmatpush.bf16.msrb.mxu0 %v11976_v4  ;;  %6735 = vmatpush.bf16.msra.mxu2 %v11980_v9  ;;  %v13739_v9 = vld [vmem:[%s21884_s20 + $0xbc] sm:$0xf]  ;;  %v11436_v32 = vor.u32 %v13747_v5, %v11435_v49  ;;  %v13730_v49 = vld [vmem:[%s21884_s20 + $0x70] sm:$0xf0] }
 0x637   : > { %v6368_v23 = vpop.f32.mrf.mxu1  ;;  %v6397_v4 = vpop.f32.mrf.mxu2  ;;  %6705 = vmatpush.bf16.msra.mxu1 %v11504_v20  ;;  %6763 = vmatpush.bf16.msra.mxu3 %v11508_v55  ;;  %v11367_v55 = vld [vmem:[%s21884_s20 + $0x30] sm:$0xf] }
 0x638   : > { %v18170_v59 = vadd.f32 %v6397_v4, %v6368_v23  ;;  %v11440_v23 = vor.u32 %v13739_v9, %v11437_v46  ;;  %v11368_v4 = vor.u32 %v13730_v49, %v11367_v55 }
 0x639   : > { %v6342_v20 = vpop.f32.mrf.mxu0  ;;  %6678 = vmatpush.bf16.msrb.mxu0 %v11908_v54  ;;  %6736 = vmatpush.bf16.msra.mxu2 %v11912_v6  ;;  %v11369_v54 = vld [vmem:[%s21884_s20 + $0x74] sm:$0xf0] }
 0x63a   : > { %22132 = vst [vmem:[#allocation181_spill] sm:$0xff] %v18170_v59  ;;  %v18185_v43 = vadd.f32 %v6342_v20, %v17946_v51  ;;  %v13722_v51 = vld [vmem:[%s21884_s20 + $0x34] sm:$0xf] }
 0x63b   : > { %6706 = vmatpush.bf16.msra.mxu1 %v11436_v32  ;;  %6764 = vmatpush.bf16.msra.mxu3 %v11440_v23  ;;  %v11372_v53 = vor.u32 %v13722_v51, %v11369_v54 }
 0x63c   : > { %22133 = vst [vmem:[#allocation182_spill] sm:$0xff] %v18185_v43  ;;  %6573 = vmatmul.bf16.gmra.mxu0 %v16225_v3  ;;  %6631 = vmatmul.bf16.gmra.mxu2 %v16225_v3  ;;  %v13816_v43 = vld [vmem:[%s21884_s20 + $0x320] sm:$0xf0] }
 0x63d   : > { %v18198_v5 = vpop.f32.mrf.mxu3 }
 0x63f   : > { %v6371_v6 = vpop.f32.mrf.mxu1  ;;  %v6400_v9 = vpop.f32.mrf.mxu2  ;;  %6707 = vmatpush.bf16.msra.mxu1 %v11368_v4  ;;  %6765 = vmatpush.bf16.msra.mxu3 %v11372_v53 }
 0x640   : > { %v18203_v20 = vadd.f32 %v6400_v9, %v6371_v6 }
 0x641   : > { %v6344_v32 = vpop.f32.mrf.mxu0 }
 0x642   : > { %22134 = vst [vmem:[#allocation183_spill] sm:$0xff] %v18203_v20  ;;  %v18206_v46 = vadd.f32 %v6344_v32, %v17955_v41  ;;  %6602 = vmatmul.bf16.gmra.mxu1 %v16216_v12  ;;  %6660 = vmatmul.bf16.gmra.mxu3 %v16216_v12 }
 0x644   : > { %22135 = vst [vmem:[#allocation184_spill] sm:$0xff] %v18206_v46  ;;  %v11715_v46 = vld [vmem:[%s21884_s20 + $0x2e0] sm:$0xf] }
 0x645   : > { %v18210_v23 = vpop.f32.mrf.mxu3 }
 0x647   : > { %v6373_v55 = vpop.f32.mrf.mxu1  ;;  %v6402_v49 = vpop.f32.mrf.mxu2 }
 0x648   : > { %v18212_v59 = vadd.f32 %v6402_v49, %v6373_v55 }
 0x649   : > { %v6347_v51 = vpop.f32.mrf.mxu0 }
 0x64a   : > { %22136 = vst [vmem:[#allocation185_spill] sm:$0xff] %v18212_v59  ;;  %v18215_v4 = vadd.f32 %v6347_v51, %v17964_v35 }
 0x64c   : > { %22137 = vst [vmem:[#allocation186_spill] sm:$0xff] %v18215_v4  ;;  %6578 = vmatmul.bf16.gmra.mxu0 %v16262_v8  ;;  %6636 = vmatmul.bf16.gmra.mxu2 %v16262_v8  ;;  %v13842_v4 = vld [vmem:[%s21884_s20 + $0x3f4] sm:$0xf] }
 0x64d   : > { %v18219_v41 = vpop.f32.mrf.mxu3 }
 0x64f   : > { %v6376_v54 = vpop.f32.mrf.mxu1  ;;  %v6405_v53 = vpop.f32.mrf.mxu2 }
 0x650   : > { %v18221_v6 = vadd.f32 %v6405_v53, %v6376_v54  ;;  %v13977_v54 = vld [vmem:[%s21884_s20 + $0x82c] sm:$0xf]  ;;  %v12395_v53 = vld [vmem:[%s21884_s20 + $0x830] sm:$0xf] }
 0x651   : > { %v6349_v9 = vpop.f32.mrf.mxu0 }
 0x652   : > { %22138 = vst [vmem:[#allocation187_spill] sm:$0xff] %v18221_v6  ;;  %v18224_v32 = vadd.f32 %v6349_v9, %v17985_v56  ;;  %6607 = vmatmul.bf16.gmra.mxu1 %v16248_v29  ;;  %6665 = vmatmul.bf16.gmra.mxu3 %v16248_v29  ;;  %v12389_v56 = vld [vmem:[%s21884_s20 + $0x86c] sm:$0xf0] }
 0x653   : > { %v12392_v9 = vor.u32 %v13977_v54, %v12389_v56  ;;  %v12321_v54 = vld [vmem:[%s21884_s20 + $0x7e4] sm:$0xf0] }
 0x654   : > { %22139 = vst [vmem:[#allocation188_spill] sm:$0xff] %v18224_v32  ;;  %v12327_v56 = vld [vmem:[%s21884_s20 + $0x7a8] sm:$0xf]  ;;  %v13850_v32 = vld [vmem:[%s21884_s20 + $0x430] sm:$0xf0] }
 0x655   : > { %v18228_v35 = vpop.f32.mrf.mxu3  ;;  %6787 = vmatpush.bf16.msra.mxu0 %v12392_v9 }
 0x657   : > { %v6378_v55 = vpop.f32.mrf.mxu1  ;;  %v6407_v49 = vpop.f32.mrf.mxu2 }
 0x658   : > { %v18230_v51 = vadd.f32 %v6407_v49, %v6378_v55  ;;  %v13986_v55 = vld [vmem:[%s21884_s20 + $0x870] sm:$0xf0]  ;;  %v13960_v49 = vld [vmem:[%s21884_s20 + $0x7a4] sm:$0xf] }
 0x659   : > { %v6448_v59 = vpop.f32.mrf.mxu0 }
 0x65a   : > { %22140 = vst [vmem:[#allocation189_spill] sm:$0xff] %v18230_v51  ;;  %v18233_v20 = vadd.f32 %v6448_v59, %v18039_v36  ;;  %v12396_v36 = vor.u32 %v13986_v55, %v12395_v53  ;;  %v13969_v53 = vld [vmem:[%s21884_s20 + $0x7e8] sm:$0xf0] }
 0x65b   : > { %v12328_v55 = vor.u32 %v13969_v53, %v12327_v56  ;;  %v13943_v53 = vld [vmem:[%s21884_s20 + $0x71c] sm:$0xf] }
 0x65c   : > { %22141 = vst [vmem:[#allocation190_spill] sm:$0xff] %v18233_v20  ;;  %6679 = vmatmul.bf16.vlgmr.msrb.gmra.mxu0 %v16153_v42  ;;  %6737 = vmatmul.bf16.vlgmr.msra.gmra.mxu2 %v16153_v42  ;;  %v12324_v20 = vor.u32 %v13960_v49, %v12321_v54 }
 0x65d   : > { %v18249_v59 = vpop.f32.mrf.mxu3  ;;  %6845 = vmatpush.bf16.msrb.mxu2 %v12396_v36  ;;  %v11851_v36 = vld [vmem:[%s21884_s20 + $0x3f0] sm:$0xf] }
 0x65e   : > { %6788 = vmatpush.bf16.msra.mxu0 %v12324_v20  ;;  %v11852_v54 = vor.u32 %v13850_v32, %v11851_v36  ;;  %v12253_v20 = vld [vmem:[%s21884_s20 + $0x75c] sm:$0xf0]  ;;  %v13952_v36 = vld [vmem:[%s21884_s20 + $0x760] sm:$0xf0] }
 0x65f   : > { %v6477_v51 = vpop.f32.mrf.mxu1  ;;  %v6506_v6 = vpop.f32.mrf.mxu2  ;;  %v12259_v32 = vld [vmem:[%s21884_s20 + $0x720] sm:$0xf] }
 0x660   : > { %v18263_v9 = vadd.f32 %v6506_v6, %v6477_v51  ;;  %v11853_v6 = vld [vmem:[%s21884_s20 + $0x434] sm:$0xf0]  ;;  %6816 = vmatpush.bf16.msrb.mxu1 %v11852_v54 }
 0x661   : > { %v6450_v49 = vpop.f32.mrf.mxu0  ;;  %v11856_v56 = vor.u32 %v13842_v4, %v11853_v6  ;;  %6846 = vmatpush.bf16.msrb.mxu2 %v12328_v55  ;;  %v12260_v4 = vor.u32 %v13952_v36, %v12259_v32  ;;  %v13833_v6 = vld [vmem:[%s21884_s20 + $0x3a8] sm:$0xf0]  ;;  %v13926_v32 = vld [vmem:[%s21884_s20 + $0x694] sm:$0xf]  ;;  %v12185_v36 = vld [vmem:[%s21884_s20 + $0x6d4] sm:$0xf0] }
 0x662   : > { %22142 = vst [vmem:[#allocation191_spill] sm:$0xff] %v18263_v9  ;;  %v18278_v51 = vadd.f32 %v6450_v49, %v18096_v58  ;;  %6708 = vmatmul.bf16.vlgmr.msra.gmra.mxu1 %v16120_v2  ;;  %6766 = vmatmul.bf16.vlgmr.msra.gmra.mxu3 %v16120_v2  ;;  %v12256_v58 = vor.u32 %v13943_v53, %v12253_v20  ;;  %v11783_v49 = vld [vmem:[%s21884_s20 + $0x368] sm:$0xf]  ;;  %v13825_v55 = vld [vmem:[%s21884_s20 + $0x36c] sm:$0xf] }
 0x663   : > { %6874 = vmatpush.bf16.msrb.mxu3 %v11856_v56  ;;  %v11784_v53 = vor.u32 %v13833_v6, %v11783_v49  ;;  %v11785_v56 = vld [vmem:[%s21884_s20 + $0x3ac] sm:$0xf0]  ;;  %v12191_v9 = vld [vmem:[%s21884_s20 + $0x698] sm:$0xf]  ;;  %v12188_v49 = vor.u32 %v13926_v32, %v12185_v36  ;;  %v13935_v6 = vld [vmem:[%s21884_s20 + $0x6d8] sm:$0xf0]  ;;  %v11716_v32 = vor.u32 %v13816_v43, %v11715_v46 }
 0x664   : > { %22143 = vst [vmem:[#allocation192_spill] sm:$0xff] %v18278_v51  ;;  %6789 = vmatpush.bf16.msra.mxu0 %v12256_v58  ;;  %v11788_v20 = vor.u32 %v13825_v55, %v11785_v56  ;;  %v12192_v56 = vor.u32 %v13935_v6, %v12191_v9  ;;  %v13909_v36 = vld [vmem:[%s21884_s20 + $0x60c] sm:$0xf]  ;;  %v12123_v43 = vld [vmem:[%s21884_s20 + $0x610] sm:$0xf] }
 0x665   : > { %v18303_v54 = vpop.f32.mrf.mxu3  ;;  %6847 = vmatpush.bf16.msrb.mxu2 %v12260_v4  ;;  %6817 = vmatpush.bf16.msrb.mxu1 %v11784_v53  ;;  %v13808_v4 = vld [vmem:[%s21884_s20 + $0x2e4] sm:$0xf]  ;;  %v11647_v6 = vld [vmem:[%s21884_s20 + $0x258] sm:$0xf] }
 0x667   : > { %v6479_v51 = vpop.f32.mrf.mxu1  ;;  %v6508_v58 = vpop.f32.mrf.mxu2  ;;  %6875 = vmatpush.bf16.msrb.mxu3 %v11788_v20 }
 0x668   : > { %v18320_v55 = vadd.f32 %v6508_v58, %v6479_v51  ;;  %6790 = vmatpush.bf16.msra.mxu0 %v12188_v49  ;;  %v11717_v51 = vld [vmem:[%s21884_s20 + $0x324] sm:$0xf0]  ;;  %v12117_v58 = vld [vmem:[%s21884_s20 + $0x64c] sm:$0xf0] }
 0x669   : > { %v6453_v53 = vpop.f32.mrf.mxu0  ;;  %v11720_v20 = vor.u32 %v13808_v4, %v11717_v51  ;;  %6848 = vmatpush.bf16.msrb.mxu2 %v12192_v56  ;;  %6818 = vmatpush.bf16.msrb.mxu1 %v11716_v32  ;;  %v12120_v46 = vor.u32 %v13909_v36, %v12117_v58  ;;  %v13799_v4 = vld [vmem:[%s21884_s20 + $0x298] sm:$0xf0]  ;;  %v11649_v51 = vld [vmem:[%s21884_s20 + $0x29c] sm:$0xf0]  ;;  %v13892_v58 = vld [vmem:[%s21884_s20 + $0x584] sm:$0xf] }
 0x66a   : > { %22144 = vst [vmem:[#allocation193_spill] sm:$0xff] %v18320_v55  ;;  %v18335_v9 = vadd.f32 %v6453_v53, %v18153_v62  ;;  %v13918_v62 = vld [vmem:[%s21884_s20 + $0x650] sm:$0xf0]  ;;  %v13791_v56 = vld [vmem:[%s21884_s20 + $0x25c] sm:$0xf]  ;;  %v11648_v32 = vor.u32 %v13799_v4, %v11647_v6 }
 0x66b   : > { %v12124_v49 = vor.u32 %v13918_v62, %v12123_v43  ;;  %6876 = vmatpush.bf16.msrb.mxu3 %v11720_v20  ;;  %v11652_v36 = vor.u32 %v13791_v56, %v11649_v51  ;;  %v12049_v43 = vld [vmem:[%s21884_s20 + $0x5c4] sm:$0xf0]  ;;  %v13901_v4 = vld [vmem:[%s21884_s20 + $0x5c8] sm:$0xf0]  ;;  %v11579_v55 = vld [vmem:[%s21884_s20 + $0x1d0] sm:$0xf] }
 0x66c   : > { %22145 = vst [vmem:[#allocation194_spill] sm:$0xff] %v18335_v9  ;;  %6684 = vmatmul.bf16.gmra.mxu0 %v16201_v31  ;;  %6742 = vmatmul.bf16.gmra.mxu2 %v16201_v31  ;;  %v12055_v62 = vld [vmem:[%s21884_s20 + $0x588] sm:$0xf]  ;;  %v12052_v6 = vor.u32 %v13892_v58, %v12049_v43  ;;  %v13782_v9 = vld [vmem:[%s21884_s20 + $0x210] sm:$0xf0] }
 0x66d   : > { %v18360_v53 = vpop.f32.mrf.mxu3  ;;  %6791 = vmatpush.bf16.msra.mxu0 %v12120_v46  ;;  %6849 = vmatpush.bf16.msrb.mxu2 %v12124_v49  ;;  %v12056_v51 = vor.u32 %v13901_v4, %v12055_v62  ;;  %v13774_v49 = vld [vmem:[%s21884_s20 + $0x1d4] sm:$0xf]  ;;  %v11580_v58 = vor.u32 %v13782_v9, %v11579_v55  ;;  %v11581_v43 = vld [vmem:[%s21884_s20 + $0x214] sm:$0xf0]  ;;  %v11981_v55 = vld [vmem:[%s21884_s20 + $0x53c] sm:$0xf0] }
 0x66e   : > { %6819 = vmatpush.bf16.msrb.mxu1 %v11648_v32  ;;  %v11987_v9 = vld [vmem:[%s21884_s20 + $0x500] sm:$0xf]  ;;  %v11511_v4 = vld [vmem:[%s21884_s20 + $0x148] sm:$0xf] }
 0x66f   : > { %v6482_v20 = vpop.f32.mrf.mxu1  ;;  %v6511_v46 = vpop.f32.mrf.mxu2  ;;  %6877 = vmatpush.bf16.msrb.mxu3 %v11652_v36  ;;  %v13884_v36 = vld [vmem:[%s21884_s20 + $0x540] sm:$0xf0] }
 0x670   : > { %v18377_v56 = vadd.f32 %v6511_v46, %v6482_v20  ;;  %v11584_v20 = vor.u32 %v13774_v49, %v11581_v43  ;;  %v13875_v46 = vld [vmem:[%s21884_s20 + $0x4fc] sm:$0xf]  ;;  %v13765_v49 = vld [vmem:[%s21884_s20 + $0x188] sm:$0xf0]  ;;  %v11513_v43 = vld [vmem:[%s21884_s20 + $0x18c] sm:$0xf0] }
 0x671   : > { %v6455_v32 = vpop.f32.mrf.mxu0  ;;  %6792 = vmatpush.bf16.msra.mxu0 %v12052_v6  ;;  %6850 = vmatpush.bf16.msrb.mxu2 %v12056_v51  ;;  %v11988_v6 = vor.u32 %v13884_v36, %v11987_v9  ;;  %v11913_v9 = vld [vmem:[%s21884_s20 + $0x4b4] sm:$0xf0] }
 0x672   : > { %22146 = vst [vmem:[#allocation195_spill] sm:$0xff] %v18377_v56  ;;  %v18392_v62 = vadd.f32 %v6455_v32, %v18198_v5  ;;  %6713 = vmatmul.bf16.gmra.mxu1 %v16192_v22  ;;  %6771 = vmatmul.bf16.gmra.mxu3 %v16192_v22  ;;  %v11984_v5 = vor.u32 %v13875_v46, %v11981_v55  ;;  %v13757_v32 = vld [vmem:[%s21884_s20 + $0x14c] sm:$0xf]  ;;  %v13858_v55 = vld [vmem:[%s21884_s20 + $0x474] sm:$0xf] }
 0x673   : > { %6820 = vmatpush.bf16.msrb.mxu1 %v11580_v58  ;;  %6878 = vmatpush.bf16.msrb.mxu3 %v11584_v20  ;;  %v11512_v58 = vor.u32 %v13765_v49, %v11511_v4  ;;  %v11516_v46 = vor.u32 %v13757_v32, %v11513_v43  ;;  %v11919_v36 = vld [vmem:[%s21884_s20 + $0x478] sm:$0xf]  ;;  %v11916_v4 = vor.u32 %v13858_v55, %v11913_v9  ;;  %v13867_v49 = vld [vmem:[%s21884_s20 + $0x4b8] sm:$0xf0]  ;;  %v11443_v56 = vld [vmem:[%s21884_s20 + $0xc0] sm:$0xf] }
 0x674   : > { %22147 = vst [vmem:[#allocation196_spill] sm:$0xff] %v18392_v62  ;;  %v11920_v43 = vor.u32 %v13867_v49, %v11919_v36  ;;  %v13748_v62 = vld [vmem:[%s21884_s20 + $0x100] sm:$0xf0]  ;;  %v11445_v9 = vld [vmem:[%s21884_s20 + $0x104] sm:$0xf0] }
 0x675   : > { %v18417_v51 = vpop.f32.mrf.mxu3  ;;  %6793 = vmatpush.bf16.msra.mxu0 %v11984_v5  ;;  %6851 = vmatpush.bf16.msrb.mxu2 %v11988_v6  ;;  %v13740_v6 = vld [vmem:[%s21884_s20 + $0xc4] sm:$0xf]  ;;  %v11444_v55 = vor.u32 %v13748_v62, %v11443_v56  ;;  %v13731_v56 = vld [vmem:[%s21884_s20 + $0x78] sm:$0xf0] }
 0x677   : > { %v6484_v20 = vpop.f32.mrf.mxu1  ;;  %v6513_v5 = vpop.f32.mrf.mxu2  ;;  %6821 = vmatpush.bf16.msrb.mxu1 %v11512_v58  ;;  %6879 = vmatpush.bf16.msrb.mxu3 %v11516_v46  ;;  %v11375_v46 = vld [vmem:[%s21884_s20 + $0x38] sm:$0xf] }
 0x678   : > { %v18434_v32 = vadd.f32 %v6513_v5, %v6484_v20  ;;  %v11448_v20 = vor.u32 %v13740_v6, %v11445_v9  ;;  %v11376_v5 = vor.u32 %v13731_v56, %v11375_v46 }
 0x679   : > { %v6458_v58 = vpop.f32.mrf.mxu0  ;;  %6794 = vmatpush.bf16.msra.mxu0 %v11916_v4  ;;  %6852 = vmatpush.bf16.msrb.mxu2 %v11920_v43  ;;  %v11377_v4 = vld [vmem:[%s21884_s20 + $0x7c] sm:$0xf0] }
 0x67a   : > { %22148 = vst [vmem:[#allocation197_spill] sm:$0xff] %v18434_v32  ;;  %v18449_v36 = vadd.f32 %v6458_v58, %v18210_v23  ;;  %v13723_v23 = vld [vmem:[%s21884_s20 + $0x3c] sm:$0xf] }
 0x67b   : > { %6822 = vmatpush.bf16.msrb.mxu1 %v11444_v55  ;;  %6880 = vmatpush.bf16.msrb.mxu3 %v11448_v20  ;;  %v11380_v49 = vor.u32 %v13723_v23, %v11377_v4 }
 0x67c   : > { %22149 = vst [vmem:[#allocation198_spill] sm:$0xff] %v18449_v36  ;;  %6689 = vmatmul.bf16.gmra.mxu0 %v16225_v3  ;;  %6747 = vmatmul.bf16.gmra.mxu2 %v16225_v3  ;;  %v13817_v36 = vld [vmem:[%s21884_s20 + $0x328] sm:$0xf0] }
 0x67d   : > { %v18462_v62 = vpop.f32.mrf.mxu3 }
 0x67f   : > { %v6487_v43 = vpop.f32.mrf.mxu1  ;;  %v6516_v6 = vpop.f32.mrf.mxu2  ;;  %6823 = vmatpush.bf16.msrb.mxu1 %v11376_v5  ;;  %6881 = vmatpush.bf16.msrb.mxu3 %v11380_v49 }
 0x680   : > { %v18467_v58 = vadd.f32 %v6516_v6, %v6487_v43 }
 0x681   : > { %v6460_v55 = vpop.f32.mrf.mxu0 }
 0x682   : > { %22150 = vst [vmem:[#allocation199_spill] sm:$0xff] %v18467_v58  ;;  %v18470_v9 = vadd.f32 %v6460_v55, %v18219_v41  ;;  %6718 = vmatmul.bf16.gmra.mxu1 %v16216_v12  ;;  %6776 = vmatmul.bf16.gmra.mxu3 %v16216_v12 }
 0x684   : > { %22151 = vst [vmem:[#allocation200_spill] sm:$0xff] %v18470_v9  ;;  %v11723_v9 = vld [vmem:[%s21884_s20 + $0x2e8] sm:$0xf] }
 0x685   : > { %v18474_v20 = vpop.f32.mrf.mxu3 }
 0x687   : > { %v6489_v46 = vpop.f32.mrf.mxu1  ;;  %v6518_v56 = vpop.f32.mrf.mxu2 }
 0x688   : > { %v18476_v32 = vadd.f32 %v6518_v56, %v6489_v46 }
 0x689   : > { %v6463_v23 = vpop.f32.mrf.mxu0 }
 0x68a   : > { %22152 = vst [vmem:[#allocation201_spill] sm:$0xff] %v18476_v32  ;;  %v18479_v5 = vadd.f32 %v6463_v23, %v18228_v35 }
 0x68c   : > { %22153 = vst [vmem:[#allocation202_spill] sm:$0xff] %v18479_v5  ;;  %6694 = vmatmul.bf16.gmra.mxu0 %v16262_v8  ;;  %6752 = vmatmul.bf16.gmra.mxu2 %v16262_v8  ;;  %v12883_v5 = vld [vmem:[%s21883_s19 + $0x3b8] sm:$0xf] }
 0x68d   : > { %v18483_v41 = vpop.f32.mrf.mxu3 }
 0x68f   : > { %v6492_v4 = vpop.f32.mrf.mxu1  ;;  %v6521_v49 = vpop.f32.mrf.mxu2 }
 0x690   : > { %v18485_v43 = vadd.f32 %v6521_v49, %v6492_v4  ;;  %v13978_v4 = vld [vmem:[%s21884_s20 + $0x834] sm:$0xf]  ;;  %v12403_v49 = vld [vmem:[%s21884_s20 + $0x838] sm:$0xf] }
 0x691   : > { %v6465_v6 = vpop.f32.mrf.mxu0 }
 0x692   : > { %22154 = vst [vmem:[#allocation203_spill] sm:$0xff] %v18485_v43  ;;  %v18488_v55 = vadd.f32 %v6465_v6, %v18249_v59  ;;  %6723 = vmatmul.bf16.gmra.mxu1 %v16248_v29  ;;  %6781 = vmatmul.bf16.gmra.mxu3 %v16248_v29  ;;  %v12397_v59 = vld [vmem:[%s21884_s20 + $0x874] sm:$0xf0] }
 0x693   : > { %v12400_v6 = vor.u32 %v13978_v4, %v12397_v59  ;;  %v12329_v4 = vld [vmem:[%s21884_s20 + $0x7ec] sm:$0xf0] }
 0x694   : > { %22155 = vst [vmem:[#allocation204_spill] sm:$0xff] %v18488_v55  ;;  %v12335_v59 = vld [vmem:[%s21884_s20 + $0x7b0] sm:$0xf]  ;;  %v13851_v55 = vld [vmem:[%s21884_s20 + $0x438] sm:$0xf0] }
 0x695   : > { %v18492_v35 = vpop.f32.mrf.mxu3  ;;  %6903 = vmatpush.bf16.msrb.mxu0 %v12400_v6 }
 0x697   : > { %v6494_v46 = vpop.f32.mrf.mxu1  ;;  %v6523_v56 = vpop.f32.mrf.mxu2 }
 0x698   : > { %v18494_v23 = vadd.f32 %v6523_v56, %v6494_v46  ;;  %v13987_v46 = vld [vmem:[%s21884_s20 + $0x878] sm:$0xf0]  ;;  %v13961_v56 = vld [vmem:[%s21884_s20 + $0x7ac] sm:$0xf] }
 0x699   : > { %v6564_v32 = vpop.f32.mrf.mxu0 }
 0x69a   : > { %22156 = vst [vmem:[#allocation205_spill] sm:$0xff] %v18494_v23  ;;  %v18497_v58 = vadd.f32 %v6564_v32, %v18303_v54  ;;  %v12404_v54 = vor.u32 %v13987_v46, %v12403_v49  ;;  %v13970_v49 = vld [vmem:[%s21884_s20 + $0x7f0] sm:$0xf0] }
 0x69b   : > { %v12336_v46 = vor.u32 %v13970_v49, %v12335_v59  ;;  %v13944_v49 = vld [vmem:[%s21884_s20 + $0x724] sm:$0xf] }
 0x69c   : > { %22157 = vst [vmem:[#allocation206_spill] sm:$0xff] %v18497_v58  ;;  %6795 = vmatmul.bf16.vlgmr.msra.gmra.mxu0 %v16153_v42  ;;  %6853 = vmatmul.bf16.vlgmr.msrb.gmra.mxu2 %v16153_v42  ;;  %v12332_v58 = vor.u32 %v13961_v56, %v12329_v4 }
 0x69d   : > { %v18513_v32 = vpop.f32.mrf.mxu3  ;;  %6961 = vmatpush.bf16.msra.mxu2 %v12404_v54  ;;  %v11859_v54 = vld [vmem:[%s21884_s20 + $0x3f8] sm:$0xf] }
 0x69e   : > { %6904 = vmatpush.bf16.msrb.mxu0 %v12332_v58  ;;  %v11860_v4 = vor.u32 %v13851_v55, %v11859_v54  ;;  %v12261_v58 = vld [vmem:[%s21884_s20 + $0x764] sm:$0xf0]  ;;  %v13953_v54 = vld [vmem:[%s21884_s20 + $0x768] sm:$0xf0] }
 0x69f   : > { %v6593_v23 = vpop.f32.mrf.mxu1  ;;  %v6622_v43 = vpop.f32.mrf.mxu2  ;;  %v12267_v55 = vld [vmem:[%s21884_s20 + $0x728] sm:$0xf] }
 0x6a0   : > { %v18527_v6 = vadd.f32 %v6622_v43, %v6593_v23  ;;  %v13639_v43 = vld [vmem:[%s21883_s19 + $0x3f8] sm:$0xf0]  ;;  %6932 = vmatpush.bf16.msra.mxu1 %v11860_v4 }
 0x6a1   : > { %v6566_v56 = vpop.f32.mrf.mxu0  ;;  %v12884_v59 = vor.u32 %v13639_v43, %v12883_v5  ;;  %6962 = vmatpush.bf16.msra.mxu2 %v12336_v46  ;;  %v12268_v5 = vor.u32 %v13953_v54, %v12267_v55  ;;  %v13834_v43 = vld [vmem:[%s21884_s20 + $0x3b0] sm:$0xf0]  ;;  %v12815_v46 = vld [vmem:[%s21883_s19 + $0x330] sm:$0xf]  ;;  %v13927_v55 = vld [vmem:[%s21884_s20 + $0x69c] sm:$0xf] }
 0x6a2   : > { %22158 = vst [vmem:[#allocation207_spill] sm:$0xff] %v18527_v6  ;;  %v18542_v23 = vadd.f32 %v6566_v56, %v18360_v53  ;;  %6824 = vmatmul.bf16.vlgmr.msrb.gmra.mxu1 %v16120_v2  ;;  %6882 = vmatmul.bf16.vlgmr.msrb.gmra.mxu3 %v16120_v2  ;;  %v12264_v53 = vor.u32 %v13944_v49, %v12261_v58  ;;  %v11791_v56 = vld [vmem:[%s21884_s20 + $0x370] sm:$0xf]  ;;  %v12193_v54 = vld [vmem:[%s21884_s20 + $0x6dc] sm:$0xf0] }
 0x6a3   : > { %8034 = vmatpush.bf16.msra.mxu3 %v12884_v59  ;;  %v11792_v49 = vor.u32 %v13834_v43, %v11791_v56  ;;  %v13622_v59 = vld [vmem:[%s21883_s19 + $0x370] sm:$0xf0]  ;;  %v12199_v6 = vld [vmem:[%s21884_s20 + $0x6a0] sm:$0xf]  ;;  %v12196_v56 = vor.u32 %v13927_v55, %v12193_v54  ;;  %v13936_v43 = vld [vmem:[%s21884_s20 + $0x6e0] sm:$0xf0]  ;;  %v11724_v55 = vor.u32 %v13817_v36, %v11723_v9 }
 0x6a4   : > { %22159 = vst [vmem:[#allocation208_spill] sm:$0xff] %v18542_v23  ;;  %6905 = vmatpush.bf16.msrb.mxu0 %v12264_v53  ;;  %v12816_v58 = vor.u32 %v13622_v59, %v12815_v46  ;;  %v12200_v59 = vor.u32 %v13936_v43, %v12199_v6  ;;  %v13910_v54 = vld [vmem:[%s21884_s20 + $0x614] sm:$0xf]  ;;  %v12131_v36 = vld [vmem:[%s21884_s20 + $0x618] sm:$0xf] }
 0x6a5   : > { %v18567_v4 = vpop.f32.mrf.mxu3  ;;  %6963 = vmatpush.bf16.msra.mxu2 %v12268_v5  ;;  %6933 = vmatpush.bf16.msra.mxu1 %v11792_v49  ;;  %v12747_v5 = vld [vmem:[%s21883_s19 + $0x2a8] sm:$0xf]  ;;  %v11655_v43 = vld [vmem:[%s21884_s20 + $0x260] sm:$0xf] }
 0x6a7   : > { %v6595_v23 = vpop.f32.mrf.mxu1  ;;  %v6624_v53 = vpop.f32.mrf.mxu2  ;;  %8035 = vmatpush.bf16.msra.mxu3 %v12816_v58 }
 0x6a8   : > { %v18584_v46 = vadd.f32 %v6624_v53, %v6595_v23  ;;  %6906 = vmatpush.bf16.msrb.mxu0 %v12196_v56  ;;  %v13605_v23 = vld [vmem:[%s21883_s19 + $0x2e8] sm:$0xf0]  ;;  %v12125_v53 = vld [vmem:[%s21884_s20 + $0x654] sm:$0xf0] }
 0x6a9   : > { %v6569_v49 = vpop.f32.mrf.mxu0  ;;  %v12748_v58 = vor.u32 %v13605_v23, %v12747_v5  ;;  %6964 = vmatpush.bf16.msra.mxu2 %v12200_v59  ;;  %6934 = vmatpush.bf16.msra.mxu1 %v11724_v55  ;;  %v12128_v9 = vor.u32 %v13910_v54, %v12125_v53  ;;  %v13800_v5 = vld [vmem:[%s21884_s20 + $0x2a0] sm:$0xf0]  ;;  %v12679_v59 = vld [vmem:[%s21883_s19 + $0x220] sm:$0xf]  ;;  %v13893_v53 = vld [vmem:[%s21884_s20 + $0x58c] sm:$0xf] }
 0x6aa   : > { %22160 = vst [vmem:[#allocation209_spill] sm:$0xff] %v18584_v46  ;;  %v18599_v6 = vadd.f32 %v6569_v49, %v18417_v51  ;;  %v13919_v51 = vld [vmem:[%s21884_s20 + $0x658] sm:$0xf0]  ;;  %v11656_v55 = vor.u32 %v13800_v5, %v11655_v43  ;;  %v13588_v23 = vld [vmem:[%s21883_s19 + $0x260] sm:$0xf0] }
 0x6ab   : > { %v12132_v56 = vor.u32 %v13919_v51, %v12131_v36  ;;  %8036 = vmatpush.bf16.msra.mxu3 %v12748_v58  ;;  %v12680_v54 = vor.u32 %v13588_v23, %v12679_v59  ;;  %v12057_v36 = vld [vmem:[%s21884_s20 + $0x5cc] sm:$0xf0]  ;;  %v13902_v5 = vld [vmem:[%s21884_s20 + $0x5d0] sm:$0xf0]  ;;  %v11587_v46 = vld [vmem:[%s21884_s20 + $0x1d8] sm:$0xf] }
 0x6ac   : > { %22161 = vst [vmem:[#allocation210_spill] sm:$0xff] %v18599_v6  ;;  %6800 = vmatmul.bf16.gmra.mxu0 %v16201_v31  ;;  %6858 = vmatmul.bf16.gmra.mxu2 %v16201_v31  ;;  %v12063_v51 = vld [vmem:[%s21884_s20 + $0x590] sm:$0xf]  ;;  %v12060_v43 = vor.u32 %v13893_v53, %v12057_v36  ;;  %v13783_v6 = vld [vmem:[%s21884_s20 + $0x218] sm:$0xf0] }
 0x6ad   : > { %v18624_v49 = vpop.f32.mrf.mxu3  ;;  %6907 = vmatpush.bf16.msrb.mxu0 %v12128_v9  ;;  %6965 = vmatpush.bf16.msra.mxu2 %v12132_v56  ;;  %v12064_v23 = vor.u32 %v13902_v5, %v12063_v51  ;;  %v12611_v56 = vld [vmem:[%s21883_s19 + $0x198] sm:$0xf]  ;;  %v11588_v53 = vor.u32 %v13783_v6, %v11587_v46  ;;  %v13571_v36 = vld [vmem:[%s21883_s19 + $0x1d8] sm:$0xf0]  ;;  %v11989_v46 = vld [vmem:[%s21884_s20 + $0x544] sm:$0xf0] }
 0x6ae   : > { %6935 = vmatpush.bf16.msra.mxu1 %v11656_v55  ;;  %v11995_v6 = vld [vmem:[%s21884_s20 + $0x508] sm:$0xf]  ;;  %v11519_v5 = vld [vmem:[%s21884_s20 + $0x150] sm:$0xf] }
 0x6af   : > { %v6598_v58 = vpop.f32.mrf.mxu1  ;;  %v6627_v9 = vpop.f32.mrf.mxu2  ;;  %8037 = vmatpush.bf16.msra.mxu3 %v12680_v54  ;;  %v13885_v54 = vld [vmem:[%s21884_s20 + $0x548] sm:$0xf0] }
 0x6b0   : > { %v18641_v59 = vadd.f32 %v6627_v9, %v6598_v58  ;;  %v12612_v58 = vor.u32 %v13571_v36, %v12611_v56  ;;  %v13876_v9 = vld [vmem:[%s21884_s20 + $0x504] sm:$0xf]  ;;  %v13766_v56 = vld [vmem:[%s21884_s20 + $0x190] sm:$0xf0] }
 0x6b1   : > { %v6571_v55 = vpop.f32.mrf.mxu0  ;;  %6908 = vmatpush.bf16.msrb.mxu0 %v12060_v43  ;;  %6966 = vmatpush.bf16.msra.mxu2 %v12064_v23  ;;  %v11996_v43 = vor.u32 %v13885_v54, %v11995_v6  ;;  %v13554_v36 = vld [vmem:[%s21883_s19 + $0x150] sm:$0xf0]  ;;  %v11921_v6 = vld [vmem:[%s21884_s20 + $0x4bc] sm:$0xf0] }
 0x6b2   : > { %22162 = vst [vmem:[#allocation211_spill] sm:$0xff] %v18641_v59  ;;  %v18656_v51 = vadd.f32 %v6571_v55, %v18462_v62  ;;  %6829 = vmatmul.bf16.gmra.mxu1 %v16192_v22  ;;  %6887 = vmatmul.bf16.gmra.mxu3 %v16192_v22  ;;  %v11992_v62 = vor.u32 %v13876_v9, %v11989_v46  ;;  %v12543_v55 = vld [vmem:[%s21883_s19 + $0x110] sm:$0xf]  ;;  %v13859_v46 = vld [vmem:[%s21884_s20 + $0x47c] sm:$0xf] }
 0x6b3   : > { %6936 = vmatpush.bf16.msra.mxu1 %v11588_v53  ;;  %8038 = vmatpush.bf16.msra.mxu3 %v12612_v58  ;;  %v11520_v53 = vor.u32 %v13766_v56, %v11519_v5  ;;  %v12544_v9 = vor.u32 %v13554_v36, %v12543_v55  ;;  %v11927_v54 = vld [vmem:[%s21884_s20 + $0x480] sm:$0xf]  ;;  %v11924_v5 = vor.u32 %v13859_v46, %v11921_v6  ;;  %v13868_v56 = vld [vmem:[%s21884_s20 + $0x4c0] sm:$0xf0]  ;;  %v11451_v59 = vld [vmem:[%s21884_s20 + $0xc8] sm:$0xf] }
 0x6b4   : > { %22163 = vst [vmem:[#allocation212_spill] sm:$0xff] %v18656_v51  ;;  %v11928_v36 = vor.u32 %v13868_v56, %v11927_v54  ;;  %v13749_v51 = vld [vmem:[%s21884_s20 + $0x108] sm:$0xf0] }
 0x6b5   : > { %v18681_v23 = vpop.f32.mrf.mxu3  ;;  %6909 = vmatpush.bf16.msrb.mxu0 %v11992_v62  ;;  %6967 = vmatpush.bf16.msra.mxu2 %v11996_v43  ;;  %v12475_v43 = vld [vmem:[%s21883_s19 + $0x88] sm:$0xf]  ;;  %v11452_v46 = vor.u32 %v13749_v51, %v11451_v59  ;;  %v13537_v6 = vld [vmem:[%s21883_s19 + $0xc8] sm:$0xf0]  ;;  %v13732_v59 = vld [vmem:[%s21884_s20 + $0x80] sm:$0xf0] }
 0x6b7   : > { %v6600_v58 = vpop.f32.mrf.mxu1  ;;  %v6629_v62 = vpop.f32.mrf.mxu2  ;;  %6937 = vmatpush.bf16.msra.mxu1 %v11520_v53  ;;  %8039 = vmatpush.bf16.msra.mxu3 %v12544_v9  ;;  %v11383_v9 = vld [vmem:[%s21884_s20 + $0x40] sm:$0xf] }
 0x6b8   : > { %v18698_v55 = vadd.f32 %v6629_v62, %v6600_v58  ;;  %v12476_v58 = vor.u32 %v13537_v6, %v12475_v43  ;;  %v11384_v62 = vor.u32 %v13732_v59, %v11383_v9 }
 0x6b9   : > { %v6574_v53 = vpop.f32.mrf.mxu0  ;;  %6910 = vmatpush.bf16.msrb.mxu0 %v11924_v5  ;;  %6968 = vmatpush.bf16.msra.mxu2 %v11928_v36  ;;  %v13520_v5 = vld [vmem:[%s21883_s19 + $0x40] sm:$0xf0] }
 0x6ba   : > { %22164 = vst [vmem:[#allocation213_spill] sm:$0xff] %v18698_v55  ;;  %v18713_v54 = vadd.f32 %v6574_v53, %v18474_v20  ;;  %v12407_v20 = vld [vmem:[%s21883_s19] sm:$0xf] }
 0x6bb   : > { %6938 = vmatpush.bf16.msra.mxu1 %v11452_v46  ;;  %8040 = vmatpush.bf16.msra.mxu3 %v12476_v58  ;;  %v12408_v56 = vor.u32 %v13520_v5, %v12407_v20  ;;  %v18752_v5 = vld [vmem:[%s22170_s1] sm:$0x3]  ;;  %s13997_s1 = smul.u32 1088, %s14271_s6  ;;  %s10106_s6 = sshll.u32 %s19612_s30, 4  ;;  %s10107_s6 = int_to_ptr.vmem [resolvable:$true] %s10106_s6 }
 0x6bc   : > { %22165 = vst [vmem:[#allocation214_spill] sm:$0xff] %v18713_v54  ;;  %6805 = vmatmul.bf16.gmra.mxu0 %v16225_v3  ;;  %6863 = vmatmul.bf16.gmra.mxu2 %v16225_v3 }
 0x6bd   : > { %v18726_v51 = vpop.f32.mrf.mxu3  ;;  %s10105_s10 = scalar_lea.hbm %s21888_s24, %s13997_s1 }
 0x6be   : > { %s10108_s2 = sshll.u32 %s10105_s10, 4  ;;  %s10109_s2 = int_to_ptr.hbm [resolvable:$true] %s10108_s2 }
 0x6bf   : > { %v6603_v36 = vpop.f32.mrf.mxu1  ;;  %v6632_v43 = vpop.f32.mrf.mxu2  ;;  %6939 = vmatpush.bf16.msra.mxu1 %v11384_v62  ;;  %8041 = vmatpush.bf16.msra.mxu3 %v12408_v56  ;;  %s14073_s7 = sshra.s32 %s10109_s2, 4  ;;  %s14074_s7 = int_to_ptr.hbm [resolvable:$true] %s14073_s7 }
 0x6c0   : > { %v18731_v53 = vadd.f32 %v6632_v43, %v6603_v36  ;;  %s14075_s28 = scalar_lea.hbm %s14074_s7, 1088  ;;  %p14080_p0 = scmp.lt.s32.totalorder %s14074_s7, %s21888_s24 }
 0x6c1   : > { %v6576_v46 = vpop.f32.mrf.mxu0  ;;  %p14076_p11 = scmp.ne.s32.totalorder %s14074_s7, %s14075_s28  ;;  %p14081_p1 = scmp.lt.s32.totalorder %s14079_s3, %s14075_s28 }
 0x6c2   : > { %22166 = vst [vmem:[#allocation215_spill] sm:$0xff] %v18731_v53  ;;  %v18734_v6 = vadd.f32 %v6576_v46, %v18483_v41  ;;  %6834 = vmatmul.bf16.gmra.mxu1 %v16216_v12  ;;  %6892 = vmatmul.bf16.gmra.mxu3 %v16216_v12 }
 0x6c3   : > { %p14077_p12 = pnand %p14076_p11, %p14288_p5  ;;  %p14082_p2 = por %p14081_p1, %p14080_p0 }
 0x6c4   : > { %22167 = vst [vmem:[#allocation216_spill] sm:$0xff] %v18734_v6 }
 0x6c5   : > { %v18738_v58 = vpop.f32.mrf.mxu3  ;;  %p14078_p13 = pneg %p14077_p12 }
 0x6c7   : > { %v6605_v9 = vpop.f32.mrf.mxu1  ;;  %v6634_v59 = vpop.f32.mrf.mxu2  ;;  %p14083_p3 = pnand %p14082_p2, %p14078_p13 }
 0x6c8   : > { %v18740_v55 = vadd.f32 %v6634_v59, %v6605_v9  ;;  %v18757_v9 = vperm.slane %v18752_v5, 0  ;;  %v18767_v59 = vld [vmem:[%s22173_s4] sm:$0x3] }
 0x6c9   : > { %v6579_v20 = vpop.f32.mrf.mxu0 }
 0x6ca   : > { %22168 = vst [vmem:[#allocation217_spill] sm:$0xff] %v18740_v55  ;;  %v18743_v62 = vadd.f32 %v6579_v20, %v18492_v35  ;;  %v22174_v20 = vld [vmem:[#allocation16_spill] sm:$0xff] }
 0x6cc   : > { %22169 = vst [vmem:[#allocation218_spill] sm:$0xff] %v18743_v62  ;;  %6810 = vmatmul.bf16.gmra.mxu0 %v16262_v8  ;;  %6868 = vmatmul.bf16.gmra.mxu2 %v16262_v8 }
 0x6cd   : > { %v18747_v41 = vpop.f32.mrf.mxu3 }
 0x6cf   : > { %v6608_v56 = vpop.f32.mrf.mxu1  ;;  %v6637_v36 = vpop.f32.mrf.mxu2 }
 0x6d0   : > { %v18754_v43 = vadd.f32 %v6637_v36, %v6608_v56  ;;  %v869_v56 = vmul.f32 %v18757_v9, %v22174_v20  ;;  %v22175_v36 = vld [vmem:[#allocation18_spill] sm:$0xff] }
 0x6d1   : > { %v6581_v46 = vpop.f32.mrf.mxu0 }
 0x6d2   : > { %22171 = vst [vmem:[#allocation219_spill] sm:$0xff] %v18754_v43  ;;  %v18760_v35 = vadd.f32 %v6581_v46, %v18513_v32  ;;  %6839 = vmatmul.bf16.gmra.mxu1 %v16248_v29  ;;  %6897 = vmatmul.bf16.gmra.mxu3 %v16248_v29  ;;  %v871_v43 = vmul.f32 %v18757_v9, %v22175_v36  ;;  %v18776_v32 = vperm.slane %v18767_v59, 0 }
 0x6d4   : > { %22172 = vst [vmem:[#allocation220_spill] sm:$0xff] %v18760_v35  ;;  %v891_v35 = vadd.f32 %v18776_v32, %v869_v56  ;;  %v893_v62 = vadd.f32 %v18776_v32, %v871_v43  ;;  %v22181_v43 = vld [vmem:[#allocation20_spill] sm:$0xff] }
 0x6d5   : > { %v18773_v55 = vpop.f32.mrf.mxu3 }
 0x6d6   : > { %v907_v20 = vmax.f32 %v891_v35, 0.0  ;;  %v909_v27 = vmax.f32 %v893_v62, 0.0  ;;  %v873_v35 = vmul.f32 %v18757_v9, %v22181_v43 }
 0x6d7   : > { %v6610_v46 = vpop.f32.mrf.mxu1  ;;  %v6639_v53 = vpop.f32.mrf.mxu2 }
 0x6d8   : > { %v18780_v6 = vadd.f32 %v6639_v53, %v6610_v46  ;;  %v18789_v17 = vpack.c.bf16 %v909_v27, %v907_v20  ;;  %v13631_v53 = vld [vmem:[%s21883_s19 + $0x3bc] sm:$0xf]  ;;  %v13640_v27 = vld [vmem:[%s21883_s19 + $0x400] sm:$0xf0]  ;;  %v22182_v46 = vld [vmem:[#allocation22_spill] sm:$0xff] }
 0x6d9   : > { %v6680_v54 = vpop.f32.mrf.mxu0  ;;  %v875_v20 = vmul.f32 %v18757_v9, %v22182_v46 }
 0x6da   : > { %22176 = vst [vmem:[#allocation16_spill] sm:$0xff] %v18780_v6  ;;  %v18783_v33 = vadd.f32 %v6680_v54, %v18567_v4  ;;  %v12885_v4 = vld [vmem:[%s21883_s19 + $0x3fc] sm:$0xf0]  ;;  %v13597_v6 = vld [vmem:[%s21883_s19 + $0x2ac] sm:$0xf] }
 0x6db   : > { %22178 = vst [vmem:[#allocation221_spill] sm:$0xff] %v18789_v17  ;;  %v12888_v62 = vor.u32 %v13631_v53, %v12885_v4  ;;  %v13614_v53 = vld [vmem:[%s21883_s19 + $0x334] sm:$0xf] }
 0x6dc   : > { %22177 = vst [vmem:[#allocation18_spill] sm:$0xff] %v18783_v33  ;;  %6911 = vmatmul.bf16.vlgmr.msrb.gmra.mxu0 %v16153_v42  ;;  %6969 = vmatmul.bf16.vlgmr.msra.gmra.mxu2 %v16153_v42  ;;  %v12891_v42 = vld [vmem:[%s21883_s19 + $0x3c0] sm:$0xf]  ;;  %v13529_v33 = vld [vmem:[%s21883_s19 + $0x8c] sm:$0xf] }
 0x6dd   : > { %v18787_v36 = vpop.f32.mrf.mxu3  ;;  %8092 = vmatpush.bf16.msrb.mxu1 %v12888_v62 }
 0x6df   : > { %v6709_v15 = vpop.f32.mrf.mxu1  ;;  %v6738_v45 = vpop.f32.mrf.mxu2 }
 0x6e0   : > { %v18791_v56 = vadd.f32 %v6738_v45, %v6709_v15  ;;  %v12892_v45 = vor.u32 %v13640_v27, %v12891_v42  ;;  %v895_v27 = vadd.f32 %v18776_v32, %v873_v35  ;;  %v12755_v35 = vld [vmem:[%s21883_s19 + $0x2b0] sm:$0xf] }
 0x6e1   : > { %v6682_v54 = vpop.f32.mrf.mxu0 }
 0x6e2   : > { %22179 = vst [vmem:[#allocation222_spill] sm:$0xff] %v18791_v56  ;;  %v18806_v15 = vadd.f32 %v6682_v54, %v18624_v49  ;;  %6940 = vmatmul.bf16.vlgmr.msra.gmra.mxu1 %v16120_v2  ;;  %8042 = vmatmul.bf16.vlgmr.msra.gmra.mxu3 %v18789_v17  ;;  %v12817_v49 = vld [vmem:[%s21883_s19 + $0x374] sm:$0xf0]  ;;  %v13623_v54 = vld [vmem:[%s21883_s19 + $0x378] sm:$0xf0] }
 0x6e3   : > { %8150 = vmatpush.bf16.msrb.mxu3 %v12892_v45  ;;  %v12823_v2 = vld [vmem:[%s21883_s19 + $0x338] sm:$0xf]  ;;  %v12820_v42 = vor.u32 %v13614_v53, %v12817_v49  ;;  %v897_v45 = vadd.f32 %v18776_v32, %v875_v20  ;;  %v12749_v53 = vld [vmem:[%s21883_s19 + $0x2ec] sm:$0xf0] }
 0x6e4   : > { %22180 = vst [vmem:[#allocation223_spill] sm:$0xff] %v18806_v15  ;;  %v12824_v62 = vor.u32 %v13623_v54, %v12823_v2  ;;  %v12752_v20 = vor.u32 %v13597_v6, %v12749_v53  ;;  %v13606_v2 = vld [vmem:[%s21883_s19 + $0x2f0] sm:$0xf0]  ;;  %v13699_v6 = vld [vmem:[%s21883_s19 + $0x5dc] sm:$0xf] }
 0x6e5   : > { %v18823_v4 = vpop.f32.mrf.mxu3  ;;  %8093 = vmatpush.bf16.msrb.mxu1 %v12820_v42  ;;  %v12756_v54 = vor.u32 %v13606_v2, %v12755_v35  ;;  %v913_v53 = vmax.f32 %v897_v45, 0.0  ;;  %v12687_v45 = vld [vmem:[%s21883_s19 + $0x228] sm:$0xf]  ;;  %v12613_v15 = vld [vmem:[%s21883_s19 + $0x1dc] sm:$0xf0] }
 0x6e7   : > { %v6711_v43 = vpop.f32.mrf.mxu1  ;;  %v6740_v46 = vpop.f32.mrf.mxu2  ;;  %8151 = vmatpush.bf16.msrb.mxu3 %v12824_v62  ;;  %v13155_v62 = vld [vmem:[%s21883_s19 + $0x5d8] sm:$0xf] }
 0x6e8   : > { %v18830_v56 = vadd.f32 %v6740_v46, %v6711_v43  ;;  %v13707_v43 = vld [vmem:[%s21883_s19 + $0x618] sm:$0xf0]  ;;  %v911_v46 = vmax.f32 %v895_v27, 0.0  ;;  %v12681_v27 = vld [vmem:[%s21883_s19 + $0x264] sm:$0xf0] }
 0x6e9   : > { %v6685_v49 = vpop.f32.mrf.mxu0  ;;  %8094 = vmatpush.bf16.msrb.mxu1 %v12752_v20 }
 0x6ea   : > { %22183 = vst [vmem:[#allocation20_spill] sm:$0xff] %v18830_v56  ;;  %v18845_v42 = vadd.f32 %v6685_v49, %v18681_v23  ;;  %v13156_v56 = vor.u32 %v13707_v43, %v13155_v62  ;;  %v13157_v23 = vld [vmem:[%s21883_s19 + $0x61c] sm:$0xf0]  ;;  %v13580_v49 = vld [vmem:[%s21883_s19 + $0x224] sm:$0xf] }
 0x6eb   : > { %v13160_v35 = vor.u32 %v13699_v6, %v13157_v23  ;;  %8152 = vmatpush.bf16.msrb.mxu3 %v12756_v54  ;;  %v12684_v2 = vor.u32 %v13580_v49, %v12681_v27  ;;  %v13087_v43 = vld [vmem:[%s21883_s19 + $0x550] sm:$0xf]  ;;  %v13690_v6 = vld [vmem:[%s21883_s19 + $0x590] sm:$0xf0]  ;;  %v18887_v27 = vpack.c.bf16 %v913_v53, %v911_v46  ;;  %v13572_v53 = vld [vmem:[%s21883_s19 + $0x1e0] sm:$0xf0] }
 0x6ec   : > { %22184 = vst [vmem:[#allocation22_spill] sm:$0xff] %v18845_v42  ;;  %6916 = vmatmul.bf16.gmra.mxu0 %v16201_v31  ;;  %6974 = vmatmul.bf16.gmra.mxu2 %v16201_v31  ;;  %v13589_v31 = vld [vmem:[%s21883_s19 + $0x268] sm:$0xf0]  ;;  %v13682_v54 = vld [vmem:[%s21883_s19 + $0x554] sm:$0xf]  ;;  %v13088_v49 = vor.u32 %v13690_v6, %v13087_v43 }
 0x6ed   : > { %v18870_v20 = vpop.f32.mrf.mxu3  ;;  %8067 = vmatpush.bf16.msra.mxu0 %v13156_v56  ;;  %8125 = vmatpush.bf16.msrb.mxu2 %v13160_v35  ;;  %v12688_v62 = vor.u32 %v13589_v31, %v12687_v45  ;;  %v13089_v35 = vld [vmem:[%s21883_s19 + $0x594] sm:$0xf0]  ;;  %v13563_v42 = vld [vmem:[%s21883_s19 + $0x19c] sm:$0xf] }
 0x6ee   : > { %8095 = vmatpush.bf16.msrb.mxu1 %v12684_v2  ;;  %v13092_v31 = vor.u32 %v13682_v54, %v13089_v35  ;;  %v12619_v2 = vld [vmem:[%s21883_s19 + $0x1a0] sm:$0xf]  ;;  %v12616_v46 = vor.u32 %v13563_v42, %v12613_v15  ;;  %v13673_v15 = vld [vmem:[%s21883_s19 + $0x508] sm:$0xf0]  ;;  %v13021_v35 = vld [vmem:[%s21883_s19 + $0x50c] sm:$0xf0] }
 0x6ef   : > { %v6714_v56 = vpop.f32.mrf.mxu1  ;;  %v6743_v23 = vpop.f32.mrf.mxu2  ;;  %8153 = vmatpush.bf16.msrb.mxu3 %v12688_v62  ;;  %v12620_v54 = vor.u32 %v13572_v53, %v12619_v2  ;;  %v13665_v42 = vld [vmem:[%s21883_s19 + $0x4cc] sm:$0xf]  ;;  %v22187_v62 = vld [vmem:[#allocation24_spill] sm:$0xff]  ;;  %v12545_v53 = vld [vmem:[%s21883_s19 + $0x154] sm:$0xf0] }
 0x6f0   : > { %v18889_v45 = vadd.f32 %v6743_v23, %v6714_v56  ;;  %v13019_v56 = vld [vmem:[%s21883_s19 + $0x4c8] sm:$0xf]  ;;  %v22188_v23 = vld [vmem:[#allocation26_spill] sm:$0xff]  ;;  %v13024_v2 = vor.u32 %v13665_v42, %v13021_v35  ;;  %v12951_v42 = vld [vmem:[%s21883_s19 + $0x440] sm:$0xf] }
 0x6f1   : > { %v6687_v43 = vpop.f32.mrf.mxu0  ;;  %8068 = vmatpush.bf16.msra.mxu0 %v13088_v49  ;;  %8126 = vmatpush.bf16.msrb.mxu2 %v13092_v31  ;;  %v13020_v49 = vor.u32 %v13673_v15, %v13019_v56  ;;  %v13555_v56 = vld [vmem:[%s21883_s19 + $0x158] sm:$0xf0]  ;;  %v13648_v35 = vld [vmem:[%s21883_s19 + $0x444] sm:$0xf] }
 0x6f2   : > { %22185 = vst [vmem:[#allocation224_spill] sm:$0xff] %v18889_v45  ;;  %v18904_v6 = vadd.f32 %v6687_v43, %v18726_v51  ;;  %6945 = vmatmul.bf16.gmra.mxu1 %v16192_v22  ;;  %8047 = vmatmul.bf16.gmra.mxu3 %v18887_v27  ;;  %v877_v51 = vmul.f32 %v18757_v9, %v22187_v62  ;;  %v13546_v43 = vld [vmem:[%s21883_s19 + $0x114] sm:$0xf]  ;;  %v12551_v62 = vld [vmem:[%s21883_s19 + $0x118] sm:$0xf] }
 0x6f3   : > { %v879_v22 = vmul.f32 %v18757_v9, %v22188_v23  ;;  %8096 = vmatpush.bf16.msrb.mxu1 %v12616_v46  ;;  %8154 = vmatpush.bf16.msrb.mxu3 %v12620_v54  ;;  %v12548_v46 = vor.u32 %v13546_v43, %v12545_v53  ;;  %v12552_v15 = vor.u32 %v13555_v56, %v12551_v62  ;;  %v13656_v23 = vld [vmem:[%s21883_s19 + $0x480] sm:$0xf0]  ;;  %v12953_v56 = vld [vmem:[%s21883_s19 + $0x484] sm:$0xf0] }
 0x6f4   : > { %22186 = vst [vmem:[#allocation225_spill] sm:$0xff] %v18904_v6  ;;  %v899_v54 = vadd.f32 %v18776_v32, %v877_v51  ;;  %v12952_v62 = vor.u32 %v13656_v23, %v12951_v42  ;;  %v12956_v6 = vor.u32 %v13648_v35, %v12953_v56  ;;  %v12477_v51 = vld [vmem:[%s21883_s19 + $0xcc] sm:$0xf0]  ;;  %v13538_v42 = vld [vmem:[%s21883_s19 + $0xd0] sm:$0xf0] }
 0x6f5   : > { %v18933_v31 = vpop.f32.mrf.mxu3  ;;  %8069 = vmatpush.bf16.msra.mxu0 %v13020_v49  ;;  %v901_v49 = vadd.f32 %v18776_v32, %v879_v22  ;;  %8127 = vmatpush.bf16.msrb.mxu2 %v13024_v2  ;;  %v12483_v22 = vld [vmem:[%s21883_s19 + $0x90] sm:$0xf] }
 0x6f6   : > { %v12484_v35 = vor.u32 %v13538_v42, %v12483_v22  ;;  %v22193_v42 = vld [vmem:[#allocation14_spill] sm:$0xff] }
 0x6f7   : > { %v6716_v43 = vpop.f32.mrf.mxu1  ;;  %v6745_v53 = vpop.f32.mrf.mxu2  ;;  %8097 = vmatpush.bf16.msrb.mxu1 %v12548_v46  ;;  %8155 = vmatpush.bf16.msrb.mxu3 %v12552_v15  ;;  %v12480_v46 = vor.u32 %v13529_v33, %v12477_v51  ;;  %v13512_v33 = vld [vmem:[%s21883_s19 + $0x4] sm:$0xf]  ;;  %v12409_v15 = vld [vmem:[%s21883_s19 + $0x44] sm:$0xf0] }
 0x6f8   : > { %v18952_v45 = vadd.f32 %v6745_v53, %v6716_v43  ;;  %v915_v43 = vmax.f32 %v899_v54, 0.0  ;;  %v917_v53 = vmax.f32 %v901_v49, 0.0 }
 0x6f9   : > { %v6690_v2 = vpop.f32.mrf.mxu0  ;;  %8070 = vmatpush.bf16.msra.mxu0 %v12952_v62  ;;  %8128 = vmatpush.bf16.msrb.mxu2 %v12956_v6  ;;  %v12412_v6 = vor.u32 %v13512_v33, %v12409_v15  ;;  %v22194_v15 = vld [vmem:[#allocation12_spill] sm:$0xff] }
 0x6fa   : > { %22189 = vst [vmem:[#allocation24_spill] sm:$0xff] %v18952_v45  ;;  %v18967_v23 = vadd.f32 %v6690_v2, %v18738_v58  ;;  %v12415_v58 = vld [vmem:[%s21883_s19 + $0x8] sm:$0xf]  ;;  %v18985_v51 = vpack.c.bf16 %v917_v53, %v915_v43  ;;  %v881_v43 = vmul.f32 %v18757_v9, %v22194_v15  ;;  %v22198_v15 = vld [vmem:[#allocation19_spill] sm:$0xff]  ;;  %v13598_v45 = vld [vmem:[%s21883_s19 + $0x2b4] sm:$0xf] }
 0x6fb   : > { %8098 = vmatpush.bf16.msrb.mxu1 %v12480_v46  ;;  %8156 = vmatpush.bf16.msrb.mxu3 %v12484_v35  ;;  %v883_v35 = vmul.f32 %v18757_v9, %v22193_v42  ;;  %v22197_v42 = vld [vmem:[#allocation17_spill] sm:$0xff] }
 0x6fc   : > { %22190 = vst [vmem:[#allocation26_spill] sm:$0xff] %v18967_v23  ;;  %6921 = vmatmul.bf16.gmra.mxu0 %v16225_v3  ;;  %6979 = vmatmul.bf16.gmra.mxu2 %v16225_v3  ;;  %v13521_v3 = vld [vmem:[%s21883_s19 + $0x48] sm:$0xf0] }
 0x6fd   : > { %v18980_v54 = vpop.f32.mrf.mxu3  ;;  %v12416_v49 = vor.u32 %v13521_v3, %v12415_v58 }
 0x6ff   : > { %v6719_v62 = vpop.f32.mrf.mxu1  ;;  %v6748_v56 = vpop.f32.mrf.mxu2  ;;  %8099 = vmatpush.bf16.msrb.mxu1 %v12412_v6  ;;  %8157 = vmatpush.bf16.msrb.mxu3 %v12416_v49  ;;  %v905_v6 = vadd.f32 %v18776_v32, %v883_v35  ;;  %v903_v49 = vadd.f32 %v18776_v32, %v881_v43 }
 0x700   : > { %v18987_v22 = vadd.f32 %v6748_v56, %v6719_v62  ;;  %v19008_v62 = vperm.slane %v18752_v5, 1 }
 0x701   : > { %v6692_v2 = vpop.f32.mrf.mxu0  ;;  %v921_v56 = vmax.f32 %v905_v6, 0.0 }
 0x702   : > { %22191 = vst [vmem:[#allocation226_spill] sm:$0xff] %v18987_v22  ;;  %v18990_v46 = vadd.f32 %v6692_v2, %v18747_v41  ;;  %6950 = vmatmul.bf16.gmra.mxu1 %v16216_v12  ;;  %8052 = vmatmul.bf16.gmra.mxu3 %v18985_v51  ;;  %v919_v2 = vmax.f32 %v903_v49, 0.0  ;;  %v870_v35 = vmul.f32 %v19008_v62, %v22197_v42 }
 0x703   : > { %v872_v32 = vmul.f32 %v19008_v62, %v22198_v15 }
 0x704   : > { %22192 = vst [vmem:[#allocation227_spill] sm:$0xff] %v18990_v46  ;;  %v19021_v5 = vpack.c.bf16 %v921_v56, %v919_v2 }
 0x705   : > { %v18996_v33 = vpop.f32.mrf.mxu3 }
 0x707   : > { %v6721_v53 = vpop.f32.mrf.mxu1  ;;  %v6750_v58 = vpop.f32.mrf.mxu2 }
 0x708   : > { %v19001_v3 = vadd.f32 %v6750_v58, %v6721_v53  ;;  %v19019_v53 = vperm.slane %v18767_v59, 1 }
 0x709   : > { %v6695_v41 = vpop.f32.mrf.mxu0 }
 0x70a   : > { %22195 = vst [vmem:[#allocation14_spill] sm:$0xff] %v19001_v3  ;;  %v19005_v12 = vadd.f32 %v6695_v41, %v18773_v55  ;;  %v894_v41 = vadd.f32 %v19019_v53, %v872_v32 }
 0x70c   : > { %22196 = vst [vmem:[#allocation12_spill] sm:$0xff] %v19005_v12  ;;  %6926 = vmatmul.bf16.gmra.mxu0 %v16262_v8  ;;  %6984 = vmatmul.bf16.gmra.mxu2 %v16262_v8  ;;  %v892_v8 = vadd.f32 %v19019_v53, %v870_v35  ;;  %v910_v15 = vmax.f32 %v894_v41, 0.0  ;;  %v13634_v12 = vld [vmem:[%s21883_s19 + $0x3d4] sm:$0xf] }
 0x70d   : > { %v19012_v9 = vpop.f32.mrf.mxu3 }
 0x70e   : > { %v908_v59 = vmax.f32 %v892_v8, 0.0 }
 0x70f   : > { %v6724_v43 = vpop.f32.mrf.mxu1  ;;  %v6753_v55 = vpop.f32.mrf.mxu2 }
 0x710   : > { %v19023_v58 = vadd.f32 %v6753_v55, %v6724_v43 }
 0x711   : > { %v6697_v6 = vpop.f32.mrf.mxu0 }
 0x712   : > { %22199 = vst [vmem:[#allocation17_spill] sm:$0xff] %v19023_v58  ;;  %v19028_v49 = vadd.f32 %v6697_v6, %v18787_v36  ;;  %6955 = vmatmul.bf16.gmra.mxu1 %v16248_v29  ;;  %8057 = vmatmul.bf16.gmra.mxu3 %v19021_v5  ;;  %v19036_v58 = vpack.c.bf16 %v910_v15, %v908_v59  ;;  %v22204_v29 = vld [vmem:[#allocation21_spill] sm:$0xff]  ;;  %v22205_v6 = vld [vmem:[#allocation23_spill] sm:$0xff] }
 0x713   : > { %v874_v36 = vmul.f32 %v19008_v62, %v22204_v29  ;;  %v876_v8 = vmul.f32 %v19008_v62, %v22205_v6 }
 0x714   : > { %22200 = vst [vmem:[#allocation19_spill] sm:$0xff] %v19028_v49 }
 0x715   : > { %v19032_v42 = vpop.f32.mrf.mxu3  ;;  %22202 = vst [vmem:[#allocation229_spill] sm:$0xff] %v19036_v58 }
 0x717   : > { %v6726_v56 = vpop.f32.mrf.mxu1  ;;  %v6755_v2 = vpop.f32.mrf.mxu2 }
 0x718   : > { %v19034_v43 = vadd.f32 %v6755_v2, %v6726_v56  ;;  %v12893_v56 = vld [vmem:[%s21883_s19 + $0x404] sm:$0xf0] }
 0x719   : > { %v6796_v55 = vpop.f32.mrf.mxu0  ;;  %v12899_v2 = vld [vmem:[%s21883_s19 + $0x3c8] sm:$0xf] }
 0x71a   : > { %22201 = vst [vmem:[#allocation228_spill] sm:$0xff] %v19034_v43  ;;  %v19039_v35 = vadd.f32 %v6796_v55, %v18823_v4  ;;  %v13632_v4 = vld [vmem:[%s21883_s19 + $0x3c4] sm:$0xf]  ;;  %v896_v55 = vadd.f32 %v19019_v53, %v874_v36  ;;  %v13615_v36 = vld [vmem:[%s21883_s19 + $0x33c] sm:$0xf] }
 0x71b   : > { %v12896_v6 = vor.u32 %v13632_v4, %v12893_v56  ;;  %v12825_v4 = vld [vmem:[%s21883_s19 + $0x37c] sm:$0xf0] }
 0x71c   : > { %22203 = vst [vmem:[#allocation230_spill] sm:$0xff] %v19039_v35  ;;  %13221 = vmatmul.msk.bf16.vlgmr.msra.gmra.mxu0 %vm1101_vm1, %v19036_v58  ;;  %13225 = vmatmul.msk.bf16.vlgmr.msrb.gmra.mxu2 %vm1101_vm1, %v19036_v58  ;;  %v12828_v56 = vor.u32 %v13615_v36, %v12825_v4  ;;  %v12757_v36 = vld [vmem:[%s21883_s19 + $0x2f4] sm:$0xf0]  ;;  %v12621_v35 = vld [vmem:[%s21883_s19 + $0x1e4] sm:$0xf0] }
 0x71d   : > { %v19047_v32 = vpop.f32.mrf.mxu3  ;;  %8208 = vmatpush.bf16.msra.mxu1 %v12896_v6  ;;  %v12760_v4 = vor.u32 %v13598_v45, %v12757_v36  ;;  %v13700_v45 = vld [vmem:[%s21883_s19 + $0x5e4] sm:$0xf] }
 0x71f   : > { %v6825_v41 = vpop.f32.mrf.mxu1  ;;  %v6854_v59 = vpop.f32.mrf.mxu2 }
 0x720   : > { %v19051_v15 = vadd.f32 %v6854_v59, %v6825_v41  ;;  %v13641_v41 = vld [vmem:[%s21883_s19 + $0x408] sm:$0xf0]  ;;  %v898_v59 = vadd.f32 %v19019_v53, %v876_v8 }
 0x721   : > { %v6798_v29 = vpop.f32.mrf.mxu0  ;;  %v12900_v43 = vor.u32 %v13641_v41, %v12899_v2  ;;  %v13624_v2 = vld [vmem:[%s21883_s19 + $0x380] sm:$0xf0]  ;;  %8209 = vmatpush.bf16.msra.mxu1 %v12828_v56 }
 0x722   : > { %22206 = vst [vmem:[#allocation21_spill] sm:$0xff] %v19051_v15  ;;  %v19068_v15 = vadd.f32 %v6798_v29, %v18870_v20  ;;  %8100 = vmatmul.bf16.vlgmr.msrb.gmra.mxu1 %v18789_v17  ;;  %8158 = vmatmul.bf16.vlgmr.msrb.gmra.mxu3 %v18789_v17  ;;  %v12831_v20 = vld [vmem:[%s21883_s19 + $0x340] sm:$0xf]  ;;  %v914_v29 = vmax.f32 %v898_v59, 0.0 }
 0x723   : > { %8266 = vmatpush.bf16.msra.mxu3 %v12900_v43  ;;  %v912_v43 = vmax.f32 %v896_v55, 0.0  ;;  %v12832_v6 = vor.u32 %v13624_v2, %v12831_v20  ;;  %v12763_v55 = vld [vmem:[%s21883_s19 + $0x2b8] sm:$0xf] }
 0x724   : > { %22207 = vst [vmem:[#allocation23_spill] sm:$0xff] %v19068_v15  ;;  %v13095_v15 = vld [vmem:[%s21883_s19 + $0x558] sm:$0xf] }
 0x725   : > { %v19081_v8 = vpop.f32.mrf.mxu3  ;;  %v19100_v20 = vpack.c.bf16 %v914_v29, %v912_v43  ;;  %8210 = vmatpush.bf16.msra.mxu1 %v12760_v4  ;;  %v13581_v29 = vld [vmem:[%s21883_s19 + $0x22c] sm:$0xf] }
 0x726   : > { %v22210_v4 = vld [vmem:[#allocation25_spill] sm:$0xff] }
 0x727   : > { %v6827_v41 = vpop.f32.mrf.mxu1  ;;  %v6856_v3 = vpop.f32.mrf.mxu2  ;;  %8267 = vmatpush.bf16.msra.mxu3 %v12832_v6  ;;  %v13163_v6 = vld [vmem:[%s21883_s19 + $0x5e0] sm:$0xf] }
 0x728   : > { %v19086_v22 = vadd.f32 %v6856_v3, %v6827_v41  ;;  %v13607_v3 = vld [vmem:[%s21883_s19 + $0x2f8] sm:$0xf0]  ;;  %v13708_v41 = vld [vmem:[%s21883_s19 + $0x620] sm:$0xf0] }
 0x729   : > { %v6801_v59 = vpop.f32.mrf.mxu0  ;;  %v12764_v2 = vor.u32 %v13607_v3, %v12763_v55  ;;  %v13164_v36 = vor.u32 %v13708_v41, %v13163_v6  ;;  %v12689_v55 = vld [vmem:[%s21883_s19 + $0x26c] sm:$0xf0]  ;;  %v878_v3 = vmul.f32 %v19008_v62, %v22210_v4  ;;  %v22211_v6 = vld [vmem:[#allocation27_spill] sm:$0xff] }
 0x72a   : > { %22208 = vst [vmem:[#allocation231_spill] sm:$0xff] %v19086_v22  ;;  %v19103_v56 = vadd.f32 %v6801_v59, %v18933_v31  ;;  %v13165_v31 = vld [vmem:[%s21883_s19 + $0x624] sm:$0xf0]  ;;  %v12695_v59 = vld [vmem:[%s21883_s19 + $0x230] sm:$0xf]  ;;  %v880_v41 = vmul.f32 %v19008_v62, %v22211_v6 }
 0x72b   : > { %v13168_v43 = vor.u32 %v13700_v45, %v13165_v31  ;;  %8268 = vmatpush.bf16.msra.mxu3 %v12764_v2  ;;  %8183 = vmatpush.bf16.msrb.mxu0 %v13164_v36  ;;  %v12692_v45 = vor.u32 %v13581_v29, %v12689_v55  ;;  %v13590_v31 = vld [vmem:[%s21883_s19 + $0x270] sm:$0xf0]  ;;  %v13691_v4 = vld [vmem:[%s21883_s19 + $0x598] sm:$0xf0] }
 0x72c   : > { %22209 = vst [vmem:[#allocation232_spill] sm:$0xff] %v19103_v56  ;;  %13222 = vmatmul.msk.bf16.gmra.mxu0 %vm1101_vm1, %v19100_v20  ;;  %13226 = vmatmul.msk.bf16.gmra.mxu2 %vm1101_vm1, %v19100_v20  ;;  %v12696_v56 = vor.u32 %v13590_v31, %v12695_v59  ;;  %v13683_v2 = vld [vmem:[%s21883_s19 + $0x55c] sm:$0xf]  ;;  %v13096_v55 = vor.u32 %v13691_v4, %v13095_v15  ;;  %v13564_v31 = vld [vmem:[%s21883_s19 + $0x1a4] sm:$0xf] }
 0x72d   : > { %v19134_v22 = vpop.f32.mrf.mxu3  ;;  %8241 = vmatpush.bf16.msra.mxu2 %v13168_v43  ;;  %8211 = vmatpush.bf16.msra.mxu1 %v12692_v45  ;;  %v13097_v43 = vld [vmem:[%s21883_s19 + $0x59c] sm:$0xf0]  ;;  %v12627_v45 = vld [vmem:[%s21883_s19 + $0x1a8] sm:$0xf]  ;;  %v900_v15 = vadd.f32 %v19019_v53, %v878_v3  ;;  %v902_v4 = vadd.f32 %v19019_v53, %v880_v41  ;;  %v13027_v3 = vld [vmem:[%s21883_s19 + $0x4d0] sm:$0xf] }
 0x72e   : > { %v13100_v6 = vor.u32 %v13683_v2, %v13097_v43  ;;  %v12624_v2 = vor.u32 %v13564_v31, %v12621_v35  ;;  %v13674_v35 = vld [vmem:[%s21883_s19 + $0x510] sm:$0xf0]  ;;  %v12553_v31 = vld [vmem:[%s21883_s19 + $0x15c] sm:$0xf0] }
 0x72f   : > { %v6830_v36 = vpop.f32.mrf.mxu1  ;;  %v6859_v29 = vpop.f32.mrf.mxu2  ;;  %8269 = vmatpush.bf16.msra.mxu3 %v12696_v56  ;;  %8184 = vmatpush.bf16.msrb.mxu0 %v13096_v55  ;;  %v13666_v56 = vld [vmem:[%s21883_s19 + $0x4d4] sm:$0xf]  ;;  %v13547_v55 = vld [vmem:[%s21883_s19 + $0x11c] sm:$0xf] }
 0x730   : > { %v19151_v59 = vadd.f32 %v6859_v29, %v6830_v36  ;;  %v13573_v36 = vld [vmem:[%s21883_s19 + $0x1e8] sm:$0xf0] }
 0x731   : > { %v6803_v49 = vpop.f32.mrf.mxu0  ;;  %v12628_v43 = vor.u32 %v13573_v36, %v12627_v45  ;;  %8242 = vmatpush.bf16.msra.mxu2 %v13100_v6  ;;  %8212 = vmatpush.bf16.msra.mxu1 %v12624_v2  ;;  %v12559_v45 = vld [vmem:[%s21883_s19 + $0x120] sm:$0xf]  ;;  %v916_v6 = vmax.f32 %v900_v15, 0.0  ;;  %v918_v2 = vmax.f32 %v902_v4, 0.0  ;;  %v13649_v15 = vld [vmem:[%s21883_s19 + $0x44c] sm:$0xf] }
 0x732   : > { %22212 = vst [vmem:[#allocation25_spill] sm:$0xff] %v19151_v59  ;;  %v19168_v29 = vadd.f32 %v6803_v49, %v18980_v54  ;;  %8105 = vmatmul.bf16.gmra.mxu1 %v18887_v27  ;;  %8163 = vmatmul.bf16.gmra.mxu3 %v18887_v27  ;;  %v13028_v54 = vor.u32 %v13674_v35, %v13027_v3  ;;  %v13029_v49 = vld [vmem:[%s21883_s19 + $0x514] sm:$0xf0]  ;;  %v13556_v35 = vld [vmem:[%s21883_s19 + $0x160] sm:$0xf0] }
 0x733   : > { %v13032_v41 = vor.u32 %v13666_v56, %v13029_v49  ;;  %8270 = vmatpush.bf16.msra.mxu3 %v12628_v43  ;;  %v12556_v3 = vor.u32 %v13547_v55, %v12553_v31  ;;  %v12560_v56 = vor.u32 %v13556_v35, %v12559_v45  ;;  %v12959_v49 = vld [vmem:[%s21883_s19 + $0x448] sm:$0xf]  ;;  %v13657_v59 = vld [vmem:[%s21883_s19 + $0x488] sm:$0xf0]  ;;  %v12961_v55 = vld [vmem:[%s21883_s19 + $0x48c] sm:$0xf0] }
 0x734   : > { %22213 = vst [vmem:[#allocation27_spill] sm:$0xff] %v19168_v29  ;;  %8185 = vmatpush.bf16.msrb.mxu0 %v13028_v54  ;;  %v12960_v54 = vor.u32 %v13657_v59, %v12959_v49  ;;  %v12964_v45 = vor.u32 %v13649_v15, %v12961_v55  ;;  %v13530_v35 = vld [vmem:[%s21883_s19 + $0x94] sm:$0xf]  ;;  %v12485_v29 = vld [vmem:[%s21883_s19 + $0xd4] sm:$0xf0]  ;;  %v19224_v15 = vpack.c.bf16 %v918_v2, %v916_v6  ;;  %v22216_v55 = vld [vmem:[#allocation13_spill] sm:$0xff] }
 0x735   : > { %v19193_v36 = vpop.f32.mrf.mxu3  ;;  %8243 = vmatpush.bf16.msra.mxu2 %v13032_v41  ;;  %8213 = vmatpush.bf16.msra.mxu1 %v12556_v3  ;;  %v12491_v41 = vld [vmem:[%s21883_s19 + $0x98] sm:$0xf]  ;;  %v12488_v3 = vor.u32 %v13530_v35, %v12485_v29  ;;  %v13539_v49 = vld [vmem:[%s21883_s19 + $0xd8] sm:$0xf0]  ;;  %v13513_v29 = vld [vmem:[%s21883_s19 + $0xc] sm:$0xf] }
 0x736   : > { %v12417_v6 = vld [vmem:[%s21883_s19 + $0x4c] sm:$0xf0]  ;;  %v22217_v35 = vld [vmem:[#allocation15_spill] sm:$0xff] }
 0x737   : > { %v6832_v4 = vpop.f32.mrf.mxu1  ;;  %v6861_v43 = vpop.f32.mrf.mxu2  ;;  %8271 = vmatpush.bf16.msra.mxu3 %v12560_v56  ;;  %v12420_v56 = vor.u32 %v13513_v29, %v12417_v6 }
 0x738   : > { %v19210_v31 = vadd.f32 %v6861_v43, %v6832_v4  ;;  %8186 = vmatpush.bf16.msrb.mxu0 %v12960_v54  ;;  %v12492_v43 = vor.u32 %v13539_v49, %v12491_v41  ;;  %v13522_v54 = vld [vmem:[%s21883_s19 + $0x50] sm:$0xf0]  ;;  %v884_v41 = vmul.f32 %v19008_v62, %v22217_v35 }
 0x739   : > { %v6806_v59 = vpop.f32.mrf.mxu0  ;;  %8244 = vmatpush.bf16.msra.mxu2 %v12964_v45  ;;  %8214 = vmatpush.bf16.msra.mxu1 %v12488_v3  ;;  %v882_v45 = vmul.f32 %v19008_v62, %v22216_v55 }
 0x73a   : > { %22214 = vst [vmem:[#allocation233_spill] sm:$0xff] %v19210_v31  ;;  %v19227_v4 = vadd.f32 %v6806_v59, %v18996_v33  ;;  %v12423_v33 = vld [vmem:[%s21883_s19 + $0x10] sm:$0xf]  ;;  %v906_v29 = vadd.f32 %v19019_v53, %v884_v41 }
 0x73b   : > { %8272 = vmatpush.bf16.msra.mxu3 %v12492_v43  ;;  %v12424_v59 = vor.u32 %v13522_v54, %v12423_v33  ;;  %v904_v43 = vadd.f32 %v19019_v53, %v882_v45 }
 0x73c   : > { %22215 = vst [vmem:[#allocation234_spill] sm:$0xff] %v19227_v4  ;;  %13223 = vmatmul.msk.bf16.gmra.mxu0 %vm1101_vm1, %v19224_v15  ;;  %13227 = vmatmul.msk.bf16.gmra.mxu2 %vm1101_vm1, %v19224_v15  ;;  %v922_v54 = vmax.f32 %v906_v29, 0.0 }
 0x73d   : > { %v19242_v2 = vpop.f32.mrf.mxu3  ;;  %8215 = vmatpush.bf16.msra.mxu1 %v12420_v56  ;;  %v920_v33 = vmax.f32 %v904_v43, 0.0 }
 0x73f   : > { %v6835_v3 = vpop.f32.mrf.mxu1  ;;  %v6864_v49 = vpop.f32.mrf.mxu2  ;;  %8273 = vmatpush.bf16.msra.mxu3 %v12424_v59 }
 0x740   : > { %v19251_v31 = vadd.f32 %v6864_v49, %v6835_v3  ;;  %v19264_v3 = vpack.c.bf16 %v922_v54, %v920_v33 }
 0x741   : > { %v6808_v4 = vpop.f32.mrf.mxu0 }
 0x742   : > { %22218 = vst [vmem:[#allocation13_spill] sm:$0xff] %v19251_v31  ;;  %v19256_v6 = vadd.f32 %v6808_v4, %v19012_v9  ;;  %8110 = vmatmul.bf16.gmra.mxu1 %v18985_v51  ;;  %8168 = vmatmul.bf16.gmra.mxu3 %v18985_v51  ;;  %v12765_v31 = vld [vmem:[%s21883_s19 + $0x2fc] sm:$0xf0] }
 0x744   : > { %22219 = vst [vmem:[#allocation15_spill] sm:$0xff] %v19256_v6 }
 0x745   : > { %v19260_v62 = vpop.f32.mrf.mxu3 }
 0x747   : > { %v6837_v56 = vpop.f32.mrf.mxu1  ;;  %v6866_v55 = vpop.f32.mrf.mxu2 }
 0x748   : > { %v19262_v35 = vadd.f32 %v6866_v55, %v6837_v56 }
 0x749   : > { %v6811_v59 = vpop.f32.mrf.mxu0 }
 0x74a   : > { %22220 = vst [vmem:[#allocation235_spill] sm:$0xff] %v19262_v35  ;;  %v19267_v53 = vadd.f32 %v6811_v59, %v19032_v42  ;;  %v13599_v35 = vld [vmem:[%s21883_s19 + $0x2bc] sm:$0xf] }
 0x74c   : > { %22221 = vst [vmem:[#allocation236_spill] sm:$0xff] %v19267_v53  ;;  %13224 = vmatmul.msk.bf16.gmra.mxu0 %vm1101_vm1, %v19264_v3  ;;  %13228 = vmatmul.msk.bf16.gmra.mxu2 %vm1101_vm1, %v19264_v3 }
 0x74d   : > { %v19273_v9 = vpop.f32.mrf.mxu3 }
 0x74f   : > { %v6840_v4 = vpop.f32.mrf.mxu1  ;;  %v6869_v45 = vpop.f32.mrf.mxu2 }
 0x750   : > { %v19275_v41 = vadd.f32 %v6869_v45, %v6840_v4 }
 0x751   : > { %v6813_v49 = vpop.f32.mrf.mxu0 }
 0x752   : > { %22222 = vst [vmem:[#allocation237_spill] sm:$0xff] %v19275_v41  ;;  %v19278_v43 = vadd.f32 %v6813_v49, %v19047_v32  ;;  %8115 = vmatmul.bf16.gmra.mxu1 %v19021_v5  ;;  %8173 = vmatmul.bf16.gmra.mxu3 %v19021_v5  ;;  %v13633_v49 = vld [vmem:[%s21883_s19 + $0x3cc] sm:$0xf] }
 0x754   : > { %22223 = vst [vmem:[#allocation238_spill] sm:$0xff] %v19278_v43  ;;  %v12493_v43 = vld [vmem:[%s21883_s19 + $0xdc] sm:$0xf0] }
 0x755   : > { %v19282_v42 = vpop.f32.mrf.mxu3 }
 0x757   : > { %v6842_v29 = vpop.f32.mrf.mxu1  ;;  %v6871_v33 = vpop.f32.mrf.mxu2 }
 0x758   : > { %v19284_v54 = vadd.f32 %v6871_v33, %v6842_v29  ;;  %v12907_v29 = vld [vmem:[%s21883_s19 + $0x3d0] sm:$0xf] }
 0x759   : > { %v6912_v56 = vpop.f32.mrf.mxu0 }
 0x75a   : > { %22224 = vst [vmem:[#allocation239_spill] sm:$0xff] %v19284_v54  ;;  %v19287_v55 = vadd.f32 %v6912_v56, %v19081_v8  ;;  %v12901_v8 = vld [vmem:[%s21883_s19 + $0x40c] sm:$0xf0]  ;;  %v13642_v54 = vld [vmem:[%s21883_s19 + $0x410] sm:$0xf0] }
 0x75b   : > { %v12904_v56 = vor.u32 %v13633_v49, %v12901_v8  ;;  %v12833_v49 = vld [vmem:[%s21883_s19 + $0x384] sm:$0xf0] }
 0x75c   : > { %22225 = vst [vmem:[#allocation240_spill] sm:$0xff] %v19287_v55  ;;  %13229 = vmatmul.msk.bf16.vlgmr.msrb.gmra.mxu0 %vm1101_vm1, %v19036_v58  ;;  %13233 = vmatmul.msk.bf16.vlgmr.msra.gmra.mxu2 %vm1101_vm1, %v19036_v58  ;;  %v12629_v55 = vld [vmem:[%s21883_s19 + $0x1ec] sm:$0xf0] }
 0x75d   : > { %v19293_v32 = vpop.f32.mrf.mxu3  ;;  %8324 = vmatpush.bf16.msrb.mxu1 %v12904_v56 }
 0x75f   : > { %v6941_v59 = vpop.f32.mrf.mxu1  ;;  %v6970_v4 = vpop.f32.mrf.mxu2 }
 0x760   : > { %v19295_v45 = vadd.f32 %v6970_v4, %v6941_v59  ;;  %v12908_v4 = vor.u32 %v13642_v54, %v12907_v29  ;;  %v13625_v54 = vld [vmem:[%s21883_s19 + $0x388] sm:$0xf0] }
 0x761   : > { %v6914_v33 = vpop.f32.mrf.mxu0 }
 0x762   : > { %22226 = vst [vmem:[#allocation241_spill] sm:$0xff] %v19295_v45  ;;  %v19310_v59 = vadd.f32 %v6914_v33, %v19134_v22  ;;  %8216 = vmatmul.bf16.vlgmr.msra.gmra.mxu1 %v18789_v17  ;;  %8274 = vmatmul.bf16.vlgmr.msra.gmra.mxu3 %v18789_v17  ;;  %v13616_v45 = vld [vmem:[%s21883_s19 + $0x344] sm:$0xf]  ;;  %v12839_v22 = vld [vmem:[%s21883_s19 + $0x348] sm:$0xf] }
 0x763   : > { %8382 = vmatpush.bf16.msrb.mxu3 %v12908_v4  ;;  %v12836_v33 = vor.u32 %v13616_v45, %v12833_v49  ;;  %v12840_v29 = vor.u32 %v13625_v54, %v12839_v22  ;;  %v12771_v45 = vld [vmem:[%s21883_s19 + $0x2c0] sm:$0xf]  ;;  %v12768_v22 = vor.u32 %v13599_v35, %v12765_v31  ;;  %v13701_v31 = vld [vmem:[%s21883_s19 + $0x5ec] sm:$0xf] }
 0x764   : > { %22227 = vst [vmem:[#allocation242_spill] sm:$0xff] %v19310_v59  ;;  %v13565_v59 = vld [vmem:[%s21883_s19 + $0x1ac] sm:$0xf] }
 0x765   : > { %v19323_v8 = vpop.f32.mrf.mxu3  ;;  %8325 = vmatpush.bf16.msrb.mxu1 %v12836_v33  ;;  %v13608_v33 = vld [vmem:[%s21883_s19 + $0x300] sm:$0xf0] }
 0x767   : > { %v6943_v56 = vpop.f32.mrf.mxu1  ;;  %v6972_v4 = vpop.f32.mrf.mxu2  ;;  %8383 = vmatpush.bf16.msrb.mxu3 %v12840_v29  ;;  %v12772_v29 = vor.u32 %v13608_v33, %v12771_v45  ;;  %v12703_v33 = vld [vmem:[%s21883_s19 + $0x238] sm:$0xf] }
 0x768   : > { %v19328_v41 = vadd.f32 %v6972_v4, %v6943_v56  ;;  %v13171_v56 = vld [vmem:[%s21883_s19 + $0x5e8] sm:$0xf]  ;;  %v13709_v4 = vld [vmem:[%s21883_s19 + $0x628] sm:$0xf0] }
 0x769   : > { %v6917_v49 = vpop.f32.mrf.mxu0  ;;  %8326 = vmatpush.bf16.msrb.mxu1 %v12768_v22  ;;  %v13172_v35 = vor.u32 %v13709_v4, %v13171_v56  ;;  %v12697_v22 = vld [vmem:[%s21883_s19 + $0x274] sm:$0xf0] }
 0x76a   : > { %22228 = vst [vmem:[#allocation243_spill] sm:$0xff] %v19328_v41  ;;  %v19343_v54 = vadd.f32 %v6917_v49, %v19193_v36  ;;  %v13173_v36 = vld [vmem:[%s21883_s19 + $0x62c] sm:$0xf0]  ;;  %v13582_v49 = vld [vmem:[%s21883_s19 + $0x234] sm:$0xf] }
 0x76b   : > { %v13176_v45 = vor.u32 %v13701_v31, %v13173_v36  ;;  %8384 = vmatpush.bf16.msrb.mxu3 %v12772_v29  ;;  %8299 = vmatpush.bf16.msra.mxu0 %v13172_v35  ;;  %v12700_v4 = vor.u32 %v13582_v49, %v12697_v22  ;;  %v13591_v31 = vld [vmem:[%s21883_s19 + $0x278] sm:$0xf0]  ;;  %v13103_v41 = vld [vmem:[%s21883_s19 + $0x560] sm:$0xf]  ;;  %v13684_v29 = vld [vmem:[%s21883_s19 + $0x564] sm:$0xf] }
 0x76c   : > { %22229 = vst [vmem:[#allocation244_spill] sm:$0xff] %v19343_v54  ;;  %13230 = vmatmul.msk.bf16.gmra.mxu0 %vm1101_vm1, %v19100_v20  ;;  %13234 = vmatmul.msk.bf16.gmra.mxu2 %vm1101_vm1, %v19100_v20  ;;  %v12704_v36 = vor.u32 %v13591_v31, %v12703_v33  ;;  %v13692_v54 = vld [vmem:[%s21883_s19 + $0x5a0] sm:$0xf0] }
 0x76d   : > { %v19370_v56 = vpop.f32.mrf.mxu3  ;;  %8357 = vmatpush.bf16.msrb.mxu2 %v13176_v45  ;;  %8327 = vmatpush.bf16.msrb.mxu1 %v12700_v4  ;;  %v13104_v22 = vor.u32 %v13692_v54, %v13103_v41  ;;  %v13105_v45 = vld [vmem:[%s21883_s19 + $0x5a4] sm:$0xf0]  ;;  %v12635_v4 = vld [vmem:[%s21883_s19 + $0x1b0] sm:$0xf]  ;;  %v12632_v54 = vor.u32 %v13565_v59, %v12629_v55  ;;  %v13675_v55 = vld [vmem:[%s21883_s19 + $0x518] sm:$0xf0] }
 0x76e   : > { %v13108_v31 = vor.u32 %v13684_v29, %v13105_v45  ;;  %v13574_v29 = vld [vmem:[%s21883_s19 + $0x1f0] sm:$0xf0]  ;;  %v13035_v45 = vld [vmem:[%s21883_s19 + $0x4d8] sm:$0xf]  ;;  %v13667_v59 = vld [vmem:[%s21883_s19 + $0x4dc] sm:$0xf] }
 0x76f   : > { %v6946_v35 = vpop.f32.mrf.mxu1  ;;  %v6975_v49 = vpop.f32.mrf.mxu2  ;;  %8385 = vmatpush.bf16.msrb.mxu3 %v12704_v36  ;;  %8300 = vmatpush.bf16.msra.mxu0 %v13104_v22  ;;  %v13037_v36 = vld [vmem:[%s21883_s19 + $0x51c] sm:$0xf0] }
 0x770   : > { %v19387_v33 = vadd.f32 %v6975_v49, %v6946_v35  ;;  %v12636_v49 = vor.u32 %v13574_v29, %v12635_v4  ;;  %v13040_v22 = vor.u32 %v13667_v59, %v13037_v36  ;;  %v13548_v4 = vld [vmem:[%s21883_s19 + $0x124] sm:$0xf]  ;;  %v12567_v29 = vld [vmem:[%s21883_s19 + $0x128] sm:$0xf]  ;;  %v12967_v59 = vld [vmem:[%s21883_s19 + $0x450] sm:$0xf] }
 0x771   : > { %v6919_v41 = vpop.f32.mrf.mxu0  ;;  %8358 = vmatpush.bf16.msrb.mxu2 %v13108_v31  ;;  %8328 = vmatpush.bf16.msrb.mxu1 %v12632_v54  ;;  %v13658_v36 = vld [vmem:[%s21883_s19 + $0x490] sm:$0xf0] }
 0x772   : > { %22230 = vst [vmem:[#allocation245_spill] sm:$0xff] %v19387_v33  ;;  %v19402_v35 = vadd.f32 %v6919_v41, %v19242_v2  ;;  %8221 = vmatmul.bf16.gmra.mxu1 %v18887_v27  ;;  %8279 = vmatmul.bf16.gmra.mxu3 %v18887_v27  ;;  %v13036_v2 = vor.u32 %v13675_v55, %v13035_v45  ;;  %v12561_v41 = vld [vmem:[%s21883_s19 + $0x164] sm:$0xf0]  ;;  %v13557_v45 = vld [vmem:[%s21883_s19 + $0x168] sm:$0xf0] }
 0x773   : > { %8386 = vmatpush.bf16.msrb.mxu3 %v12636_v49  ;;  %v12564_v54 = vor.u32 %v13548_v4, %v12561_v41  ;;  %v12568_v55 = vor.u32 %v13557_v45, %v12567_v29  ;;  %v13650_v33 = vld [vmem:[%s21883_s19 + $0x454] sm:$0xf]  ;;  %v12968_v4 = vor.u32 %v13658_v36, %v12967_v59  ;;  %v12969_v41 = vld [vmem:[%s21883_s19 + $0x494] sm:$0xf0] }
 0x774   : > { %22231 = vst [vmem:[#allocation246_spill] sm:$0xff] %v19402_v35  ;;  %8301 = vmatpush.bf16.msra.mxu0 %v13036_v2  ;;  %v12972_v45 = vor.u32 %v13650_v33, %v12969_v41  ;;  %v13531_v35 = vld [vmem:[%s21883_s19 + $0x9c] sm:$0xf]  ;;  %v13540_v33 = vld [vmem:[%s21883_s19 + $0xe0] sm:$0xf0] }
 0x775   : > { %v19427_v31 = vpop.f32.mrf.mxu3  ;;  %8359 = vmatpush.bf16.msrb.mxu2 %v13040_v22  ;;  %8329 = vmatpush.bf16.msrb.mxu1 %v12564_v54  ;;  %v12499_v22 = vld [vmem:[%s21883_s19 + $0xa0] sm:$0xf]  ;;  %v12496_v59 = vor.u32 %v13531_v35, %v12493_v43  ;;  %v13514_v43 = vld [vmem:[%s21883_s19 + $0x14] sm:$0xf]  ;;  %v12425_v35 = vld [vmem:[%s21883_s19 + $0x54] sm:$0xf0] }
 0x777   : > { %v6948_v49 = vpop.f32.mrf.mxu1  ;;  %v6977_v2 = vpop.f32.mrf.mxu2  ;;  %8387 = vmatpush.bf16.msrb.mxu3 %v12568_v55 }
 0x778   : > { %v19444_v29 = vadd.f32 %v6977_v2, %v6948_v49  ;;  %8302 = vmatpush.bf16.msra.mxu0 %v12968_v4  ;;  %v12500_v49 = vor.u32 %v13540_v33, %v12499_v22  ;;  %v12428_v2 = vor.u32 %v13514_v43, %v12425_v35  ;;  %v13523_v4 = vld [vmem:[%s21883_s19 + $0x58] sm:$0xf0] }
 0x779   : > { %v6922_v54 = vpop.f32.mrf.mxu0  ;;  %8360 = vmatpush.bf16.msrb.mxu2 %v12972_v45  ;;  %8330 = vmatpush.bf16.msrb.mxu1 %v12496_v59 }
 0x77a   : > { %22232 = vst [vmem:[#allocation247_spill] sm:$0xff] %v19444_v29  ;;  %v19459_v36 = vadd.f32 %v6922_v54, %v19260_v62  ;;  %v12431_v62 = vld [vmem:[%s21883_s19 + $0x18] sm:$0xf] }
 0x77b   : > { %8388 = vmatpush.bf16.msrb.mxu3 %v12500_v49  ;;  %v12432_v41 = vor.u32 %v13523_v4, %v12431_v62 }
 0x77c   : > { %22233 = vst [vmem:[#allocation248_spill] sm:$0xff] %v19459_v36  ;;  %13231 = vmatmul.msk.bf16.gmra.mxu0 %vm1101_vm1, %v19224_v15  ;;  %13235 = vmatmul.msk.bf16.gmra.mxu2 %vm1101_vm1, %v19224_v15 }
 0x77d   : > { %v19474_v55 = vpop.f32.mrf.mxu3  ;;  %8331 = vmatpush.bf16.msrb.mxu1 %v12428_v2 }
 0x77f   : > { %v6951_v45 = vpop.f32.mrf.mxu1  ;;  %v6980_v22 = vpop.f32.mrf.mxu2  ;;  %8389 = vmatpush.bf16.msrb.mxu3 %v12432_v41 }
 0x780   : > { %v19479_v54 = vadd.f32 %v6980_v22, %v6951_v45 }
 0x781   : > { %v6924_v59 = vpop.f32.mrf.mxu0 }
 0x782   : > { %22234 = vst [vmem:[#allocation249_spill] sm:$0xff] %v19479_v54  ;;  %v19482_v33 = vadd.f32 %v6924_v59, %v19273_v9  ;;  %8226 = vmatmul.bf16.gmra.mxu1 %v18985_v51  ;;  %8284 = vmatmul.bf16.gmra.mxu3 %v18985_v51 }
 0x784   : > { %22235 = vst [vmem:[#allocation250_spill] sm:$0xff] %v19482_v33 }
 0x785   : > { %v19486_v49 = vpop.f32.mrf.mxu3 }
 0x787   : > { %v6953_v43 = vpop.f32.mrf.mxu1  ;;  %v6982_v35 = vpop.f32.mrf.mxu2 }
 0x788   : > { %v19488_v29 = vadd.f32 %v6982_v35, %v6953_v43  ;;  %v19511_v43 = vld [vmem:[%s21885_s21] sm:$0xff] }
 0x789   : > { %v6927_v62 = vpop.f32.mrf.mxu0  ;;  %22240 = vst [vmem:[#allocation255_spill] sm:$0xff] %v19511_v43  ;;  %v19516_v35 = vld [vmem:[%s21882_s18] sm:$0xff] }
 0x78a   : > { %22236 = vst [vmem:[#allocation251_spill] sm:$0xff] %v19488_v29  ;;  %v19491_v2 = vadd.f32 %v6927_v62, %v19282_v42  ;;  %v19526_v29 = vperm.slane %v19516_v35, 0 }
 0x78b   : > { %22241 = vst [vmem:[#allocation256_spill] sm:$0xff] %v19516_v35 }
 0x78c   : > { %22237 = vst [vmem:[#allocation252_spill] sm:$0xff] %v19491_v2  ;;  %13232 = vmatmul.msk.bf16.gmra.mxu0 %vm1101_vm1, %v19264_v3  ;;  %13236 = vmatmul.msk.bf16.gmra.mxu2 %vm1101_vm1, %v19264_v3 }
 0x78d   : > { %v19497_v9 = vpop.f32.mrf.mxu3 }
 0x78f   : > { %v6956_v4 = vpop.f32.mrf.mxu1  ;;  %v6985_v41 = vpop.f32.mrf.mxu2 }
 0x790   : > { %v19499_v45 = vadd.f32 %v6985_v41, %v6956_v4  ;;  %v8044_v4 = vadd.f32 %v19323_v8, %v17214_v63  ;;  %v19542_v63 = vld [vmem:[%s21887_s23] sm:$0xff] }
 0x791   : > { %v6929_v22 = vpop.f32.mrf.mxu0  ;;  %v19561_v53 = vperm.slane %v19542_v63, 0 }
 0x792   : > { %22238 = vst [vmem:[#allocation253_spill] sm:$0xff] %v19499_v45  ;;  %v19502_v59 = vadd.f32 %v6929_v22, %v19293_v32  ;;  %8231 = vmatmul.bf16.gmra.mxu1 %v19021_v5  ;;  %8289 = vmatmul.bf16.gmra.mxu3 %v19021_v5  ;;  %v19523_v22 = vperm.slane %v19511_v43, 0 }
 0x794   : > { %22239 = vst [vmem:[#allocation254_spill] sm:$0xff] %v19502_v59  ;;  %v19531_v59 = vld [vmem:[%s21886_s22] sm:$0xff] }
 0x795   : > { %v19506_v42 = vpop.f32.mrf.mxu3 }
 0x797   : > { %v6958_v62 = vpop.f32.mrf.mxu1  ;;  %v6987_v32 = vpop.f32.mrf.mxu2 }
 0x798   : > { %v19520_v41 = vadd.f32 %v6987_v32, %v6958_v62  ;;  %v19552_v32 = vperm.slane %v19516_v35, 1 }
 0x799   : > { %v8072_v45 = vpop.f32.mrf.mxu0 }
 0x79a   : > { %22242 = vst [vmem:[#allocation257_spill] sm:$0xff] %v19520_v41  ;;  %v8073_v54 = vadd.f32 %v8072_v45, %v8044_v4  ;;  %v3625_v45 = vadd.f32 %v16229_v14, %v19526_v29  ;;  %v8046_v4 = vadd.f32 %v19370_v56, %v17270_v34  ;;  %v12909_v34 = vld [vmem:[%s21883_s19 + $0x414] sm:$0xf0] }
 0x79b   : > { %v12915_v56 = vld [vmem:[%s21883_s19 + $0x3d8] sm:$0xf]  ;;  %v12912_v46 = vor.u32 %v13634_v12, %v12909_v34  ;;  %v13617_v12 = vld [vmem:[%s21883_s19 + $0x34c] sm:$0xf] }
 0x79c   : > { %v9060_v2 = vadd.f32 %v19523_v22, %v8073_v54  ;;  %13237 = vmatmul.msk.bf16.vlgmr.msra.gmra.mxu0 %vm1101_vm1, %v19036_v58  ;;  %13241 = vmatmul.msk.bf16.vlgmr.msrb.gmra.mxu2 %vm1101_vm1, %v19036_v58  ;;  %v19549_v54 = vperm.slane %v19531_v59, 0 }
 0x79d   : > { %v19544_v8 = vpop.f32.mrf.mxu3  ;;  %8440 = vmatpush.bf16.msra.mxu1 %v12912_v46  ;;  %v19606_v46 = vperm.slane %v19542_v63, 1 }
 0x79e   : > { %v9196_v62 = vmul.f32 0.1, %v9060_v2  ;;  %v19565_v2 = vperm.slane %v19511_v43, 1 }
 0x79f   : > { %v8101_v41 = vpop.f32.mrf.mxu1  ;;  %v8130_v33 = vpop.f32.mrf.mxu2 }
 0x7a0   : > { %v9332_v36 = vadd.f32 %v9196_v62, %v3625_v45  ;;  %v8102_v14 = vadd.f32 %v8101_v41, %v17441_v10  ;;  %v13643_v41 = vld [vmem:[%s21883_s19 + $0x418] sm:$0xf0] }
 0x7a1   : > { %v8074_v6 = vpop.f32.mrf.mxu0  ;;  %v12916_v23 = vor.u32 %v13643_v41, %v12915_v56  ;;  %v13626_v41 = vld [vmem:[%s21883_s19 + $0x390] sm:$0xf0] }
 0x7a2   : > { %v9508_v45 = vmul.f32 %v19549_v54, %v9332_v36  ;;  %v8131_v62 = vadd.f32 %v8130_v33, %v8102_v14  ;;  %v8075_v10 = vadd.f32 %v8074_v6, %v8046_v4  ;;  %8332 = vmatmul.bf16.vlgmr.msrb.gmra.mxu1 %v18789_v17  ;;  %8390 = vmatmul.bf16.vlgmr.msrb.gmra.mxu3 %v18789_v17  ;;  %v12841_v4 = vld [vmem:[%s21883_s19 + $0x38c] sm:$0xf0] }
 0x7a3   : > { %v3654_v36 = vadd.f32 %v16240_v48, %v19552_v32  ;;  %v3627_v6 = vadd.f32 %v16245_v30, %v19526_v29  ;;  %8498 = vmatpush.bf16.msra.mxu3 %v12916_v23  ;;  %v12847_v48 = vld [vmem:[%s21883_s19 + $0x350] sm:$0xf]  ;;  %v19601_v30 = vperm.slane %v19531_v59, 1  ;;  %v8049_v23 = vadd.f32 %v19427_v31, %v17326_v50  ;;  %v13600_v31 = vld [vmem:[%s21883_s19 + $0x2c4] sm:$0xf] }
 0x7a4   : > { %v9684_v58 = vadd.f32 %v19561_v53, %v9508_v45  ;;  %v9061_v35 = vadd.f32 %v19565_v2, %v8131_v62  ;;  %v9077_v43 = vadd.f32 %v19523_v22, %v8075_v10  ;;  %v12844_v10 = vor.u32 %v13617_v12, %v12841_v4  ;;  %v12773_v12 = vld [vmem:[%s21883_s19 + $0x304] sm:$0xf0] }
 0x7a5   : > { %v19589_v33 = vpop.f32.mrf.mxu3  ;;  %v12848_v17 = vor.u32 %v13626_v41, %v12847_v48  ;;  %v12779_v4 = vld [vmem:[%s21883_s19 + $0x2c8] sm:$0xf]  ;;  %v13710_v41 = vld [vmem:[%s21883_s19 + $0x630] sm:$0xf0] }
 0x7a6   : > { %v9820_v14 = vmax.f32 %v9684_v58, 0.0  ;;  %v9197_v34 = vmul.f32 0.1, %v9061_v35  ;;  %v9213_v56 = vmul.f32 0.1, %v9077_v43  ;;  %8441 = vmatpush.bf16.msra.mxu1 %v12844_v10 }
 0x7a7   : > { %v8103_v45 = vpop.f32.mrf.mxu1  ;;  %v8132_v62 = vpop.f32.mrf.mxu2  ;;  %8499 = vmatpush.bf16.msra.mxu3 %v12848_v17  ;;  %v13179_v10 = vld [vmem:[%s21883_s19 + $0x5f0] sm:$0xf]  ;;  %v13702_v17 = vld [vmem:[%s21883_s19 + $0x5f4] sm:$0xf] }
 0x7a8   : > { %9956 = vst [vmem:[%s19612_s30] sm:$0xff] %v9820_v14  ;;  %v9333_v58 = vadd.f32 %v9197_v34, %v3654_v36  ;;  %v9349_v35 = vadd.f32 %v9213_v56, %v3627_v6  ;;  %v8104_v43 = vadd.f32 %v8103_v45, %v17486_v38  ;;  %v13609_v14 = vld [vmem:[%s21883_s19 + $0x308] sm:$0xf0]  ;;  %v3656_v34 = vadd.f32 %v16258_v28, %v19552_v32 }
 0x7a9   : > { %v8077_v50 = vpop.f32.mrf.mxu0  ;;  %v12776_v56 = vor.u32 %v13600_v31, %v12773_v12  ;;  %v12780_v45 = vor.u32 %v13609_v14, %v12779_v4  ;;  %v13180_v31 = vor.u32 %v13710_v41, %v13179_v10  ;;  %v13583_v4 = vld [vmem:[%s21883_s19 + $0x23c] sm:$0xf] }
 0x7aa   : > { %v9509_v36 = vmul.f32 %v19601_v30, %v9333_v58  ;;  %v9525_v6 = vmul.f32 %v19549_v54, %v9349_v35  ;;  %v8133_v38 = vadd.f32 %v8132_v62, %v8104_v43  ;;  %v8078_v48 = vadd.f32 %v8077_v50, %v8049_v23  ;;  %v13181_v35 = vld [vmem:[%s21883_s19 + $0x634] sm:$0xf0] }
 0x7ab   : > { %v3630_v43 = vadd.f32 %v16264_v21, %v19526_v29  ;;  %8442 = vmatpush.bf16.msra.mxu1 %v12776_v56  ;;  %v13184_v12 = vor.u32 %v13702_v17, %v13181_v35  ;;  %v12711_v21 = vld [vmem:[%s21883_s19 + $0x240] sm:$0xf]  ;;  %8500 = vmatpush.bf16.msra.mxu3 %v12780_v45  ;;  %v8051_v56 = vadd.f32 %v19474_v55, %v17382_v61  ;;  %v13592_v35 = vld [vmem:[%s21883_s19 + $0x280] sm:$0xf0]  ;;  %v13693_v45 = vld [vmem:[%s21883_s19 + $0x5a8] sm:$0xf0] }
 0x7ac   : > { %v9685_v23 = vadd.f32 %v19606_v46, %v9509_v36  ;;  %v9701_v62 = vadd.f32 %v19561_v53, %v9525_v6  ;;  %v9078_v28 = vadd.f32 %v19565_v2, %v8133_v38  ;;  %v9094_v58 = vadd.f32 %v19523_v22, %v8078_v48  ;;  %13238 = vmatmul.msk.bf16.gmra.mxu0 %vm1101_vm1, %v19100_v20  ;;  %v12705_v36 = vld [vmem:[%s21883_s19 + $0x27c] sm:$0xf0] }
 0x7ad   : > { %13242 = vmatmul.msk.bf16.gmra.mxu2 %vm1101_vm1, %v19100_v20  ;;  %v19654_v50 = vpop.f32.mrf.mxu3  ;;  %8415 = vmatpush.bf16.msrb.mxu0 %v13180_v31  ;;  %v12708_v17 = vor.u32 %v13583_v4, %v12705_v36  ;;  %v13113_v31 = vld [vmem:[%s21883_s19 + $0x5ac] sm:$0xf0] }
 0x7ae   : > { %v9821_v6 = vmax.f32 %v9685_v23, 0.0  ;;  %v9837_v38 = vmax.f32 %v9701_v62, 0.0  ;;  %v9214_v48 = vmul.f32 0.1, %v9078_v28  ;;  %v9230_v14 = vmul.f32 0.1, %v9094_v58  ;;  %8473 = vmatpush.bf16.msra.mxu2 %v13184_v12 }
 0x7af   : > { %v8106_v10 = vpop.f32.mrf.mxu1  ;;  %v8135_v41 = vpop.f32.mrf.mxu2  ;;  %v13111_v23 = vld [vmem:[%s21883_s19 + $0x568] sm:$0xf]  ;;  %v12712_v28 = vor.u32 %v13592_v35, %v12711_v21  ;;  %v13685_v58 = vld [vmem:[%s21883_s19 + $0x56c] sm:$0xf]  ;;  %8443 = vmatpush.bf16.msra.mxu1 %v12708_v17 }
 0x7b0   : > { %9957 = vst [vmem:[%s19612_s30 + $0x8] sm:$0xff] %v9821_v6  ;;  %v9350_v61 = vadd.f32 %v9214_v48, %v3656_v34  ;;  %v9366_v55 = vadd.f32 %v9230_v14, %v3630_v43  ;;  %v8107_v62 = vadd.f32 %v8106_v10, %v17543_v40  ;;  %v13112_v4 = vor.u32 %v13693_v45, %v13111_v23  ;;  %v13566_v34 = vld [vmem:[%s21883_s19 + $0x1b4] sm:$0xf]  ;;  %v12637_v40 = vld [vmem:[%s21883_s19 + $0x1f4] sm:$0xf0] }
 0x7b1   : > { %9973 = vst [vmem:[%s19612_s30 + $0x88] sm:$0xff] %v9837_v38  ;;  %v8079_v12 = vpop.f32.mrf.mxu0  ;;  %v13116_v36 = vor.u32 %v13685_v58, %v13113_v31  ;;  %v12643_v38 = vld [vmem:[%s21883_s19 + $0x1b8] sm:$0xf]  ;;  %v13575_v14 = vld [vmem:[%s21883_s19 + $0x1f8] sm:$0xf0]  ;;  %v3659_v10 = vadd.f32 %v16278_v13, %v19552_v32  ;;  %v12640_v17 = vor.u32 %v13566_v34, %v12637_v40  ;;  %8501 = vmatpush.bf16.msra.mxu3 %v12712_v28 }
 0x7b2   : > { %v9526_v43 = vmul.f32 %v19601_v30, %v9350_v61  ;;  %v9542_v21 = vmul.f32 %v19549_v54, %v9366_v55  ;;  %v8136_v6 = vadd.f32 %v8135_v41, %v8107_v62  ;;  %v8080_v48 = vadd.f32 %v8079_v12, %v8051_v56  ;;  %8337 = vmatmul.bf16.gmra.mxu1 %v18887_v27  ;;  %v13043_v56 = vld [vmem:[%s21883_s19 + $0x4e0] sm:$0xf]  ;;  %v13676_v41 = vld [vmem:[%s21883_s19 + $0x520] sm:$0xf0]  ;;  %v13045_v62 = vld [vmem:[%s21883_s19 + $0x524] sm:$0xf0] }
 0x7b3   : > { %8395 = vmatmul.bf16.gmra.mxu3 %v18887_v27  ;;  %8416 = vmatpush.bf16.msrb.mxu0 %v13112_v4  ;;  %v12644_v35 = vor.u32 %v13575_v14, %v12643_v38  ;;  %v13668_v23 = vld [vmem:[%s21883_s19 + $0x4e4] sm:$0xf]  ;;  %v3632_v58 = vadd.f32 %v16282_v44, %v19526_v29  ;;  %v13044_v12 = vor.u32 %v13676_v41, %v13043_v56  ;;  %v13549_v34 = vld [vmem:[%s21883_s19 + $0x12c] sm:$0xf]  ;;  %v12569_v28 = vld [vmem:[%s21883_s19 + $0x16c] sm:$0xf0] }
 0x7b4   : > { %v9702_v45 = vadd.f32 %v19606_v46, %v9526_v43  ;;  %v9718_v13 = vadd.f32 %v19561_v53, %v9542_v21  ;;  %v9095_v61 = vadd.f32 %v19565_v2, %v8136_v6  ;;  %v9111_v55 = vadd.f32 %v19523_v22, %v8080_v48  ;;  %8474 = vmatpush.bf16.msra.mxu2 %v13116_v36  ;;  %v12575_v40 = vld [vmem:[%s21883_s19 + $0x130] sm:$0xf]  ;;  %v12975_v56 = vld [vmem:[%s21883_s19 + $0x458] sm:$0xf]  ;;  %v13659_v41 = vld [vmem:[%s21883_s19 + $0x498] sm:$0xf0] }
 0x7b5   : > { %v19721_v31 = vpop.f32.mrf.mxu3  ;;  %8444 = vmatpush.bf16.msra.mxu1 %v12640_v17  ;;  %v13048_v4 = vor.u32 %v13668_v23, %v13045_v62  ;;  %v8054_v6 = vadd.f32 %v19486_v49, %v17414_v7  ;;  %v12572_v14 = vor.u32 %v13549_v34, %v12569_v28  ;;  %v13558_v17 = vld [vmem:[%s21883_s19 + $0x170] sm:$0xf0]  ;;  %8502 = vmatpush.bf16.msra.mxu3 %v12644_v35  ;;  %v13651_v49 = vld [vmem:[%s21883_s19 + $0x45c] sm:$0xf] }
 0x7b6   : > { %v9838_v44 = vmax.f32 %v9702_v45, 0.0  ;;  %v9854_v43 = vmax.f32 %v9718_v13, 0.0  ;;  %v9231_v21 = vmul.f32 0.1, %v9095_v61  ;;  %v9247_v36 = vmul.f32 0.1, %v9111_v55 }
 0x7b7   : > { %v8108_v48 = vpop.f32.mrf.mxu1  ;;  %v8137_v38 = vpop.f32.mrf.mxu2  ;;  %8417 = vmatpush.bf16.msrb.mxu0 %v13044_v12  ;;  %v12977_v13 = vld [vmem:[%s21883_s19 + $0x49c] sm:$0xf0]  ;;  %v12576_v55 = vor.u32 %v13558_v17, %v12575_v40  ;;  %v12976_v62 = vor.u32 %v13659_v41, %v12975_v56  ;;  %v13541_v40 = vld [vmem:[%s21883_s19 + $0xe8] sm:$0xf0]  ;;  %v13515_v56 = vld [vmem:[%s21883_s19 + $0x1c] sm:$0xf] }
 0x7b8   : > { %9974 = vst [vmem:[%s19612_s30 + $0x90] sm:$0xff] %v9838_v44  ;;  %v9367_v23 = vadd.f32 %v9231_v21, %v3659_v10  ;;  %v9383_v45 = vadd.f32 %v9247_v36, %v3632_v58  ;;  %v8109_v7 = vadd.f32 %v8108_v48, %v17600_v57  ;;  %8475 = vmatpush.bf16.msra.mxu2 %v13048_v4  ;;  %v13532_v57 = vld [vmem:[%s21883_s19 + $0xa4] sm:$0xf]  ;;  %v12501_v10 = vld [vmem:[%s21883_s19 + $0xe4] sm:$0xf0] }
 0x7b9   : > { %9990 = vst [vmem:[%s19612_s30 + $0x110] sm:$0xff] %v9854_v43  ;;  %v8082_v61 = vpop.f32.mrf.mxu0  ;;  %8445 = vmatpush.bf16.msra.mxu1 %v12572_v14  ;;  %v12980_v12 = vor.u32 %v13651_v49, %v12977_v13  ;;  %v12507_v4 = vld [vmem:[%s21883_s19 + $0xa8] sm:$0xf]  ;;  %v12504_v44 = vor.u32 %v13532_v57, %v12501_v10  ;;  %8503 = vmatpush.bf16.msra.mxu3 %v12576_v55  ;;  %v12433_v41 = vld [vmem:[%s21883_s19 + $0x5c] sm:$0xf0] }
 0x7ba   : > { %v9543_v35 = vmul.f32 %v19601_v30, %v9367_v23  ;;  %v9559_v58 = vmul.f32 %v19549_v54, %v9383_v45  ;;  %v8138_v34 = vadd.f32 %v8137_v38, %v8109_v7  ;;  %v8083_v28 = vadd.f32 %v8082_v61, %v8054_v6  ;;  %v13524_v55 = vld [vmem:[%s21883_s19 + $0x60] sm:$0xf0] }
 0x7bb   : > { %8418 = vmatpush.bf16.msrb.mxu0 %v12976_v62  ;;  %v3661_v6 = vadd.f32 %v16305_v60, %v19552_v32  ;;  %v3635_v38 = vadd.f32 %v16318_v1, %v19526_v29  ;;  %v12508_v17 = vor.u32 %v13541_v40, %v12507_v4  ;;  %v12439_v60 = vld [vmem:[%s21883_s19 + $0x20] sm:$0xf]  ;;  %v12436_v61 = vor.u32 %v13515_v56, %v12433_v41 }
 0x7bc   : > { %v9719_v43 = vadd.f32 %v19606_v46, %v9543_v35  ;;  %v9735_v21 = vadd.f32 %v19561_v53, %v9559_v58  ;;  %v9112_v36 = vadd.f32 %v19565_v2, %v8138_v34  ;;  %v9128_v48 = vadd.f32 %v19523_v22, %v8083_v28  ;;  %13239 = vmatmul.msk.bf16.gmra.mxu0 %vm1101_vm1, %v19224_v15 }
 0x7bd   : > { %13243 = vmatmul.msk.bf16.gmra.mxu2 %vm1101_vm1, %v19224_v15  ;;  %v19778_v14 = vpop.f32.mrf.mxu3  ;;  %8446 = vmatpush.bf16.msra.mxu1 %v12504_v44  ;;  %v8056_v62 = vadd.f32 %v19497_v9, %v17422_v19 }
 0x7be   : > { %v9855_v1 = vmax.f32 %v9719_v43, 0.0  ;;  %v9871_v23 = vmax.f32 %v9735_v21, 0.0  ;;  %v9248_v45 = vmul.f32 0.1, %v9112_v36  ;;  %v9264_v7 = vmul.f32 0.1, %v9128_v48  ;;  %8476 = vmatpush.bf16.msra.mxu2 %v12980_v12  ;;  %8504 = vmatpush.bf16.msra.mxu3 %v12508_v17 }
 0x7bf   : > { %v8111_v49 = vpop.f32.mrf.mxu1  ;;  %v8140_v13 = vpop.f32.mrf.mxu2  ;;  %v12440_v12 = vor.u32 %v13524_v55, %v12439_v60  ;;  %v3664_v43 = vadd.f32 %v16344_v26, %v19552_v32  ;;  %v3637_v21 = vadd.f32 %v16348_v0, %v19526_v29  ;;  %v8059_v60 = vadd.f32 %v19506_v42, %v17430_v16 }
 0x7c0   : > { %9991 = vst [vmem:[%s19612_s30 + $0x118] sm:$0xff] %v9855_v1  ;;  %v9384_v57 = vadd.f32 %v9248_v45, %v3661_v6  ;;  %v9400_v10 = vadd.f32 %v9264_v7, %v3635_v38  ;;  %v8112_v35 = vadd.f32 %v8111_v49, %v17657_v52 }
 0x7c1   : > { %10007 = vst [vmem:[%s19612_s30 + $0x198] sm:$0xff] %v9871_v23  ;;  %v8084_v58 = vpop.f32.mrf.mxu0  ;;  %8447 = vmatpush.bf16.msra.mxu1 %v12436_v61 }
 0x7c2   : > { %v9560_v34 = vmul.f32 %v19601_v30, %v9384_v57  ;;  %v9576_v28 = vmul.f32 %v19549_v54, %v9400_v10  ;;  %v8141_v4 = vadd.f32 %v8140_v13, %v8112_v35  ;;  %v8085_v40 = vadd.f32 %v8084_v58, %v8056_v62  ;;  %8342 = vmatmul.bf16.gmra.mxu1 %v18985_v51 }
 0x7c3   : > { %8400 = vmatmul.bf16.gmra.mxu3 %v18985_v51  ;;  %v3640_v62 = vadd.f32 %v16360_v25, %v19526_v29 }
 0x7c4   : > { %v9736_v19 = vadd.f32 %v19606_v46, %v9560_v34  ;;  %v9752_v52 = vadd.f32 %v19561_v53, %v9576_v28  ;;  %v9129_v9 = vadd.f32 %v19565_v2, %v8141_v4  ;;  %v9145_v44 = vadd.f32 %v19523_v22, %v8085_v40  ;;  %8505 = vmatpush.bf16.msra.mxu3 %v12440_v12 }
 0x7c5   : > { %v19809_v36 = vpop.f32.mrf.mxu3  ;;  %v8061_v4 = vadd.f32 %v19544_v8, %v17438_v37 }
 0x7c6   : > { %v9872_v48 = vmax.f32 %v9736_v19, 0.0  ;;  %v9888_v6 = vmax.f32 %v9752_v52, 0.0  ;;  %v9265_v38 = vmul.f32 0.1, %v9129_v9  ;;  %v9281_v17 = vmul.f32 0.1, %v9145_v44 }
 0x7c7   : > { %v8113_v56 = vpop.f32.mrf.mxu1  ;;  %v8142_v41 = vpop.f32.mrf.mxu2 }
 0x7c8   : > { %10008 = vst [vmem:[%s19612_s30 + $0x1a0] sm:$0xff] %v9872_v48  ;;  %v9401_v1 = vadd.f32 %v9265_v38, %v3664_v43  ;;  %v9417_v23 = vadd.f32 %v9281_v17, %v3637_v21  ;;  %v8114_v26 = vadd.f32 %v8113_v56, %v17678_v24  ;;  %v3666_v24 = vadd.f32 %v16356_v47, %v19552_v32 }
 0x7c9   : > { %10024 = vst [vmem:[%s19612_s30 + $0x220] sm:$0xff] %v9888_v6  ;;  %v8087_v45 = vpop.f32.mrf.mxu0  ;;  %v3669_v48 = vadd.f32 %v16368_v11, %v19552_v32  ;;  %v3642_v6 = vadd.f32 %v16372_v18, %v19526_v29  ;;  %v22246_v18 = vld [vmem:[#allocation256_spill] sm:$0xff] }
 0x7ca   : > { %v9577_v0 = vmul.f32 %v19601_v30, %v9401_v1  ;;  %v9593_v7 = vmul.f32 %v19549_v54, %v9417_v23  ;;  %v8143_v49 = vadd.f32 %v8142_v41, %v8114_v26  ;;  %v8088_v13 = vadd.f32 %v8087_v45, %v8059_v60  ;;  %v22243_v1 = vld [vmem:[#allocation149_spill] sm:$0xff] }
 0x7cb   : > { %v8160_v23 = vadd.f32 %v19589_v33, %v22243_v1  ;;  %v19859_v29 = vperm.slane %v22246_v18, 2 }
 0x7cc   : > { %v9753_v61 = vadd.f32 %v19606_v46, %v9577_v0  ;;  %v9769_v55 = vadd.f32 %v19561_v53, %v9593_v7  ;;  %v9146_v16 = vadd.f32 %v19565_v2, %v8143_v49  ;;  %v9162_v42 = vadd.f32 %v19523_v22, %v8088_v13  ;;  %13240 = vmatmul.msk.bf16.gmra.mxu0 %vm1101_vm1, %v19264_v3  ;;  %v22244_v7 = vld [vmem:[#allocation156_spill] sm:$0xff]  ;;  %v22245_v49 = vld [vmem:[#allocation255_spill] sm:$0xff] }
 0x7cd   : > { %13244 = vmatmul.msk.bf16.gmra.mxu2 %vm1101_vm1, %v19264_v3  ;;  %v19830_v57 = vpop.f32.mrf.mxu3  ;;  %v19856_v13 = vperm.slane %v22245_v49, 2 }
 0x7ce   : > { %v9889_v10 = vmax.f32 %v9753_v61, 0.0  ;;  %v9905_v35 = vmax.f32 %v9769_v55, 0.0  ;;  %v9282_v58 = vmul.f32 0.1, %v9146_v16  ;;  %v9298_v12 = vmul.f32 0.1, %v9162_v42 }
 0x7cf   : > { %v8116_v34 = vpop.f32.mrf.mxu1  ;;  %v8145_v28 = vpop.f32.mrf.mxu2 }
 0x7d0   : > { %10025 = vst [vmem:[%s19612_s30 + $0x228] sm:$0xff] %v9889_v10  ;;  %v9418_v40 = vadd.f32 %v9282_v58, %v3666_v24  ;;  %v9434_v47 = vadd.f32 %v9298_v12, %v3640_v62  ;;  %v8117_v19 = vadd.f32 %v8116_v34, %v17687_v39  ;;  %v22247_v58 = vld [vmem:[#allocation229_spill] sm:$0xff]  ;;  %v22248_v12 = vld [vmem:[#allocation34_spill] sm:$0xff] }
 0x7d1   : > { %10041 = vst [vmem:[%s19612_s30 + $0x2a8] sm:$0xff] %v9905_v35  ;;  %v8089_v25 = vpop.f32.mrf.mxu0  ;;  %v3683_v34 = vadd.f32 %v22248_v12, %v19859_v29 }
 0x7d2   : > { %v9594_v52 = vmul.f32 %v19601_v30, %v9418_v40  ;;  %v9610_v9 = vmul.f32 %v19549_v54, %v9434_v47  ;;  %v8146_v44 = vadd.f32 %v8145_v28, %v8117_v19  ;;  %v8090_v43 = vadd.f32 %v8089_v25, %v8061_v4  ;;  %8347 = vmatmul.bf16.gmra.mxu1 %v19021_v5  ;;  %v22249_v28 = vld [vmem:[#allocation42_spill] sm:$0xff] }
 0x7d3   : > { %8405 = vmatmul.bf16.gmra.mxu3 %v19021_v5  ;;  %v19875_v4 = vperm.slane %v19531_v59, 2  ;;  %v22250_v25 = vld [vmem:[#allocation150_spill] sm:$0xff] }
 0x7d4   : > { %v9770_v37 = vadd.f32 %v19606_v46, %v9594_v52  ;;  %v9786_v8 = vadd.f32 %v19561_v53, %v9610_v9  ;;  %v9163_v21 = vadd.f32 %v19565_v2, %v8146_v44  ;;  %v9179_v39 = vadd.f32 %v19523_v22, %v8090_v43 }
 0x7d5   : > { %v19849_v38 = vpop.f32.mrf.mxu3  ;;  %v8162_v52 = vadd.f32 %v19654_v50, %v22250_v25  ;;  %v19884_v9 = vperm.slane %v19542_v63, 2  ;;  %v13635_v50 = vld [vmem:[%s21883_s19 + $0x3dc] sm:$0xf] }
 0x7d6   : > { %v9906_v17 = vmax.f32 %v9770_v37, 0.0  ;;  %v9922_v56 = vmax.f32 %v9786_v8, 0.0  ;;  %v9299_v41 = vmul.f32 0.1, %v9163_v21  ;;  %v9315_v60 = vmul.f32 0.1, %v9179_v39 }
 0x7d7   : > { %v8118_v26 = vpop.f32.mrf.mxu1  ;;  %v8147_v45 = vpop.f32.mrf.mxu2  ;;  %v22251_v8 = vld [vmem:[#allocation158_spill] sm:$0xff]  ;;  %v19889_v39 = vperm.slane %v22245_v49, 3 }
 0x7d8   : > { %10042 = vst [vmem:[%s19612_s30 + $0x2b0] sm:$0xff] %v9906_v17  ;;  %v9435_v22 = vadd.f32 %v9299_v41, %v3669_v48  ;;  %v9451_v0 = vadd.f32 %v9315_v60, %v3642_v6  ;;  %v8119_v11 = vadd.f32 %v8118_v26, %v22244_v7  ;;  %v19892_v48 = vperm.slane %v22246_v18, 3  ;;  %v12917_v17 = vld [vmem:[%s21883_s19 + $0x41c] sm:$0xf0] }
 0x7d9   : > { %10058 = vst [vmem:[%s19612_s30 + $0x330] sm:$0xff] %v9922_v56  ;;  %v8188_v61 = vpop.f32.mrf.mxu0  ;;  %v12923_v26 = vld [vmem:[%s21883_s19 + $0x3e0] sm:$0xf] }
 0x7da   : > { %v9611_v55 = vmul.f32 %v19601_v30, %v9435_v22  ;;  %v9627_v16 = vmul.f32 %v19549_v54, %v9451_v0  ;;  %v8148_v33 = vadd.f32 %v8147_v45, %v8119_v11  ;;  %v8189_v42 = vadd.f32 %v8188_v61, %v8160_v23  ;;  %v22252_v23 = vld [vmem:[#allocation221_spill] sm:$0xff]  ;;  %v13644_v45 = vld [vmem:[%s21883_s19 + $0x420] sm:$0xf0] }
 0x7db   : > { %v3671_v54 = vadd.f32 %v22249_v28, %v19552_v32  ;;  %v19911_v22 = vperm.slane %v19531_v59, 3  ;;  %v12924_v0 = vor.u32 %v13644_v45, %v12923_v26  ;;  %v22253_v61 = vld [vmem:[#allocation29_spill] sm:$0xff]  ;;  %v13187_v45 = vld [vmem:[%s21883_s19 + $0x5f8] sm:$0xf] }
 0x7dc   : > { %v9787_v24 = vadd.f32 %v19606_v46, %v9611_v55  ;;  %v9803_v62 = vadd.f32 %v19561_v53, %v9627_v16  ;;  %v9180_v10 = vadd.f32 %v19565_v2, %v8148_v33  ;;  %v9062_v35 = vadd.f32 %v19856_v13, %v8189_v42  ;;  %13245 = vmatmul.msk.bf16.vlgmr.msrb.gmra.mxu0 %vm1101_vm1, %v22247_v58  ;;  %v22254_v16 = vld [vmem:[#allocation30_spill] sm:$0xff]  ;;  %v12849_v42 = vld [vmem:[%s21883_s19 + $0x394] sm:$0xf0] }
 0x7dd   : > { %13249 = vmatmul.msk.bf16.vlgmr.msra.gmra.mxu2 %vm1101_vm1, %v22247_v58  ;;  %v19879_v53 = vpop.f32.mrf.mxu3  ;;  %v3712_v55 = vadd.f32 %v22253_v61, %v19892_v48  ;;  %v3685_v33 = vadd.f32 %v22254_v16, %v19859_v29  ;;  %8614 = vmatpush.bf16.msrb.mxu3 %v12924_v0  ;;  %v13703_v0 = vld [vmem:[%s21883_s19 + $0x5fc] sm:$0xf]  ;;  %v13189_v61 = vld [vmem:[%s21883_s19 + $0x63c] sm:$0xf0] }
 0x7de   : > { %v9923_v2 = vmax.f32 %v9787_v24, 0.0  ;;  %v9939_v40 = vmax.f32 %v9803_v62, 0.0  ;;  %v9316_v47 = vmul.f32 0.1, %v9180_v10  ;;  %v9198_v19 = vmul.f32 0.1, %v9062_v35 }
 0x7df   : > { %v8217_v32 = vpop.f32.mrf.mxu1  ;;  %v8246_v44 = vpop.f32.mrf.mxu2  ;;  %v12855_v24 = vld [vmem:[%s21883_s19 + $0x358] sm:$0xf] }
 0x7e0   : > { %10059 = vst [vmem:[%s19612_s30 + $0x338] sm:$0xff] %v9923_v2  ;;  %v9452_v43 = vadd.f32 %v9316_v47, %v3671_v54  ;;  %v9334_v37 = vadd.f32 %v9198_v19, %v3683_v34  ;;  %v8218_v21 = vadd.f32 %v8217_v32, %v22251_v8  ;;  %v22255_v34 = vld [vmem:[#allocation151_spill] sm:$0xff]  ;;  %v19936_v54 = vperm.slane %v19542_v63, 3  ;;  %v22256_v32 = vld [vmem:[#allocation160_spill] sm:$0xff]  ;;  %v13601_v63 = vld [vmem:[%s21883_s19 + $0x2cc] sm:$0xf] }
 0x7e1   : > { %10075 = vst [vmem:[%s19612_s30 + $0x3b8] sm:$0xff] %v9939_v40  ;;  %v8190_v6 = vpop.f32.mrf.mxu0  ;;  %v8165_v28 = vadd.f32 %v19721_v31, %v22255_v34  ;;  %v13627_v19 = vld [vmem:[%s21883_s19 + $0x398] sm:$0xf0]  ;;  %v12781_v31 = vld [vmem:[%s21883_s19 + $0x30c] sm:$0xf0] }
 0x7e2   : > { %v9628_v56 = vmul.f32 %v19601_v30, %v9452_v43  ;;  %v9510_v41 = vmul.f32 %v19875_v4, %v9334_v37  ;;  %v8247_v60 = vadd.f32 %v8246_v44, %v8218_v21  ;;  %v8191_v1 = vadd.f32 %v8190_v6, %v8162_v52  ;;  %8448 = vmatmul.bf16.vlgmr.msra.gmra.mxu1 %v22252_v23 }
 0x7e3   : > { %8506 = vmatmul.bf16.vlgmr.msra.gmra.mxu3 %v22252_v23  ;;  %v12920_v30 = vor.u32 %v13635_v50, %v12917_v17  ;;  %v12856_v43 = vor.u32 %v13627_v19, %v12855_v24  ;;  %v12787_v17 = vld [vmem:[%s21883_s19 + $0x2d0] sm:$0xf]  ;;  %v13584_v24 = vld [vmem:[%s21883_s19 + $0x244] sm:$0xf] }
 0x7e4   : > { %v9804_v7 = vadd.f32 %v19606_v46, %v9628_v56  ;;  %v9686_v11 = vadd.f32 %v19884_v9, %v9510_v41  ;;  %v9063_v49 = vadd.f32 %v19889_v39, %v8247_v60  ;;  %v9079_v18 = vadd.f32 %v19856_v13, %v8191_v1  ;;  %v13618_v46 = vld [vmem:[%s21883_s19 + $0x354] sm:$0xf]  ;;  %v22257_v41 = vld [vmem:[#allocation33_spill] sm:$0xff] }
 0x7e5   : > { %v19922_v59 = vpop.f32.mrf.mxu3  ;;  %8556 = vmatpush.bf16.msrb.mxu1 %v12920_v30  ;;  %v12852_v47 = vor.u32 %v13618_v46, %v12849_v42  ;;  %8615 = vmatpush.bf16.msrb.mxu3 %v12856_v43  ;;  %v13610_v56 = vld [vmem:[%s21883_s19 + $0x310] sm:$0xf0]  ;;  %v3714_v60 = vadd.f32 %v22257_v41, %v19892_v48  ;;  %v12784_v1 = vor.u32 %v13601_v63, %v12781_v31  ;;  %v13711_v30 = vld [vmem:[%s21883_s19 + $0x638] sm:$0xf0]  ;;  %v12645_v41 = vld [vmem:[%s21883_s19 + $0x1fc] sm:$0xf0] }
 0x7e6   : > { %v9940_v62 = vmax.f32 %v9804_v7, 0.0  ;;  %v9822_v10 = vmax.f32 %v9686_v11, 0.0  ;;  %v9199_v35 = vmul.f32 0.1, %v9063_v49  ;;  %v9215_v12 = vmul.f32 0.1, %v9079_v18 }
 0x7e7   : > { %v8219_v2 = vpop.f32.mrf.mxu1  ;;  %v8248_v40 = vpop.f32.mrf.mxu2  ;;  %v12788_v26 = vor.u32 %v13610_v56, %v12787_v17  ;;  %v13188_v46 = vor.u32 %v13711_v30, %v13187_v45  ;;  %v13192_v42 = vor.u32 %v13703_v0, %v13189_v61  ;;  %v13567_v56 = vld [vmem:[%s21883_s19 + $0x1bc] sm:$0xf]  ;;  %v12651_v30 = vld [vmem:[%s21883_s19 + $0x1c0] sm:$0xf]  ;;  %v13576_v0 = vld [vmem:[%s21883_s19 + $0x200] sm:$0xf0] }
 0x7e8   : > { %10076 = vst [vmem:[%s19612_s30 + $0x3c0] sm:$0xff] %v9940_v62  ;;  %v9335_v25 = vadd.f32 %v9199_v35, %v3712_v55  ;;  %v9351_v52 = vadd.f32 %v9215_v12, %v3685_v33  ;;  %v8220_v44 = vadd.f32 %v8219_v2, %v22256_v32  ;;  %v22258_v55 = vld [vmem:[#allocation28_spill] sm:$0xff]  ;;  %v12713_v62 = vld [vmem:[%s21883_s19 + $0x284] sm:$0xf0]  ;;  %v13119_v32 = vld [vmem:[%s21883_s19 + $0x570] sm:$0xf] }
 0x7e9   : > { %9958 = vst [vmem:[%s19612_s30 + $0x10] sm:$0xff] %v9822_v10  ;;  %v8193_v37 = vpop.f32.mrf.mxu0  ;;  %8557 = vmatpush.bf16.msrb.mxu1 %v12852_v47  ;;  %v3688_v16 = vadd.f32 %v22258_v55, %v19859_v29  ;;  %v12719_v10 = vld [vmem:[%s21883_s19 + $0x248] sm:$0xf]  ;;  %8616 = vmatpush.bf16.msrb.mxu3 %v12788_v26  ;;  %v22259_v2 = vld [vmem:[#allocation152_spill] sm:$0xff]  ;;  %v13677_v55 = vld [vmem:[%s21883_s19 + $0x528] sm:$0xf0] }
 0x7ea   : > { %v9511_v8 = vmul.f32 %v19911_v22, %v9335_v25  ;;  %v9527_v21 = vmul.f32 %v19875_v4, %v9351_v52  ;;  %v8249_v6 = vadd.f32 %v8248_v40, %v8220_v44  ;;  %v8194_v50 = vadd.f32 %v8193_v37, %v8165_v28  ;;  %8531 = vmatpush.bf16.msra.mxu0 %v13188_v46  ;;  %v13593_v52 = vld [vmem:[%s21883_s19 + $0x288] sm:$0xf0]  ;;  %v13694_v44 = vld [vmem:[%s21883_s19 + $0x5b0] sm:$0xf0]  ;;  %v13051_v61 = vld [vmem:[%s21883_s19 + $0x4e8] sm:$0xf] }
 0x7eb   : > { %v8167_v40 = vadd.f32 %v19778_v14, %v22259_v2  ;;  %8589 = vmatpush.bf16.msrb.mxu2 %v13192_v42  ;;  %v12716_v25 = vor.u32 %v13584_v24, %v12713_v62  ;;  %v22260_v37 = vld [vmem:[#allocation162_spill] sm:$0xff]  ;;  %v12720_v31 = vor.u32 %v13593_v52, %v12719_v10 }
 0x7ec   : > { %v9687_v7 = vadd.f32 %v19936_v54, %v9511_v8  ;;  %v9703_v11 = vadd.f32 %v19884_v9, %v9527_v21  ;;  %v9080_v49 = vadd.f32 %v19889_v39, %v8249_v6  ;;  %v9096_v18 = vadd.f32 %v19856_v13, %v8194_v50  ;;  %13246 = vmatmul.msk.bf16.gmra.mxu0 %vm1101_vm1, %v19100_v20  ;;  %v13686_v8 = vld [vmem:[%s21883_s19 + $0x574] sm:$0xf]  ;;  %v13121_v21 = vld [vmem:[%s21883_s19 + $0x5b4] sm:$0xf0]  ;;  %v13053_v10 = vld [vmem:[%s21883_s19 + $0x52c] sm:$0xf0] }
 0x7ed   : > { %13250 = vmatmul.msk.bf16.gmra.mxu2 %vm1101_vm1, %v19100_v20  ;;  %v19982_v33 = vpop.f32.mrf.mxu3  ;;  %8558 = vmatpush.bf16.msrb.mxu1 %v12784_v1  ;;  %v13120_v50 = vor.u32 %v13694_v44, %v13119_v32  ;;  %v13124_v17 = vor.u32 %v13686_v8, %v13121_v21  ;;  %v13559_v8 = vld [vmem:[%s21883_s19 + $0x178] sm:$0xf0]  ;;  %v12983_v21 = vld [vmem:[%s21883_s19 + $0x460] sm:$0xf] }
 0x7ee   : > { %v9823_v35 = vmax.f32 %v9687_v7, 0.0  ;;  %v9839_v12 = vmax.f32 %v9703_v11, 0.0  ;;  %v9216_v34 = vmul.f32 0.1, %v9080_v49  ;;  %v9232_v28 = vmul.f32 0.1, %v9096_v18  ;;  %8617 = vmatpush.bf16.msrb.mxu3 %v12720_v31 }
 0x7ef   : > { %v8222_v47 = vpop.f32.mrf.mxu1  ;;  %v8251_v19 = vpop.f32.mrf.mxu2  ;;  %v22261_v7 = vld [vmem:[#allocation31_spill] sm:$0xff]  ;;  %8532 = vmatpush.bf16.msra.mxu0 %v13120_v50  ;;  %v12648_v49 = vor.u32 %v13567_v56, %v12645_v41  ;;  %v12652_v18 = vor.u32 %v13576_v0, %v12651_v30  ;;  %8590 = vmatpush.bf16.msrb.mxu2 %v13124_v17  ;;  %v13652_v41 = vld [vmem:[%s21883_s19 + $0x464] sm:$0xf]  ;;  %v13533_v0 = vld [vmem:[%s21883_s19 + $0xac] sm:$0xf] }
 0x7f0   : > { %9959 = vst [vmem:[%s19612_s30 + $0x18] sm:$0xff] %v9823_v35  ;;  %v9352_v14 = vadd.f32 %v9216_v34, %v3714_v60  ;;  %v9368_v43 = vadd.f32 %v9232_v28, %v3688_v16  ;;  %v8223_v63 = vadd.f32 %v8222_v47, %v22260_v37  ;;  %v3717_v11 = vadd.f32 %v22261_v7, %v19892_v48  ;;  %v13669_v16 = vld [vmem:[%s21883_s19 + $0x4ec] sm:$0xf]  ;;  %v22262_v35 = vld [vmem:[#allocation32_spill] sm:$0xff]  ;;  %v12577_v47 = vld [vmem:[%s21883_s19 + $0x174] sm:$0xf0] }
 0x7f1   : > { %9975 = vst [vmem:[%s19612_s30 + $0x98] sm:$0xff] %v9839_v12  ;;  %v8195_v6 = vpop.f32.mrf.mxu0  ;;  %8559 = vmatpush.bf16.msrb.mxu1 %v12716_v25  ;;  %v3690_v12 = vadd.f32 %v22262_v35, %v19859_v29  ;;  %v13052_v28 = vor.u32 %v13677_v55, %v13051_v61  ;;  %v13056_v2 = vor.u32 %v13669_v16, %v13053_v10  ;;  %v12509_v7 = vld [vmem:[%s21883_s19 + $0xec] sm:$0xf0]  ;;  %v13542_v16 = vld [vmem:[%s21883_s19 + $0xf0] sm:$0xf0]  ;;  %v22265_v35 = vld [vmem:[#allocation35_spill] sm:$0xff] }
 0x7f2   : > { %v9528_v60 = vmul.f32 %v19911_v22, %v9352_v14  ;;  %v9544_v1 = vmul.f32 %v19875_v4, %v9368_v43  ;;  %v8252_v26 = vadd.f32 %v8251_v19, %v8223_v63  ;;  %v8196_v45 = vadd.f32 %v8195_v6, %v8167_v40  ;;  %8453 = vmatmul.bf16.gmra.mxu1 %v18887_v27  ;;  %v13550_v40 = vld [vmem:[%s21883_s19 + $0x134] sm:$0xf]  ;;  %v12583_v19 = vld [vmem:[%s21883_s19 + $0x138] sm:$0xf]  ;;  %v22263_v14 = vld [vmem:[#allocation153_spill] sm:$0xff] }
 0x7f3   : > { %8511 = vmatmul.bf16.gmra.mxu3 %v18887_v27  ;;  %v8170_v43 = vadd.f32 %v19809_v36, %v22263_v14  ;;  %8533 = vmatpush.bf16.msra.mxu0 %v13052_v28  ;;  %v12580_v31 = vor.u32 %v13550_v40, %v12577_v47  ;;  %v13660_v6 = vld [vmem:[%s21883_s19 + $0x4a0] sm:$0xf0]  ;;  %v12515_v55 = vld [vmem:[%s21883_s19 + $0xb0] sm:$0xf] }
 0x7f4   : > { %v9704_v46 = vadd.f32 %v19936_v54, %v9528_v60  ;;  %v9720_v42 = vadd.f32 %v19884_v9, %v9544_v1  ;;  %v9097_v24 = vadd.f32 %v19889_v39, %v8252_v26  ;;  %v9113_v62 = vadd.f32 %v19856_v13, %v8196_v45  ;;  %v22264_v36 = vld [vmem:[#allocation164_spill] sm:$0xff]  ;;  %8618 = vmatpush.bf16.msrb.mxu3 %v12652_v18  ;;  %v12985_v60 = vld [vmem:[%s21883_s19 + $0x4a4] sm:$0xf0] }
 0x7f5   : > { %v20049_v34 = vpop.f32.mrf.mxu3  ;;  %8560 = vmatpush.bf16.msrb.mxu1 %v12648_v49  ;;  %8591 = vmatpush.bf16.msrb.mxu2 %v13056_v2  ;;  %v12584_v26 = vor.u32 %v13559_v8, %v12583_v19  ;;  %v12984_v45 = vor.u32 %v13660_v6, %v12983_v21  ;;  %v12988_v30 = vor.u32 %v13652_v41, %v12985_v60  ;;  %v22266_v28 = vld [vmem:[#allocation36_spill] sm:$0xff]  ;;  %v13525_v8 = vld [vmem:[%s21883_s19 + $0x68] sm:$0xf0]  ;;  %v22267_v21 = vld [vmem:[#allocation154_spill] sm:$0xff] }
 0x7f6   : > { %v9840_v25 = vmax.f32 %v9704_v46, 0.0  ;;  %v9856_v52 = vmax.f32 %v9720_v42, 0.0  ;;  %v9233_v32 = vmul.f32 0.1, %v9097_v24  ;;  %v9249_v44 = vmul.f32 0.1, %v9113_v62 }
 0x7f7   : > { %v8224_v37 = vpop.f32.mrf.mxu1  ;;  %v8253_v63 = vpop.f32.mrf.mxu2  ;;  %8534 = vmatpush.bf16.msra.mxu0 %v12984_v45  ;;  %v12512_v46 = vor.u32 %v13533_v0, %v12509_v7  ;;  %v3693_v2 = vadd.f32 %v22266_v28, %v19859_v29  ;;  %v12516_v47 = vor.u32 %v13542_v16, %v12515_v55  ;;  %v13516_v19 = vld [vmem:[%s21883_s19 + $0x24] sm:$0xf]  ;;  %v8172_v6 = vadd.f32 %v19830_v57, %v22267_v21 }
 0x7f8   : > { %9976 = vst [vmem:[%s19612_s30 + $0xa0] sm:$0xff] %v9840_v25  ;;  %v9369_v50 = vadd.f32 %v9233_v32, %v3717_v11  ;;  %v9385_v17 = vadd.f32 %v9249_v44, %v3690_v12  ;;  %v8225_v56 = vadd.f32 %v8224_v37, %v22264_v36  ;;  %v3719_v12 = vadd.f32 %v22265_v35, %v19892_v48  ;;  %v12441_v25 = vld [vmem:[%s21883_s19 + $0x64] sm:$0xf0]  ;;  %v22268_v36 = vld [vmem:[#allocation166_spill] sm:$0xff] }
 0x7f9   : > { %9992 = vst [vmem:[%s19612_s30 + $0x120] sm:$0xff] %v9856_v52  ;;  %v8198_v1 = vpop.f32.mrf.mxu0  ;;  %8561 = vmatpush.bf16.msrb.mxu1 %v12580_v31  ;;  %8619 = vmatpush.bf16.msrb.mxu3 %v12584_v26  ;;  %v12447_v52 = vld [vmem:[%s21883_s19 + $0x28] sm:$0xf]  ;;  %v12444_v31 = vor.u32 %v13516_v19, %v12441_v25  ;;  %v22272_v19 = vld [vmem:[#allocation168_spill] sm:$0xff] }
 0x7fa   : > { %v9545_v11 = vmul.f32 %v19911_v22, %v9369_v50  ;;  %v9561_v49 = vmul.f32 %v19875_v4, %v9385_v17  ;;  %v8254_v18 = vadd.f32 %v8253_v63, %v8225_v56  ;;  %v8199_v61 = vadd.f32 %v8198_v1, %v8170_v43  ;;  %8592 = vmatpush.bf16.msrb.mxu2 %v12988_v30 }
 0x7fb   : > { %v12448_v60 = vor.u32 %v13525_v8, %v12447_v52  ;;  %v22273_v8 = vld [vmem:[#allocation39_spill] sm:$0xff] }
 0x7fc   : > { %v9721_v42 = vadd.f32 %v19936_v54, %v9545_v11  ;;  %v9737_v24 = vadd.f32 %v19884_v9, %v9561_v49  ;;  %v9114_v62 = vadd.f32 %v19889_v39, %v8254_v18  ;;  %v9130_v10 = vadd.f32 %v19856_v13, %v8199_v61  ;;  %13247 = vmatmul.msk.bf16.gmra.mxu0 %vm1101_vm1, %v19224_v15  ;;  %v22269_v49 = vld [vmem:[#allocation37_spill] sm:$0xff]  ;;  %v22270_v61 = vld [vmem:[#allocation38_spill] sm:$0xff] }
 0x7fd   : > { %13251 = vmatmul.msk.bf16.gmra.mxu2 %vm1101_vm1, %v19224_v15  ;;  %v20106_v40 = vpop.f32.mrf.mxu3  ;;  %8562 = vmatpush.bf16.msrb.mxu1 %v12512_v46  ;;  %v3722_v18 = vadd.f32 %v22269_v49, %v19892_v48  ;;  %v3695_v55 = vadd.f32 %v22270_v61, %v19859_v29  ;;  %v3724_v21 = vadd.f32 %v22273_v8, %v19892_v48  ;;  %v20194_v8 = vld [vmem:[%s21882_s18] sm:$0xff] }
 0x7fe   : > { %v9857_v32 = vmax.f32 %v9721_v42, 0.0  ;;  %v9873_v44 = vmax.f32 %v9737_v24, 0.0  ;;  %v9250_v14 = vmul.f32 0.1, %v9114_v62  ;;  %v9266_v43 = vmul.f32 0.1, %v9130_v10  ;;  %8620 = vmatpush.bf16.msrb.mxu3 %v12516_v47 }
 0x7ff   : > { %v8227_v37 = vpop.f32.mrf.mxu1  ;;  %v8256_v63 = vpop.f32.mrf.mxu2 }
 0x800   : > { %9993 = vst [vmem:[%s19612_s30 + $0x128] sm:$0xff] %v9857_v32  ;;  %v9386_v50 = vadd.f32 %v9250_v14, %v3719_v12  ;;  %v9402_v17 = vadd.f32 %v9266_v43, %v3693_v2  ;;  %v8228_v56 = vadd.f32 %v8227_v37, %v22268_v36  ;;  %v22271_v12 = vld [vmem:[#allocation155_spill] sm:$0xff] }
 0x801   : > { %10009 = vst [vmem:[%s19612_s30 + $0x1a8] sm:$0xff] %v9873_v44  ;;  %v8200_v41 = vpop.f32.mrf.mxu0  ;;  %8563 = vmatpush.bf16.msrb.mxu1 %v12444_v31  ;;  %v8175_v28 = vadd.f32 %v19849_v38, %v22271_v12  ;;  %v22278_v12 = vld [vmem:[#allocation43_spill] sm:$0xff] }
 0x802   : > { %v9562_v1 = vmul.f32 %v19911_v22, %v9386_v50  ;;  %v9578_v26 = vmul.f32 %v19875_v4, %v9402_v17  ;;  %v8257_v45 = vadd.f32 %v8256_v63, %v8228_v56  ;;  %v8201_v30 = vadd.f32 %v8200_v41, %v8172_v6  ;;  %8458 = vmatmul.bf16.gmra.mxu1 %v18985_v51  ;;  %v22274_v6 = vld [vmem:[#allocation40_spill] sm:$0xff] }
 0x803   : > { %8516 = vmatmul.bf16.gmra.mxu3 %v18985_v51  ;;  %v3698_v50 = vadd.f32 %v22274_v6, %v19859_v29 }
 0x804   : > { %v9738_v57 = vadd.f32 %v19936_v54, %v9562_v1  ;;  %v9754_v0 = vadd.f32 %v19884_v9, %v9578_v26  ;;  %v9131_v7 = vadd.f32 %v19889_v39, %v8257_v45  ;;  %v9147_v11 = vadd.f32 %v19856_v13, %v8201_v30  ;;  %8621 = vmatpush.bf16.msrb.mxu3 %v12448_v60  ;;  %v22275_v45 = vld [vmem:[#allocation157_spill] sm:$0xff] }
 0x805   : > { %v20137_v16 = vpop.f32.mrf.mxu3  ;;  %v8177_v30 = vadd.f32 %v19879_v53, %v22275_v45  ;;  %v22281_v45 = vld [vmem:[#allocation44_spill] sm:$0xff] }
 0x806   : > { %v9874_v46 = vmax.f32 %v9738_v57, 0.0  ;;  %v9890_v42 = vmax.f32 %v9754_v0, 0.0  ;;  %v9267_v24 = vmul.f32 0.1, %v9131_v7  ;;  %v9283_v62 = vmul.f32 0.1, %v9147_v11 }
 0x807   : > { %v8229_v10 = vpop.f32.mrf.mxu1  ;;  %v8258_v35 = vpop.f32.mrf.mxu2  ;;  %v22276_v7 = vld [vmem:[#allocation170_spill] sm:$0xff] }
 0x808   : > { %10010 = vst [vmem:[%s19612_s30 + $0x1b0] sm:$0xff] %v9874_v46  ;;  %v9403_v2 = vadd.f32 %v9267_v24, %v3722_v18  ;;  %v9419_v47 = vadd.f32 %v9283_v62, %v3695_v55  ;;  %v8230_v25 = vadd.f32 %v8229_v10, %v22272_v19  ;;  %v22277_v10 = vld [vmem:[#allocation41_spill] sm:$0xff] }
 0x809   : > { %10026 = vst [vmem:[%s19612_s30 + $0x230] sm:$0xff] %v9890_v42  ;;  %v8203_v52 = vpop.f32.mrf.mxu0 }
 0x80a   : > { %v9579_v32 = vmul.f32 %v19911_v22, %v9403_v2  ;;  %v9595_v44 = vmul.f32 %v19875_v4, %v9419_v47  ;;  %v8259_v14 = vadd.f32 %v8258_v35, %v8230_v25  ;;  %v8204_v43 = vadd.f32 %v8203_v52, %v8175_v28 }
 0x80b   : > { %v3727_v35 = vadd.f32 %v22277_v10, %v19892_v48  ;;  %v3700_v28 = vadd.f32 %v22278_v12, %v19859_v29  ;;  %v20186_v29 = vld [vmem:[%s21885_s21] sm:$0xff]  ;;  %v22284_v10 = vld [vmem:[#allocation174_spill] sm:$0xff] }
 0x80c   : > { %v9755_v37 = vadd.f32 %v19936_v54, %v9579_v32  ;;  %v9771_v63 = vadd.f32 %v19884_v9, %v9595_v44  ;;  %v9148_v38 = vadd.f32 %v19889_v39, %v8259_v14  ;;  %v9164_v31 = vadd.f32 %v19856_v13, %v8204_v43  ;;  %13248 = vmatmul.msk.bf16.gmra.mxu0 %vm1101_vm1, %v19264_v3  ;;  %v22279_v32 = vld [vmem:[#allocation159_spill] sm:$0xff] }
 0x80d   : > { %13252 = vmatmul.msk.bf16.gmra.mxu2 %vm1101_vm1, %v19264_v3  ;;  %v20158_v17 = vpop.f32.mrf.mxu3  ;;  %v8276_v44 = vadd.f32 %v19922_v59, %v22279_v32  ;;  %v20197_v59 = vperm.slane %v20194_v8, 4  ;;  %v20237_v12 = vperm.slane %v20186_v29, 5 }
 0x80e   : > { %v9891_v36 = vmax.f32 %v9755_v37, 0.0  ;;  %v9907_v56 = vmax.f32 %v9771_v63, 0.0  ;;  %v9284_v41 = vmul.f32 0.1, %v9148_v38  ;;  %v9300_v60 = vmul.f32 0.1, %v9164_v31 }
 0x80f   : > { %v8232_v1 = vpop.f32.mrf.mxu1  ;;  %v8261_v26 = vpop.f32.mrf.mxu2  ;;  %v22280_v63 = vld [vmem:[#allocation172_spill] sm:$0xff]  ;;  %v20189_v31 = vperm.slane %v20186_v29, 4 }
 0x810   : > { %10027 = vst [vmem:[%s19612_s30 + $0x238] sm:$0xff] %v9891_v36  ;;  %v9420_v57 = vadd.f32 %v9284_v41, %v3724_v21  ;;  %v9436_v0 = vadd.f32 %v9300_v60, %v3698_v50  ;;  %v8233_v11 = vadd.f32 %v8232_v1, %v22276_v7 }
 0x811   : > { %10043 = vst [vmem:[%s19612_s30 + $0x2b8] sm:$0xff] %v9907_v56  ;;  %v8205_v49 = vpop.f32.mrf.mxu0 }
 0x812   : > { %v9596_v18 = vmul.f32 %v19911_v22, %v9420_v57  ;;  %v9612_v61 = vmul.f32 %v19875_v4, %v9436_v0  ;;  %v8262_v55 = vadd.f32 %v8261_v26, %v8233_v11  ;;  %v8206_v46 = vadd.f32 %v8205_v49, %v8177_v30  ;;  %8463 = vmatmul.bf16.gmra.mxu1 %v19021_v5  ;;  %v22282_v57 = vld [vmem:[#allocation45_spill] sm:$0xff]  ;;  %v20215_v0 = vld [vmem:[%s21886_s22] sm:$0xff] }
 0x813   : > { %8521 = vmatmul.bf16.gmra.mxu3 %v19021_v5  ;;  %v3741_v30 = vadd.f32 %v22281_v45, %v20197_v59 }
 0x814   : > { %v9772_v53 = vadd.f32 %v19936_v54, %v9596_v18  ;;  %v9788_v42 = vadd.f32 %v19884_v9, %v9612_v61  ;;  %v9165_v24 = vadd.f32 %v19889_v39, %v8262_v55  ;;  %v9181_v62 = vadd.f32 %v19856_v13, %v8206_v46  ;;  %v22283_v61 = vld [vmem:[#allocation161_spill] sm:$0xff]  ;;  %v20229_v55 = vld [vmem:[%s21887_s23] sm:$0xff] }
 0x815   : > { %v20177_v2 = vpop.f32.mrf.mxu3  ;;  %v20232_v46 = vperm.slane %v20229_v55, 4 }
 0x816   : > { %v9908_v47 = vmax.f32 %v9772_v53, 0.0  ;;  %v9924_v19 = vmax.f32 %v9788_v42, 0.0  ;;  %v9301_v25 = vmul.f32 0.1, %v9165_v24  ;;  %v9317_v52 = vmul.f32 0.1, %v9181_v62 }
 0x817   : > { %v8234_v14 = vpop.f32.mrf.mxu1  ;;  %v8263_v43 = vpop.f32.mrf.mxu2 }
 0x818   : > { %10044 = vst [vmem:[%s19612_s30 + $0x2c0] sm:$0xff] %v9908_v47  ;;  %v9437_v13 = vadd.f32 %v9301_v25, %v3727_v35  ;;  %v9453_v37 = vadd.f32 %v9317_v52, %v3700_v28  ;;  %v8235_v38 = vadd.f32 %v8234_v14, %v22280_v63  ;;  %v13636_v47 = vld [vmem:[%s21883_s19 + $0x3e4] sm:$0xf]  ;;  %v12931_v14 = vld [vmem:[%s21883_s19 + $0x3e8] sm:$0xf] }
 0x819   : > { %10060 = vst [vmem:[%s19612_s30 + $0x340] sm:$0xff] %v9924_v19  ;;  %v8304_v21 = vpop.f32.mrf.mxu0  ;;  %v12925_v19 = vld [vmem:[%s21883_s19 + $0x424] sm:$0xf0] }
 0x81a   : > { %v9613_v6 = vmul.f32 %v19911_v22, %v9437_v13  ;;  %v9629_v50 = vmul.f32 %v19875_v4, %v9453_v37  ;;  %v8264_v36 = vadd.f32 %v8263_v43, %v8235_v38  ;;  %v8305_v56 = vadd.f32 %v8304_v21, %v8276_v44  ;;  %v13645_v43 = vld [vmem:[%s21883_s19 + $0x428] sm:$0xf0] }
 0x81b   : > { %v3729_v4 = vadd.f32 %v22282_v57, %v19892_v48  ;;  %v8278_v48 = vadd.f32 %v19982_v33, %v22283_v61  ;;  %v20240_v33 = vperm.slane %v20194_v8, 5  ;;  %v20259_v13 = vperm.slane %v20215_v0, 5 }
 0x81c   : > { %v9789_v41 = vadd.f32 %v19936_v54, %v9613_v6  ;;  %v9805_v60 = vadd.f32 %v19884_v9, %v9629_v50  ;;  %v9182_v1 = vadd.f32 %v19889_v39, %v8264_v36  ;;  %v9064_v26 = vadd.f32 %v20189_v31, %v8305_v56  ;;  %13253 = vmatmul.msk.bf16.vlgmr.msra.gmra.mxu0 %vm1101_vm1, %v22247_v58  ;;  %v22285_v50 = vld [vmem:[#allocation46_spill] sm:$0xff]  ;;  %v22286_v56 = vld [vmem:[#allocation48_spill] sm:$0xff] }
 0x81d   : > { %v20218_v9 = vperm.slane %v20215_v0, 4  ;;  %13257 = vmatmul.msk.bf16.vlgmr.msrb.gmra.mxu2 %vm1101_vm1, %v22247_v58  ;;  %v20222_v39 = vpop.f32.mrf.mxu3  ;;  %v12932_v37 = vor.u32 %v13645_v43, %v12931_v14  ;;  %v3770_v36 = vadd.f32 %v22285_v50, %v20240_v33  ;;  %v13611_v14 = vld [vmem:[%s21883_s19 + $0x318] sm:$0xf0]  ;;  %v22289_v43 = vld [vmem:[#allocation50_spill] sm:$0xff] }
 0x81e   : > { %v9925_v7 = vmax.f32 %v9789_v41, 0.0  ;;  %v9941_v11 = vmax.f32 %v9805_v60, 0.0  ;;  %v9318_v49 = vmul.f32 0.1, %v9182_v1  ;;  %v9200_v18 = vmul.f32 0.1, %v9064_v26 }
 0x81f   : > { %v8333_v53 = vpop.f32.mrf.mxu1  ;;  %v8362_v42 = vpop.f32.mrf.mxu2  ;;  %v3743_v41 = vadd.f32 %v22286_v56, %v20197_v59  ;;  %8730 = vmatpush.bf16.msra.mxu3 %v12932_v37  ;;  %v12857_v1 = vld [vmem:[%s21883_s19 + $0x39c] sm:$0xf0] }
 0x820   : > { %10061 = vst [vmem:[%s19612_s30 + $0x348] sm:$0xff] %v9925_v7  ;;  %v9454_v24 = vadd.f32 %v9318_v49, %v3729_v4  ;;  %v9336_v62 = vadd.f32 %v9200_v18, %v3741_v30  ;;  %v8334_v35 = vadd.f32 %v8333_v53, %v22284_v10  ;;  %v12863_v26 = vld [vmem:[%s21883_s19 + $0x360] sm:$0xf]  ;;  %v22287_v7 = vld [vmem:[#allocation163_spill] sm:$0xff]  ;;  %v20284_v49 = vperm.slane %v20229_v55, 5 }
 0x821   : > { %10077 = vst [vmem:[%s19612_s30 + $0x3c8] sm:$0xff] %v9941_v11  ;;  %v8306_v28 = vpop.f32.mrf.mxu0  ;;  %v8281_v11 = vadd.f32 %v20049_v34, %v22287_v7  ;;  %v13628_v53 = vld [vmem:[%s21883_s19 + $0x3a0] sm:$0xf0]  ;;  %v13602_v34 = vld [vmem:[%s21883_s19 + $0x2d4] sm:$0xf] }
 0x822   : > { %v9630_v25 = vmul.f32 %v19911_v22, %v9454_v24  ;;  %v9512_v52 = vmul.f32 %v20218_v9, %v9336_v62  ;;  %v8363_v32 = vadd.f32 %v8362_v42, %v8334_v35  ;;  %v8307_v44 = vadd.f32 %v8306_v28, %v8278_v48  ;;  %8564 = vmatmul.bf16.vlgmr.msrb.gmra.mxu1 %v22252_v23  ;;  %v22288_v62 = vld [vmem:[#allocation176_spill] sm:$0xff]  ;;  %v12721_v7 = vld [vmem:[%s21883_s19 + $0x28c] sm:$0xf0] }
 0x823   : > { %8622 = vmatmul.bf16.vlgmr.msrb.gmra.mxu3 %v22252_v23  ;;  %v12928_v22 = vor.u32 %v13636_v47, %v12925_v19  ;;  %v12864_v35 = vor.u32 %v13628_v53, %v12863_v26  ;;  %v12789_v47 = vld [vmem:[%s21883_s19 + $0x314] sm:$0xf0] }
 0x824   : > { %v9806_v63 = vadd.f32 %v19936_v54, %v9630_v25  ;;  %v9688_v38 = vadd.f32 %v20232_v46, %v9512_v52  ;;  %v9065_v21 = vadd.f32 %v20237_v12, %v8363_v32  ;;  %v9081_v6 = vadd.f32 %v20189_v31, %v8307_v44  ;;  %v13619_v54 = vld [vmem:[%s21883_s19 + $0x35c] sm:$0xf]  ;;  %v12795_v44 = vld [vmem:[%s21883_s19 + $0x2d8] sm:$0xf] }
 0x825   : > { %v20270_v60 = vpop.f32.mrf.mxu3  ;;  %8672 = vmatpush.bf16.msra.mxu1 %v12928_v22  ;;  %v12860_v48 = vor.u32 %v13619_v54, %v12857_v1  ;;  %8731 = vmatpush.bf16.msra.mxu3 %v12864_v35  ;;  %v3772_v22 = vadd.f32 %v22289_v43, %v20240_v33  ;;  %v12792_v37 = vor.u32 %v13602_v34, %v12789_v47  ;;  %v13197_v54 = vld [vmem:[%s21883_s19 + $0x644] sm:$0xf0]  ;;  %v22290_v1 = vld [vmem:[#allocation52_spill] sm:$0xff]  ;;  %v13594_v35 = vld [vmem:[%s21883_s19 + $0x290] sm:$0xf0] }
 0x826   : > { %v9942_v45 = vmax.f32 %v9806_v63, 0.0  ;;  %v9824_v30 = vmax.f32 %v9688_v38, 0.0  ;;  %v9201_v57 = vmul.f32 0.1, %v9065_v21  ;;  %v9217_v4 = vmul.f32 0.1, %v9081_v6 }
 0x827   : > { %v8335_v18 = vpop.f32.mrf.mxu1  ;;  %v8364_v61 = vpop.f32.mrf.mxu2  ;;  %v12796_v63 = vor.u32 %v13611_v14, %v12795_v44  ;;  %v13195_v38 = vld [vmem:[%s21883_s19 + $0x600] sm:$0xf]  ;;  %v13712_v21 = vld [vmem:[%s21883_s19 + $0x640] sm:$0xf0]  ;;  %v3746_v26 = vadd.f32 %v22290_v1, %v20197_v59  ;;  %v13695_v34 = vld [vmem:[%s21883_s19 + $0x5b8] sm:$0xf0] }
 0x828   : > { %10078 = vst [vmem:[%s19612_s30 + $0x3d0] sm:$0xff] %v9942_v45  ;;  %v9337_v42 = vadd.f32 %v9201_v57, %v3770_v36  ;;  %v9353_v24 = vadd.f32 %v9217_v4, %v3743_v41  ;;  %v8336_v10 = vadd.f32 %v8335_v18, %v22288_v62  ;;  %v13704_v6 = vld [vmem:[%s21883_s19 + $0x604] sm:$0xf]  ;;  %v13585_v4 = vld [vmem:[%s21883_s19 + $0x24c] sm:$0xf] }
 0x829   : > { %9960 = vst [vmem:[%s19612_s30 + $0x20] sm:$0xff] %v9824_v30  ;;  %v8309_v28 = vpop.f32.mrf.mxu0  ;;  %8673 = vmatpush.bf16.msra.mxu1 %v12860_v48  ;;  %v13196_v30 = vor.u32 %v13712_v21, %v13195_v38  ;;  %v13200_v57 = vor.u32 %v13704_v6, %v13197_v54  ;;  %8732 = vmatpush.bf16.msra.mxu3 %v12796_v63  ;;  %v13687_v44 = vld [vmem:[%s21883_s19 + $0x57c] sm:$0xf]  ;;  %v13129_v14 = vld [vmem:[%s21883_s19 + $0x5bc] sm:$0xf0]  ;;  %v22293_v54 = vld [vmem:[#allocation54_spill] sm:$0xff] }
 0x82a   : > { %v9513_v19 = vmul.f32 %v20259_v13, %v9337_v42  ;;  %v9529_v25 = vmul.f32 %v20218_v9, %v9353_v24  ;;  %v8365_v52 = vadd.f32 %v8364_v61, %v8336_v10  ;;  %v8310_v32 = vadd.f32 %v8309_v28, %v8281_v11  ;;  %v12727_v11 = vld [vmem:[%s21883_s19 + $0x250] sm:$0xf]  ;;  %v22291_v42 = vld [vmem:[#allocation165_spill] sm:$0xff]  ;;  %v13127_v28 = vld [vmem:[%s21883_s19 + $0x578] sm:$0xf] }
 0x82b   : > { %v8283_v24 = vadd.f32 %v20106_v40, %v22291_v42  ;;  %8647 = vmatpush.bf16.msrb.mxu0 %v13196_v30  ;;  %8705 = vmatpush.bf16.msra.mxu2 %v13200_v57  ;;  %v12724_v10 = vor.u32 %v13585_v4, %v12721_v7  ;;  %v13132_v63 = vor.u32 %v13687_v44, %v13129_v14  ;;  %v12653_v38 = vld [vmem:[%s21883_s19 + $0x204] sm:$0xf0]  ;;  %v13059_v57 = vld [vmem:[%s21883_s19 + $0x4f0] sm:$0xf]  ;;  %v13678_v4 = vld [vmem:[%s21883_s19 + $0x530] sm:$0xf0] }
 0x82c   : > { %v9689_v50 = vadd.f32 %v20284_v49, %v9513_v19  ;;  %v9705_v36 = vadd.f32 %v20232_v46, %v9529_v25  ;;  %v9082_v56 = vadd.f32 %v20237_v12, %v8365_v52  ;;  %v9098_v41 = vadd.f32 %v20189_v31, %v8310_v32  ;;  %13254 = vmatmul.msk.bf16.gmra.mxu0 %vm1101_vm1, %v19100_v20  ;;  %v22292_v19 = vld [vmem:[#allocation178_spill] sm:$0xff]  ;;  %v22294_v42 = vld [vmem:[#allocation56_spill] sm:$0xff] }
 0x82d   : > { %13258 = vmatmul.msk.bf16.gmra.mxu2 %vm1101_vm1, %v19100_v20  ;;  %v20330_v45 = vpop.f32.mrf.mxu3  ;;  %8674 = vmatpush.bf16.msra.mxu1 %v12792_v37  ;;  %v12728_v32 = vor.u32 %v13594_v35, %v12727_v11  ;;  %v13128_v37 = vor.u32 %v13695_v34, %v13127_v28  ;;  %v3775_v1 = vadd.f32 %v22293_v54, %v20240_v33  ;;  %v13670_v7 = vld [vmem:[%s21883_s19 + $0x4f4] sm:$0xf]  ;;  %v13551_v35 = vld [vmem:[%s21883_s19 + $0x13c] sm:$0xf]  ;;  %v12585_v28 = vld [vmem:[%s21883_s19 + $0x17c] sm:$0xf0] }
 0x82e   : > { %v9825_v18 = vmax.f32 %v9689_v50, 0.0  ;;  %v9841_v61 = vmax.f32 %v9705_v36, 0.0  ;;  %v9218_v48 = vmul.f32 0.1, %v9082_v56  ;;  %v9234_v53 = vmul.f32 0.1, %v9098_v41 }
 0x82f   : > { %v8338_v62 = vpop.f32.mrf.mxu1  ;;  %v12659_v56 = vld [vmem:[%s21883_s19 + $0x1c8] sm:$0xf]  ;;  %v13577_v41 = vld [vmem:[%s21883_s19 + $0x208] sm:$0xf0]  ;;  %8648 = vmatpush.bf16.msrb.mxu0 %v13128_v37  ;;  %8733 = vmatpush.bf16.msra.mxu3 %v12728_v32  ;;  %v12591_v34 = vld [vmem:[%s21883_s19 + $0x140] sm:$0xf] }
 0x830   : > { %9961 = vst [vmem:[%s19612_s30 + $0x28] sm:$0xff] %v9825_v18  ;;  %v9354_v47 = vadd.f32 %v9218_v48, %v3772_v22  ;;  %v9370_v40 = vadd.f32 %v9234_v53, %v3746_v26  ;;  %v8339_v25 = vadd.f32 %v8338_v62, %v22292_v19  ;;  %v8367_v52 = vpop.f32.mrf.mxu2  ;;  %v13568_v22 = vld [vmem:[%s21883_s19 + $0x1c4] sm:$0xf]  ;;  %v12660_v30 = vor.u32 %v13577_v41, %v12659_v56  ;;  %v13061_v53 = vld [vmem:[%s21883_s19 + $0x534] sm:$0xf0] }
 0x831   : > { %9977 = vst [vmem:[%s19612_s30 + $0xa8] sm:$0xff] %v9841_v61  ;;  %v8311_v43 = vpop.f32.mrf.mxu0  ;;  %8675 = vmatpush.bf16.msra.mxu1 %v12724_v10  ;;  %v12656_v26 = vor.u32 %v13568_v22, %v12653_v38  ;;  %8706 = vmatpush.bf16.msra.mxu2 %v13132_v63  ;;  %v13060_v62 = vor.u32 %v13678_v4, %v13059_v57  ;;  %v22295_v32 = vld [vmem:[#allocation167_spill] sm:$0xff]  ;;  %v13560_v37 = vld [vmem:[%s21883_s19 + $0x180] sm:$0xf0]  ;;  %v12991_v63 = vld [vmem:[%s21883_s19 + $0x468] sm:$0xf] }
 0x832   : > { %v9530_v21 = vmul.f32 %v20259_v13, %v9354_v47  ;;  %v9546_v6 = vmul.f32 %v20218_v9, %v9370_v40  ;;  %v8368_v50 = vadd.f32 %v8367_v52, %v8339_v25  ;;  %v8312_v36 = vadd.f32 %v8311_v43, %v8283_v24  ;;  %8569 = vmatmul.bf16.gmra.mxu1 %v18887_v27  ;;  %v13661_v22 = vld [vmem:[%s21883_s19 + $0x4a8] sm:$0xf0]  ;;  %v12993_v56 = vld [vmem:[%s21883_s19 + $0x4ac] sm:$0xf0]  ;;  %v13534_v57 = vld [vmem:[%s21883_s19 + $0xb4] sm:$0xf] }
 0x833   : > { %8627 = vmatmul.bf16.gmra.mxu3 %v18887_v27  ;;  %v3748_v24 = vadd.f32 %v22294_v42, %v20197_v59  ;;  %v13064_v10 = vor.u32 %v13670_v7, %v13061_v53  ;;  %v8286_v44 = vadd.f32 %v20137_v16, %v22295_v32  ;;  %8649 = vmatpush.bf16.msrb.mxu0 %v13060_v62  ;;  %v12455_v32 = vld [vmem:[%s21883_s19 + $0x30] sm:$0xf] }
 0x834   : > { %v9706_v11 = vadd.f32 %v20284_v49, %v9530_v21  ;;  %v9722_v18 = vadd.f32 %v20232_v46, %v9546_v6  ;;  %v9099_v61 = vadd.f32 %v20237_v12, %v8368_v50  ;;  %v9115_v48 = vadd.f32 %v20189_v31, %v8312_v36  ;;  %v22296_v6 = vld [vmem:[#allocation180_spill] sm:$0xff]  ;;  %8734 = vmatpush.bf16.msra.mxu3 %v12660_v30  ;;  %v13653_v36 = vld [vmem:[%s21883_s19 + $0x46c] sm:$0xf]  ;;  %v12517_v30 = vld [vmem:[%s21883_s19 + $0xf4] sm:$0xf0] }
 0x835   : > { %8676 = vmatpush.bf16.msra.mxu1 %v12656_v26  ;;  %v12588_v43 = vor.u32 %v13551_v35, %v12585_v28  ;;  %8707 = vmatpush.bf16.msra.mxu2 %v13064_v10  ;;  %v12592_v54 = vor.u32 %v13560_v37, %v12591_v34  ;;  %v12992_v26 = vor.u32 %v13661_v22, %v12991_v63  ;;  %v22297_v35 = vld [vmem:[#allocation58_spill] sm:$0xff]  ;;  %v22298_v34 = vld [vmem:[#allocation60_spill] sm:$0xff] }
 0x836   : > { %v9842_v47 = vmax.f32 %v9706_v11, 0.0  ;;  %v9858_v40 = vmax.f32 %v9722_v18, 0.0  ;;  %v9235_v19 = vmul.f32 0.1, %v9099_v61  ;;  %v9251_v25 = vmul.f32 0.1, %v9115_v48  ;;  %v20406_v52 = vpop.f32.mrf.mxu3 }
 0x837   : > { %v8340_v14 = vpop.f32.mrf.mxu1  ;;  %v12523_v61 = vld [vmem:[%s21883_s19 + $0xb8] sm:$0xf]  ;;  %v13543_v48 = vld [vmem:[%s21883_s19 + $0xf8] sm:$0xf0]  ;;  %8650 = vmatpush.bf16.msrb.mxu0 %v12992_v26  ;;  %v12520_v53 = vor.u32 %v13534_v57, %v12517_v30  ;;  %v3777_v28 = vadd.f32 %v22297_v35, %v20240_v33 }
 0x838   : > { %9978 = vst [vmem:[%s19612_s30 + $0xb0] sm:$0xff] %v9842_v47  ;;  %v9371_v38 = vadd.f32 %v9235_v19, %v3775_v1  ;;  %v9387_v21 = vadd.f32 %v9251_v25, %v3748_v24  ;;  %v8341_v16 = vadd.f32 %v8340_v14, %v22296_v6  ;;  %v8369_v50 = vpop.f32.mrf.mxu2  ;;  %v12996_v1 = vor.u32 %v13653_v36, %v12993_v56  ;;  %v13517_v19 = vld [vmem:[%s21883_s19 + $0x2c] sm:$0xf]  ;;  %v12449_v25 = vld [vmem:[%s21883_s19 + $0x6c] sm:$0xf0] }
 0x839   : > { %9994 = vst [vmem:[%s19612_s30 + $0x130] sm:$0xff] %v9858_v40  ;;  %v8314_v41 = vpop.f32.mrf.mxu0  ;;  %8677 = vmatpush.bf16.msra.mxu1 %v12588_v43  ;;  %v3751_v47 = vadd.f32 %v22298_v34, %v20197_v59  ;;  %8735 = vmatpush.bf16.msra.mxu3 %v12592_v54  ;;  %v12524_v40 = vor.u32 %v13543_v48, %v12523_v61  ;;  %v22299_v6 = vld [vmem:[#allocation169_spill] sm:$0xff]  ;;  %v22300_v56 = vld [vmem:[#allocation182_spill] sm:$0xff] }
 0x83a   : > { %v9547_v4 = vmul.f32 %v20259_v13, %v9371_v38  ;;  %v9563_v7 = vmul.f32 %v20218_v9, %v9387_v21  ;;  %v8370_v11 = vadd.f32 %v8369_v50, %v8341_v16  ;;  %v8315_v18 = vadd.f32 %v8314_v41, %v8286_v44  ;;  %8708 = vmatpush.bf16.msra.mxu2 %v12996_v1  ;;  %v13526_v21 = vld [vmem:[%s21883_s19 + $0x70] sm:$0xf0] }
 0x83b   : > { %v12452_v38 = vor.u32 %v13517_v19, %v12449_v25  ;;  %v8288_v16 = vadd.f32 %v20158_v17, %v22299_v6  ;;  %v12456_v1 = vor.u32 %v13526_v21, %v12455_v32  ;;  %v22301_v48 = vld [vmem:[#allocation62_spill] sm:$0xff] }
 0x83c   : > { %v9723_v42 = vadd.f32 %v20284_v49, %v9547_v4  ;;  %v9739_v24 = vadd.f32 %v20232_v46, %v9563_v7  ;;  %v9116_v62 = vadd.f32 %v20237_v12, %v8370_v11  ;;  %v9132_v10 = vadd.f32 %v20189_v31, %v8315_v18  ;;  %13255 = vmatmul.msk.bf16.gmra.mxu0 %vm1101_vm1, %v19224_v15 }
 0x83d   : > { %13259 = vmatmul.msk.bf16.gmra.mxu2 %vm1101_vm1, %v19224_v15  ;;  %8678 = vmatpush.bf16.msra.mxu1 %v12520_v53  ;;  %v3780_v53 = vadd.f32 %v22301_v48, %v20240_v33 }
 0x83e   : > { %v9859_v44 = vmax.f32 %v9723_v42, 0.0  ;;  %v9875_v14 = vmax.f32 %v9739_v24, 0.0  ;;  %v9252_v43 = vmul.f32 0.1, %v9116_v62  ;;  %v9268_v37 = vmul.f32 0.1, %v9132_v10  ;;  %v20463_v63 = vpop.f32.mrf.mxu3  ;;  %8736 = vmatpush.bf16.msra.mxu3 %v12524_v40 }
 0x83f   : > { %v8343_v22 = vpop.f32.mrf.mxu1  ;;  %v22302_v42 = vld [vmem:[#allocation64_spill] sm:$0xff]  ;;  %v22303_v40 = vld [vmem:[#allocation171_spill] sm:$0xff] }
 0x840   : > { %9995 = vst [vmem:[%s19612_s30 + $0x138] sm:$0xff] %v9859_v44  ;;  %v9388_v50 = vadd.f32 %v9252_v43, %v3777_v28  ;;  %v9404_v36 = vadd.f32 %v9268_v37, %v3751_v47  ;;  %v8344_v41 = vadd.f32 %v8343_v22, %v22300_v56  ;;  %v8372_v54 = vpop.f32.mrf.mxu2  ;;  %v3753_v24 = vadd.f32 %v22302_v42, %v20197_v59  ;;  %v22304_v44 = vld [vmem:[#allocation184_spill] sm:$0xff]  ;;  %v22305_v56 = vld [vmem:[#allocation66_spill] sm:$0xff] }
 0x841   : > { %10011 = vst [vmem:[%s19612_s30 + $0x1b8] sm:$0xff] %v9875_v14  ;;  %v8316_v26 = vpop.f32.mrf.mxu0  ;;  %8679 = vmatpush.bf16.msra.mxu1 %v12452_v38  ;;  %v8291_v19 = vadd.f32 %v20177_v2, %v22303_v40 }
 0x842   : > { %v9564_v57 = vmul.f32 %v20259_v13, %v9388_v50  ;;  %v9580_v30 = vmul.f32 %v20218_v9, %v9404_v36  ;;  %v8373_v4 = vadd.f32 %v8372_v54, %v8344_v41  ;;  %v8317_v7 = vadd.f32 %v8316_v26, %v8288_v16  ;;  %8574 = vmatmul.bf16.gmra.mxu1 %v18985_v51  ;;  %v22306_v54 = vld [vmem:[#allocation68_spill] sm:$0xff] }
 0x843   : > { %8632 = vmatmul.bf16.gmra.mxu3 %v18985_v51  ;;  %v3782_v41 = vadd.f32 %v22305_v56, %v20240_v33  ;;  %v3756_v26 = vadd.f32 %v22306_v54, %v20197_v59  ;;  %v22312_v56 = vld [vmem:[#allocation188_spill] sm:$0xff] }
 0x844   : > { %v9740_v17 = vadd.f32 %v20284_v49, %v9564_v57  ;;  %v9756_v11 = vadd.f32 %v20232_v46, %v9580_v30  ;;  %v9133_v18 = vadd.f32 %v20237_v12, %v8373_v4  ;;  %v9149_v61 = vadd.f32 %v20189_v31, %v8317_v7  ;;  %8737 = vmatpush.bf16.msra.mxu3 %v12456_v1 }
 0x846   : > { %v9876_v62 = vmax.f32 %v9740_v17, 0.0  ;;  %v9892_v10 = vmax.f32 %v9756_v11, 0.0  ;;  %v9269_v35 = vmul.f32 0.1, %v9133_v18  ;;  %v9285_v28 = vmul.f32 0.1, %v9149_v61  ;;  %v20485_v34 = vpop.f32.mrf.mxu3 }
 0x847   : > { %v8345_v47 = vpop.f32.mrf.mxu1  ;;  %v22307_v11 = vld [vmem:[#allocation173_spill] sm:$0xff] }
 0x848   : > { %10012 = vst [vmem:[%s19612_s30 + $0x1c0] sm:$0xff] %v9876_v62  ;;  %v9405_v25 = vadd.f32 %v9269_v35, %v3780_v53  ;;  %v9421_v32 = vadd.f32 %v9285_v28, %v3753_v24  ;;  %v8346_v14 = vadd.f32 %v8345_v47, %v22304_v44  ;;  %v8374_v43 = vpop.f32.mrf.mxu2  ;;  %v8293_v18 = vadd.f32 %v20222_v39, %v22307_v11  ;;  %v22308_v53 = vld [vmem:[#allocation186_spill] sm:$0xff] }
 0x849   : > { %10028 = vst [vmem:[%s19612_s30 + $0x240] sm:$0xff] %v9892_v10  ;;  %v8319_v37 = vpop.f32.mrf.mxu0 }
 0x84a   : > { %v9581_v22 = vmul.f32 %v20259_v13, %v9405_v25  ;;  %v9597_v38 = vmul.f32 %v20218_v9, %v9421_v32  ;;  %v8375_v21 = vadd.f32 %v8374_v43, %v8346_v14  ;;  %v8320_v6 = vadd.f32 %v8319_v37, %v8291_v19  ;;  %v22309_v32 = vld [vmem:[#allocation70_spill] sm:$0xff]  ;;  %v22310_v14 = vld [vmem:[#allocation72_spill] sm:$0xff] }
 0x84b   : > { %v3785_v44 = vadd.f32 %v22309_v32, %v20240_v33  ;;  %v3758_v43 = vadd.f32 %v22310_v14, %v20197_v59  ;;  %v20535_v59 = vperm.slane %v20194_v8, 6  ;;  %v20565_v14 = vperm.slane %v20186_v29, 7 }
 0x84c   : > { %v9757_v16 = vadd.f32 %v20284_v49, %v9581_v22  ;;  %v9773_v50 = vadd.f32 %v20232_v46, %v9597_v38  ;;  %v9150_v2 = vadd.f32 %v20237_v12, %v8375_v21  ;;  %v9166_v36 = vadd.f32 %v20189_v31, %v8320_v6  ;;  %13256 = vmatmul.msk.bf16.gmra.mxu0 %vm1101_vm1, %v19264_v3 }
 0x84d   : > { %13260 = vmatmul.msk.bf16.gmra.mxu2 %vm1101_vm1, %v19264_v3 }
 0x84e   : > { %v9893_v1 = vmax.f32 %v9757_v16, 0.0  ;;  %v9909_v57 = vmax.f32 %v9773_v50, 0.0  ;;  %v9286_v30 = vmul.f32 0.1, %v9150_v2  ;;  %v9302_v4 = vmul.f32 0.1, %v9166_v36  ;;  %v20506_v7 = vpop.f32.mrf.mxu3 }
 0x84f   : > { %v8348_v17 = vpop.f32.mrf.mxu1  ;;  %v22311_v16 = vld [vmem:[#allocation175_spill] sm:$0xff] }
 0x850   : > { %10029 = vst [vmem:[%s19612_s30 + $0x248] sm:$0xff] %v9893_v1  ;;  %v9422_v61 = vadd.f32 %v9286_v30, %v3782_v41  ;;  %v9438_v48 = vadd.f32 %v9302_v4, %v3756_v26  ;;  %v8349_v42 = vadd.f32 %v8348_v17, %v22308_v53  ;;  %v8377_v24 = vpop.f32.mrf.mxu2  ;;  %v8392_v50 = vadd.f32 %v20270_v60, %v22311_v16 }
 0x851   : > { %10045 = vst [vmem:[%s19612_s30 + $0x2c8] sm:$0xff] %v9909_v57  ;;  %v8321_v62 = vpop.f32.mrf.mxu0  ;;  %v20532_v26 = vperm.slane %v20186_v29, 6 }
 0x852   : > { %v9598_v10 = vmul.f32 %v20259_v13, %v9422_v61  ;;  %v9614_v35 = vmul.f32 %v20218_v9, %v9438_v48  ;;  %v8378_v28 = vadd.f32 %v8377_v24, %v8349_v42  ;;  %v8322_v47 = vadd.f32 %v8321_v62, %v8293_v18  ;;  %8579 = vmatmul.bf16.gmra.mxu1 %v19021_v5  ;;  %v22313_v48 = vld [vmem:[#allocation47_spill] sm:$0xff]  ;;  %v22314_v42 = vld [vmem:[#allocation74_spill] sm:$0xff] }
 0x853   : > { %8637 = vmatmul.bf16.gmra.mxu3 %v19021_v5  ;;  %v3799_v53 = vadd.f32 %v22313_v48, %v20535_v59  ;;  %v20551_v24 = vperm.slane %v20215_v0, 6 }
 0x854   : > { %v9774_v39 = vadd.f32 %v20284_v49, %v9598_v10  ;;  %v9790_v40 = vadd.f32 %v20232_v46, %v9614_v35  ;;  %v9167_v19 = vadd.f32 %v20237_v12, %v8378_v28  ;;  %v9183_v25 = vadd.f32 %v20189_v31, %v8322_v47  ;;  %v22315_v28 = vld [vmem:[#allocation177_spill] sm:$0xff] }
 0x855   : > { %v8394_v47 = vadd.f32 %v20330_v45, %v22315_v28  ;;  %v13637_v45 = vld [vmem:[%s21883_s19 + $0x3ec] sm:$0xf] }
 0x856   : > { %v9910_v37 = vmax.f32 %v9774_v39, 0.0  ;;  %v9926_v22 = vmax.f32 %v9790_v40, 0.0  ;;  %v9303_v38 = vmul.f32 0.1, %v9167_v19  ;;  %v9319_v21 = vmul.f32 0.1, %v9183_v25  ;;  %v20525_v6 = vpop.f32.mrf.mxu3 }
 0x857   : > { %v8350_v2 = vpop.f32.mrf.mxu1  ;;  %v20560_v39 = vperm.slane %v20229_v55, 6  ;;  %v22316_v25 = vld [vmem:[#allocation190_spill] sm:$0xff] }
 0x858   : > { %10046 = vst [vmem:[%s19612_s30 + $0x2d0] sm:$0xff] %v9910_v37  ;;  %v9439_v36 = vadd.f32 %v9303_v38, %v3785_v44  ;;  %v9455_v31 = vadd.f32 %v9319_v21, %v3758_v43  ;;  %v8351_v41 = vadd.f32 %v8350_v2, %v22312_v56  ;;  %v8379_v54 = vpop.f32.mrf.mxu2  ;;  %v20568_v43 = vperm.slane %v20194_v8, 7  ;;  %v12939_v8 = vld [vmem:[%s21883_s19 + $0x3f0] sm:$0xf] }
 0x859   : > { %10062 = vst [vmem:[%s19612_s30 + $0x350] sm:$0xff] %v9926_v22  ;;  %v8420_v1 = vpop.f32.mrf.mxu0  ;;  %v12933_v22 = vld [vmem:[%s21883_s19 + $0x42c] sm:$0xf0]  ;;  %v20587_v2 = vperm.slane %v20215_v0, 7  ;;  %v13620_v0 = vld [vmem:[%s21883_s19 + $0x364] sm:$0xf] }
 0x85a   : > { %v9615_v57 = vmul.f32 %v20259_v13, %v9439_v36  ;;  %v9631_v30 = vmul.f32 %v20218_v9, %v9455_v31  ;;  %v8380_v60 = vadd.f32 %v8379_v54, %v8351_v41  ;;  %v8421_v4 = vadd.f32 %v8420_v1, %v8392_v50  ;;  %v13646_v50 = vld [vmem:[%s21883_s19 + $0x430] sm:$0xf0]  ;;  %v22317_v1 = vld [vmem:[#allocation49_spill] sm:$0xff] }
 0x85b   : > { %v3787_v9 = vadd.f32 %v22314_v42, %v20240_v33  ;;  %v12940_v36 = vor.u32 %v13646_v50, %v12939_v8  ;;  %v13203_v50 = vld [vmem:[%s21883_s19 + $0x608] sm:$0xf] }
 0x85c   : > { %v9791_v17 = vadd.f32 %v20284_v49, %v9615_v57  ;;  %v9807_v11 = vadd.f32 %v20232_v46, %v9631_v30  ;;  %v9184_v18 = vadd.f32 %v20237_v12, %v8380_v60  ;;  %v9066_v61 = vadd.f32 %v20532_v26, %v8421_v4  ;;  %13261 = vmatmul.msk.bf16.vlgmr.msrb.gmra.mxu0 %vm1101_vm1, %v22247_v58  ;;  %v22318_v30 = vld [vmem:[#allocation51_spill] sm:$0xff]  ;;  %v12871_v4 = vld [vmem:[%s21883_s19 + $0x368] sm:$0xf] }
 0x85d   : > { %13265 = vmatmul.msk.bf16.vlgmr.msra.gmra.mxu2 %vm1101_vm1, %v22247_v58  ;;  %v3828_v57 = vadd.f32 %v22317_v1, %v20568_v43  ;;  %v3801_v60 = vadd.f32 %v22318_v30, %v20535_v59  ;;  %8846 = vmatpush.bf16.msrb.mxu3 %v12940_v36  ;;  %v13705_v36 = vld [vmem:[%s21883_s19 + $0x60c] sm:$0xf]  ;;  %v13205_v1 = vld [vmem:[%s21883_s19 + $0x64c] sm:$0xf0] }
 0x85e   : > { %v9927_v46 = vmax.f32 %v9791_v17, 0.0  ;;  %v9943_v12 = vmax.f32 %v9807_v11, 0.0  ;;  %v9320_v62 = vmul.f32 0.1, %v9184_v18  ;;  %v9202_v10 = vmul.f32 0.1, %v9066_v61  ;;  %v20555_v35 = vpop.f32.mrf.mxu3 }
 0x85f   : > { %v8449_v33 = vpop.f32.mrf.mxu1 }
 0x860   : > { %10063 = vst [vmem:[%s19612_s30 + $0x358] sm:$0xff] %v9927_v46  ;;  %v9456_v40 = vadd.f32 %v9320_v62, %v3787_v9  ;;  %v9338_v19 = vadd.f32 %v9202_v10, %v3799_v53  ;;  %v8450_v32 = vadd.f32 %v8449_v33, %v22316_v25  ;;  %v8478_v44 = vpop.f32.mrf.mxu2  ;;  %v22319_v53 = vld [vmem:[#allocation179_spill] sm:$0xff]  ;;  %v20612_v9 = vperm.slane %v20229_v55, 7  ;;  %v13629_v62 = vld [vmem:[%s21883_s19 + $0x3a8] sm:$0xf0] }
 0x861   : > { %10079 = vst [vmem:[%s19612_s30 + $0x3d8] sm:$0xff] %v9943_v12  ;;  %v8422_v37 = vpop.f32.mrf.mxu0  ;;  %v8397_v42 = vadd.f32 %v20406_v52, %v22319_v53  ;;  %v13603_v55 = vld [vmem:[%s21883_s19 + $0x2dc] sm:$0xf]  ;;  %v12797_v52 = vld [vmem:[%s21883_s19 + $0x31c] sm:$0xf0] }
 0x862   : > { %v9632_v38 = vmul.f32 %v20259_v13, %v9456_v40  ;;  %v9514_v21 = vmul.f32 %v20551_v24, %v9338_v19  ;;  %v8479_v16 = vadd.f32 %v8478_v44, %v8450_v32  ;;  %v8423_v29 = vadd.f32 %v8422_v37, %v8394_v47  ;;  %8680 = vmatmul.bf16.vlgmr.msra.gmra.mxu1 %v22252_v23  ;;  %v22320_v47 = vld [vmem:[#allocation192_spill] sm:$0xff] }
 0x863   : > { %8738 = vmatmul.bf16.vlgmr.msra.gmra.mxu3 %v22252_v23  ;;  %v12936_v13 = vor.u32 %v13637_v45, %v12933_v22  ;;  %v12872_v19 = vor.u32 %v13629_v62, %v12871_v4  ;;  %v12803_v22 = vld [vmem:[%s21883_s19 + $0x2e0] sm:$0xf]  ;;  %v12729_v4 = vld [vmem:[%s21883_s19 + $0x294] sm:$0xf0] }
 0x864   : > { %v9808_v31 = vadd.f32 %v20284_v49, %v9632_v38  ;;  %v9690_v56 = vadd.f32 %v20560_v39, %v9514_v21  ;;  %v9067_v41 = vadd.f32 %v20565_v14, %v8479_v16  ;;  %v9083_v54 = vadd.f32 %v20532_v26, %v8423_v29  ;;  %v12865_v49 = vld [vmem:[%s21883_s19 + $0x3a4] sm:$0xf0]  ;;  %v13612_v38 = vld [vmem:[%s21883_s19 + $0x320] sm:$0xf0] }
 0x865   : > { %8788 = vmatpush.bf16.msrb.mxu1 %v12936_v13  ;;  %v12868_v12 = vor.u32 %v13620_v0, %v12865_v49  ;;  %8847 = vmatpush.bf16.msrb.mxu3 %v12872_v19  ;;  %v22321_v21 = vld [vmem:[#allocation53_spill] sm:$0xff]  ;;  %v12800_v29 = vor.u32 %v13603_v55, %v12797_v52  ;;  %v12804_v8 = vor.u32 %v13612_v38, %v12803_v22  ;;  %v13586_v49 = vld [vmem:[%s21883_s19 + $0x254] sm:$0xf] }
 0x866   : > { %v9944_v17 = vmax.f32 %v9808_v31, 0.0  ;;  %v9826_v11 = vmax.f32 %v9690_v56, 0.0  ;;  %v9203_v18 = vmul.f32 0.1, %v9067_v41  ;;  %v9219_v61 = vmul.f32 0.1, %v9083_v54  ;;  %v20607_v48 = vpop.f32.mrf.mxu3 }
 0x867   : > { %v8451_v46 = vpop.f32.mrf.mxu1  ;;  %v3830_v16 = vadd.f32 %v22321_v21, %v20568_v43  ;;  %v13713_v13 = vld [vmem:[%s21883_s19 + $0x648] sm:$0xf0]  ;;  %v13208_v0 = vor.u32 %v13705_v36, %v13205_v1  ;;  %v22324_v19 = vld [vmem:[#allocation194_spill] sm:$0xff]  ;;  %v13067_v1 = vld [vmem:[%s21883_s19 + $0x4f8] sm:$0xf] }
 0x868   : > { %10080 = vst [vmem:[%s19612_s30 + $0x3e0] sm:$0xff] %v9944_v17  ;;  %v9339_v10 = vadd.f32 %v9203_v18, %v3828_v57  ;;  %v9355_v28 = vadd.f32 %v9219_v61, %v3801_v60  ;;  %v8452_v33 = vadd.f32 %v8451_v46, %v22320_v47  ;;  %v8480_v40 = vpop.f32.mrf.mxu2  ;;  %v22322_v57 = vld [vmem:[#allocation55_spill] sm:$0xff]  ;;  %v13204_v60 = vor.u32 %v13713_v13, %v13203_v50  ;;  %v22323_v46 = vld [vmem:[#allocation181_spill] sm:$0xff]  ;;  %v13135_v47 = vld [vmem:[%s21883_s19 + $0x580] sm:$0xf] }
 0x869   : > { %9962 = vst [vmem:[%s19612_s30 + $0x30] sm:$0xff] %v9826_v11  ;;  %v8425_v25 = vpop.f32.mrf.mxu0  ;;  %8789 = vmatpush.bf16.msrb.mxu1 %v12868_v12  ;;  %v3804_v30 = vadd.f32 %v22322_v57, %v20535_v59  ;;  %v12735_v17 = vld [vmem:[%s21883_s19 + $0x258] sm:$0xf]  ;;  %8848 = vmatpush.bf16.msrb.mxu3 %v12804_v8  ;;  %v8399_v12 = vadd.f32 %v20463_v63, %v22323_v46  ;;  %v13569_v38 = vld [vmem:[%s21883_s19 + $0x1cc] sm:$0xf] }
 0x86a   : > { %v9515_v32 = vmul.f32 %v20587_v2, %v9339_v10  ;;  %v9531_v44 = vmul.f32 %v20551_v24, %v9355_v28  ;;  %v8481_v37 = vadd.f32 %v8480_v40, %v8452_v33  ;;  %v8426_v45 = vadd.f32 %v8425_v25, %v8397_v42  ;;  %8763 = vmatpush.bf16.msra.mxu0 %v13204_v60  ;;  %v13595_v28 = vld [vmem:[%s21883_s19 + $0x298] sm:$0xf0]  ;;  %v13696_v33 = vld [vmem:[%s21883_s19 + $0x5c0] sm:$0xf0]  ;;  %v12661_v21 = vld [vmem:[%s21883_s19 + $0x20c] sm:$0xf0] }
 0x86b   : > { %8821 = vmatpush.bf16.msrb.mxu2 %v13208_v0  ;;  %v12732_v10 = vor.u32 %v13586_v49, %v12729_v4  ;;  %v12736_v52 = vor.u32 %v13595_v28, %v12735_v17  ;;  %v12667_v13 = vld [vmem:[%s21883_s19 + $0x1d0] sm:$0xf]  ;;  %v13578_v36 = vld [vmem:[%s21883_s19 + $0x210] sm:$0xf0]  ;;  %v13679_v57 = vld [vmem:[%s21883_s19 + $0x538] sm:$0xf0] }
 0x86c   : > { %v9691_v31 = vadd.f32 %v20612_v9, %v9515_v32  ;;  %v9707_v56 = vadd.f32 %v20560_v39, %v9531_v44  ;;  %v9084_v41 = vadd.f32 %v20565_v14, %v8481_v37  ;;  %v9100_v54 = vadd.f32 %v20532_v26, %v8426_v45  ;;  %13262 = vmatmul.msk.bf16.gmra.mxu0 %vm1101_vm1, %v19100_v20  ;;  %v13688_v32 = vld [vmem:[%s21883_s19 + $0x584] sm:$0xf]  ;;  %v13137_v44 = vld [vmem:[%s21883_s19 + $0x5c4] sm:$0xf0]  ;;  %v13069_v17 = vld [vmem:[%s21883_s19 + $0x53c] sm:$0xf0] }
 0x86d   : > { %13266 = vmatmul.msk.bf16.gmra.mxu2 %vm1101_vm1, %v19100_v20  ;;  %8790 = vmatpush.bf16.msrb.mxu1 %v12800_v29  ;;  %v13136_v45 = vor.u32 %v13696_v33, %v13135_v47  ;;  %v13140_v22 = vor.u32 %v13688_v32, %v13137_v44  ;;  %v13552_v46 = vld [vmem:[%s21883_s19 + $0x144] sm:$0xf]  ;;  %v12999_v32 = vld [vmem:[%s21883_s19 + $0x470] sm:$0xf]  ;;  %v13662_v44 = vld [vmem:[%s21883_s19 + $0x4b0] sm:$0xf0] }
 0x86e   : > { %v9827_v11 = vmax.f32 %v9691_v31, 0.0  ;;  %v9843_v18 = vmax.f32 %v9707_v56, 0.0  ;;  %v9220_v61 = vmul.f32 0.1, %v9084_v41  ;;  %v9236_v53 = vmul.f32 0.1, %v9100_v54  ;;  %v20667_v42 = vpop.f32.mrf.mxu3  ;;  %8849 = vmatpush.bf16.msrb.mxu3 %v12736_v52 }
 0x86f   : > { %v8454_v62 = vpop.f32.mrf.mxu1  ;;  %v22325_v31 = vld [vmem:[#allocation57_spill] sm:$0xff]  ;;  %8764 = vmatpush.bf16.msra.mxu0 %v13136_v45  ;;  %v12664_v41 = vor.u32 %v13569_v38, %v12661_v21  ;;  %v12668_v54 = vor.u32 %v13578_v36, %v12667_v13  ;;  %8822 = vmatpush.bf16.msrb.mxu2 %v13140_v22  ;;  %v22328_v22 = vld [vmem:[#allocation196_spill] sm:$0xff]  ;;  %v13654_v21 = vld [vmem:[%s21883_s19 + $0x474] sm:$0xf] }
 0x870   : > { %9963 = vst [vmem:[%s19612_s30 + $0x38] sm:$0xff] %v9827_v11  ;;  %v9356_v40 = vadd.f32 %v9220_v61, %v3830_v16  ;;  %v9372_v63 = vadd.f32 %v9236_v53, %v3804_v30  ;;  %v8455_v25 = vadd.f32 %v8454_v62, %v22324_v19  ;;  %v8483_v55 = vpop.f32.mrf.mxu2  ;;  %v3833_v56 = vadd.f32 %v22325_v31, %v20568_v43  ;;  %v13671_v30 = vld [vmem:[%s21883_s19 + $0x4fc] sm:$0xf]  ;;  %v12599_v62 = vld [vmem:[%s21883_s19 + $0x148] sm:$0xf] }
 0x871   : > { %9979 = vst [vmem:[%s19612_s30 + $0xb8] sm:$0xff] %v9843_v18  ;;  %v8427_v37 = vpop.f32.mrf.mxu0  ;;  %8791 = vmatpush.bf16.msrb.mxu1 %v12732_v10  ;;  %v22326_v11 = vld [vmem:[#allocation59_spill] sm:$0xff]  ;;  %v13068_v61 = vor.u32 %v13679_v57, %v13067_v1  ;;  %v13072_v53 = vor.u32 %v13671_v30, %v13069_v17  ;;  %v13561_v52 = vld [vmem:[%s21883_s19 + $0x188] sm:$0xf0]  ;;  %v12525_v31 = vld [vmem:[%s21883_s19 + $0xfc] sm:$0xf0] }
 0x872   : > { %v9532_v16 = vmul.f32 %v20587_v2, %v9356_v40  ;;  %v9548_v29 = vmul.f32 %v20551_v24, %v9372_v63  ;;  %v8484_v8 = vadd.f32 %v8483_v55, %v8455_v25  ;;  %v8428_v50 = vadd.f32 %v8427_v37, %v8399_v12  ;;  %8685 = vmatmul.bf16.gmra.mxu1 %v18887_v27  ;;  %v12593_v12 = vld [vmem:[%s21883_s19 + $0x184] sm:$0xf0]  ;;  %v22327_v63 = vld [vmem:[#allocation183_spill] sm:$0xff]  ;;  %v12531_v57 = vld [vmem:[%s21883_s19 + $0xc0] sm:$0xf] }
 0x873   : > { %8743 = vmatmul.bf16.gmra.mxu3 %v18887_v27  ;;  %v3806_v18 = vadd.f32 %v22326_v11, %v20535_v59  ;;  %v8402_v19 = vadd.f32 %v20485_v34, %v22327_v63  ;;  %8765 = vmatpush.bf16.msra.mxu0 %v13068_v61  ;;  %v12596_v55 = vor.u32 %v13552_v46, %v12593_v12  ;;  %v13535_v36 = vld [vmem:[%s21883_s19 + $0xbc] sm:$0xf]  ;;  %v13544_v30 = vld [vmem:[%s21883_s19 + $0x100] sm:$0xf0]  ;;  %v22329_v11 = vld [vmem:[#allocation61_spill] sm:$0xff] }
 0x874   : > { %v9708_v60 = vadd.f32 %v20612_v9, %v9532_v16  ;;  %v9724_v0 = vadd.f32 %v20560_v39, %v9548_v29  ;;  %v9101_v49 = vadd.f32 %v20565_v14, %v8484_v8  ;;  %v9117_v4 = vadd.f32 %v20532_v26, %v8428_v50  ;;  %8850 = vmatpush.bf16.msrb.mxu3 %v12668_v54  ;;  %v13001_v16 = vld [vmem:[%s21883_s19 + $0x4b4] sm:$0xf0]  ;;  %v13518_v12 = vld [vmem:[%s21883_s19 + $0x34] sm:$0xf] }
 0x875   : > { %8792 = vmatpush.bf16.msrb.mxu1 %v12664_v41  ;;  %8823 = vmatpush.bf16.msrb.mxu2 %v13072_v53  ;;  %v12600_v8 = vor.u32 %v13561_v52, %v12599_v62  ;;  %v13000_v50 = vor.u32 %v13662_v44, %v12999_v32  ;;  %v13004_v13 = vor.u32 %v13654_v21, %v13001_v16  ;;  %v22330_v61 = vld [vmem:[#allocation63_spill] sm:$0xff]  ;;  %v22331_v32 = vld [vmem:[#allocation185_spill] sm:$0xff] }
 0x876   : > { %v9844_v10 = vmax.f32 %v9708_v60, 0.0  ;;  %v9860_v28 = vmax.f32 %v9724_v0, 0.0  ;;  %v9237_v47 = vmul.f32 0.1, %v9101_v49  ;;  %v9253_v33 = vmul.f32 0.1, %v9117_v4  ;;  %v20734_v40 = vpop.f32.mrf.mxu3 }
 0x877   : > { %v8456_v25 = vpop.f32.mrf.mxu1  ;;  %8766 = vmatpush.bf16.msra.mxu0 %v13000_v50  ;;  %v12528_v60 = vor.u32 %v13535_v36, %v12525_v31  ;;  %v3809_v53 = vadd.f32 %v22330_v61, %v20535_v59  ;;  %v12532_v46 = vor.u32 %v13544_v30, %v12531_v57  ;;  %v12457_v62 = vld [vmem:[%s21883_s19 + $0x74] sm:$0xf0]  ;;  %v13527_v52 = vld [vmem:[%s21883_s19 + $0x78] sm:$0xf0]  ;;  %v8404_v44 = vadd.f32 %v20506_v7, %v22331_v32  ;;  %v22337_v32 = vld [vmem:[#allocation69_spill] sm:$0xff] }
 0x878   : > { %9980 = vst [vmem:[%s19612_s30 + $0xc0] sm:$0xff] %v9844_v10  ;;  %v9373_v37 = vadd.f32 %v9237_v47, %v3833_v56  ;;  %v9389_v45 = vadd.f32 %v9253_v33, %v3806_v18  ;;  %v8457_v34 = vadd.f32 %v8456_v25, %v22328_v22  ;;  %v8485_v38 = vpop.f32.mrf.mxu2  ;;  %v3835_v18 = vadd.f32 %v22329_v11, %v20568_v43  ;;  %v12463_v10 = vld [vmem:[%s21883_s19 + $0x38] sm:$0xf]  ;;  %v22332_v22 = vld [vmem:[#allocation198_spill] sm:$0xff] }
 0x879   : > { %9996 = vst [vmem:[%s19612_s30 + $0x140] sm:$0xff] %v9860_v28  ;;  %v8430_v29 = vpop.f32.mrf.mxu0  ;;  %8793 = vmatpush.bf16.msrb.mxu1 %v12596_v55  ;;  %8851 = vmatpush.bf16.msrb.mxu3 %v12600_v8  ;;  %v12460_v55 = vor.u32 %v13518_v12, %v12457_v62  ;;  %v12464_v16 = vor.u32 %v13527_v52, %v12463_v10  ;;  %v22335_v11 = vld [vmem:[#allocation187_spill] sm:$0xff] }
 0x87a   : > { %v9549_v56 = vmul.f32 %v20587_v2, %v9373_v37  ;;  %v9565_v41 = vmul.f32 %v20551_v24, %v9389_v45  ;;  %v8486_v54 = vadd.f32 %v8485_v38, %v8457_v34  ;;  %v8431_v1 = vadd.f32 %v8430_v29, %v8402_v19  ;;  %8824 = vmatpush.bf16.msrb.mxu2 %v13004_v13 }
 0x87c   : > { %v9725_v0 = vadd.f32 %v20612_v9, %v9549_v56  ;;  %v9741_v49 = vadd.f32 %v20560_v39, %v9565_v41  ;;  %v9118_v4 = vadd.f32 %v20565_v14, %v8486_v54  ;;  %v9134_v17 = vadd.f32 %v20532_v26, %v8431_v1  ;;  %13263 = vmatmul.msk.bf16.gmra.mxu0 %vm1101_vm1, %v19224_v15  ;;  %v22333_v41 = vld [vmem:[#allocation65_spill] sm:$0xff]  ;;  %v22334_v1 = vld [vmem:[#allocation67_spill] sm:$0xff] }
 0x87d   : > { %13267 = vmatmul.msk.bf16.gmra.mxu2 %vm1101_vm1, %v19224_v15  ;;  %8794 = vmatpush.bf16.msrb.mxu1 %v12528_v60  ;;  %v3838_v54 = vadd.f32 %v22333_v41, %v20568_v43  ;;  %v3811_v57 = vadd.f32 %v22334_v1, %v20535_v59 }
 0x87e   : > { %v9861_v28 = vmax.f32 %v9725_v0, 0.0  ;;  %v9877_v47 = vmax.f32 %v9741_v49, 0.0  ;;  %v9254_v33 = vmul.f32 0.1, %v9118_v4  ;;  %v9270_v63 = vmul.f32 0.1, %v9134_v17  ;;  %v20791_v19 = vpop.f32.mrf.mxu3  ;;  %8852 = vmatpush.bf16.msrb.mxu3 %v12532_v46 }
 0x87f   : > { %v8459_v25 = vpop.f32.mrf.mxu1  ;;  %v22336_v46 = vld [vmem:[#allocation200_spill] sm:$0xff] }
 0x880   : > { %9997 = vst [vmem:[%s19612_s30 + $0x148] sm:$0xff] %v9861_v28  ;;  %v9390_v37 = vadd.f32 %v9254_v33, %v3835_v18  ;;  %v9406_v45 = vadd.f32 %v9270_v63, %v3809_v53  ;;  %v8460_v34 = vadd.f32 %v8459_v25, %v22332_v22  ;;  %v8488_v38 = vpop.f32.mrf.mxu2  ;;  %v8407_v18 = vadd.f32 %v20525_v6, %v22335_v11 }
 0x881   : > { %10013 = vst [vmem:[%s19612_s30 + $0x1c8] sm:$0xff] %v9877_v47  ;;  %v8432_v21 = vpop.f32.mrf.mxu0  ;;  %8795 = vmatpush.bf16.msrb.mxu1 %v12460_v55 }
 0x882   : > { %v9566_v29 = vmul.f32 %v20587_v2, %v9390_v37  ;;  %v9582_v8 = vmul.f32 %v20551_v24, %v9406_v45  ;;  %v8489_v50 = vadd.f32 %v8488_v38, %v8460_v34  ;;  %v8433_v13 = vadd.f32 %v8432_v21, %v8404_v44  ;;  %8690 = vmatmul.bf16.gmra.mxu1 %v18985_v51  ;;  %v22338_v37 = vld [vmem:[#allocation71_spill] sm:$0xff] }
 0x883   : > { %8748 = vmatmul.bf16.gmra.mxu3 %v18985_v51  ;;  %v3840_v44 = vadd.f32 %v22337_v32, %v20568_v43  ;;  %v3814_v45 = vadd.f32 %v22338_v37, %v20535_v59 }
 0x884   : > { %v9742_v7 = vadd.f32 %v20612_v9, %v9566_v29  ;;  %v9758_v36 = vadd.f32 %v20560_v39, %v9582_v8  ;;  %v9135_v31 = vadd.f32 %v20565_v14, %v8489_v50  ;;  %v9151_v56 = vadd.f32 %v20532_v26, %v8433_v13  ;;  %8853 = vmatpush.bf16.msrb.mxu3 %v12464_v16  ;;  %v22339_v8 = vld [vmem:[#allocation189_spill] sm:$0xff] }
 0x885   : > { %v8409_v50 = vadd.f32 %v20555_v35, %v22339_v8 }
 0x886   : > { %v9878_v30 = vmax.f32 %v9742_v7, 0.0  ;;  %v9894_v60 = vmax.f32 %v9758_v36, 0.0  ;;  %v9271_v0 = vmul.f32 0.1, %v9135_v31  ;;  %v9287_v49 = vmul.f32 0.1, %v9151_v56  ;;  %v20813_v4 = vpop.f32.mrf.mxu3 }
 0x887   : > { %v8461_v17 = vpop.f32.mrf.mxu1  ;;  %v22340_v36 = vld [vmem:[#allocation202_spill] sm:$0xff] }
 0x888   : > { %10014 = vst [vmem:[%s19612_s30 + $0x1d0] sm:$0xff] %v9878_v30  ;;  %v9407_v61 = vadd.f32 %v9271_v0, %v3838_v54  ;;  %v9423_v53 = vadd.f32 %v9287_v49, %v3811_v57  ;;  %v8462_v12 = vadd.f32 %v8461_v17, %v22336_v46  ;;  %v8490_v62 = vpop.f32.mrf.mxu2  ;;  %v22341_v17 = vld [vmem:[#allocation73_spill] sm:$0xff] }
 0x889   : > { %10030 = vst [vmem:[%s19612_s30 + $0x250] sm:$0xff] %v9894_v60  ;;  %v8435_v10 = vpop.f32.mrf.mxu0  ;;  %v3843_v11 = vadd.f32 %v22341_v17, %v20568_v43  ;;  %v20861_v46 = vld [vmem:[%s21885_s21 + $0x8] sm:$0xff] }
 0x88a   : > { %v9583_v28 = vmul.f32 %v20587_v2, %v9407_v61  ;;  %v9599_v47 = vmul.f32 %v20551_v24, %v9423_v53  ;;  %v8491_v33 = vadd.f32 %v8490_v62, %v8462_v12  ;;  %v8436_v63 = vadd.f32 %v8435_v10, %v8407_v18  ;;  %v22342_v18 = vld [vmem:[#allocation75_spill] sm:$0xff]  ;;  %v20856_v53 = vld [vmem:[%s21882_s18 + $0x8] sm:$0xff] }
 0x88b   : > { %v3816_v61 = vadd.f32 %v22342_v18, %v20535_v59  ;;  %v20870_v32 = vperm.slane %v20861_v46, 0  ;;  %v20913_v18 = vperm.slane %v20861_v46, 1 }
 0x88c   : > { %v9759_v25 = vadd.f32 %v20612_v9, %v9583_v28  ;;  %v9775_v55 = vadd.f32 %v20560_v39, %v9599_v47  ;;  %v9152_v6 = vadd.f32 %v20565_v14, %v8491_v33  ;;  %v9168_v52 = vadd.f32 %v20532_v26, %v8436_v63  ;;  %13264 = vmatmul.msk.bf16.gmra.mxu0 %vm1101_vm1, %v19264_v3  ;;  %v22343_v47 = vld [vmem:[#allocation191_spill] sm:$0xff] }
 0x88d   : > { %13268 = vmatmul.msk.bf16.gmra.mxu2 %vm1101_vm1, %v19264_v3  ;;  %v8508_v59 = vadd.f32 %v20607_v48, %v22343_v47 }
 0x88e   : > { %v9895_v22 = vmax.f32 %v9759_v25, 0.0  ;;  %v9911_v34 = vmax.f32 %v9775_v55, 0.0  ;;  %v9288_v38 = vmul.f32 0.1, %v9152_v6  ;;  %v9304_v21 = vmul.f32 0.1, %v9168_v52  ;;  %v20834_v16 = vpop.f32.mrf.mxu3 }
 0x88f   : > { %v8464_v29 = vpop.f32.mrf.mxu1  ;;  %v22344_v55 = vld [vmem:[#allocation204_spill] sm:$0xff] }
 0x890   : > { %10031 = vst [vmem:[%s19612_s30 + $0x258] sm:$0xff] %v9895_v22  ;;  %v9424_v13 = vadd.f32 %v9288_v38, %v3840_v44  ;;  %v9440_v7 = vadd.f32 %v9304_v21, %v3814_v45  ;;  %v8465_v31 = vadd.f32 %v8464_v29, %v22340_v36  ;;  %v8493_v56 = vpop.f32.mrf.mxu2  ;;  %v20873_v44 = vperm.slane %v20856_v53, 0  ;;  %v20881_v38 = vld [vmem:[%s21886_s22 + $0x8] sm:$0xff] }
 0x891   : > { %10047 = vst [vmem:[%s19612_s30 + $0x2d8] sm:$0xff] %v9911_v34  ;;  %v8437_v41 = vpop.f32.mrf.mxu0  ;;  %v22346_v36 = vld [vmem:[#allocation77_spill] sm:$0xff] }
 0x892   : > { %v9600_v54 = vmul.f32 %v20587_v2, %v9424_v13  ;;  %v9616_v1 = vmul.f32 %v20551_v24, %v9440_v7  ;;  %v8494_v57 = vadd.f32 %v8493_v56, %v8465_v31  ;;  %v8438_v30 = vadd.f32 %v8437_v41, %v8409_v50  ;;  %8695 = vmatmul.bf16.gmra.mxu1 %v19021_v5  ;;  %v22345_v13 = vld [vmem:[#allocation76_spill] sm:$0xff] }
 0x893   : > { %8753 = vmatmul.bf16.gmra.mxu3 %v19021_v5  ;;  %v3857_v7 = vadd.f32 %v22345_v13, %v20873_v44  ;;  %v3845_v31 = vadd.f32 %v22346_v36, %v20568_v43 }
 0x894   : > { %v9776_v35 = vadd.f32 %v20612_v9, %v9600_v54  ;;  %v9792_v60 = vadd.f32 %v20560_v39, %v9616_v1  ;;  %v9169_v0 = vadd.f32 %v20565_v14, %v8494_v57  ;;  %v9185_v49 = vadd.f32 %v20532_v26, %v8438_v30  ;;  %v22347_v57 = vld [vmem:[#allocation193_spill] sm:$0xff] }
 0x895   : > { %v8510_v30 = vadd.f32 %v20667_v42, %v22347_v57  ;;  %v13638_v42 = vld [vmem:[%s21883_s19 + $0x3f4] sm:$0xf] }
 0x896   : > { %v9912_v12 = vmax.f32 %v9776_v35, 0.0  ;;  %v9928_v62 = vmax.f32 %v9792_v60, 0.0  ;;  %v9305_v26 = vmul.f32 0.1, %v9169_v0  ;;  %v9321_v10 = vmul.f32 0.1, %v9185_v49  ;;  %v20863_v28 = vpop.f32.mrf.mxu3 }
 0x897   : > { %v8466_v33 = vpop.f32.mrf.mxu1  ;;  %v22348_v49 = vld [vmem:[#allocation206_spill] sm:$0xff] }
 0x898   : > { %10048 = vst [vmem:[%s19612_s30 + $0x2e0] sm:$0xff] %v9912_v12  ;;  %v9441_v63 = vadd.f32 %v9305_v26, %v3843_v11  ;;  %v9457_v25 = vadd.f32 %v9321_v10, %v3816_v61  ;;  %v8467_v6 = vadd.f32 %v8466_v33, %v22344_v55  ;;  %v8495_v52 = vpop.f32.mrf.mxu2  ;;  %v20916_v61 = vperm.slane %v20856_v53, 1  ;;  %v12947_v33 = vld [vmem:[%s21883_s19 + $0x3f8] sm:$0xf] }
 0x899   : > { %10064 = vst [vmem:[%s19612_s30 + $0x360] sm:$0xff] %v9928_v62  ;;  %v8536_v37 = vpop.f32.mrf.mxu0  ;;  %v12941_v62 = vld [vmem:[%s21883_s19 + $0x434] sm:$0xf0] }
 0x89a   : > { %v9617_v45 = vmul.f32 %v20587_v2, %v9441_v63  ;;  %v9633_v22 = vmul.f32 %v20551_v24, %v9457_v25  ;;  %v8496_v48 = vadd.f32 %v8495_v52, %v8467_v6  ;;  %v8537_v34 = vadd.f32 %v8536_v37, %v8508_v59  ;;  %v20890_v24 = vld [vmem:[%s21887_s23 + $0x8] sm:$0xff]  ;;  %v13647_v63 = vld [vmem:[%s21883_s19 + $0x438] sm:$0xf0] }
 0x89b   : > { %v20908_v35 = vperm.slane %v20890_v24, 0  ;;  %v20935_v25 = vperm.slane %v20881_v38, 1  ;;  %v12948_v55 = vor.u32 %v13647_v63, %v12947_v33  ;;  %v13613_v33 = vld [vmem:[%s21883_s19 + $0x328] sm:$0xf0]  ;;  %v22353_v63 = vld [vmem:[#allocation82_spill] sm:$0xff] }
 0x89c   : > { %v9793_v21 = vadd.f32 %v20612_v9, %v9617_v45  ;;  %v9809_v29 = vadd.f32 %v20560_v39, %v9633_v22  ;;  %v9186_v8 = vadd.f32 %v20565_v14, %v8496_v48  ;;  %v9068_v50 = vadd.f32 %v20870_v32, %v8537_v34  ;;  %13269 = vmatmul.msk.bf16.vlgmr.msra.gmra.mxu0 %vm1101_vm1, %v22247_v58  ;;  %v22349_v22 = vld [vmem:[#allocation78_spill] sm:$0xff]  ;;  %v22350_v34 = vld [vmem:[#allocation80_spill] sm:$0xff] }
 0x89d   : > { %v20899_v39 = vperm.slane %v20881_v38, 0  ;;  %13273 = vmatmul.msk.bf16.vlgmr.msrb.gmra.mxu2 %vm1101_vm1, %v22247_v58  ;;  %v3886_v48 = vadd.f32 %v22349_v22, %v20916_v61  ;;  %8962 = vmatpush.bf16.msra.mxu3 %v12948_v55 }
 0x89e   : > { %v9929_v14 = vmax.f32 %v9793_v21, 0.0  ;;  %v9945_v56 = vmax.f32 %v9809_v29, 0.0  ;;  %v9322_v41 = vmul.f32 0.1, %v9186_v8  ;;  %v9204_v54 = vmul.f32 0.1, %v9068_v50  ;;  %v20903_v1 = vpop.f32.mrf.mxu3 }
 0x89f   : > { %v8565_v43 = vpop.f32.mrf.mxu1  ;;  %v3859_v21 = vadd.f32 %v22350_v34, %v20873_v44  ;;  %v13621_v29 = vld [vmem:[%s21883_s19 + $0x36c] sm:$0xf]  ;;  %v12879_v8 = vld [vmem:[%s21883_s19 + $0x370] sm:$0xf] }
 0x8a0   : > { %10065 = vst [vmem:[%s19612_s30 + $0x368] sm:$0xff] %v9929_v14  ;;  %v9458_v60 = vadd.f32 %v9322_v41, %v3845_v31  ;;  %v9340_v0 = vadd.f32 %v9204_v54, %v3857_v7  ;;  %v8566_v17 = vadd.f32 %v8565_v43, %v22348_v49  ;;  %v8594_v11 = vpop.f32.mrf.mxu2  ;;  %v22351_v14 = vld [vmem:[#allocation195_spill] sm:$0xff]  ;;  %v20960_v41 = vperm.slane %v20890_v24, 1 }
 0x8a1   : > { %10081 = vst [vmem:[%s19612_s30 + $0x3e8] sm:$0xff] %v9945_v56  ;;  %v8538_v12 = vpop.f32.mrf.mxu0  ;;  %v8513_v56 = vadd.f32 %v20734_v40, %v22351_v14  ;;  %v13604_v40 = vld [vmem:[%s21883_s19 + $0x2e4] sm:$0xf]  ;;  %v12743_v14 = vld [vmem:[%s21883_s19 + $0x260] sm:$0xf] }
 0x8a2   : > { %v9634_v26 = vmul.f32 %v20587_v2, %v9458_v60  ;;  %v9516_v10 = vmul.f32 %v20899_v39, %v9340_v0  ;;  %v8595_v47 = vadd.f32 %v8594_v11, %v8566_v17  ;;  %v8539_v59 = vadd.f32 %v8538_v12, %v8510_v30  ;;  %8796 = vmatmul.bf16.vlgmr.msrb.gmra.mxu1 %v22252_v23  ;;  %v13630_v30 = vld [vmem:[%s21883_s19 + $0x3b0] sm:$0xf0]  ;;  %v22352_v0 = vld [vmem:[#allocation208_spill] sm:$0xff] }
 0x8a3   : > { %8854 = vmatmul.bf16.vlgmr.msrb.gmra.mxu3 %v22252_v23  ;;  %v12944_v2 = vor.u32 %v13638_v42, %v12941_v62  ;;  %v12880_v11 = vor.u32 %v13630_v30, %v12879_v8  ;;  %v12805_v42 = vld [vmem:[%s21883_s19 + $0x324] sm:$0xf0] }
 0x8a4   : > { %v9810_v6 = vadd.f32 %v20612_v9, %v9634_v26  ;;  %v9692_v52 = vadd.f32 %v20908_v35, %v9516_v10  ;;  %v9069_v37 = vadd.f32 %v20913_v18, %v8595_v47  ;;  %v9085_v45 = vadd.f32 %v20870_v32, %v8539_v59  ;;  %v12873_v9 = vld [vmem:[%s21883_s19 + $0x3ac] sm:$0xf0]  ;;  %v12811_v59 = vld [vmem:[%s21883_s19 + $0x2e8] sm:$0xf] }
 0x8a5   : > { %8904 = vmatpush.bf16.msra.mxu1 %v12944_v2  ;;  %v12876_v57 = vor.u32 %v13621_v29, %v12873_v9  ;;  %8963 = vmatpush.bf16.msra.mxu3 %v12880_v11  ;;  %v3888_v2 = vadd.f32 %v22353_v63, %v20916_v61  ;;  %v12808_v55 = vor.u32 %v13604_v40, %v12805_v42  ;;  %v13213_v29 = vld [vmem:[%s21883_s19 + $0x654] sm:$0xf0]  ;;  %v22354_v9 = vld [vmem:[#allocation84_spill] sm:$0xff]  ;;  %v13697_v40 = vld [vmem:[%s21883_s19 + $0x5c8] sm:$0xf0] }
 0x8a6   : > { %v9946_v50 = vmax.f32 %v9810_v6, 0.0  ;;  %v9828_v13 = vmax.f32 %v9692_v52, 0.0  ;;  %v9205_v7 = vmul.f32 0.1, %v9069_v37  ;;  %v9221_v36 = vmul.f32 0.1, %v9085_v45  ;;  %v20955_v31 = vpop.f32.mrf.mxu3 }
 0x8a7   : > { %v8567_v54 = vpop.f32.mrf.mxu1  ;;  %v12812_v6 = vor.u32 %v13613_v33, %v12811_v59  ;;  %v13211_v52 = vld [vmem:[%s21883_s19 + $0x610] sm:$0xf]  ;;  %v13714_v37 = vld [vmem:[%s21883_s19 + $0x650] sm:$0xf0]  ;;  %v3862_v8 = vadd.f32 %v22354_v9, %v20873_v44  ;;  %v13596_v11 = vld [vmem:[%s21883_s19 + $0x2a0] sm:$0xf0] }
 0x8a8   : > { %10082 = vst [vmem:[%s19612_s30 + $0x3f0] sm:$0xff] %v9946_v50  ;;  %v9341_v43 = vadd.f32 %v9205_v7, %v3886_v48  ;;  %v9357_v60 = vadd.f32 %v9221_v36, %v3859_v21  ;;  %v8568_v49 = vadd.f32 %v8567_v54, %v22352_v0  ;;  %v8596_v17 = vpop.f32.mrf.mxu2  ;;  %v13706_v45 = vld [vmem:[%s21883_s19 + $0x614] sm:$0xf]  ;;  %v13212_v50 = vor.u32 %v13714_v37, %v13211_v52  ;;  %v13587_v7 = vld [vmem:[%s21883_s19 + $0x25c] sm:$0xf] }
 0x8a9   : > { %9964 = vst [vmem:[%s19612_s30 + $0x40] sm:$0xff] %v9828_v13  ;;  %v8541_v12 = vpop.f32.mrf.mxu0  ;;  %8905 = vmatpush.bf16.msra.mxu1 %v12876_v57  ;;  %v13216_v13 = vor.u32 %v13706_v45, %v13213_v29  ;;  %v12737_v36 = vld [vmem:[%s21883_s19 + $0x29c] sm:$0xf0]  ;;  %8964 = vmatpush.bf16.msra.mxu3 %v12812_v6  ;;  %v13689_v59 = vld [vmem:[%s21883_s19 + $0x58c] sm:$0xf]  ;;  %v22357_v29 = vld [vmem:[#allocation86_spill] sm:$0xff] }
 0x8aa   : > { %v9517_v62 = vmul.f32 %v20935_v25, %v9341_v43  ;;  %v9533_v26 = vmul.f32 %v20899_v39, %v9357_v60  ;;  %v8597_v10 = vadd.f32 %v8596_v17, %v8568_v49  ;;  %v8542_v47 = vadd.f32 %v8541_v12, %v8513_v56  ;;  %v22355_v60 = vld [vmem:[#allocation197_spill] sm:$0xff]  ;;  %8879 = vmatpush.bf16.msrb.mxu0 %v13212_v50  ;;  %v13145_v33 = vld [vmem:[%s21883_s19 + $0x5cc] sm:$0xf0]  ;;  %v12669_v52 = vld [vmem:[%s21883_s19 + $0x214] sm:$0xf0] }
 0x8ab   : > { %v8515_v0 = vadd.f32 %v20791_v19, %v22355_v60  ;;  %8937 = vmatpush.bf16.msra.mxu2 %v13216_v13  ;;  %v12740_v17 = vor.u32 %v13587_v7, %v12737_v36  ;;  %v13143_v12 = vld [vmem:[%s21883_s19 + $0x588] sm:$0xf]  ;;  %v13148_v6 = vor.u32 %v13689_v59, %v13145_v33  ;;  %v3891_v9 = vadd.f32 %v22357_v29, %v20916_v61  ;;  %v13075_v13 = vld [vmem:[%s21883_s19 + $0x500] sm:$0xf]  ;;  %v13680_v7 = vld [vmem:[%s21883_s19 + $0x540] sm:$0xf0] }
 0x8ac   : > { %v9693_v22 = vadd.f32 %v20960_v41, %v9517_v62  ;;  %v9709_v48 = vadd.f32 %v20908_v35, %v9533_v26  ;;  %v9086_v34 = vadd.f32 %v20913_v18, %v8597_v10  ;;  %v9102_v21 = vadd.f32 %v20870_v32, %v8542_v47  ;;  %13270 = vmatmul.msk.bf16.gmra.mxu0 %vm1101_vm1, %v19100_v20  ;;  %v22356_v62 = vld [vmem:[#allocation210_spill] sm:$0xff]  ;;  %v13672_v36 = vld [vmem:[%s21883_s19 + $0x504] sm:$0xf] }
 0x8ad   : > { %13274 = vmatmul.msk.bf16.gmra.mxu2 %vm1101_vm1, %v19100_v20  ;;  %8906 = vmatpush.bf16.msra.mxu1 %v12808_v55  ;;  %v12744_v47 = vor.u32 %v13596_v11, %v12743_v14  ;;  %v13144_v55 = vor.u32 %v13697_v40, %v13143_v12  ;;  %v22358_v60 = vld [vmem:[#allocation88_spill] sm:$0xff]  ;;  %v13553_v11 = vld [vmem:[%s21883_s19 + $0x14c] sm:$0xf]  ;;  %v12601_v12 = vld [vmem:[%s21883_s19 + $0x18c] sm:$0xf0] }
 0x8ae   : > { %v9829_v56 = vmax.f32 %v9693_v22, 0.0  ;;  %v9845_v54 = vmax.f32 %v9709_v48, 0.0  ;;  %v9222_v57 = vmul.f32 0.1, %v9086_v34  ;;  %v9238_v30 = vmul.f32 0.1, %v9102_v21  ;;  %v21015_v43 = vpop.f32.mrf.mxu3 }
 0x8af   : > { %v8570_v49 = vpop.f32.mrf.mxu1  ;;  %v12675_v34 = vld [vmem:[%s21883_s19 + $0x1d8] sm:$0xf]  ;;  %v13579_v21 = vld [vmem:[%s21883_s19 + $0x218] sm:$0xf0]  ;;  %8880 = vmatpush.bf16.msrb.mxu0 %v13144_v55  ;;  %8965 = vmatpush.bf16.msra.mxu3 %v12744_v47  ;;  %v12607_v40 = vld [vmem:[%s21883_s19 + $0x150] sm:$0xf] }
 0x8b0   : > { %9965 = vst [vmem:[%s19612_s30 + $0x48] sm:$0xff] %v9829_v56  ;;  %v9358_v42 = vadd.f32 %v9222_v57, %v3888_v2  ;;  %v9374_v19 = vadd.f32 %v9238_v30, %v3862_v8  ;;  %v8571_v26 = vadd.f32 %v8570_v49, %v22356_v62  ;;  %v8599_v10 = vpop.f32.mrf.mxu2  ;;  %v13570_v2 = vld [vmem:[%s21883_s19 + $0x1d4] sm:$0xf]  ;;  %v12676_v50 = vor.u32 %v13579_v21, %v12675_v34  ;;  %v13077_v30 = vld [vmem:[%s21883_s19 + $0x544] sm:$0xf0]  ;;  %v22359_v47 = vld [vmem:[#allocation199_spill] sm:$0xff] }
 0x8b1   : > { %9981 = vst [vmem:[%s19612_s30 + $0xc8] sm:$0xff] %v9845_v54  ;;  %v8543_v63 = vpop.f32.mrf.mxu0  ;;  %8907 = vmatpush.bf16.msra.mxu1 %v12740_v17  ;;  %v12672_v8 = vor.u32 %v13570_v2, %v12669_v52  ;;  %8938 = vmatpush.bf16.msra.mxu2 %v13148_v6  ;;  %v13076_v49 = vor.u32 %v13680_v7, %v13075_v13  ;;  %v13562_v55 = vld [vmem:[%s21883_s19 + $0x190] sm:$0xf0]  ;;  %v13007_v6 = vld [vmem:[%s21883_s19 + $0x478] sm:$0xf] }
 0x8b2   : > { %v9534_v37 = vmul.f32 %v20935_v25, %v9358_v42  ;;  %v9550_v45 = vmul.f32 %v20899_v39, %v9374_v19  ;;  %v8600_v22 = vadd.f32 %v8599_v10, %v8571_v26  ;;  %v8544_v48 = vadd.f32 %v8543_v63, %v8515_v0  ;;  %8801 = vmatmul.bf16.gmra.mxu1 %v18887_v27  ;;  %v13663_v2 = vld [vmem:[%s21883_s19 + $0x4b8] sm:$0xf0]  ;;  %v13009_v34 = vld [vmem:[%s21883_s19 + $0x4bc] sm:$0xf0]  ;;  %v13536_v13 = vld [vmem:[%s21883_s19 + $0xc4] sm:$0xf] }
 0x8b3   : > { %8859 = vmatmul.bf16.gmra.mxu3 %v18887_v27  ;;  %v3864_v0 = vadd.f32 %v22358_v60, %v20873_v44  ;;  %v13080_v17 = vor.u32 %v13672_v36, %v13077_v30  ;;  %v8518_v59 = vadd.f32 %v20813_v4, %v22359_v47  ;;  %8881 = vmatpush.bf16.msrb.mxu0 %v13076_v49  ;;  %v12471_v47 = vld [vmem:[%s21883_s19 + $0x40] sm:$0xf] }
 0x8b4   : > { %v9710_v14 = vadd.f32 %v20960_v41, %v9534_v37  ;;  %v9726_v56 = vadd.f32 %v20908_v35, %v9550_v45  ;;  %v9103_v54 = vadd.f32 %v20913_v18, %v8600_v22  ;;  %v9119_v57 = vadd.f32 %v20870_v32, %v8544_v48  ;;  %v22360_v45 = vld [vmem:[#allocation212_spill] sm:$0xff]  ;;  %8966 = vmatpush.bf16.msra.mxu3 %v12676_v50  ;;  %v13655_v48 = vld [vmem:[%s21883_s19 + $0x47c] sm:$0xf]  ;;  %v12533_v50 = vld [vmem:[%s21883_s19 + $0x104] sm:$0xf0] }
 0x8b5   : > { %8908 = vmatpush.bf16.msra.mxu1 %v12672_v8  ;;  %v12604_v63 = vor.u32 %v13553_v11, %v12601_v12  ;;  %8939 = vmatpush.bf16.msra.mxu2 %v13080_v17  ;;  %v12608_v29 = vor.u32 %v13562_v55, %v12607_v40  ;;  %v13008_v8 = vor.u32 %v13663_v2, %v13007_v6  ;;  %v22361_v11 = vld [vmem:[#allocation90_spill] sm:$0xff]  ;;  %v22362_v40 = vld [vmem:[#allocation92_spill] sm:$0xff] }
 0x8b6   : > { %v9846_v42 = vmax.f32 %v9710_v14, 0.0  ;;  %v9862_v19 = vmax.f32 %v9726_v56, 0.0  ;;  %v9239_v62 = vmul.f32 0.1, %v9103_v54  ;;  %v9255_v26 = vmul.f32 0.1, %v9119_v57  ;;  %v21082_v10 = vpop.f32.mrf.mxu3 }
 0x8b7   : > { %v8572_v33 = vpop.f32.mrf.mxu1  ;;  %v12539_v54 = vld [vmem:[%s21883_s19 + $0xc8] sm:$0xf]  ;;  %v13545_v57 = vld [vmem:[%s21883_s19 + $0x108] sm:$0xf0]  ;;  %8882 = vmatpush.bf16.msrb.mxu0 %v13008_v8  ;;  %v12536_v30 = vor.u32 %v13536_v13, %v12533_v50  ;;  %v3893_v12 = vadd.f32 %v22361_v11, %v20916_v61 }
 0x8b8   : > { %9982 = vst [vmem:[%s19612_s30 + $0xd0] sm:$0xff] %v9846_v42  ;;  %v9375_v52 = vadd.f32 %v9239_v62, %v3891_v9  ;;  %v9391_v37 = vadd.f32 %v9255_v26, %v3864_v0  ;;  %v8573_v4 = vadd.f32 %v8572_v33, %v22360_v45  ;;  %v8601_v22 = vpop.f32.mrf.mxu2  ;;  %v13012_v9 = vor.u32 %v13655_v48, %v13009_v34  ;;  %v13519_v62 = vld [vmem:[%s21883_s19 + $0x3c] sm:$0xf]  ;;  %v12465_v26 = vld [vmem:[%s21883_s19 + $0x7c] sm:$0xf0]  ;;  %v22363_v45 = vld [vmem:[#allocation201_spill] sm:$0xff] }
 0x8b9   : > { %9998 = vst [vmem:[%s19612_s30 + $0x150] sm:$0xff] %v9862_v19  ;;  %v8546_v21 = vpop.f32.mrf.mxu0  ;;  %8909 = vmatpush.bf16.msra.mxu1 %v12604_v63  ;;  %v3867_v42 = vadd.f32 %v22362_v40, %v20873_v44  ;;  %8967 = vmatpush.bf16.msra.mxu3 %v12608_v29  ;;  %v12540_v19 = vor.u32 %v13545_v57, %v12539_v54  ;;  %v22364_v34 = vld [vmem:[#allocation214_spill] sm:$0xff] }
 0x8ba   : > { %v9551_v7 = vmul.f32 %v20935_v25, %v9375_v52  ;;  %v9567_v36 = vmul.f32 %v20899_v39, %v9391_v37  ;;  %v8602_v14 = vadd.f32 %v8601_v22, %v8573_v4  ;;  %v8547_v56 = vadd.f32 %v8546_v21, %v8518_v59  ;;  %8940 = vmatpush.bf16.msra.mxu2 %v13012_v9  ;;  %v13528_v37 = vld [vmem:[%s21883_s19 + $0x80] sm:$0xf0]  ;;  %v22365_v57 = vld [vmem:[#allocation94_spill] sm:$0xff] }
 0x8bb   : > { %v12468_v52 = vor.u32 %v13519_v62, %v12465_v26  ;;  %v8520_v4 = vadd.f32 %v20834_v16, %v22363_v45  ;;  %v12472_v9 = vor.u32 %v13528_v37, %v12471_v47 }
 0x8bc   : > { %v9727_v60 = vadd.f32 %v20960_v41, %v9551_v7  ;;  %v9743_v0 = vadd.f32 %v20908_v35, %v9567_v36  ;;  %v9120_v49 = vadd.f32 %v20913_v18, %v8602_v14  ;;  %v9136_v17 = vadd.f32 %v20870_v32, %v8547_v56  ;;  %13271 = vmatmul.msk.bf16.gmra.mxu0 %vm1101_vm1, %v19224_v15 }
 0x8bd   : > { %13275 = vmatmul.msk.bf16.gmra.mxu2 %vm1101_vm1, %v19224_v15  ;;  %8910 = vmatpush.bf16.msra.mxu1 %v12536_v30  ;;  %v3896_v30 = vadd.f32 %v22365_v57, %v20916_v61 }
 0x8be   : > { %v9863_v59 = vmax.f32 %v9727_v60, 0.0  ;;  %v9879_v33 = vmax.f32 %v9743_v0, 0.0  ;;  %v9256_v63 = vmul.f32 0.1, %v9120_v49  ;;  %v9272_v55 = vmul.f32 0.1, %v9136_v17  ;;  %v21139_v6 = vpop.f32.mrf.mxu3  ;;  %8968 = vmatpush.bf16.msra.mxu3 %v12540_v19 }
 0x8bf   : > { %v8575_v2 = vpop.f32.mrf.mxu1  ;;  %v22366_v60 = vld [vmem:[#allocation96_spill] sm:$0xff]  ;;  %v22367_v19 = vld [vmem:[#allocation203_spill] sm:$0xff] }
 0x8c0   : > { %9999 = vst [vmem:[%s19612_s30 + $0x158] sm:$0xff] %v9863_v59  ;;  %v9392_v22 = vadd.f32 %v9256_v63, %v3893_v12  ;;  %v9408_v48 = vadd.f32 %v9272_v55, %v3867_v42  ;;  %v8576_v21 = vadd.f32 %v8575_v2, %v22364_v34  ;;  %v8604_v29 = vpop.f32.mrf.mxu2  ;;  %v3869_v0 = vadd.f32 %v22366_v60, %v20873_v44  ;;  %v22368_v59 = vld [vmem:[#allocation216_spill] sm:$0xff]  ;;  %v22369_v34 = vld [vmem:[#allocation98_spill] sm:$0xff] }
 0x8c1   : > { %10015 = vst [vmem:[%s19612_s30 + $0x1d8] sm:$0xff] %v9879_v33  ;;  %v8548_v8 = vpop.f32.mrf.mxu0  ;;  %8911 = vmatpush.bf16.msra.mxu1 %v12468_v52  ;;  %v8523_v62 = vadd.f32 %v20863_v28, %v22367_v19 }
 0x8c2   : > { %v9568_v13 = vmul.f32 %v20935_v25, %v9392_v22  ;;  %v9584_v50 = vmul.f32 %v20899_v39, %v9408_v48  ;;  %v8605_v7 = vadd.f32 %v8604_v29, %v8576_v21  ;;  %v8549_v36 = vadd.f32 %v8548_v8, %v8520_v4  ;;  %8806 = vmatmul.bf16.gmra.mxu1 %v18985_v51  ;;  %v22370_v29 = vld [vmem:[#allocation100_spill] sm:$0xff] }
 0x8c3   : > { %8864 = vmatmul.bf16.gmra.mxu3 %v18985_v51  ;;  %v3898_v21 = vadd.f32 %v22369_v34, %v20916_v61  ;;  %v3872_v8 = vadd.f32 %v22370_v29, %v20873_v44  ;;  %v22376_v34 = vld [vmem:[#allocation220_spill] sm:$0xff] }
 0x8c4   : > { %v9744_v16 = vadd.f32 %v20960_v41, %v9568_v13  ;;  %v9760_v14 = vadd.f32 %v20908_v35, %v9584_v50  ;;  %v9137_v56 = vadd.f32 %v20913_v18, %v8605_v7  ;;  %v9153_v54 = vadd.f32 %v20870_v32, %v8549_v36  ;;  %8969 = vmatpush.bf16.msra.mxu3 %v12472_v9 }
 0x8c6   : > { %v9880_v49 = vmax.f32 %v9744_v16, 0.0  ;;  %v9896_v17 = vmax.f32 %v9760_v14, 0.0  ;;  %v9273_v11 = vmul.f32 0.1, %v9137_v56  ;;  %v9289_v12 = vmul.f32 0.1, %v9153_v54  ;;  %v21161_v40 = vpop.f32.mrf.mxu3 }
 0x8c7   : > { %v8577_v42 = vpop.f32.mrf.mxu1  ;;  %v22371_v14 = vld [vmem:[#allocation205_spill] sm:$0xff] }
 0x8c8   : > { %10016 = vst [vmem:[%s19612_s30 + $0x1e0] sm:$0xff] %v9880_v49  ;;  %v9409_v26 = vadd.f32 %v9273_v11, %v3896_v30  ;;  %v9425_v47 = vadd.f32 %v9289_v12, %v3869_v0  ;;  %v8578_v33 = vadd.f32 %v8577_v42, %v22368_v59  ;;  %v8606_v63 = vpop.f32.mrf.mxu2  ;;  %v8525_v56 = vadd.f32 %v20903_v1, %v22371_v14  ;;  %v22372_v30 = vld [vmem:[#allocation218_spill] sm:$0xff] }
 0x8c9   : > { %10032 = vst [vmem:[%s19612_s30 + $0x260] sm:$0xff] %v9896_v17  ;;  %v8551_v55 = vpop.f32.mrf.mxu0 }
 0x8ca   : > { %v9585_v2 = vmul.f32 %v20935_v25, %v9409_v26  ;;  %v9601_v52 = vmul.f32 %v20899_v39, %v9425_v47  ;;  %v8607_v37 = vadd.f32 %v8606_v63, %v8578_v33  ;;  %v8552_v45 = vadd.f32 %v8551_v55, %v8523_v62  ;;  %v22373_v47 = vld [vmem:[#allocation102_spill] sm:$0xff]  ;;  %v22374_v33 = vld [vmem:[#allocation104_spill] sm:$0xff] }
 0x8cb   : > { %v3901_v59 = vadd.f32 %v22373_v47, %v20916_v61  ;;  %v3874_v63 = vadd.f32 %v22374_v33, %v20873_v44  ;;  %v21211_v44 = vperm.slane %v20856_v53, 2  ;;  %v21241_v33 = vperm.slane %v20861_v46, 3 }
 0x8cc   : > { %v9761_v4 = vadd.f32 %v20960_v41, %v9585_v2  ;;  %v9777_v22 = vadd.f32 %v20908_v35, %v9601_v52  ;;  %v9154_v28 = vadd.f32 %v20913_v18, %v8607_v37  ;;  %v9170_v48 = vadd.f32 %v20870_v32, %v8552_v45  ;;  %13272 = vmatmul.msk.bf16.gmra.mxu0 %vm1101_vm1, %v19264_v3 }
 0x8cd   : > { %13276 = vmatmul.msk.bf16.gmra.mxu2 %vm1101_vm1, %v19264_v3 }
 0x8ce   : > { %v9897_v9 = vmax.f32 %v9761_v4, 0.0  ;;  %v9913_v13 = vmax.f32 %v9777_v22, 0.0  ;;  %v9290_v50 = vmul.f32 0.1, %v9154_v28  ;;  %v9306_v7 = vmul.f32 0.1, %v9170_v48  ;;  %v21182_v36 = vpop.f32.mrf.mxu3 }
 0x8cf   : > { %v8580_v16 = vpop.f32.mrf.mxu1  ;;  %v22375_v4 = vld [vmem:[#allocation207_spill] sm:$0xff] }
 0x8d0   : > { %10033 = vst [vmem:[%s19612_s30 + $0x268] sm:$0xff] %v9897_v9  ;;  %v9426_v54 = vadd.f32 %v9290_v50, %v3898_v21  ;;  %v9442_v57 = vadd.f32 %v9306_v7, %v3872_v8  ;;  %v8581_v60 = vadd.f32 %v8580_v16, %v22372_v30  ;;  %v8609_v0 = vpop.f32.mrf.mxu2  ;;  %v8624_v22 = vadd.f32 %v20955_v31, %v22375_v4 }
 0x8d1   : > { %10049 = vst [vmem:[%s19612_s30 + $0x2e8] sm:$0xff] %v9913_v13  ;;  %v8553_v49 = vpop.f32.mrf.mxu0  ;;  %v21208_v8 = vperm.slane %v20861_v46, 2 }
 0x8d2   : > { %v9602_v17 = vmul.f32 %v20935_v25, %v9426_v54  ;;  %v9618_v11 = vmul.f32 %v20899_v39, %v9442_v57  ;;  %v8610_v12 = vadd.f32 %v8609_v0, %v8581_v60  ;;  %v8554_v42 = vadd.f32 %v8553_v49, %v8525_v56  ;;  %8811 = vmatmul.bf16.gmra.mxu1 %v19021_v5  ;;  %v22377_v57 = vld [vmem:[#allocation79_spill] sm:$0xff]  ;;  %v22378_v60 = vld [vmem:[#allocation106_spill] sm:$0xff] }
 0x8d3   : > { %8869 = vmatmul.bf16.gmra.mxu3 %v19021_v5  ;;  %v3915_v30 = vadd.f32 %v22377_v57, %v21211_v44  ;;  %v21227_v0 = vperm.slane %v20881_v38, 2 }
 0x8d4   : > { %v9778_v1 = vadd.f32 %v20960_v41, %v9602_v17  ;;  %v9794_v19 = vadd.f32 %v20908_v35, %v9618_v11  ;;  %v9171_v62 = vadd.f32 %v20913_v18, %v8610_v12  ;;  %v9187_v26 = vadd.f32 %v20870_v32, %v8554_v42  ;;  %v22379_v12 = vld [vmem:[#allocation209_spill] sm:$0xff] }
 0x8d5   : > { %v8626_v42 = vadd.f32 %v21015_v43, %v22379_v12 }
 0x8d6   : > { %v9914_v55 = vmax.f32 %v9778_v1, 0.0  ;;  %v9930_v2 = vmax.f32 %v9794_v19, 0.0  ;;  %v9307_v52 = vmul.f32 0.1, %v9171_v62  ;;  %v9323_v37 = vmul.f32 0.1, %v9187_v26  ;;  %v21201_v45 = vpop.f32.mrf.mxu3 }
 0x8d7   : > { %v8582_v28 = vpop.f32.mrf.mxu1  ;;  %v21236_v1 = vperm.slane %v20890_v24, 2  ;;  %v22380_v26 = vld [vmem:[#allocation18_spill] sm:$0xff] }
 0x8d8   : > { %10050 = vst [vmem:[%s19612_s30 + $0x2f0] sm:$0xff] %v9914_v55  ;;  %v9443_v48 = vadd.f32 %v9307_v52, %v3901_v59  ;;  %v9459_v32 = vadd.f32 %v9323_v37, %v3874_v63  ;;  %v8583_v21 = vadd.f32 %v8582_v28, %v22376_v34  ;;  %v8611_v29 = vpop.f32.mrf.mxu2  ;;  %v21244_v63 = vperm.slane %v20856_v53, 3  ;;  %v22381_v28 = vld [vmem:[#allocation81_spill] sm:$0xff] }
 0x8d9   : > { %10066 = vst [vmem:[%s19612_s30 + $0x370] sm:$0xff] %v9930_v2  ;;  %v8652_v9 = vpop.f32.mrf.mxu0  ;;  %v21260_v34 = vperm.slane %v20881_v38, 3 }
 0x8da   : > { %v9619_v13 = vmul.f32 %v20935_v25, %v9443_v48  ;;  %v9635_v50 = vmul.f32 %v20899_v39, %v9459_v32  ;;  %v8612_v31 = vadd.f32 %v8611_v29, %v8583_v21  ;;  %v8653_v7 = vadd.f32 %v8652_v9, %v8624_v22  ;;  %v22382_v48 = vld [vmem:[#allocation83_spill] sm:$0xff] }
 0x8db   : > { %v3903_v39 = vadd.f32 %v22378_v60, %v20916_v61  ;;  %v3917_v32 = vadd.f32 %v22382_v48, %v21211_v44  ;;  %v22383_v9 = vld [vmem:[#allocation211_spill] sm:$0xff] }
 0x8dc   : > { %v9795_v16 = vadd.f32 %v20960_v41, %v9619_v13  ;;  %v9811_v14 = vadd.f32 %v20908_v35, %v9635_v50  ;;  %v9188_v56 = vadd.f32 %v20913_v18, %v8612_v31  ;;  %v9070_v54 = vadd.f32 %v21208_v8, %v8653_v7  ;;  %13277 = vmatmul.msk.bf16.vlgmr.msrb.gmra.mxu0 %vm1101_vm1, %v22247_v58 }
 0x8dd   : > { %13281 = vmatmul.msk.bf16.vlgmr.msra.gmra.mxu2 %vm1101_vm1, %v22247_v58  ;;  %v8629_v13 = vadd.f32 %v21082_v10, %v22383_v9 }
 0x8de   : > { %v9931_v35 = vmax.f32 %v9795_v16, 0.0  ;;  %v9947_v18 = vmax.f32 %v9811_v14, 0.0  ;;  %v9324_v49 = vmul.f32 0.1, %v9188_v56  ;;  %v9206_v17 = vmul.f32 0.1, %v9070_v54  ;;  %v21231_v11 = vpop.f32.mrf.mxu3 }
 0x8df   : > { %v8681_v61 = vpop.f32.mrf.mxu1  ;;  %v21268_v16 = vperm.slane %v20890_v24, 3  ;;  %v22384_v56 = vld [vmem:[#allocation223_spill] sm:$0xff] }
 0x8e0   : > { %10067 = vst [vmem:[%s19612_s30 + $0x378] sm:$0xff] %v9931_v35  ;;  %v9460_v19 = vadd.f32 %v9324_v49, %v3903_v39  ;;  %v9342_v62 = vadd.f32 %v9206_v17, %v3915_v30  ;;  %v8682_v47 = vadd.f32 %v8681_v61, %v22380_v26  ;;  %v8710_v59 = vpop.f32.mrf.mxu2  ;;  %v13219_v35 = vld [vmem:[%s21883_s19 + $0x618] sm:$0xf]  ;;  %v13715_v24 = vld [vmem:[%s21883_s19 + $0x658] sm:$0xf0] }
 0x8e1   : > { %10083 = vst [vmem:[%s19612_s30 + $0x3f8] sm:$0xff] %v9947_v18  ;;  %v8654_v55 = vpop.f32.mrf.mxu0  ;;  %v13220_v26 = vor.u32 %v13715_v24, %v13219_v35 }
 0x8e2   : > { %v9636_v43 = vmul.f32 %v20935_v25, %v9460_v19  ;;  %v9518_v2 = vmul.f32 %v21227_v0, %v9342_v62  ;;  %v8711_v52 = vadd.f32 %v8710_v59, %v8682_v47  ;;  %v8655_v37 = vadd.f32 %v8654_v55, %v8626_v42  ;;  %8912 = vmatmul.bf16.vlgmr.msra.gmra.mxu1 %v22252_v23  ;;  %v22385_v42 = vld [vmem:[#allocation85_spill] sm:$0xff]  ;;  %v22386_v19 = vld [vmem:[#allocation87_spill] sm:$0xff] }
 0x8e3   : > { %8970 = vmatmul.bf16.vlgmr.msra.gmra.mxu3 %v22252_v23  ;;  %v3944_v25 = vadd.f32 %v22381_v28, %v21244_v63  ;;  %v3946_v61 = vadd.f32 %v22385_v42, %v21244_v63  ;;  %v3920_v62 = vadd.f32 %v22386_v19, %v21211_v44  ;;  %8995 = vmatpush.bf16.msra.mxu0 %v13220_v26  ;;  %v22388_v28 = vld [vmem:[#allocation22_spill] sm:$0xff]  ;;  %v13664_v42 = vld [vmem:[%s21883_s19 + $0x4c0] sm:$0xf0] }
 0x8e4   : > { %v9812_v4 = vadd.f32 %v20960_v41, %v9636_v43  ;;  %v9694_v46 = vadd.f32 %v21236_v1, %v9518_v2  ;;  %v9071_v53 = vadd.f32 %v21241_v33, %v8711_v52  ;;  %v9087_v22 = vadd.f32 %v21208_v8, %v8655_v37  ;;  %v22387_v2 = vld [vmem:[#allocation213_spill] sm:$0xff] }
 0x8e5   : > { %v8631_v52 = vadd.f32 %v21139_v6, %v22387_v2 }
 0x8e6   : > { %v9948_v21 = vmax.f32 %v9812_v4, 0.0  ;;  %v9830_v23 = vmax.f32 %v9694_v46, 0.0  ;;  %v9207_v29 = vmul.f32 0.1, %v9071_v53  ;;  %v9223_v41 = vmul.f32 0.1, %v9087_v22  ;;  %v21264_v50 = vpop.f32.mrf.mxu3 }
 0x8e7   : > { %v8683_v31 = vpop.f32.mrf.mxu1  ;;  %v13151_v4 = vld [vmem:[%s21883_s19 + $0x590] sm:$0xf]  ;;  %v13698_v46 = vld [vmem:[%s21883_s19 + $0x5d0] sm:$0xf0] }
 0x8e8   : > { %10084 = vst [vmem:[%s19612_s30 + $0x400] sm:$0xff] %v9948_v21  ;;  %v9343_v7 = vadd.f32 %v9207_v29, %v3944_v25  ;;  %v9359_v14 = vadd.f32 %v9223_v41, %v3917_v32  ;;  %v8684_v54 = vadd.f32 %v8683_v31, %v22384_v56  ;;  %v8712_v38 = vpop.f32.mrf.mxu2  ;;  %v13152_v32 = vor.u32 %v13698_v46, %v13151_v4  ;;  %v13681_v31 = vld [vmem:[%s21883_s19 + $0x548] sm:$0xf0] }
 0x8e9   : > { %9966 = vst [vmem:[%s19612_s30 + $0x50] sm:$0xff] %v9830_v23  ;;  %v8657_v57 = vpop.f32.mrf.mxu0 }
 0x8ea   : > { %v9519_v30 = vmul.f32 %v21260_v34, %v9343_v7  ;;  %v9535_v60 = vmul.f32 %v21227_v0, %v9359_v14  ;;  %v8713_v39 = vadd.f32 %v8712_v38, %v8684_v54  ;;  %v8658_v10 = vadd.f32 %v8657_v57, %v8629_v13  ;;  %8996 = vmatpush.bf16.msra.mxu0 %v13152_v32  ;;  %v13083_v13 = vld [vmem:[%s21883_s19 + $0x508] sm:$0xf]  ;;  %v22390_v57 = vld [vmem:[#allocation91_spill] sm:$0xff] }
 0x8ec   : > { %v9695_v18 = vadd.f32 %v21268_v16, %v9519_v30  ;;  %v9711_v49 = vadd.f32 %v21236_v1, %v9535_v60  ;;  %v9088_v17 = vadd.f32 %v21241_v33, %v8713_v39  ;;  %v9104_v12 = vadd.f32 %v21208_v8, %v8658_v10  ;;  %13278 = vmatmul.msk.bf16.gmra.mxu0 %vm1101_vm1, %v19100_v20 }
 0x8ed   : > { %13282 = vmatmul.msk.bf16.gmra.mxu2 %vm1101_vm1, %v19100_v20  ;;  %v3922_v30 = vadd.f32 %v22390_v57, %v21211_v44  ;;  %v13084_v60 = vor.u32 %v13681_v31, %v13083_v13  ;;  %v22395_v13 = vld [vmem:[#allocation217_spill] sm:$0xff] }
 0x8ee   : > { %v9831_v47 = vmax.f32 %v9695_v18, 0.0  ;;  %v9847_v59 = vmax.f32 %v9711_v49, 0.0  ;;  %v9224_v55 = vmul.f32 0.1, %v9088_v17  ;;  %v9240_v43 = vmul.f32 0.1, %v9104_v12  ;;  %v21303_v21 = vpop.f32.mrf.mxu3 }
 0x8ef   : > { %v8686_v37 = vpop.f32.mrf.mxu1  ;;  %v22391_v18 = vld [vmem:[#allocation215_spill] sm:$0xff]  ;;  %8997 = vmatpush.bf16.msra.mxu0 %v13084_v60  ;;  %v13015_v12 = vld [vmem:[%s21883_s19 + $0x480] sm:$0xf]  ;;  %v8636_v31 = vadd.f32 %v21182_v36, %v22395_v13 }
 0x8f0   : > { %9967 = vst [vmem:[%s19612_s30 + $0x58] sm:$0xff] %v9831_v47  ;;  %v9360_v53 = vadd.f32 %v9224_v55, %v3946_v61  ;;  %v9376_v22 = vadd.f32 %v9240_v43, %v3920_v62  ;;  %v8687_v25 = vadd.f32 %v8686_v37, %v22388_v28  ;;  %v8715_v48 = vpop.f32.mrf.mxu2  ;;  %v8634_v49 = vadd.f32 %v21161_v40, %v22391_v18  ;;  %v22392_v62 = vld [vmem:[#allocation225_spill] sm:$0xff] }
 0x8f1   : > { %9983 = vst [vmem:[%s19612_s30 + $0xd8] sm:$0xff] %v9847_v59  ;;  %v8659_v6 = vpop.f32.mrf.mxu0  ;;  %v13016_v59 = vor.u32 %v13664_v42, %v13015_v12  ;;  %v22393_v28 = vld [vmem:[#allocation93_spill] sm:$0xff] }
 0x8f2   : > { %v9536_v23 = vmul.f32 %v21260_v34, %v9360_v53  ;;  %v9552_v29 = vmul.f32 %v21227_v0, %v9376_v22  ;;  %v8716_v41 = vadd.f32 %v8715_v48, %v8687_v25  ;;  %v8660_v9 = vadd.f32 %v8659_v6, %v8631_v52  ;;  %8917 = vmatmul.bf16.gmra.mxu1 %v18887_v27  ;;  %v22394_v48 = vld [vmem:[#allocation95_spill] sm:$0xff]  ;;  %v22397_v18 = vld [vmem:[#allocation97_spill] sm:$0xff] }
 0x8f3   : > { %8975 = vmatmul.bf16.gmra.mxu3 %v18887_v27  ;;  %v22389_v27 = vld [vmem:[#allocation89_spill] sm:$0xff]  ;;  %8998 = vmatpush.bf16.msra.mxu0 %v13016_v59  ;;  %v3951_v25 = vadd.f32 %v22393_v28, %v21244_v63  ;;  %v3925_v32 = vadd.f32 %v22394_v48, %v21211_v44 }
 0x8f4   : > { %v9712_v7 = vadd.f32 %v21268_v16, %v9536_v23  ;;  %v9728_v14 = vadd.f32 %v21236_v1, %v9552_v29  ;;  %v9105_v56 = vadd.f32 %v21241_v33, %v8716_v41  ;;  %v9121_v54 = vadd.f32 %v21208_v8, %v8660_v9 }
 0x8f5   : > { %v3949_v38 = vadd.f32 %v22389_v27, %v21244_v63 }
 0x8f6   : > { %v9848_v39 = vmax.f32 %v9712_v7, 0.0  ;;  %v9864_v10 = vmax.f32 %v9728_v14, 0.0  ;;  %v9241_v35 = vmul.f32 0.1, %v9105_v56  ;;  %v9257_v24 = vmul.f32 0.1, %v9121_v54  ;;  %v21336_v37 = vpop.f32.mrf.mxu3 }
 0x8f7   : > { %v8688_v17 = vpop.f32.mrf.mxu1  ;;  %v22396_v56 = vld [vmem:[#allocation26_spill] sm:$0xff] }
 0x8f8   : > { %9984 = vst [vmem:[%s19612_s30 + $0xe0] sm:$0xff] %v9848_v39  ;;  %v9377_v61 = vadd.f32 %v9241_v35, %v3949_v38  ;;  %v9393_v19 = vadd.f32 %v9257_v24, %v3922_v30  ;;  %v8689_v26 = vadd.f32 %v8688_v17, %v22392_v62  ;;  %v8717_v47 = vpop.f32.mrf.mxu2  ;;  %v22398_v17 = vld [vmem:[#allocation99_spill] sm:$0xff] }
 0x8f9   : > { %10000 = vst [vmem:[%s19612_s30 + $0x160] sm:$0xff] %v9864_v10  ;;  %v8662_v55 = vpop.f32.mrf.mxu0  ;;  %v3927_v12 = vadd.f32 %v22398_v17, %v21211_v44 }
 0x8fa   : > { %v9553_v40 = vmul.f32 %v21260_v34, %v9377_v61  ;;  %v9569_v43 = vmul.f32 %v21227_v0, %v9393_v19  ;;  %v8718_v2 = vadd.f32 %v8717_v47, %v8689_v26  ;;  %v8663_v52 = vadd.f32 %v8662_v55, %v8634_v49  ;;  %v22399_v47 = vld [vmem:[#allocation219_spill] sm:$0xff] }
 0x8fb   : > { %v3954_v49 = vadd.f32 %v22397_v18, %v21244_v63  ;;  %v8639_v59 = vadd.f32 %v21201_v45, %v22399_v47 }
 0x8fc   : > { %v9729_v4 = vadd.f32 %v21268_v16, %v9553_v40  ;;  %v9745_v46 = vadd.f32 %v21236_v1, %v9569_v43  ;;  %v9122_v53 = vadd.f32 %v21241_v33, %v8718_v2  ;;  %v9138_v22 = vadd.f32 %v21208_v8, %v8663_v52  ;;  %13279 = vmatmul.msk.bf16.gmra.mxu0 %vm1101_vm1, %v19224_v15  ;;  %v22400_v43 = vld [vmem:[#allocation227_spill] sm:$0xff] }
 0x8fd   : > { %13283 = vmatmul.msk.bf16.gmra.mxu2 %vm1101_vm1, %v19224_v15 }
 0x8fe   : > { %v9865_v6 = vmax.f32 %v9729_v4, 0.0  ;;  %v9881_v23 = vmax.f32 %v9745_v46, 0.0  ;;  %v9258_v29 = vmul.f32 0.1, %v9122_v53  ;;  %v9274_v41 = vmul.f32 0.1, %v9138_v22  ;;  %v21367_v42 = vpop.f32.mrf.mxu3 }
 0x8ff   : > { %v8691_v9 = vpop.f32.mrf.mxu1 }
 0x900   : > { %10001 = vst [vmem:[%s19612_s30 + $0x168] sm:$0xff] %v9865_v6  ;;  %v9394_v7 = vadd.f32 %v9258_v29, %v3951_v25  ;;  %v9410_v14 = vadd.f32 %v9274_v41, %v3925_v32  ;;  %v8692_v54 = vadd.f32 %v8691_v9, %v22396_v56  ;;  %v8720_v27 = vpop.f32.mrf.mxu2  ;;  %v22401_v6 = vld [vmem:[#allocation101_spill] sm:$0xff]  ;;  %v22402_v29 = vld [vmem:[#allocation103_spill] sm:$0xff] }
 0x901   : > { %10017 = vst [vmem:[%s19612_s30 + $0x1e8] sm:$0xff] %v9881_v23  ;;  %v8664_v38 = vpop.f32.mrf.mxu0  ;;  %v3956_v23 = vadd.f32 %v22401_v6, %v21244_v63  ;;  %v3930_v41 = vadd.f32 %v22402_v29, %v21211_v44 }
 0x902   : > { %v9570_v57 = vmul.f32 %v21260_v34, %v9394_v7  ;;  %v9586_v30 = vmul.f32 %v21227_v0, %v9410_v14  ;;  %v8721_v60 = vadd.f32 %v8720_v27, %v8692_v54  ;;  %v8665_v39 = vadd.f32 %v8664_v38, %v8636_v31  ;;  %8922 = vmatmul.bf16.gmra.mxu1 %v18985_v51  ;;  %v22403_v54 = vld [vmem:[#allocation16_spill] sm:$0xff] }
 0x903   : > { %8980 = vmatmul.bf16.gmra.mxu3 %v18985_v51  ;;  %v8641_v27 = vadd.f32 %v21231_v11, %v22403_v54 }
 0x904   : > { %v9746_v36 = vadd.f32 %v21268_v16, %v9570_v57  ;;  %v9762_v10 = vadd.f32 %v21236_v1, %v9586_v30  ;;  %v9139_v35 = vadd.f32 %v21241_v33, %v8721_v60  ;;  %v9155_v24 = vadd.f32 %v21208_v8, %v8665_v39  ;;  %v22404_v30 = vld [vmem:[#allocation12_spill] sm:$0xff] }
 0x906   : > { %v9882_v61 = vmax.f32 %v9746_v36, 0.0  ;;  %v9898_v19 = vmax.f32 %v9762_v10, 0.0  ;;  %v9275_v51 = vmul.f32 0.1, %v9139_v35  ;;  %v9291_v62 = vmul.f32 0.1, %v9155_v24  ;;  %v21388_v14 = vpop.f32.mrf.mxu3 }
 0x907   : > { %v8693_v26 = vpop.f32.mrf.mxu1 }
 0x908   : > { %10018 = vst [vmem:[%s19612_s30 + $0x1f0] sm:$0xff] %v9882_v61  ;;  %v9411_v55 = vadd.f32 %v9275_v51, %v3954_v49  ;;  %v9427_v40 = vadd.f32 %v9291_v62, %v3927_v12  ;;  %v8694_v2 = vadd.f32 %v8693_v26, %v22400_v43  ;;  %v8722_v52 = vpop.f32.mrf.mxu2  ;;  %v22405_v61 = vld [vmem:[#allocation105_spill] sm:$0xff]  ;;  %v22406_v51 = vld [vmem:[#allocation107_spill] sm:$0xff] }
 0x909   : > { %10034 = vst [vmem:[%s19612_s30 + $0x270] sm:$0xff] %v9898_v19  ;;  %v8667_v4 = vpop.f32.mrf.mxu0  ;;  %v3959_v19 = vadd.f32 %v22405_v61, %v21244_v63  ;;  %v3932_v62 = vadd.f32 %v22406_v51, %v21211_v44 }
 0x90a   : > { %v9587_v46 = vmul.f32 %v21260_v34, %v9411_v55  ;;  %v9603_v53 = vmul.f32 %v21227_v0, %v9427_v40  ;;  %v8723_v22 = vadd.f32 %v8722_v52, %v8694_v2  ;;  %v8668_v28 = vadd.f32 %v8667_v4, %v8639_v59  ;;  %v22408_v4 = vld [vmem:[#allocation19_spill] sm:$0xff] }
 0x90c   : > { %v9763_v25 = vadd.f32 %v21268_v16, %v9587_v46  ;;  %v9779_v48 = vadd.f32 %v21236_v1, %v9603_v53  ;;  %v9156_v45 = vadd.f32 %v21241_v33, %v8723_v22  ;;  %v9172_v32 = vadd.f32 %v21208_v8, %v8668_v28  ;;  %13280 = vmatmul.msk.bf16.gmra.mxu0 %vm1101_vm1, %v19264_v3  ;;  %v21414_v53 = vld [vmem:[%s21885_s21 + $0x8] sm:$0xff] }
 0x90d   : > { %13284 = vmatmul.msk.bf16.gmra.mxu2 %vm1101_vm1, %v19264_v3  ;;  %v21417_v44 = vperm.slane %v21414_v53, 4  ;;  %v21422_v22 = vld [vmem:[%s21882_s18 + $0x8] sm:$0xff] }
 0x90e   : > { %v9899_v9 = vmax.f32 %v9763_v25, 0.0  ;;  %v9915_v13 = vmax.f32 %v9779_v48, 0.0  ;;  %v9292_v31 = vmul.f32 0.1, %v9156_v45  ;;  %v9308_v7 = vmul.f32 0.1, %v9172_v32  ;;  %v21428_v28 = vpop.f32.mrf.mxu3 }
 0x90f   : > { %v8696_v56 = vpop.f32.mrf.mxu1 }
 0x910   : > { %10035 = vst [vmem:[%s19612_s30 + $0x278] sm:$0xff] %v9899_v9  ;;  %v9428_v38 = vadd.f32 %v9292_v31, %v3956_v23  ;;  %v9444_v57 = vadd.f32 %v9308_v7, %v3930_v41  ;;  %v8697_v60 = vadd.f32 %v8696_v56, %v22404_v30  ;;  %v8725_v39 = vpop.f32.mrf.mxu2  ;;  %v22410_v7 = vld [vmem:[#allocation109_spill] sm:$0xff] }
 0x911   : > { %10051 = vst [vmem:[%s19612_s30 + $0x2f8] sm:$0xff] %v9915_v13  ;;  %v8669_v36 = vpop.f32.mrf.mxu0  ;;  %v22409_v13 = vld [vmem:[#allocation108_spill] sm:$0xff]  ;;  %v21445_v56 = vld [vmem:[%s21886_s22 + $0x8] sm:$0xff] }
 0x912   : > { %v9604_v10 = vmul.f32 %v21260_v34, %v9428_v38  ;;  %v9620_v35 = vmul.f32 %v21227_v0, %v9444_v57  ;;  %v8726_v24 = vadd.f32 %v8725_v39, %v8697_v60  ;;  %v8670_v18 = vadd.f32 %v8669_v36, %v8641_v27  ;;  %8927 = vmatmul.bf16.gmra.mxu1 %v19021_v5 }
 0x913   : > { %8985 = vmatmul.bf16.gmra.mxu3 %v19021_v5  ;;  %v22407_v5 = vld [vmem:[#allocation222_spill] sm:$0xff] }
 0x914   : > { %v9780_v11 = vadd.f32 %v21268_v16, %v9604_v10  ;;  %v9796_v49 = vadd.f32 %v21236_v1, %v9620_v35  ;;  %v9173_v17 = vadd.f32 %v21241_v33, %v8726_v24  ;;  %v9189_v12 = vadd.f32 %v21208_v8, %v8670_v18  ;;  %v22412_v10 = vld [vmem:[#allocation230_spill] sm:$0xff] }
 0x915   : > { %v8740_v40 = vadd.f32 %v21264_v50, %v22407_v5  ;;  %v21425_v50 = vperm.slane %v21422_v22, 4  ;;  %v21463_v18 = vperm.slane %v21414_v53, 5 }
 0x916   : > { %v9916_v26 = vmax.f32 %v9780_v11, 0.0  ;;  %v9932_v47 = vmax.f32 %v9796_v49, 0.0  ;;  %v9309_v59 = vmul.f32 0.1, %v9173_v17  ;;  %v9325_v55 = vmul.f32 0.1, %v9189_v12 }
 0x917   : > { %v8698_v43 = vpop.f32.mrf.mxu1  ;;  %v3973_v31 = vadd.f32 %v22409_v13, %v21425_v50 }
 0x918   : > { %10052 = vst [vmem:[%s19612_s30 + $0x300] sm:$0xff] %v9916_v26  ;;  %v9445_v2 = vadd.f32 %v9309_v59, %v3959_v19  ;;  %v9461_v52 = vadd.f32 %v9325_v55, %v3932_v62  ;;  %v8699_v8 = vadd.f32 %v8698_v43, %v22408_v4  ;;  %v8727_v46 = vpop.f32.mrf.mxu2  ;;  %v21471_v19 = vpop.f32.mrf.mxu3  ;;  %v22413_v59 = vld [vmem:[#allocation110_spill] sm:$0xff]  ;;  %v22415_v4 = vld [vmem:[#allocation224_spill] sm:$0xff] }
 0x919   : > { %10068 = vst [vmem:[%s19612_s30 + $0x380] sm:$0xff] %v9932_v47  ;;  %v8768_v25 = vpop.f32.mrf.mxu0 }
 0x91a   : > { %v9621_v48 = vmul.f32 %v21260_v34, %v9445_v2  ;;  %v9637_v45 = vmul.f32 %v21227_v0, %v9461_v52  ;;  %v8728_v32 = vadd.f32 %v8727_v46, %v8699_v8  ;;  %v8769_v6 = vadd.f32 %v8768_v25, %v8740_v40 }
 0x91b   : > { %v3961_v0 = vadd.f32 %v22410_v7, %v21244_v63  ;;  %v21455_v63 = vld [vmem:[%s21887_s23 + $0x8] sm:$0xff]  ;;  %v21482_v40 = vperm.slane %v21445_v56, 5  ;;  %v8745_v8 = vadd.f32 %v21336_v37, %v22415_v4 }
 0x91c   : > { %v9797_v23 = vadd.f32 %v21268_v16, %v9621_v48  ;;  %v9813_v29 = vadd.f32 %v21236_v1, %v9637_v45  ;;  %v9190_v41 = vadd.f32 %v21241_v33, %v8728_v32  ;;  %v9072_v9 = vadd.f32 %v21417_v44, %v8769_v6  ;;  %13285 = vmatmul.msk.bf16.vlgmr.msra.gmra.mxu0 %vm1101_vm1, %v22247_v58  ;;  %v22411_v58 = vld [vmem:[#allocation20_spill] sm:$0xff]  ;;  %v22416_v32 = vld [vmem:[#allocation23_spill] sm:$0xff] }
 0x91d   : > { %v21448_v1 = vperm.slane %v21445_v56, 4  ;;  %v8742_v57 = vadd.f32 %v21303_v21, %v22411_v58  ;;  %v21458_v30 = vperm.slane %v21455_v63, 4  ;;  %v21466_v21 = vperm.slane %v21422_v22, 5 }
 0x91e   : > { %v9933_v33 = vmax.f32 %v9797_v23, 0.0  ;;  %v9949_v54 = vmax.f32 %v9813_v29, 0.0  ;;  %v9326_v27 = vmul.f32 0.1, %v9190_v41  ;;  %v9208_v38 = vmul.f32 0.1, %v9072_v9 }
 0x91f   : > { %v8797_v60 = vpop.f32.mrf.mxu1  ;;  %v4002_v55 = vadd.f32 %v22413_v59, %v21466_v21  ;;  %v21488_v48 = vperm.slane %v21455_v63, 5 }
 0x920   : > { %10069 = vst [vmem:[%s19612_s30 + $0x388] sm:$0xff] %v9933_v33  ;;  %v9462_v39 = vadd.f32 %v9326_v27, %v3961_v0  ;;  %v9344_v36 = vadd.f32 %v9208_v38, %v3973_v31  ;;  %v8798_v35 = vadd.f32 %v8797_v60, %v22412_v10  ;;  %v8826_v24 = vpop.f32.mrf.mxu2  ;;  %v22418_v38 = vld [vmem:[#allocation116_spill] sm:$0xff] }
 0x921   : > { %10085 = vst [vmem:[%s19612_s30 + $0x408] sm:$0xff] %v9949_v54  ;;  %v8770_v11 = vpop.f32.mrf.mxu0  ;;  %v22417_v54 = vld [vmem:[#allocation114_spill] sm:$0xff]  ;;  %v3978_v58 = vadd.f32 %v22418_v38, %v21425_v50 }
 0x922   : > { %v9638_v49 = vmul.f32 %v21260_v34, %v9462_v39  ;;  %v9520_v17 = vmul.f32 %v21448_v1, %v9344_v36  ;;  %v8827_v12 = vadd.f32 %v8826_v24, %v8798_v35  ;;  %v8771_v61 = vadd.f32 %v8770_v11, %v8742_v57  ;;  %v22414_v34 = vld [vmem:[#allocation112_spill] sm:$0xff]  ;;  %v21504_v57 = vpop.f32.mrf.mxu3 }
 0x923   : > { %v3975_v5 = vadd.f32 %v22414_v34, %v21425_v50  ;;  %v4004_v27 = vadd.f32 %v22417_v54, %v21466_v21  ;;  %v22419_v24 = vld [vmem:[#allocation24_spill] sm:$0xff] }
 0x924   : > { %v9814_v51 = vadd.f32 %v21268_v16, %v9638_v49  ;;  %v9696_v62 = vadd.f32 %v21458_v30, %v9520_v17  ;;  %v9073_v26 = vadd.f32 %v21463_v18, %v8827_v12  ;;  %v9089_v47 = vadd.f32 %v21417_v44, %v8771_v61 }
 0x925   : > { %v8747_v11 = vadd.f32 %v21367_v42, %v22419_v24 }
 0x926   : > { %v9950_v43 = vmax.f32 %v9814_v51, 0.0  ;;  %v9832_v2 = vmax.f32 %v9696_v62, 0.0  ;;  %v9209_v52 = vmul.f32 0.1, %v9073_v26  ;;  %v9225_v16 = vmul.f32 0.1, %v9089_v47 }
 0x927   : > { %v8799_v46 = vpop.f32.mrf.mxu1 }
 0x928   : > { %10086 = vst [vmem:[%s19612_s30 + $0x410] sm:$0xff] %v9950_v43  ;;  %v9345_v25 = vadd.f32 %v9209_v52, %v4002_v55  ;;  %v9361_v45 = vadd.f32 %v9225_v16, %v3975_v5  ;;  %v8800_v6 = vadd.f32 %v8799_v46, %v22416_v32  ;;  %v8828_v23 = vpop.f32.mrf.mxu2  ;;  %v22421_v43 = vld [vmem:[#allocation118_spill] sm:$0xff]  ;;  %v22422_v52 = vld [vmem:[#allocation120_spill] sm:$0xff] }
 0x929   : > { %9968 = vst [vmem:[%s19612_s30 + $0x60] sm:$0xff] %v9832_v2  ;;  %v8773_v29 = vpop.f32.mrf.mxu0  ;;  %v4007_v2 = vadd.f32 %v22421_v43, %v21466_v21  ;;  %v3980_v16 = vadd.f32 %v22422_v52, %v21425_v50 }
 0x92a   : > { %v9521_v41 = vmul.f32 %v21482_v40, %v9345_v25  ;;  %v9537_v9 = vmul.f32 %v21448_v1, %v9361_v45  ;;  %v8829_v13 = vadd.f32 %v8828_v23, %v8800_v6  ;;  %v8774_v31 = vadd.f32 %v8773_v29, %v8745_v8  ;;  %v21521_v45 = vpop.f32.mrf.mxu3  ;;  %v22423_v6 = vld [vmem:[#allocation226_spill] sm:$0xff] }
 0x92b   : > { %v8750_v23 = vadd.f32 %v21388_v14, %v22423_v6 }
 0x92c   : > { %v9697_v37 = vadd.f32 %v21488_v48, %v9521_v41  ;;  %v9713_v7 = vadd.f32 %v21458_v30, %v9537_v9  ;;  %v9090_v0 = vadd.f32 %v21463_v18, %v8829_v13  ;;  %v9106_v33 = vadd.f32 %v21417_v44, %v8774_v31  ;;  %13286 = vmatmul.msk.bf16.gmra.mxu0 %vm1101_vm1, %v19100_v20  ;;  %v22420_v20 = vld [vmem:[#allocation232_spill] sm:$0xff]  ;;  %v22424_v9 = vld [vmem:[#allocation27_spill] sm:$0xff] }
 0x92e   : > { %v9833_v60 = vmax.f32 %v9697_v37, 0.0  ;;  %v9849_v39 = vmax.f32 %v9713_v7, 0.0  ;;  %v9226_v36 = vmul.f32 0.1, %v9090_v0  ;;  %v9242_v10 = vmul.f32 0.1, %v9106_v33 }
 0x92f   : > { %v8802_v35 = vpop.f32.mrf.mxu1 }
 0x930   : > { %9969 = vst [vmem:[%s19612_s30 + $0x68] sm:$0xff] %v9833_v60  ;;  %v9362_v49 = vadd.f32 %v9226_v36, %v4004_v27  ;;  %v9378_v17 = vadd.f32 %v9242_v10, %v3978_v58  ;;  %v8803_v12 = vadd.f32 %v8802_v35, %v22420_v20  ;;  %v8831_v61 = vpop.f32.mrf.mxu2  ;;  %v22425_v60 = vld [vmem:[#allocation122_spill] sm:$0xff]  ;;  %v22426_v36 = vld [vmem:[#allocation124_spill] sm:$0xff] }
 0x931   : > { %9985 = vst [vmem:[%s19612_s30 + $0xe8] sm:$0xff] %v9849_v39  ;;  %v8775_v51 = vpop.f32.mrf.mxu0  ;;  %v4009_v39 = vadd.f32 %v22425_v60, %v21466_v21  ;;  %v3983_v10 = vadd.f32 %v22426_v36, %v21425_v50  ;;  %v22427_v20 = vld [vmem:[#allocation14_spill] sm:$0xff] }
 0x932   : > { %v9538_v62 = vmul.f32 %v21482_v40, %v9362_v49  ;;  %v9554_v26 = vmul.f32 %v21448_v1, %v9378_v17  ;;  %v8832_v47 = vadd.f32 %v8831_v61, %v8803_v12  ;;  %v8776_v59 = vadd.f32 %v8775_v51, %v8747_v11 }
 0x933   : > { %v8752_v12 = vadd.f32 %v21428_v28, %v22427_v20 }
 0x934   : > { %v9714_v55 = vadd.f32 %v21488_v48, %v9538_v62  ;;  %v9730_v34 = vadd.f32 %v21458_v30, %v9554_v26  ;;  %v9107_v42 = vadd.f32 %v21463_v18, %v8832_v47  ;;  %v9123_v5 = vadd.f32 %v21417_v44, %v8776_v59  ;;  %v22428_v62 = vld [vmem:[#allocation234_spill] sm:$0xff]  ;;  %v21544_v47 = vpop.f32.mrf.mxu3 }
 0x936   : > { %v9850_v4 = vmax.f32 %v9714_v55, 0.0  ;;  %v9866_v8 = vmax.f32 %v9730_v34, 0.0  ;;  %v9243_v46 = vmul.f32 0.1, %v9107_v42  ;;  %v9259_v25 = vmul.f32 0.1, %v9123_v5 }
 0x937   : > { %v8804_v32 = vpop.f32.mrf.mxu1 }
 0x938   : > { %9986 = vst [vmem:[%s19612_s30 + $0xf0] sm:$0xff] %v9850_v4  ;;  %v9379_v29 = vadd.f32 %v9243_v46, %v4007_v2  ;;  %v9395_v41 = vadd.f32 %v9259_v25, %v3980_v16  ;;  %v8805_v13 = vadd.f32 %v8804_v32, %v22424_v9  ;;  %v8833_v31 = vpop.f32.mrf.mxu2  ;;  %v22429_v16 = vld [vmem:[#allocation126_spill] sm:$0xff] }
 0x939   : > { %10002 = vst [vmem:[%s19612_s30 + $0x170] sm:$0xff] %v9866_v8  ;;  %v8778_v37 = vpop.f32.mrf.mxu0  ;;  %v4012_v4 = vadd.f32 %v22429_v16, %v21466_v21  ;;  %v22430_v8 = vld [vmem:[#allocation128_spill] sm:$0xff] }
 0x93a   : > { %v9555_v7 = vmul.f32 %v21482_v40, %v9379_v29  ;;  %v9571_v0 = vmul.f32 %v21448_v1, %v9395_v41  ;;  %v8834_v33 = vadd.f32 %v8833_v31, %v8805_v13  ;;  %v8779_v54 = vadd.f32 %v8778_v37, %v8750_v23  ;;  %v22431_v41 = vld [vmem:[#allocation17_spill] sm:$0xff]  ;;  %v22432_v37 = vld [vmem:[#allocation15_spill] sm:$0xff] }
 0x93b   : > { %v3985_v46 = vadd.f32 %v22430_v8, %v21425_v50  ;;  %v8755_v9 = vadd.f32 %v21471_v19, %v22431_v41 }
 0x93c   : > { %v9731_v27 = vadd.f32 %v21488_v48, %v9555_v7  ;;  %v9747_v38 = vadd.f32 %v21458_v30, %v9571_v0  ;;  %v9124_v14 = vadd.f32 %v21463_v18, %v8834_v33  ;;  %v9140_v58 = vadd.f32 %v21417_v44, %v8779_v54  ;;  %13287 = vmatmul.msk.bf16.gmra.mxu0 %vm1101_vm1, %v19224_v15 }
 0x93e   : > { %v9867_v35 = vmax.f32 %v9731_v27, 0.0  ;;  %v9883_v24 = vmax.f32 %v9747_v38, 0.0  ;;  %v9260_v11 = vmul.f32 0.1, %v9124_v14  ;;  %v9276_v49 = vmul.f32 0.1, %v9140_v58  ;;  %v21564_v58 = vpop.f32.mrf.mxu3 }
 0x93f   : > { %v8807_v17 = vpop.f32.mrf.mxu1 }
 0x940   : > { %10003 = vst [vmem:[%s19612_s30 + $0x178] sm:$0xff] %v9867_v35  ;;  %v9396_v61 = vadd.f32 %v9260_v11, %v4009_v39  ;;  %v9412_v51 = vadd.f32 %v9276_v49, %v3983_v10  ;;  %v8808_v26 = vadd.f32 %v8807_v17, %v22428_v62  ;;  %v8836_v15 = vpop.f32.mrf.mxu2  ;;  %v22433_v10 = vld [vmem:[#allocation130_spill] sm:$0xff] }
 0x941   : > { %10019 = vst [vmem:[%s19612_s30 + $0x1f8] sm:$0xff] %v9883_v24  ;;  %v8780_v59 = vpop.f32.mrf.mxu0  ;;  %v4014_v35 = vadd.f32 %v22433_v10, %v21466_v21  ;;  %v22434_v24 = vld [vmem:[#allocation132_spill] sm:$0xff] }
 0x942   : > { %v9572_v55 = vmul.f32 %v21482_v40, %v9396_v61  ;;  %v9588_v34 = vmul.f32 %v21448_v1, %v9412_v51  ;;  %v8837_v42 = vadd.f32 %v8836_v15, %v8808_v26  ;;  %v8781_v5 = vadd.f32 %v8780_v59, %v8752_v12  ;;  %v22435_v51 = vld [vmem:[#allocation228_spill] sm:$0xff] }
 0x943   : > { %v3988_v11 = vadd.f32 %v22434_v24, %v21425_v50  ;;  %v8757_v62 = vadd.f32 %v21504_v57, %v22435_v51  ;;  %v22436_v59 = vld [vmem:[#allocation236_spill] sm:$0xff]  ;;  %v22443_v51 = vld [vmem:[#allocation231_spill] sm:$0xff] }
 0x944   : > { %v9748_v43 = vadd.f32 %v21488_v48, %v9572_v55  ;;  %v9764_v28 = vadd.f32 %v21458_v30, %v9588_v34  ;;  %v9141_v2 = vadd.f32 %v21463_v18, %v8837_v42  ;;  %v9157_v52 = vadd.f32 %v21417_v44, %v8781_v5 }
 0x946   : > { %v9884_v25 = vmax.f32 %v9748_v43, 0.0  ;;  %v9900_v32 = vmax.f32 %v9764_v28, 0.0  ;;  %v9277_v6 = vmul.f32 0.1, %v9141_v2  ;;  %v9293_v23 = vmul.f32 0.1, %v9157_v52 }
 0x947   : > { %v8809_v29 = vpop.f32.mrf.mxu1 }
 0x948   : > { %10020 = vst [vmem:[%s19612_s30 + $0x200] sm:$0xff] %v9884_v25  ;;  %v9413_v13 = vadd.f32 %v9277_v6, %v4012_v4  ;;  %v9429_v31 = vadd.f32 %v9293_v23, %v3985_v46  ;;  %v8810_v7 = vadd.f32 %v8809_v29, %v22432_v37  ;;  %v8838_v0 = vpop.f32.mrf.mxu2  ;;  %v22437_v4 = vld [vmem:[#allocation134_spill] sm:$0xff]  ;;  %v22438_v46 = vld [vmem:[#allocation136_spill] sm:$0xff] }
 0x949   : > { %10036 = vst [vmem:[%s19612_s30 + $0x280] sm:$0xff] %v9900_v32  ;;  %v8783_v33 = vpop.f32.mrf.mxu0  ;;  %v4017_v8 = vadd.f32 %v22437_v4, %v21466_v21  ;;  %v3990_v25 = vadd.f32 %v22438_v46, %v21425_v50  ;;  %v21591_v32 = vpop.f32.mrf.mxu3  ;;  %v21601_v50 = vperm.slane %v21422_v22, 6  ;;  %v21644_v46 = vperm.slane %v21445_v56, 7 }
 0x94a   : > { %v9589_v54 = vmul.f32 %v21482_v40, %v9413_v13  ;;  %v9605_v27 = vmul.f32 %v21448_v1, %v9429_v31  ;;  %v8839_v38 = vadd.f32 %v8838_v0, %v8810_v7  ;;  %v8784_v14 = vadd.f32 %v8783_v33, %v8755_v9  ;;  %v22439_v9 = vld [vmem:[#allocation21_spill] sm:$0xff]  ;;  %v22440_v7 = vld [vmem:[#allocation238_spill] sm:$0xff] }
 0x94b   : > { %v8856_v13 = vadd.f32 %v21521_v45, %v22439_v9 }
 0x94c   : > { %v9765_v60 = vadd.f32 %v21488_v48, %v9589_v54  ;;  %v9781_v19 = vadd.f32 %v21458_v30, %v9605_v27  ;;  %v9158_v39 = vadd.f32 %v21463_v18, %v8839_v38  ;;  %v9174_v36 = vadd.f32 %v21417_v44, %v8784_v14  ;;  %13288 = vmatmul.msk.bf16.gmra.mxu0 %vm1101_vm1, %v19264_v3 }
 0x94d   : > { %v21598_v54 = vperm.slane %v21414_v53, 6 }
 0x94e   : > { %v9901_v49 = vmax.f32 %v9765_v60, 0.0  ;;  %v9917_v17 = vmax.f32 %v9781_v19, 0.0  ;;  %v9294_v20 = vmul.f32 0.1, %v9158_v39  ;;  %v9310_v12 = vmul.f32 0.1, %v9174_v36 }
 0x94f   : > { %v8812_v61 = vpop.f32.mrf.mxu1 }
 0x950   : > { %10037 = vst [vmem:[%s19612_s30 + $0x288] sm:$0xff] %v9901_v49  ;;  %v9430_v26 = vadd.f32 %v9294_v20, %v4014_v35  ;;  %v9446_v15 = vadd.f32 %v9310_v12, %v3988_v11  ;;  %v8813_v55 = vadd.f32 %v8812_v61, %v22436_v59  ;;  %v8841_v3 = vpop.f32.mrf.mxu2  ;;  %v22441_v35 = vld [vmem:[#allocation111_spill] sm:$0xff]  ;;  %v22442_v11 = vld [vmem:[#allocation138_spill] sm:$0xff]  ;;  %v22444_v59 = vld [vmem:[#allocation240_spill] sm:$0xff] }
 0x951   : > { %10053 = vst [vmem:[%s19612_s30 + $0x308] sm:$0xff] %v9917_v17  ;;  %v8785_v34 = vpop.f32.mrf.mxu0  ;;  %v4031_v24 = vadd.f32 %v22441_v35, %v21601_v50  ;;  %v4019_v49 = vadd.f32 %v22442_v11, %v21466_v21  ;;  %v21615_v17 = vperm.slane %v21445_v56, 6 }
 0x952   : > { %v9606_v42 = vmul.f32 %v21482_v40, %v9430_v26  ;;  %v9622_v5 = vmul.f32 %v21448_v1, %v9446_v15  ;;  %v8842_v43 = vadd.f32 %v8841_v3, %v8813_v55  ;;  %v8786_v28 = vadd.f32 %v8785_v34, %v8757_v62 }
 0x953   : > { %v21622_v62 = vperm.slane %v21455_v63, 6  ;;  %v21627_v34 = vperm.slane %v21414_v53, 7 }
 0x954   : > { %v9782_v2 = vadd.f32 %v21488_v48, %v9606_v42  ;;  %v9798_v52 = vadd.f32 %v21458_v30, %v9622_v5  ;;  %v9175_v57 = vadd.f32 %v21463_v18, %v8842_v43  ;;  %v9191_v16 = vadd.f32 %v21417_v44, %v8786_v28 }
 0x955   : > { %v21630_v42 = vperm.slane %v21422_v22, 7  ;;  %v22445_v22 = vld [vmem:[#allocation113_spill] sm:$0xff] }
 0x956   : > { %v9918_v6 = vmax.f32 %v9782_v2, 0.0  ;;  %v9934_v23 = vmax.f32 %v9798_v52, 0.0  ;;  %v9311_v29 = vmul.f32 0.1, %v9175_v57  ;;  %v9327_v41 = vmul.f32 0.1, %v9191_v16 }
 0x957   : > { %v8814_v31 = vpop.f32.mrf.mxu1  ;;  %v4060_v4 = vadd.f32 %v22445_v22, %v21630_v42 }
 0x958   : > { %10054 = vst [vmem:[%s19612_s30 + $0x310] sm:$0xff] %v9918_v6  ;;  %v9447_v37 = vadd.f32 %v9311_v29, %v4017_v8  ;;  %v9463_v44 = vadd.f32 %v9327_v41, %v3990_v25  ;;  %v8815_v0 = vadd.f32 %v8814_v31, %v22440_v7  ;;  %v8843_v33 = vpop.f32.mrf.mxu2  ;;  %v22446_v8 = vld [vmem:[#allocation115_spill] sm:$0xff]  ;;  %v22447_v29 = vld [vmem:[#allocation25_spill] sm:$0xff]  ;;  %v21650_v31 = vperm.slane %v21455_v63, 7 }
 0x959   : > { %10070 = vst [vmem:[%s19612_s30 + $0x390] sm:$0xff] %v9934_v23  ;;  %v8884_v27 = vpop.f32.mrf.mxu0  ;;  %v8861_v41 = vadd.f32 %v21564_v58, %v22447_v29 }
 0x95a   : > { %v9623_v38 = vmul.f32 %v21482_v40, %v9447_v37  ;;  %v9639_v14 = vmul.f32 %v21448_v1, %v9463_v44  ;;  %v8844_v45 = vadd.f32 %v8843_v33, %v8815_v0  ;;  %v8885_v60 = vadd.f32 %v8884_v27, %v8856_v13  ;;  %v22448_v44 = vld [vmem:[#allocation242_spill] sm:$0xff] }
 0x95c   : > { %v9799_v19 = vadd.f32 %v21488_v48, %v9623_v38  ;;  %v9815_v39 = vadd.f32 %v21458_v30, %v9639_v14  ;;  %v9192_v36 = vadd.f32 %v21463_v18, %v8844_v45  ;;  %v9074_v10 = vadd.f32 %v21598_v54, %v8885_v60  ;;  %v21619_v18 = vpop.f32.mrf.mxu3 }
 0x95d   : > { %v8858_v30 = vadd.f32 %v21544_v47, %v22443_v51 }
 0x95e   : > { %v9935_v1 = vmax.f32 %v9799_v19, 0.0  ;;  %v9951_v20 = vmax.f32 %v9815_v39, 0.0  ;;  %v9328_v12 = vmul.f32 0.1, %v9192_v36  ;;  %v9210_v61 = vmul.f32 0.1, %v9074_v10 }
 0x95f   : > { %v8913_v26 = vpop.f32.mrf.mxu1  ;;  %v22449_v39 = vld [vmem:[#allocation117_spill] sm:$0xff]  ;;  %v22450_v10 = vld [vmem:[#allocation119_spill] sm:$0xff] }
 0x960   : > { %10071 = vst [vmem:[%s19612_s30 + $0x398] sm:$0xff] %v9935_v1  ;;  %v9464_v15 = vadd.f32 %v9328_v12, %v4019_v49  ;;  %v9346_v21 = vadd.f32 %v9210_v61, %v4031_v24  ;;  %v8914_v55 = vadd.f32 %v8913_v26, %v22444_v59  ;;  %v8942_v3 = vpop.f32.mrf.mxu2  ;;  %v4062_v36 = vadd.f32 %v22449_v39, %v21630_v42  ;;  %v22451_v12 = vld [vmem:[#allocation233_spill] sm:$0xff]  ;;  %v22452_v26 = vld [vmem:[#allocation244_spill] sm:$0xff] }
 0x961   : > { %10087 = vst [vmem:[%s19612_s30 + $0x418] sm:$0xff] %v9951_v20  ;;  %v8886_v47 = vpop.f32.mrf.mxu0  ;;  %v4036_v35 = vadd.f32 %v22450_v10, %v21601_v50  ;;  %v8863_v61 = vadd.f32 %v21591_v32, %v22451_v12 }
 0x962   : > { %v9640_v5 = vmul.f32 %v21482_v40, %v9464_v15  ;;  %v9522_v43 = vmul.f32 %v21615_v17, %v9346_v21  ;;  %v8943_v28 = vadd.f32 %v8942_v3, %v8914_v55  ;;  %v8887_v2 = vadd.f32 %v8886_v47, %v8858_v30 }
 0x963   : > { %v4033_v40 = vadd.f32 %v22446_v8, %v21601_v50 }
 0x964   : > { %v9816_v52 = vadd.f32 %v21488_v48, %v9640_v5  ;;  %v9698_v57 = vadd.f32 %v21622_v62, %v9522_v43  ;;  %v9075_v16 = vadd.f32 %v21627_v34, %v8943_v28  ;;  %v9091_v53 = vadd.f32 %v21598_v54, %v8887_v2  ;;  %v21653_v33 = vpop.f32.mrf.mxu3 }
 0x966   : > { %v9952_v25 = vmax.f32 %v9816_v52, 0.0  ;;  %v9834_v6 = vmax.f32 %v9698_v57, 0.0  ;;  %v9211_v23 = vmul.f32 0.1, %v9075_v16  ;;  %v9227_v48 = vmul.f32 0.1, %v9091_v53 }
 0x967   : > { %v8915_v9 = vpop.f32.mrf.mxu1  ;;  %v22453_v57 = vld [vmem:[#allocation121_spill] sm:$0xff]  ;;  %v22454_v53 = vld [vmem:[#allocation123_spill] sm:$0xff] }
 0x968   : > { %10088 = vst [vmem:[%s19612_s30 + $0x420] sm:$0xff] %v9952_v25  ;;  %v9347_v13 = vadd.f32 %v9211_v23, %v4060_v4  ;;  %v9363_v37 = vadd.f32 %v9227_v48, %v4033_v40  ;;  %v8916_v7 = vadd.f32 %v8915_v9, %v22448_v44  ;;  %v8944_v0 = vpop.f32.mrf.mxu2  ;;  %v4065_v16 = vadd.f32 %v22453_v57, %v21630_v42  ;;  %v22455_v23 = vld [vmem:[#allocation13_spill] sm:$0xff]  ;;  %v22456_v9 = vld [vmem:[#allocation246_spill] sm:$0xff] }
 0x969   : > { %9970 = vst [vmem:[%s19612_s30 + $0x70] sm:$0xff] %v9834_v6  ;;  %v8889_v56 = vpop.f32.mrf.mxu0  ;;  %v4038_v22 = vadd.f32 %v22454_v53, %v21601_v50  ;;  %v8866_v48 = vadd.f32 %v21619_v18, %v22455_v23 }
 0x96a   : > { %v9523_v27 = vmul.f32 %v21644_v46, %v9347_v13  ;;  %v9539_v38 = vmul.f32 %v21615_v17, %v9363_v37  ;;  %v8945_v58 = vadd.f32 %v8944_v0, %v8916_v7  ;;  %v8890_v14 = vadd.f32 %v8889_v56, %v8861_v41 }
 0x96c   : > { %v9699_v45 = vadd.f32 %v21650_v31, %v9523_v27  ;;  %v9715_v63 = vadd.f32 %v21622_v62, %v9539_v38  ;;  %v9092_v60 = vadd.f32 %v21627_v34, %v8945_v58  ;;  %v9108_v19 = vadd.f32 %v21598_v54, %v8890_v14  ;;  %v8870_v43 = vpop.f32.mrf.mxu3 }
 0x96e   : > { %v9835_v24 = vmax.f32 %v9699_v45, 0.0  ;;  %v9851_v11 = vmax.f32 %v9715_v63, 0.0  ;;  %v9228_v49 = vmul.f32 0.1, %v9092_v60  ;;  %v9244_v1 = vmul.f32 0.1, %v9108_v19 }
 0x96f   : > { %v8918_v20 = vpop.f32.mrf.mxu1  ;;  %v22457_v45 = vld [vmem:[#allocation125_spill] sm:$0xff]  ;;  %v22458_v60 = vld [vmem:[#allocation127_spill] sm:$0xff] }
 0x970   : > { %9971 = vst [vmem:[%s19612_s30 + $0x78] sm:$0xff] %v9835_v24  ;;  %v9364_v51 = vadd.f32 %v9228_v49, %v4062_v36  ;;  %v9380_v30 = vadd.f32 %v9244_v1, %v4036_v35  ;;  %v8919_v15 = vadd.f32 %v8918_v20, %v22452_v26  ;;  %v8947_v21 = vpop.f32.mrf.mxu2  ;;  %v4067_v63 = vadd.f32 %v22457_v45, %v21630_v42  ;;  %v22459_v49 = vld [vmem:[#allocation235_spill] sm:$0xff] }
 0x971   : > { %9987 = vst [vmem:[%s19612_s30 + $0xf8] sm:$0xff] %v9851_v11  ;;  %v8891_v59 = vpop.f32.mrf.mxu0  ;;  %v4041_v19 = vadd.f32 %v22458_v60, %v21601_v50  ;;  %v8868_v1 = vadd.f32 %v21653_v33, %v22459_v49  ;;  %v22468_v49 = vld [vmem:[#allocation252_spill] sm:$0xff] }
 0x972   : > { %v9540_v55 = vmul.f32 %v21644_v46, %v9364_v51  ;;  %v9556_v3 = vmul.f32 %v21615_v17, %v9380_v30  ;;  %v8948_v47 = vadd.f32 %v8947_v21, %v8919_v15  ;;  %v8892_v5 = vadd.f32 %v8891_v59, %v8863_v61  ;;  %v22460_v61 = vld [vmem:[#allocation248_spill] sm:$0xff] }
 0x974   : > { %v9716_v28 = vadd.f32 %v21650_v31, %v9540_v55  ;;  %v9732_v32 = vadd.f32 %v21622_v62, %v9556_v3  ;;  %v9109_v2 = vadd.f32 %v21627_v34, %v8948_v47  ;;  %v9125_v52 = vadd.f32 %v21598_v54, %v8892_v5  ;;  %v8872_v39 = vpop.f32.mrf.mxu3 }
 0x976   : > { %v9852_v4 = vmax.f32 %v9716_v28, 0.0  ;;  %v9868_v8 = vmax.f32 %v9732_v32, 0.0  ;;  %v9245_v40 = vmul.f32 0.1, %v9109_v2  ;;  %v9261_v25 = vmul.f32 0.1, %v9125_v52 }
 0x977   : > { %v8920_v6 = vpop.f32.mrf.mxu1  ;;  %v22461_v28 = vld [vmem:[#allocation129_spill] sm:$0xff]  ;;  %v22462_v2 = vld [vmem:[#allocation131_spill] sm:$0xff] }
 0x978   : > { %9988 = vst [vmem:[%s19612_s30 + $0x100] sm:$0xff] %v9852_v4  ;;  %v9381_v29 = vadd.f32 %v9245_v40, %v4065_v16  ;;  %v9397_v41 = vadd.f32 %v9261_v25, %v4038_v22  ;;  %v8921_v13 = vadd.f32 %v8920_v6, %v22456_v9  ;;  %v8949_v37 = vpop.f32.mrf.mxu2  ;;  %v4070_v32 = vadd.f32 %v22461_v28, %v21630_v42  ;;  %v22463_v40 = vld [vmem:[#allocation237_spill] sm:$0xff] }
 0x979   : > { %10004 = vst [vmem:[%s19612_s30 + $0x180] sm:$0xff] %v9868_v8  ;;  %v8894_v44 = vpop.f32.mrf.mxu0  ;;  %v4043_v52 = vadd.f32 %v22462_v2, %v21601_v50  ;;  %v8871_v25 = vadd.f32 %v8870_v43, %v22463_v40  ;;  %v22472_v40 = vld [vmem:[#allocation254_spill] sm:$0xff] }
 0x97a   : > { %v9557_v7 = vmul.f32 %v21644_v46, %v9381_v29  ;;  %v9573_v0 = vmul.f32 %v21615_v17, %v9397_v41  ;;  %v8950_v56 = vadd.f32 %v8949_v37, %v8921_v13  ;;  %v8895_v27 = vadd.f32 %v8894_v44, %v8866_v48  ;;  %v22464_v48 = vld [vmem:[#allocation250_spill] sm:$0xff] }
 0x97c   : > { %v9733_v38 = vadd.f32 %v21650_v31, %v9557_v7  ;;  %v9749_v58 = vadd.f32 %v21622_v62, %v9573_v0  ;;  %v9126_v18 = vadd.f32 %v21627_v34, %v8950_v56  ;;  %v9142_v14 = vadd.f32 %v21598_v54, %v8895_v27  ;;  %v8971_v4 = vpop.f32.mrf.mxu3 }
 0x97e   : > { %v9869_v36 = vmax.f32 %v9733_v38, 0.0  ;;  %v9885_v10 = vmax.f32 %v9749_v58, 0.0  ;;  %v9262_v35 = vmul.f32 0.1, %v9126_v18  ;;  %v9278_v24 = vmul.f32 0.1, %v9142_v14 }
 0x97f   : > { %v8923_v11 = vpop.f32.mrf.mxu1  ;;  %v22465_v38 = vld [vmem:[#allocation133_spill] sm:$0xff]  ;;  %v22466_v18 = vld [vmem:[#allocation135_spill] sm:$0xff] }
 0x980   : > { %10005 = vst [vmem:[%s19612_s30 + $0x188] sm:$0xff] %v9869_v36  ;;  %v9398_v20 = vadd.f32 %v9262_v35, %v4067_v63  ;;  %v9414_v12 = vadd.f32 %v9278_v24, %v4041_v19  ;;  %v8924_v51 = vadd.f32 %v8923_v11, %v22460_v61  ;;  %v8952_v30 = vpop.f32.mrf.mxu2  ;;  %v4072_v58 = vadd.f32 %v22465_v38, %v21630_v42 }
 0x981   : > { %10021 = vst [vmem:[%s19612_s30 + $0x208] sm:$0xff] %v9885_v10  ;;  %v8896_v26 = vpop.f32.mrf.mxu0  ;;  %v4046_v14 = vadd.f32 %v22466_v18, %v21601_v50  ;;  %v22467_v10 = vld [vmem:[#allocation239_spill] sm:$0xff] }
 0x982   : > { %v9574_v15 = vmul.f32 %v21644_v46, %v9398_v20  ;;  %v9590_v21 = vmul.f32 %v21615_v17, %v9414_v12  ;;  %v8953_v59 = vadd.f32 %v8952_v30, %v8924_v51  ;;  %v8897_v55 = vadd.f32 %v8896_v26, %v8868_v1 }
 0x983   : > { %v8873_v35 = vadd.f32 %v8872_v39, %v22467_v10 }
 0x984   : > { %v9750_v3 = vadd.f32 %v21650_v31, %v9574_v15  ;;  %v9766_v47 = vadd.f32 %v21622_v62, %v9590_v21  ;;  %v9143_v33 = vadd.f32 %v21627_v34, %v8953_v59  ;;  %v9159_v5 = vadd.f32 %v21598_v54, %v8897_v55  ;;  %v8973_v12 = vpop.f32.mrf.mxu3 }
 0x986   : > { %v9886_v57 = vmax.f32 %v9750_v3, 0.0  ;;  %v9902_v16 = vmax.f32 %v9766_v47, 0.0  ;;  %v9279_v53 = vmul.f32 0.1, %v9143_v33  ;;  %v9295_v22 = vmul.f32 0.1, %v9159_v5 }
 0x987   : > { %v8925_v8 = vpop.f32.mrf.mxu1  ;;  %v22469_v3 = vld [vmem:[#allocation137_spill] sm:$0xff]  ;;  %v22470_v33 = vld [vmem:[#allocation139_spill] sm:$0xff] }
 0x988   : > { %10022 = vst [vmem:[%s19612_s30 + $0x210] sm:$0xff] %v9886_v57  ;;  %v9415_v6 = vadd.f32 %v9279_v53, %v4070_v32  ;;  %v9431_v23 = vadd.f32 %v9295_v22, %v4043_v52  ;;  %v8926_v29 = vadd.f32 %v8925_v8, %v22464_v48  ;;  %v8954_v41 = vpop.f32.mrf.mxu2  ;;  %v4075_v47 = vadd.f32 %v22469_v3, %v21630_v42 }
 0x989   : > { %10038 = vst [vmem:[%s19612_s30 + $0x290] sm:$0xff] %v9902_v16  ;;  %v8899_v9 = vpop.f32.mrf.mxu0  ;;  %v4048_v5 = vadd.f32 %v22470_v33, %v21601_v50  ;;  %v22471_v16 = vld [vmem:[#allocation241_spill] sm:$0xff]  ;;  %v21750_v50 = vld [vmem:[%s21882_s18 + $0x10] ss:$0 sm:$0xff] }
 0x98a   : > { %v9591_v13 = vmul.f32 %v21644_v46, %v9415_v6  ;;  %v9607_v37 = vmul.f32 %v21615_v17, %v9431_v23  ;;  %v8955_v44 = vadd.f32 %v8954_v41, %v8926_v29  ;;  %v8900_v7 = vadd.f32 %v8899_v9, %v8871_v25 }
 0x98b   : > { %v8972_v53 = vadd.f32 %v8971_v4, %v22471_v16 }
 0x98c   : > { %v9767_v0 = vadd.f32 %v21650_v31, %v9591_v13  ;;  %v9783_v56 = vadd.f32 %v21622_v62, %v9607_v37  ;;  %v9160_v43 = vadd.f32 %v21627_v34, %v8955_v44  ;;  %v9176_v27 = vadd.f32 %v21598_v54, %v8900_v7  ;;  %v8976_v9 = vpop.f32.mrf.mxu3 }
 0x98e   : > { %v9903_v45 = vmax.f32 %v9767_v0, 0.0  ;;  %v9919_v63 = vmax.f32 %v9783_v56, 0.0  ;;  %v9296_v60 = vmul.f32 0.1, %v9160_v43  ;;  %v9312_v19 = vmul.f32 0.1, %v9176_v27 }
 0x98f   : > { %v8928_v36 = vpop.f32.mrf.mxu1  ;;  %v22473_v0 = vld [vmem:[#allocation140_spill] sm:$0xff]  ;;  %v22474_v43 = vld [vmem:[#allocation141_spill] sm:$0xff] }
 0x990   : > { %10039 = vst [vmem:[%s19612_s30 + $0x298] sm:$0xff] %v9903_v45  ;;  %v9432_v24 = vadd.f32 %v9296_v60, %v4072_v58  ;;  %v9448_v11 = vadd.f32 %v9312_v19, %v4046_v14  ;;  %v8929_v1 = vadd.f32 %v8928_v36, %v22468_v49  ;;  %v8957_v20 = vpop.f32.mrf.mxu2  ;;  %v4089_v56 = vadd.f32 %v21750_v50, %v22473_v0  ;;  %v21773_v60 = vld [vmem:[%s21887_s23 + $0x10] ss:$0 sm:$0xff] }
 0x991   : > { %10055 = vst [vmem:[%s19612_s30 + $0x318] sm:$0xff] %v9919_v63  ;;  %v8901_v61 = vpop.f32.mrf.mxu0  ;;  %v4077_v27 = vadd.f32 %v22474_v43, %v21630_v42 }
 0x992   : > { %v9608_v51 = vmul.f32 %v21644_v46, %v9432_v24  ;;  %v9624_v30 = vmul.f32 %v21615_v17, %v9448_v11  ;;  %v8958_v26 = vadd.f32 %v8957_v20, %v8929_v1  ;;  %v8902_v15 = vadd.f32 %v8901_v61, %v8873_v35  ;;  %v22476_v1 = vld [vmem:[#allocation142_spill] sm:$0xff] }
 0x993   : > { %v4091_v20 = vadd.f32 %v21750_v50, %v22476_v1 }
 0x994   : > { %v9784_v21 = vadd.f32 %v21650_v31, %v9608_v51  ;;  %v9800_v39 = vadd.f32 %v21622_v62, %v9624_v30  ;;  %v9177_v59 = vadd.f32 %v21627_v34, %v8958_v26  ;;  %v9193_v55 = vadd.f32 %v21598_v54, %v8902_v15  ;;  %v21745_v54 = vld [vmem:[%s21885_s21 + $0x10] ss:$0 sm:$0xff]  ;;  %v8978_v49 = vpop.f32.mrf.mxu3  ;;  %v22477_v30 = vld [vmem:[#allocation245_spill] sm:$0xff] }
 0x995   : > { %v8977_v26 = vadd.f32 %v8976_v9, %v22477_v30  ;;  %v22486_v30 = vld [vmem:[#allocation147_spill] sm:$0xff] }
 0x996   : > { %v9920_v28 = vmax.f32 %v9784_v21, 0.0  ;;  %v9936_v32 = vmax.f32 %v9800_v39, 0.0  ;;  %v9313_v2 = vmul.f32 0.1, %v9177_v59  ;;  %v9329_v52 = vmul.f32 0.1, %v9193_v55 }
 0x997   : > { %v8930_v57 = vpop.f32.mrf.mxu1  ;;  %v22478_v55 = vld [vmem:[#allocation143_spill] sm:$0xff] }
 0x998   : > { %10056 = vst [vmem:[%s19612_s30 + $0x320] sm:$0xff] %v9920_v28  ;;  %v9449_v22 = vadd.f32 %v9313_v2, %v4075_v47  ;;  %v9465_v8 = vadd.f32 %v9329_v52, %v4048_v5  ;;  %v8931_v25 = vadd.f32 %v8930_v57, %v22472_v40  ;;  %v8959_v6 = vpop.f32.mrf.mxu2  ;;  %v4094_v3 = vadd.f32 %v21750_v50, %v22478_v55  ;;  %v22479_v28 = vld [vmem:[#allocation247_spill] sm:$0xff] }
 0x999   : > { %10072 = vst [vmem:[%s19612_s30 + $0x3a0] sm:$0xff] %v9936_v32  ;;  %v9000_v23 = vpop.f32.mrf.mxu0  ;;  %v8979_v32 = vadd.f32 %v8978_v49, %v22479_v28 }
 0x99a   : > { %v9625_v4 = vmul.f32 %v21644_v46, %v9449_v22  ;;  %v9641_v48 = vmul.f32 %v21615_v17, %v9465_v8  ;;  %v8960_v29 = vadd.f32 %v8959_v6, %v8931_v25  ;;  %v9001_v41 = vadd.f32 %v9000_v23, %v8972_v53  ;;  %v21766_v17 = vld [vmem:[%s21886_s22 + $0x10] ss:$0 sm:$0xff]  ;;  %v22480_v8 = vld [vmem:[#allocation144_spill] sm:$0xff]  ;;  %v22481_v23 = vld [vmem:[#allocation249_spill] sm:$0xff] }
 0x99b   : > { %v4096_v40 = vadd.f32 %v21750_v50, %v22480_v8 }
 0x99c   : > { %v9801_v13 = vadd.f32 %v21650_v31, %v9625_v4  ;;  %v9817_v37 = vadd.f32 %v21622_v62, %v9641_v48  ;;  %v9194_v44 = vadd.f32 %v21627_v34, %v8960_v29  ;;  %v9076_v7 = vadd.f32 %v21745_v54, %v9001_v41  ;;  %v22475_v62 = vld [vmem:[#allocation243_spill] sm:$0xff]  ;;  %v8981_v5 = vpop.f32.mrf.mxu3 }
 0x99d   : > { %v8974_v45 = vadd.f32 %v8973_v12, %v22475_v62  ;;  %v8982_v4 = vadd.f32 %v8981_v5, %v22481_v23  ;;  %v22488_v5 = vld [vmem:[#allocation148_spill] sm:$0xff] }
 0x99e   : > { %v9937_v38 = vmax.f32 %v9801_v13, 0.0  ;;  %v9953_v58 = vmax.f32 %v9817_v37, 0.0  ;;  %v9330_v18 = vmul.f32 0.1, %v9194_v44  ;;  %v9212_v14 = vmul.f32 0.1, %v9076_v7 }
 0x99f   : > { %v22482_v7 = vld [vmem:[#allocation145_spill] sm:$0xff]  ;;  %v4106_v28 = vadd.f32 %v21750_v50, %v22488_v5 }
 0x9a0   : > { %10073 = vst [vmem:[%s19612_s30 + $0x3a8] sm:$0xff] %v9937_v38  ;;  %v9466_v34 = vadd.f32 %v9330_v18, %v4077_v27  ;;  %v9348_v63 = vadd.f32 %v9212_v14, %v4089_v56  ;;  %v4099_v0 = vadd.f32 %v21750_v50, %v22482_v7  ;;  %v22483_v27 = vld [vmem:[#allocation251_spill] sm:$0xff] }
 0x9a1   : > { %10089 = vst [vmem:[%s19612_s30 + $0x428] sm:$0xff] %v9953_v58  ;;  %v9002_v42 = vpop.f32.mrf.mxu0 }
 0x9a2   : > { %v9642_v19 = vmul.f32 %v21644_v46, %v9466_v34  ;;  %v9524_v36 = vmul.f32 %v21766_v17, %v9348_v63  ;;  %v9003_v10 = vadd.f32 %v9002_v42, %v8974_v45  ;;  %v22484_v42 = vld [vmem:[#allocation146_spill] sm:$0xff] }
 0x9a4   : > { %v9818_v35 = vadd.f32 %v21650_v31, %v9642_v19  ;;  %v9700_v24 = vadd.f32 %v21773_v60, %v9524_v36  ;;  %v9093_v11 = vadd.f32 %v21745_v54, %v9003_v10  ;;  %v8983_v29 = vpop.f32.mrf.mxu3  ;;  %v4101_v19 = vadd.f32 %v21750_v50, %v22484_v42 }
 0x9a5   : > { %v8984_v38 = vadd.f32 %v8983_v29, %v22483_v27 }
 0x9a6   : > { %v9954_v12 = vmax.f32 %v9818_v35, 0.0  ;;  %v9836_v61 = vmax.f32 %v9700_v24, 0.0  ;;  %v9229_v51 = vmul.f32 0.1, %v9093_v11  ;;  %v22485_v35 = vld [vmem:[#allocation253_spill] sm:$0xff] }
 0x9a8   : > { %10090 = vst [vmem:[%s19612_s30 + $0x430] sm:$0xff] %v9954_v12  ;;  %v9365_v46 = vadd.f32 %v9229_v51, %v4091_v20 }
 0x9a9   : > { %9972 = vst [vmem:[%s19612_s30 + $0x80] sm:$0xff] %v9836_v61  ;;  %v9005_v15 = vpop.f32.mrf.mxu0 }
 0x9aa   : > { %v9541_v31 = vmul.f32 %v21766_v17, %v9365_v46  ;;  %v9006_v21 = vadd.f32 %v9005_v15, %v8977_v26  ;;  %v4104_v26 = vadd.f32 %v21750_v50, %v22486_v30 }
 0x9ac   : > { %v9717_v39 = vadd.f32 %v21773_v60, %v9541_v31  ;;  %v9110_v59 = vadd.f32 %v21745_v54, %v9006_v21  ;;  %v8986_v45 = vpop.f32.mrf.mxu3  ;;  %v22487_v31 = vld [vmem:[#allocation257_spill] sm:$0xff] }
 0x9ad   : > { %v8987_v24 = vadd.f32 %v8986_v45, %v22485_v35 }
 0x9ae   : > { %v9853_v47 = vmax.f32 %v9717_v39, 0.0  ;;  %v9246_v33 = vmul.f32 0.1, %v9110_v59 }
 0x9b0   : > { %9989 = vst [vmem:[%s19612_s30 + $0x108] sm:$0xff] %v9853_v47  ;;  %v9382_v2 = vadd.f32 %v9246_v33, %v4094_v3 }
 0x9b1   : > { %v9007_v52 = vpop.f32.mrf.mxu0 }
 0x9b2   : > { %v9558_v57 = vmul.f32 %v21766_v17, %v9382_v2  ;;  %v9008_v16 = vadd.f32 %v9007_v52, %v8979_v32 }
 0x9b4   : > { %v9734_v53 = vadd.f32 %v21773_v60, %v9558_v57  ;;  %v9127_v22 = vadd.f32 %v21745_v54, %v9008_v16  ;;  %v8988_v51 = vpop.f32.mrf.mxu3 }
 0x9b5   : > { %v8989_v21 = vadd.f32 %v8988_v51, %v22487_v31 }
 0x9b6   : > { %v9870_v25 = vmax.f32 %v9734_v53, 0.0  ;;  %v9263_v6 = vmul.f32 0.1, %v9127_v22 }
 0x9b8   : > { %10006 = vst [vmem:[%s19612_s30 + $0x190] sm:$0xff] %v9870_v25  ;;  %v9399_v48 = vadd.f32 %v9263_v6, %v4096_v40 }
 0x9b9   : > { %v9010_v41 = vpop.f32.mrf.mxu0 }
 0x9ba   : > { %v9575_v9 = vmul.f32 %v21766_v17, %v9399_v48  ;;  %v9011_v13 = vadd.f32 %v9010_v41, %v8982_v4 }
 0x9bc   : > { %v9751_v37 = vadd.f32 %v21773_v60, %v9575_v9  ;;  %v9144_v44 = vadd.f32 %v21745_v54, %v9011_v13 }
 0x9be   : > { %v9887_v56 = vmax.f32 %v9751_v37, 0.0  ;;  %v9280_v43 = vmul.f32 0.1, %v9144_v44 }
 0x9c0   : > { %10023 = vst [vmem:[%s19612_s30 + $0x218] sm:$0xff] %v9887_v56  ;;  %v9416_v58 = vadd.f32 %v9280_v43, %v4099_v0 }
 0x9c1   : > { %v9012_v18 = vpop.f32.mrf.mxu0 }
 0x9c2   : > { %v9592_v14 = vmul.f32 %v21766_v17, %v9416_v58  ;;  %v9013_v62 = vadd.f32 %v9012_v18, %v8984_v38 }
 0x9c4   : > { %v9768_v34 = vadd.f32 %v21773_v60, %v9592_v14  ;;  %v9161_v63 = vadd.f32 %v21745_v54, %v9013_v62 }
 0x9c6   : > { %v9904_v36 = vmax.f32 %v9768_v34, 0.0  ;;  %v9297_v10 = vmul.f32 0.1, %v9161_v63 }
 0x9c8   : > { %10040 = vst [vmem:[%s19612_s30 + $0x2a0] sm:$0xff] %v9904_v36  ;;  %v9433_v11 = vadd.f32 %v9297_v10, %v4101_v19 }
 0x9c9   : > { %v9015_v49 = vpop.f32.mrf.mxu0 }
 0x9ca   : > { %v9609_v1 = vmul.f32 %v21766_v17, %v9433_v11  ;;  %v9016_v20 = vadd.f32 %v9015_v49, %v8987_v24 }
 0x9cc   : > { %v9785_v12 = vadd.f32 %v21773_v60, %v9609_v1  ;;  %v9178_v61 = vadd.f32 %v21745_v54, %v9016_v20 }
 0x9ce   : > { %v9921_v46 = vmax.f32 %v9785_v12, 0.0  ;;  %v9314_v15 = vmul.f32 0.1, %v9178_v61 }
 0x9d0   : > { %10057 = vst [vmem:[%s19612_s30 + $0x328] sm:$0xff] %v9921_v46  ;;  %v9450_v39 = vadd.f32 %v9314_v15, %v4104_v26 }
 0x9d1   : > { %v9017_v59 = vpop.f32.mrf.mxu0 }
 0x9d2   : > { %v9626_v55 = vmul.f32 %v21766_v17, %v9450_v39  ;;  %v9018_v3 = vadd.f32 %v9017_v59, %v8989_v21 }
 0x9d4   : > { %v9802_v47 = vadd.f32 %v21773_v60, %v9626_v55  ;;  %v9195_v33 = vadd.f32 %v21745_v54, %v9018_v3 }
 0x9d6   : > { %v9938_v32 = vmax.f32 %v9802_v47, 0.0  ;;  %v9331_v2 = vmul.f32 0.1, %v9195_v33 }
 0x9d8   : > { %10074 = vst [vmem:[%s19612_s30 + $0x3b0] sm:$0xff] %v9938_v32  ;;  %v9467_v52 = vadd.f32 %v9331_v2, %v4106_v28 }
 0x9da   : > { %v9643_v57 = vmul.f32 %v21766_v17, %v9467_v52 }
 0x9dc   : > { %v9819_v16 = vadd.f32 %v21773_v60, %v9643_v57 }
 0x9de   : > { %v9955_v54 = vmax.f32 %v9819_v16, 0.0 }
 0x9e0   : > { %10091 = vst [vmem:[%s19612_s30 + $0x438] sm:$0xff] %v9955_v54 }
 0x9e1   : > { %14086 = shalt.err (!%p14083_p3)
}
 0x9e2   : > { %s14123_s27 = smov 2176   ;;  %s14124_s30 = smov 136  }
 0x9e3   : > { %13998 = dma.vmem_to_hbm [thread:$0]  (%p14288_p5), %s10107_s6, 17408, %s10109_s2, %s10093_s0, %s14123_s27, %s14123_s27, %s14124_s30  }
 0x9e4 PF: > { %s22490_s8 = sld [smem:[#allocation7_spill]] }
 0x9e5   : > { %s22491_s11 = sld [smem:[#allocation5_spill]] }
 0x9ea   : > { %p14004_p4 = scmp.ge.s32.totalorder %s22490_s8, 2 }
 0x9eb   : > { %s10123_s5 = sand.u32 1, %s22491_s11  }
 0x9ec   : > { %p14001_p7 = pnand %p14004_p4, %p14292_p6  ;;  %s10124_s1 = scalar_lea.sflag [#allocation3], %s10123_s5 }
 0x9ee   : > { %p14002_p8 = pneg %p14001_p7 }
 0x9f0   : > { %14104 = dma.done.wait (%p14002_p8), %s10124_s1, 17408  }
 0x9f1   : > { %14106 = vsyncadd (%p14002_p8), %s10124_s1, 4294949888  ;;  %s22493_s28 = sld [smem:[#allocation8_spill]]  ;;  %s22496_s5 = smov %s14113_s26 }
 0x9f2   : > { %s22494_s7 = sld [smem:[#allocation6_spill]] }
 0x9f3   : > { %s22495_s27 = sld [smem:[#allocation9_spill]] }
 0x9f7   : > { %p34_p9 = scmp.ge.s32.totalorder %s22493_s28, 4  }
 0x9f8   : > { %s22497_s26 = smov %s22494_s7 }
 0x9f9   :  { %36 = sbr.rel (!%p34_p9) target bundleno = 17 (0x11), region = 155 }
 0x9fe   :  { %10130 = vsyncpa [#allocation3], 1 }
 0x9ff   :  { %10132 = vsyncpa [#allocation3 + $0x1], 1 }

</bundles_post_ra>
